<compile_context>
chip_gen: v6e
topology: v6e:2x2x1
jax: 0.10.0
libtpu: 0.0.40
codegen_flags: <defaults>
</compile_context>

<pallas_src>
import jax
import jax.numpy as jnp
from jax.experimental import pallas as pl
from jax.experimental.pallas import tpu as pltpu

_BN_EPS = 1e-5
# v7x-safe (64 MiB physical); could be raised to ~96-112 MiB on v5e/v6e if
# per-step image blocks are enlarged.
_VMEM_LIMIT_BYTES = 48 * 1024 * 1024


# ----------------------------------------------------------------------------
# Shared in-kernel helper: padded im2col patch slab for a block of B images.
# ----------------------------------------------------------------------------
def _im2col_patches(x, H, W):
    """x: (B, Cin, H, W) f32 -> (B, 9*Cin, H*W); pad=1 halo built in VMEM."""
    B, Cin = x.shape[0], x.shape[1]
    zc = jnp.zeros((B, Cin, H, 1), x.dtype)
    zr = jnp.zeros((B, Cin, 1, W + 2), x.dtype)
    xp = jnp.concatenate([zr, jnp.concatenate([zc, x, zc], axis=3), zr], axis=2)
    # TODO(synk): for large images, switch to a lane-dense (B, Cin, H*W) input
    # block with pltpu.roll + iota-mask tap construction to avoid these
    # slice+reshape relayouts and the 16/128-lane input tile.
    taps = [xp[:, :, dy:dy + H, dx:dx + W].reshape(B, Cin, H * W)
            for dy in range(3) for dx in range(3)]
    return jnp.concatenate(taps, axis=1)  # k = (dy*3 + dx)*Cin + ci


# ----------------------------------------------------------------------------
# Pass 1: conv recompute -> per-channel [sum, sum-of-squares] partials,
# accumulated in the resident (Cout, 2) output across the grid.
# ----------------------------------------------------------------------------
def _conv_stats_kernel(x_ref, w_ref, stats_ref):
    B, _, H, W = x_ref.shape
    Cout = w_ref.shape[0]
    patches = _im2col_patches(x_ref[...].astype(jnp.float32), H, W)
    w = w_ref[...]
    s_tot = jnp.zeros((Cout, 1), jnp.float32)
    q_tot = jnp.zeros((Cout, 1), jnp.float32)
    for b in range(B):  # static unroll over the images of this block
        y = jnp.dot(w, patches[b], preferred_element_type=jnp.float32)  # (Cout, H*W)
        s_tot = s_tot + jnp.sum(y, axis=1, keepdims=True)
        q_tot = q_tot + jnp.sum(y * y, axis=1, keepdims=True)

    @pl.when(pl.program_id(0) == 0)
    def _():
        stats_ref[...] = jnp.zeros_like(stats_ref)

    stats_ref[...] += jnp.concatenate([s_tot, q_tot], axis=1)  # (Cout, 2)


# ----------------------------------------------------------------------------
# Pass 2: conv recompute with BN scale folded into the weights, + bias, ReLU.
# Output stored lane-dense as (B, Cout, H*W) directly in NCHW order.
# ----------------------------------------------------------------------------
def _conv_bn_relu_kernel(x_ref, ws_ref, bias_ref, o_ref):
    B, _, H, W = x_ref.shape
    patches = _im2col_patches(x_ref[...].astype(jnp.float32), H, W)
    w = ws_ref[...]        # (Cout, 9*Cin), BN scale already folded in
    bias = bias_ref[...]   # (Cout, 1) broadcasts over the H*W lane dim
    for b in range(B):
        y = jnp.dot(w, patches[b], preferred_element_type=jnp.float32)  # (Cout, H*W)
        o_ref[b] = jnp.maximum(y + bias, 0.0).astype(o_ref.dtype)


# ----------------------------------------------------------------------------
# Images-per-step picker: batch enough images per grid step to amortize the
# per-step pipeline overhead (must divide N).
# ----------------------------------------------------------------------------
def _images_per_step(n, hw, target_positions=2048):
    # TODO(synk): query TensorCore count (v7x has 2) and cap at n//2 there so
    # the parallel pass-2 grid gets >= 2 steps; single-TC chips prefer 1 step.
    b_max = max(1, target_positions // max(hw, 1))
    best = 1
    for cand in range(1, n + 1):
        if n % cand == 0 and cand <= b_max:
            best = cand
    return best


# ----------------------------------------------------------------------------
# Public wrapper: PyTorch-style NCHW in / NCHW out, no layout relayouts.
# ----------------------------------------------------------------------------
@jax.jit
def conv_block_forward(x_nchw, w_oihw, gamma, beta):
    # TODO(synk): only stride=1 (the module default) is implemented; general
    # stride needs a strided output-position gather in the patch construction.
    N, Cin, H, W = x_nchw.shape
    Cout = w_oihw.shape[0]
    HW = H * W
    B = _images_per_step(N, HW)
    grid = (N // B,)

    # (Cout, Cin, 3, 3) -> (Cout, 3, 3, Cin) -> (Cout, 9*Cin); row ordering
    # (dy, dx, cin) matches the im2col concat order in the kernels.
    w_slab = jnp.transpose(w_oihw, (0, 2, 3, 1)).reshape(Cout, 9 * Cin).astype(jnp.float32)
    x_f32 = x_nchw.astype(jnp.float32)

    # --- Pass 1: per-channel conv-output statistics (no conv HBM write) -------
    stats = pl.pallas_call(
        _conv_stats_kernel,
        out_shape=jax.ShapeDtypeStruct((Cout, 2), jnp.float32),
        grid_spec=pltpu.PrefetchScalarGridSpec(
            num_scalar_prefetch=0,
            grid=grid,
            in_specs=[
                pl.BlockSpec((B, Cin, H, W), lambda i: (i, 0, 0, 0)),
                pl.BlockSpec((Cout, 9 * Cin), lambda i: (0, 0)),
            ],
            out_specs=pl.BlockSpec((Cout, 2), lambda i: (0, 0)),
        ),
        compiler_params=pltpu.CompilerParams(
            dimension_semantics=("arbitrary",),   # resident stats accumulator
            vmem_limit_bytes=_VMEM_LIMIT_BYTES,
        ),
    )(x_f32, w_slab)

    # --- Fold BN (training-mode stats, biased var) into scale/bias (O(Cout)) --
    # NOTE: E[x^2]-E[x]^2 in f32 is fine at these scales; use centered/Welford
    # accumulation if this block is ever run at very large N*H*W.
    count = jnp.float32(N * HW)
    mean = stats[:, 0] / count
    var = jnp.maximum(stats[:, 1] / count - mean * mean, 0.0)
    scale = gamma.astype(jnp.float32) * jax.lax.rsqrt(var + _BN_EPS)
    bias = beta.astype(jnp.float32) - mean * scale
    w_scaled = w_slab * scale[:, None]   # fold per-channel scale into the weights
    bias_col = bias[:, None]             # (Cout, 1)

    # --- Pass 2: recompute conv, add bias, ReLU, write final NCHW output ------
    out_flat = pl.pallas_call(
        _conv_bn_relu_kernel,
        out_shape=jax.ShapeDtypeStruct((N, Cout, HW), jnp.float32),
        grid_spec=pltpu.PrefetchScalarGridSpec(
            num_scalar_prefetch=0,
            grid=grid,
            in_specs=[
                pl.BlockSpec((B, Cin, H, W), lambda i: (i, 0, 0, 0)),
                pl.BlockSpec((Cout, 9 * Cin), lambda i: (0, 0)),
                pl.BlockSpec((Cout, 1), lambda i: (0, 0)),
            ],
            out_specs=pl.BlockSpec((B, Cout, HW), lambda i: (i, 0, 0)),
        ),
        compiler_params=pltpu.CompilerParams(
            dimension_semantics=("parallel",),
            vmem_limit_bytes=_VMEM_LIMIT_BYTES,
        ),
    )(x_f32, w_scaled, bias_col)

    # (N, Cout, H*W) -> (N, Cout, H, W): splits the contiguous minor dim => free.
    return out_flat.reshape(N, Cout, H, W)


# ----------------------------------------------------------------------------
# Pure-JAX reference (correctness check)
# ----------------------------------------------------------------------------
def conv_block_ref(x_nchw, w_oihw, gamma, beta):
    y = jax.lax.conv_general_dilated(
        x_nchw, w_oihw, window_strides=(1, 1), padding=((1, 1), (1, 1)),
        dimension_numbers=("NCHW", "OIHW", "NCHW"))
    mean = jnp.mean(y, axis=(0, 2, 3), keepdims=True)
    var = jnp.mean(jnp.square(y - mean), axis=(0, 2, 3), keepdims=True)
    yhat = (y - mean) * jax.lax.rsqrt(var + _BN_EPS)
    out = yhat * gamma.reshape(1, -1, 1, 1) + beta.reshape(1, -1, 1, 1)
    return jnp.maximum(out, 0.0)


if __name__ == "__main__":
    N, Cin, Cout, H, W = 2, 4, 8, 16, 16

    key = jax.random.PRNGKey(0)
    kx, kw, kg, kb = jax.random.split(key, 4)
    x = jax.random.normal(kx, (N, Cin, H, W), dtype=jnp.float32)
    w = jax.random.normal(kw, (Cout, Cin, 3, 3), dtype=jnp.float32) * 0.1
    gamma = 1.0 + 0.1 * jax.random.normal(kg, (Cout,), dtype=jnp.float32)
    beta = 0.1 * jax.random.normal(kb, (Cout,), dtype=jnp.float32)

    out = jax.block_until_ready(conv_block_forward(x, w, gamma, beta))
    ref = conv_block_ref(x, w, gamma, beta)

    assert out.shape == (N, Cout, H, W)
    assert jnp.max(jnp.abs(out - ref)) < 1e-3, "mismatch vs reference"

    print("KERNEL_OK")
</pallas_src>

<mosaic_0001>
module attributes {stable_mosaic.version = 11 : i64} {
  func.func @_conv_stats_kernel(%arg0: i32, %arg1: memref<2x4x16x16xf32, #tpu.memory_space<vmem>>, %arg2: memref<8x36xf32, #tpu.memory_space<vmem>>, %arg3: memref<8x2xf32, #tpu.memory_space<vmem>>) attributes {dimension_semantics = [#tpu.dimension_semantics<arbitrary>], iteration_bounds = array<i64: 1>, scalar_prefetch = 0 : i64, scratch_operands = 0 : i64, tpu.core_type = #tpu.core_type<tc>, window_params = [{transform_indices = @transform_0, window_bounds = array<i64: 2, 4, 16, 16>}, {pipeline_mode = #tpu.pipeline_mode<synchronous>, transform_indices = @transform_1, window_bounds = array<i64: 8, 36>}, {pipeline_mode = #tpu.pipeline_mode<synchronous>, transform_indices = @transform_2, window_bounds = array<i64: 8, 2>}]} {
    %c0 = arith.constant 0 : index
    %c0_0 = arith.constant 0 : index
    %c0_1 = arith.constant 0 : index
    %c0_2 = arith.constant 0 : index
    %0 = vector.load %arg1[%c0, %c0_0, %c0_1, %c0_2] : memref<2x4x16x16xf32, #tpu.memory_space<vmem>>, vector<2x4x16x16xf32>
    %cst = arith.constant 0.000000e+00 : f32
    %1 = vector.broadcast %cst : f32 to vector<2x4x16x1xf32>
    %cst_3 = arith.constant 0.000000e+00 : f32
    %2 = vector.broadcast %cst_3 : f32 to vector<2x4x1x18xf32>
    %3 = tpu.concatenate %1, %0, %1 in 3 : vector<2x4x16x1xf32>, vector<2x4x16x16xf32>, vector<2x4x16x1xf32> -> vector<2x4x16x18xf32>
    %4 = tpu.concatenate %2, %3, %2 in 2 : vector<2x4x1x18xf32>, vector<2x4x16x18xf32>, vector<2x4x1x18xf32> -> vector<2x4x18x18xf32>
    %5 = vector.extract_strided_slice %4 {offsets = [0, 0, 0, 0], sizes = [2, 4, 16, 16], strides = [1, 1, 1, 1]} : vector<2x4x18x18xf32> to vector<2x4x16x16xf32>
    %6 = vector.shape_cast %5 : vector<2x4x16x16xf32> to vector<2x4x256xf32>
    %7 = vector.extract_strided_slice %4 {offsets = [0, 0, 0, 1], sizes = [2, 4, 16, 16], strides = [1, 1, 1, 1]} : vector<2x4x18x18xf32> to vector<2x4x16x16xf32>
    %8 = vector.shape_cast %7 : vector<2x4x16x16xf32> to vector<2x4x256xf32>
    %9 = vector.extract_strided_slice %4 {offsets = [0, 0, 0, 2], sizes = [2, 4, 16, 16], strides = [1, 1, 1, 1]} : vector<2x4x18x18xf32> to vector<2x4x16x16xf32>
    %10 = vector.shape_cast %9 : vector<2x4x16x16xf32> to vector<2x4x256xf32>
    %11 = vector.extract_strided_slice %4 {offsets = [0, 0, 1, 0], sizes = [2, 4, 16, 16], strides = [1, 1, 1, 1]} : vector<2x4x18x18xf32> to vector<2x4x16x16xf32>
    %12 = vector.shape_cast %11 : vector<2x4x16x16xf32> to vector<2x4x256xf32>
    %13 = vector.extract_strided_slice %4 {offsets = [0, 0, 1, 1], sizes = [2, 4, 16, 16], strides = [1, 1, 1, 1]} : vector<2x4x18x18xf32> to vector<2x4x16x16xf32>
    %14 = vector.shape_cast %13 : vector<2x4x16x16xf32> to vector<2x4x256xf32>
    %15 = vector.extract_strided_slice %4 {offsets = [0, 0, 1, 2], sizes = [2, 4, 16, 16], strides = [1, 1, 1, 1]} : vector<2x4x18x18xf32> to vector<2x4x16x16xf32>
    %16 = vector.shape_cast %15 : vector<2x4x16x16xf32> to vector<2x4x256xf32>
    %17 = vector.extract_strided_slice %4 {offsets = [0, 0, 2, 0], sizes = [2, 4, 16, 16], strides = [1, 1, 1, 1]} : vector<2x4x18x18xf32> to vector<2x4x16x16xf32>
    %18 = vector.shape_cast %17 : vector<2x4x16x16xf32> to vector<2x4x256xf32>
    %19 = vector.extract_strided_slice %4 {offsets = [0, 0, 2, 1], sizes = [2, 4, 16, 16], strides = [1, 1, 1, 1]} : vector<2x4x18x18xf32> to vector<2x4x16x16xf32>
    %20 = vector.shape_cast %19 : vector<2x4x16x16xf32> to vector<2x4x256xf32>
    %21 = vector.extract_strided_slice %4 {offsets = [0, 0, 2, 2], sizes = [2, 4, 16, 16], strides = [1, 1, 1, 1]} : vector<2x4x18x18xf32> to vector<2x4x16x16xf32>
    %22 = vector.shape_cast %21 : vector<2x4x16x16xf32> to vector<2x4x256xf32>
    %23 = tpu.concatenate %6, %8, %10, %12, %14, %16, %18, %20, %22 in 1 : vector<2x4x256xf32>, vector<2x4x256xf32>, vector<2x4x256xf32>, vector<2x4x256xf32>, vector<2x4x256xf32>, vector<2x4x256xf32>, vector<2x4x256xf32>, vector<2x4x256xf32>, vector<2x4x256xf32> -> vector<2x36x256xf32>
    %c0_4 = arith.constant 0 : index
    %c0_5 = arith.constant 0 : index
    %24 = vector.load %arg2[%c0_4, %c0_5] : memref<8x36xf32, #tpu.memory_space<vmem>>, vector<8x36xf32>
    %cst_6 = arith.constant 0.000000e+00 : f32
    %25 = vector.broadcast %cst_6 : f32 to vector<8x1xf32>
    %cst_7 = arith.constant 0.000000e+00 : f32
    %26 = vector.broadcast %cst_7 : f32 to vector<8x1xf32>
    %27 = vector.extract_strided_slice %23 {offsets = [0, 0, 0], sizes = [1, 36, 256], strides = [1, 1, 1]} : vector<2x36x256xf32> to vector<1x36x256xf32>
    %28 = vector.shape_cast %27 : vector<1x36x256xf32> to vector<36x256xf32>
    %cst_8 = arith.constant dense<0.000000e+00> : vector<8x256xf32>
    %29 = tpu.matmul %24, %28, %cst_8 {dimension_numbers = #tpu.dot_dimension_numbers<[1], [0], [0], [1], [0, 0, 1, 1], [], []>} : vector<8x36xf32>, vector<36x256xf32>, vector<8x256xf32> -> vector<8x256xf32>
    %cst_9 = arith.constant dense<0.000000e+00> : vector<8xf32>
    %30 = vector.multi_reduction <add>, %29, %cst_9 [1] : vector<8x256xf32> to vector<8xf32>
    %31 = vector.shape_cast %30 : vector<8xf32> to vector<8x1xf32>
    %32 = arith.addf %25, %31 : vector<8x1xf32>
    %33 = arith.mulf %29, %29 : vector<8x256xf32>
    %cst_10 = arith.constant dense<0.000000e+00> : vector<8xf32>
    %34 = vector.multi_reduction <add>, %33, %cst_10 [1] : vector<8x256xf32> to vector<8xf32>
    %35 = vector.shape_cast %34 : vector<8xf32> to vector<8x1xf32>
    %36 = arith.addf %26, %35 : vector<8x1xf32>
    %37 = vector.extract_strided_slice %23 {offsets = [1, 0, 0], sizes = [1, 36, 256], strides = [1, 1, 1]} : vector<2x36x256xf32> to vector<1x36x256xf32>
    %38 = vector.shape_cast %37 : vector<1x36x256xf32> to vector<36x256xf32>
    %cst_11 = arith.constant dense<0.000000e+00> : vector<8x256xf32>
    %39 = tpu.matmul %24, %38, %cst_11 {dimension_numbers = #tpu.dot_dimension_numbers<[1], [0], [0], [1], [0, 0, 1, 1], [], []>} : vector<8x36xf32>, vector<36x256xf32>, vector<8x256xf32> -> vector<8x256xf32>
    %cst_12 = arith.constant dense<0.000000e+00> : vector<8xf32>
    %40 = vector.multi_reduction <add>, %39, %cst_12 [1] : vector<8x256xf32> to vector<8xf32>
    %41 = vector.shape_cast %40 : vector<8xf32> to vector<8x1xf32>
    %42 = arith.addf %32, %41 : vector<8x1xf32>
    %43 = arith.mulf %39, %39 : vector<8x256xf32>
    %cst_13 = arith.constant dense<0.000000e+00> : vector<8xf32>
    %44 = vector.multi_reduction <add>, %43, %cst_13 [1] : vector<8x256xf32> to vector<8xf32>
    %45 = vector.shape_cast %44 : vector<8xf32> to vector<8x1xf32>
    %46 = arith.addf %36, %45 : vector<8x1xf32>
    %c0_i32 = arith.constant 0 : i32
    %47 = arith.cmpi eq, %arg0, %c0_i32 : i32
    %48 = arith.extui %47 : i1 to i32
    %c0_i32_14 = arith.constant 0 : i32
    %49 = arith.cmpi ne, %48, %c0_i32_14 : i32
    scf.if %49 {
      %cst_19 = arith.constant 0.000000e+00 : f32
      %54 = vector.broadcast %cst_19 : f32 to vector<8x2xf32>
      %c0_20 = arith.constant 0 : index
      %c0_21 = arith.constant 0 : index
      %55 = vector.load %arg3[%c0_20, %c0_21] : memref<8x2xf32, #tpu.memory_space<vmem>>, vector<8x2xf32>
      tpu.vector_store %arg3[%c0_20, %c0_21], %54 {strides = array<i32>} : memref<8x2xf32, #tpu.memory_space<vmem>>, vector<8x2xf32>,
    } else {
    }
    %c0_15 = arith.constant 0 : index
    %c0_16 = arith.constant 0 : index
    %50 = vector.load %arg3[%c0_15, %c0_16] : memref<8x2xf32, #tpu.memory_space<vmem>>, vector<8x2xf32>
    %51 = tpu.concatenate %42, %46 in 1 : vector<8x1xf32>, vector<8x1xf32> -> vector<8x2xf32>
    %52 = arith.addf %50, %51 : vector<8x2xf32>
    %c0_17 = arith.constant 0 : index
    %c0_18 = arith.constant 0 : index
    %53 = vector.load %arg3[%c0_17, %c0_18] : memref<8x2xf32, #tpu.memory_space<vmem>>, vector<8x2xf32>
    tpu.vector_store %arg3[%c0_17, %c0_18], %52 {strides = array<i32>} : memref<8x2xf32, #tpu.memory_space<vmem>>, vector<8x2xf32>,
    return
  }
  func.func @transform_0(%arg0: i32) -> (i32, i32, i32, i32) {
    %c0_i32 = arith.constant 0 : i32
    %c0_i32_0 = arith.constant 0 : i32
    %c0_i32_1 = arith.constant 0 : i32
    %c0_i32_2 = arith.constant 0 : i32
    return %arg0, %c0_i32, %c0_i32_0, %c0_i32_1 : i32, i32, i32, i32
  }
  func.func @transform_1(%arg0: i32) -> (i32, i32) {
    %c0_i32 = arith.constant 0 : i32
    %c0_i32_0 = arith.constant 0 : i32
    %c0_i32_1 = arith.constant 0 : i32
    return %c0_i32, %c0_i32_0 : i32, i32
  }
  func.func @transform_2(%arg0: i32) -> (i32, i32) {
    %c0_i32 = arith.constant 0 : i32
    %c0_i32_0 = arith.constant 0 : i32
    %c0_i32_1 = arith.constant 0 : i32
    return %c0_i32, %c0_i32_0 : i32, i32
  }
}

module attributes {stable_mosaic.version = 11 : i64} {
  func.func @_conv_bn_relu_kernel(%arg0: i32, %arg1: memref<2x4x16x16xf32, #tpu.memory_space<vmem>>, %arg2: memref<8x36xf32, #tpu.memory_space<vmem>>, %arg3: memref<8x1xf32, #tpu.memory_space<vmem>>, %arg4: memref<2x8x256xf32, #tpu.memory_space<vmem>>) attributes {dimension_semantics = [#tpu.dimension_semantics<parallel>], iteration_bounds = array<i64: 1>, scalar_prefetch = 0 : i64, scratch_operands = 0 : i64, tpu.core_type = #tpu.core_type<tc>, window_params = [{transform_indices = @transform_0, window_bounds = array<i64: 2, 4, 16, 16>}, {pipeline_mode = #tpu.pipeline_mode<synchronous>, transform_indices = @transform_1, window_bounds = array<i64: 8, 36>}, {pipeline_mode = #tpu.pipeline_mode<synchronous>, transform_indices = @transform_2, window_bounds = array<i64: 8, 1>}, {transform_indices = @transform_3, window_bounds = array<i64: 2, 8, 256>}]} {
    %c0 = arith.constant 0 : index
    %c0_0 = arith.constant 0 : index
    %c0_1 = arith.constant 0 : index
    %c0_2 = arith.constant 0 : index
    %0 = vector.load %arg1[%c0, %c0_0, %c0_1, %c0_2] : memref<2x4x16x16xf32, #tpu.memory_space<vmem>>, vector<2x4x16x16xf32>
    %cst = arith.constant 0.000000e+00 : f32
    %1 = vector.broadcast %cst : f32 to vector<2x4x16x1xf32>
    %cst_3 = arith.constant 0.000000e+00 : f32
    %2 = vector.broadcast %cst_3 : f32 to vector<2x4x1x18xf32>
    %3 = tpu.concatenate %1, %0, %1 in 3 : vector<2x4x16x1xf32>, vector<2x4x16x16xf32>, vector<2x4x16x1xf32> -> vector<2x4x16x18xf32>
    %4 = tpu.concatenate %2, %3, %2 in 2 : vector<2x4x1x18xf32>, vector<2x4x16x18xf32>, vector<2x4x1x18xf32> -> vector<2x4x18x18xf32>
    %5 = vector.extract_strided_slice %4 {offsets = [0, 0, 0, 0], sizes = [2, 4, 16, 16], strides = [1, 1, 1, 1]} : vector<2x4x18x18xf32> to vector<2x4x16x16xf32>
    %6 = vector.shape_cast %5 : vector<2x4x16x16xf32> to vector<2x4x256xf32>
    %7 = vector.extract_strided_slice %4 {offsets = [0, 0, 0, 1], sizes = [2, 4, 16, 16], strides = [1, 1, 1, 1]} : vector<2x4x18x18xf32> to vector<2x4x16x16xf32>
    %8 = vector.shape_cast %7 : vector<2x4x16x16xf32> to vector<2x4x256xf32>
    %9 = vector.extract_strided_slice %4 {offsets = [0, 0, 0, 2], sizes = [2, 4, 16, 16], strides = [1, 1, 1, 1]} : vector<2x4x18x18xf32> to vector<2x4x16x16xf32>
    %10 = vector.shape_cast %9 : vector<2x4x16x16xf32> to vector<2x4x256xf32>
    %11 = vector.extract_strided_slice %4 {offsets = [0, 0, 1, 0], sizes = [2, 4, 16, 16], strides = [1, 1, 1, 1]} : vector<2x4x18x18xf32> to vector<2x4x16x16xf32>
    %12 = vector.shape_cast %11 : vector<2x4x16x16xf32> to vector<2x4x256xf32>
    %13 = vector.extract_strided_slice %4 {offsets = [0, 0, 1, 1], sizes = [2, 4, 16, 16], strides = [1, 1, 1, 1]} : vector<2x4x18x18xf32> to vector<2x4x16x16xf32>
    %14 = vector.shape_cast %13 : vector<2x4x16x16xf32> to vector<2x4x256xf32>
    %15 = vector.extract_strided_slice %4 {offsets = [0, 0, 1, 2], sizes = [2, 4, 16, 16], strides = [1, 1, 1, 1]} : vector<2x4x18x18xf32> to vector<2x4x16x16xf32>
    %16 = vector.shape_cast %15 : vector<2x4x16x16xf32> to vector<2x4x256xf32>
    %17 = vector.extract_strided_slice %4 {offsets = [0, 0, 2, 0], sizes = [2, 4, 16, 16], strides = [1, 1, 1, 1]} : vector<2x4x18x18xf32> to vector<2x4x16x16xf32>
    %18 = vector.shape_cast %17 : vector<2x4x16x16xf32> to vector<2x4x256xf32>
    %19 = vector.extract_strided_slice %4 {offsets = [0, 0, 2, 1], sizes = [2, 4, 16, 16], strides = [1, 1, 1, 1]} : vector<2x4x18x18xf32> to vector<2x4x16x16xf32>
    %20 = vector.shape_cast %19 : vector<2x4x16x16xf32> to vector<2x4x256xf32>
    %21 = vector.extract_strided_slice %4 {offsets = [0, 0, 2, 2], sizes = [2, 4, 16, 16], strides = [1, 1, 1, 1]} : vector<2x4x18x18xf32> to vector<2x4x16x16xf32>
    %22 = vector.shape_cast %21 : vector<2x4x16x16xf32> to vector<2x4x256xf32>
    %23 = tpu.concatenate %6, %8, %10, %12, %14, %16, %18, %20, %22 in 1 : vector<2x4x256xf32>, vector<2x4x256xf32>, vector<2x4x256xf32>, vector<2x4x256xf32>, vector<2x4x256xf32>, vector<2x4x256xf32>, vector<2x4x256xf32>, vector<2x4x256xf32>, vector<2x4x256xf32> -> vector<2x36x256xf32>
    %c0_4 = arith.constant 0 : index
    %c0_5 = arith.constant 0 : index
    %24 = vector.load %arg2[%c0_4, %c0_5] : memref<8x36xf32, #tpu.memory_space<vmem>>, vector<8x36xf32>
    %c0_6 = arith.constant 0 : index
    %c0_7 = arith.constant 0 : index
    %25 = vector.load %arg3[%c0_6, %c0_7] : memref<8x1xf32, #tpu.memory_space<vmem>>, vector<8x1xf32>
    %26 = vector.extract_strided_slice %23 {offsets = [0, 0, 0], sizes = [1, 36, 256], strides = [1, 1, 1]} : vector<2x36x256xf32> to vector<1x36x256xf32>
    %27 = vector.shape_cast %26 : vector<1x36x256xf32> to vector<36x256xf32>
    %cst_8 = arith.constant dense<0.000000e+00> : vector<8x256xf32>
    %28 = tpu.matmul %24, %27, %cst_8 {dimension_numbers = #tpu.dot_dimension_numbers<[1], [0], [0], [1], [0, 0, 1, 1], [], []>} : vector<8x36xf32>, vector<36x256xf32>, vector<8x256xf32> -> vector<8x256xf32>
    %29 = vector.broadcast %25 : vector<8x1xf32> to vector<8x256xf32>
    %30 = arith.addf %28, %29 : vector<8x256xf32>
    %cst_9 = arith.constant 0.000000e+00 : f32
    %31 = vector.broadcast %cst_9 : f32 to vector<8x256xf32>
    %32 = arith.maximumf %30, %31 : vector<8x256xf32>
    %c0_10 = arith.constant 0 : index
    %c0_11 = arith.constant 0 : index
    %c0_12 = arith.constant 0 : index
    %33 = vector.load %arg4[%c0_10, %c0_11, %c0_12] : memref<2x8x256xf32, #tpu.memory_space<vmem>>, vector<1x8x256xf32>
    %34 = vector.shape_cast %33 : vector<1x8x256xf32> to vector<8x256xf32>
    %35 = vector.shape_cast %32 : vector<8x256xf32> to vector<1x8x256xf32>
    tpu.vector_store %arg4[%c0_10, %c0_11, %c0_12], %35 {strides = array<i32>} : memref<2x8x256xf32, #tpu.memory_space<vmem>>, vector<1x8x256xf32>,
    %36 = vector.extract_strided_slice %23 {offsets = [1, 0, 0], sizes = [1, 36, 256], strides = [1, 1, 1]} : vector<2x36x256xf32> to vector<1x36x256xf32>
    %37 = vector.shape_cast %36 : vector<1x36x256xf32> to vector<36x256xf32>
    %cst_13 = arith.constant dense<0.000000e+00> : vector<8x256xf32>
    %38 = tpu.matmul %24, %37, %cst_13 {dimension_numbers = #tpu.dot_dimension_numbers<[1], [0], [0], [1], [0, 0, 1, 1], [], []>} : vector<8x36xf32>, vector<36x256xf32>, vector<8x256xf32> -> vector<8x256xf32>
    %39 = vector.broadcast %25 : vector<8x1xf32> to vector<8x256xf32>
    %40 = arith.addf %38, %39 : vector<8x256xf32>
    %cst_14 = arith.constant 0.000000e+00 : f32
    %41 = vector.broadcast %cst_14 : f32 to vector<8x256xf32>
    %42 = arith.maximumf %40, %41 : vector<8x256xf32>
    %c1 = arith.constant 1 : index
    %c0_15 = arith.constant 0 : index
    %c0_16 = arith.constant 0 : index
    %43 = vector.load %arg4[%c1, %c0_15, %c0_16] : memref<2x8x256xf32, #tpu.memory_space<vmem>>, vector<1x8x256xf32>
    %44 = vector.shape_cast %43 : vector<1x8x256xf32> to vector<8x256xf32>
    %45 = vector.shape_cast %42 : vector<8x256xf32> to vector<1x8x256xf32>
    tpu.vector_store %arg4[%c1, %c0_15, %c0_16], %45 {strides = array<i32>} : memref<2x8x256xf32, #tpu.memory_space<vmem>>, vector<1x8x256xf32>,
    return
  }
  func.func @transform_0(%arg0: i32) -> (i32, i32, i32, i32) {
    %c0_i32 = arith.constant 0 : i32
    %c0_i32_0 = arith.constant 0 : i32
    %c0_i32_1 = arith.constant 0 : i32
    %c0_i32_2 = arith.constant 0 : i32
    return %arg0, %c0_i32, %c0_i32_0, %c0_i32_1 : i32, i32, i32, i32
  }
  func.func @transform_1(%arg0: i32) -> (i32, i32) {
    %c0_i32 = arith.constant 0 : i32
    %c0_i32_0 = arith.constant 0 : i32
    %c0_i32_1 = arith.constant 0 : i32
    return %c0_i32, %c0_i32_0 : i32, i32
  }
  func.func @transform_2(%arg0: i32) -> (i32, i32) {
    %c0_i32 = arith.constant 0 : i32
    %c0_i32_0 = arith.constant 0 : i32
    %c0_i32_1 = arith.constant 0 : i32
    return %c0_i32, %c0_i32_0 : i32, i32
  }
  func.func @transform_3(%arg0: i32) -> (i32, i32, i32) {
    %c0_i32 = arith.constant 0 : i32
    %c0_i32_0 = arith.constant 0 : i32
    %c0_i32_1 = arith.constant 0 : i32
    return %arg0, %c0_i32, %c0_i32_0 : i32, i32, i32
  }
}

</mosaic_0001>

<bundles_post_ra>
// kernel: conv_block_forward.3
= control target key start
LH: loop header
LB: loop body
LE: loop exit
PB: predicated region body
PF: predicated region fallthrough
CT: control target
= control target key end

     0   :  { %s4608_s16 = smov 1   ;;  %v7844_v16 = vmov 0.0   ;;  %vm94_vm0 = vcmask 7168   ;;  %vm111_vm1 = vcmask 138240   ;;  %vm144_vm2 = vcmask 1040384   ;;  %s4614_s19 = smov 32   ;;  %s7836_s0 = inlined_call_operand.vmem [shape: f32[2,4,16,16], index: 0, kind: input, shape index: {}]   ;;  %s7837_s2 = inlined_call_operand.vmem [shape: f32[8,1], index: 2, kind: input, shape index: {}]   ;;  %s7838_s1 = inlined_call_operand.vmem [shape: f32[8,36], index: 1, kind: input, shape index: {}]   ;;  %s7839_s3 = inlined_call_operand.vmem [shape: f32[2,8,256], index: 3, kind: output, shape index: {}]  }
   0x1   :  { %v16_v0 = vld [vmem:[%s7836_s0 + $0x10] sm:$0xff]  ;;  %v14_v1 = vld [vmem:[%s7836_s0] sm:$0xff]  ;;  %v17_v2 = vld [vmem:[%s7836_s0 + $0x18] sm:$0xff]  ;;  %4569 = vmatprep.mubr.f32.mxu1 %v7844_v16  ;;  %4488 = vmatprep.mubr.f32.mxu0 %v7844_v16  ;;  %vm1564_vm3 = vcmask 1046528   ;;  %s4615_s20 = smov 64   ;;  %s4616_s21 = smov 96  }
   0x2   :  { %50 = vrot.lane.b32.xlu1 %v16_v0, %s4608_s16  ;;  %46 = vrot.lane.b32.xlu0 %v14_v1, %s4608_s16  ;;  %v15_v3 = vld [vmem:[%s7836_s0 + $0x8] sm:$0xff]  ;;  %v18_v5 = vld [vmem:[%s7836_s0 + $0x20] sm:$0xff]  ;;  %vm2953_vm4 = vcmask 1045504   ;;  %s4617_s22 = smov 16   ;;  %s4618_s23 = smov 48   ;;  %vm593_vm5 = vcmask 130048  }
   0x3   :  { %v19_v4 = vld [vmem:[%s7836_s0 + $0x28] sm:$0xff]  ;;  %v21_v6 = vld [vmem:[%s7836_s0 + $0x38] sm:$0xff]  ;;  %v20_v7 = vld [vmem:[%s7836_s0 + $0x30] sm:$0xff]  ;;  %s4619_s24 = smov 80   ;;  %s4620_s25 = smov 112   ;;  %vm596_vm6 = vcmask 261120  }
   0x4   :  { %v23_v8 = vld [vmem:[%s7836_s0 + $0x48] sm:$0xff]  ;;  %v22_v9 = vld [vmem:[%s7836_s0 + $0x40] sm:$0xff]  ;;  %v25_v10 = vld [vmem:[%s7836_s0 + $0x58] sm:$0xff]  ;;  %vm599_vm7 = vcmask 392192   ;;  %vm602_vm8 = vcmask 523264   ;;  %vm605_vm9 = vcmask 654336  }
   0x5   :  { %v24_v11 = vld [vmem:[%s7836_s0 + $0x50] sm:$0xff]  ;;  %v27_v12 = vld [vmem:[%s7836_s0 + $0x68] sm:$0xff]  ;;  %v26_v13 = vld [vmem:[%s7836_s0 + $0x60] sm:$0xff]  ;;  %vm608_vm10 = vcmask 785408   ;;  %vm611_vm11 = vcmask 916480   ;;  %vm4390_vm12 = vcmask 1043456  }
   0x6   :  { %52 = vrot.lane.b32.xlu1 %v17_v2, %s4608_s16  ;;  %48 = vrot.lane.b32.xlu0 %v15_v3, %s4608_s16  ;;  %v29_v14 = vld [vmem:[%s7836_s0 + $0x78] sm:$0xff]  ;;  %v28_v15 = vld [vmem:[%s7836_s0 + $0x70] sm:$0xff]  ;;  %s4610_s0 = smov 127   ;;  %vm4414_vm13 = vcmask 293888  }
   0xa   :  { %56 = vrot.lane.b32.xlu1 %v19_v4, %s4608_s16  ;;  %54 = vrot.lane.b32.xlu0 %v18_v5, %s4608_s16 }
   0xe   :  { %60 = vrot.lane.b32.xlu1 %v21_v6, %s4608_s16  ;;  %58 = vrot.lane.b32.xlu0 %v20_v7, %s4608_s16 }
  0x12   :  { %64 = vrot.lane.b32.xlu1 %v23_v8, %s4608_s16  ;;  %62 = vrot.lane.b32.xlu0 %v22_v9, %s4608_s16 }
  0x16   :  { %68 = vrot.lane.b32.xlu1 %v25_v10, %s4608_s16  ;;  %66 = vrot.lane.b32.xlu0 %v24_v11, %s4608_s16 }
  0x1a   :  { %72 = vrot.lane.b32.xlu1 %v27_v12, %s4608_s16  ;;  %70 = vrot.lane.b32.xlu0 %v26_v13, %s4608_s16 }
  0x1e   :  { %76 = vrot.lane.b32.xlu1 %v29_v14, %s4608_s16  ;;  %74 = vrot.lane.b32.xlu0 %v28_v15, %s4608_s16  ;;  %s4612_s16 = smov 126  }
  0x74   :  { %v51_v17 = vpop.permute.xlu1 %50  ;;  %v47_v18 = vpop.permute.xlu0 %46 }
  0x75   :  { %v97_v19 = vsel %vm94_vm0, 0.0, %v51_v17  ;;  %v95_v20 = vsel %vm94_vm0, 0.0, %v47_v18 }
  0x76   :  { %v114_v21 = vsel %vm111_vm1, %v97_v19, 0.0  ;;  %v112_v22 = vsel %vm111_vm1, %v95_v20, 0.0 }
  0x77   :  { %v148_v23 = vrot.slane %v114_v21, 7  ;;  %v145_v24 = vrot.slane %v112_v22, 7 }
  0x78   :  { %v53_v25 = vpop.permute.xlu1 %52  ;;  %v49_v26 = vpop.permute.xlu0 %48 }
  0x79   :  { %v4697_v27 = vsel %vm144_vm2, 0.0, %v145_v24  ;;  %v98_v28 = vsel %vm94_vm0, 0.0, %v53_v25  ;;  %v96_v29 = vsel %vm94_vm0, 0.0, %v49_v26  ;;  %v4706_v32 = vsel %vm144_vm2, 0.0, %v148_v23 }
  0x7a   :  { %v115_v30 = vsel %vm111_vm1, %v98_v28, 0.0  ;;  %v113_v31 = vsel %vm111_vm1, %v96_v29, 0.0  ;;  %636 = vrot.lane.b32.xlu0 %v4697_v27, %s4610_s0  ;;  %v1570_v41 = vrot.slane %v4706_v32, 1 }
  0x7b   :  { %v149_v33 = vrot.slane %v115_v30, 7  ;;  %v146_v34 = vrot.slane %v113_v31, 7 }
  0x7c   :  { %v57_v35 = vpop.permute.xlu1 %56  ;;  %v55_v36 = vpop.permute.xlu0 %54 }
  0x7d   :  { %v4709_v37 = vsel %vm144_vm2, %v148_v23, %v149_v33  ;;  %v4712_v38 = vsel %vm144_vm2, %v149_v33, 0.0  ;;  %v4715_v39 = vsel %vm144_vm2, %v145_v24, %v146_v34  ;;  %v4718_v40 = vsel %vm144_vm2, %v146_v34, 0.0 }
  0x7e   :  { %v1571_v42 = vrot.slane %v4709_v37, 1  ;;  %v1573_v43 = vrot.slane %v4712_v38, 1  ;;  %640 = vrot.lane.b32.xlu0 %v4706_v32, %s4610_s0  ;;  %638 = vrot.lane.b32.xlu1 %v4715_v39, %s4610_s0  ;;  %v100_v44 = vsel %vm94_vm0, 0.0, %v57_v35  ;;  %v99_v45 = vsel %vm94_vm0, 0.0, %v55_v36 }
  0x7f   :  { %v117_v47 = vsel %vm111_vm1, %v100_v44, 0.0  ;;  %v116_v48 = vsel %vm111_vm1, %v99_v45, 0.0 }
  0x80   :  { %v4730_v46 = vsel %vm1564_vm3, %v1571_v42, %v1573_v43  ;;  %v61_v49 = vpop.permute.xlu1 %60  ;;  %v59_v50 = vpop.permute.xlu0 %58  ;;  %v152_v51 = vrot.slane %v117_v47, 7  ;;  %v151_v52 = vrot.slane %v116_v48, 7  ;;  %v4740_v56 = vsel %vm1564_vm3, %v1570_v41, %v1571_v42 }
  0x81   :  { %v102_v53 = vsel %vm94_vm0, 0.0, %v61_v49  ;;  %v101_v55 = vsel %vm94_vm0, 0.0, %v59_v50 }
  0x82   :  { %v119_v54 = vsel %vm111_vm1, %v102_v53, 0.0  ;;  %642 = vrot.lane.b32.xlu1 %v4709_v37, %s4610_s0  ;;  %v4743_v57 = vsel %vm144_vm2, %v152_v51, 0.0  ;;  %v4746_v58 = vsel %vm144_vm2, 0.0, %v151_v52  ;;  %v4749_v60 = vsel %vm144_vm2, %v151_v52, %v152_v51 }
  0x83   :  { %v155_v59 = vrot.slane %v119_v54, 7  ;;  %644 = vrot.lane.b32.xlu0 %v4746_v58, %s4610_s0  ;;  %v118_v0 = vsel %vm111_vm1, %v101_v55, 0.0 }
  0x84   :  { %v65_v61 = vpop.permute.xlu1 %64  ;;  %v63_v62 = vpop.permute.xlu0 %62  ;;  %v154_v3 = vrot.slane %v118_v0, 7  ;;  %v214_v0 = vlaneseq }
  0x85   :  { %v4754_v63 = vsel %vm144_vm2, %v155_v59, 0.0  ;;  %v104_v1 = vsel %vm94_vm0, 0.0, %v65_v61  ;;  %v103_v2 = vsel %vm94_vm0, 0.0, %v63_v62  ;;  %v4611_v61 = vmov 1983009808  }
  0x86   :  { %646 = vrot.lane.b32.xlu1 %v4749_v60, %s4610_s0  ;;  %v121_v4 = vsel %vm111_vm1, %v104_v1, 0.0  ;;  %v120_v5 = vsel %vm111_vm1, %v103_v2, 0.0  ;;  %v4764_v6 = vsel %vm144_vm2, %v154_v3, %v155_v59  ;;  %v4767_v7 = vsel %vm144_vm2, 0.0, %v154_v3 }
  0x87   :  { %v158_v8 = vrot.slane %v121_v4, 7  ;;  %v157_v9 = vrot.slane %v120_v5, 7  ;;  %v1580_v12 = vrot.slane %v4767_v7, 1  ;;  %v1581_v13 = vrot.slane %v4764_v6, 1  ;;  %648 = vrot.lane.b32.xlu0 %v4767_v7, %s4610_s0 }
  0x88   :  { %v69_v10 = vpop.permute.xlu1 %68  ;;  %v67_v11 = vpop.permute.xlu0 %66  ;;  %v212_v62 = vunpack.c.l.s4 %v4611_v61  ;;  %v215_v2 = vshrl.u32 %v214_v0, 7  ;;  %v225_v3 = vcombine.low %v4706_v32, %v4767_v7  ;;  %v4613_v4 = vmov 1934713408  }
  0x89   :  { %v106_v14 = vsel %vm94_vm0, 0.0, %v69_v10  ;;  %v105_v15 = vsel %vm94_vm0, 0.0, %v67_v11  ;;  %v4776_v17 = vsel %vm144_vm2, %v158_v8, 0.0  ;;  %v4779_v18 = vsel %vm144_vm2, 0.0, %v157_v9 }
  0x8a   :  { %v123_v19 = vsel %vm111_vm1, %v106_v14, 0.0  ;;  %650 = vrot.lane.b32.xlu1 %v4764_v6, %s4610_s0  ;;  %v4787_v20 = vsel %vm1564_vm3, %v1580_v12, %v1581_v13  ;;  %v4790_v22 = vsel %vm144_vm2, %v157_v9, %v158_v8  ;;  %v122_v23 = vsel %vm111_vm1, %v105_v15, 0.0 }
  0x8b   :  { %v161_v21 = vrot.slane %v123_v19, 7  ;;  %v160_v28 = vrot.slane %v122_v23, 7  ;;  %652 = vrot.lane.b32.xlu0 %v4779_v18, %s4610_s0  ;;  %v213_v1 = vunpack.c.0.s8 %v212_v62  ;;  %v244_v5 = vunpack.c.l.s4 %v4613_v4 }
  0x8c   :  { %v73_v24 = vpop.permute.xlu1 %72  ;;  %v71_v25 = vpop.permute.xlu0 %70  ;;  %v209_v9 = vcombine.low %v4697_v27, %v4746_v58  ;;  %v226_v15 = vcombine.high %v4706_v32, %v4767_v7  ;;  %v2962_v62 = vrot.slane %v4712_v38, 2  ;;  %v1588_v0 = vrot.slane %v4776_v17, 1 }
  0x8d   :  { %v4794_v26 = vsel %vm144_vm2, %v161_v21, 0.0  ;;  %v108_v29 = vsel %vm94_vm0, 0.0, %v73_v24  ;;  %v107_v30 = vsel %vm94_vm0, 0.0, %v71_v25  ;;  %v4805_v34 = vsel %vm144_vm2, 0.0, %v160_v28 }
  0x8e   :  { %v125_v31 = vsel %vm111_vm1, %v108_v29, 0.0  ;;  %v124_v33 = vsel %vm111_vm1, %v107_v30, 0.0  ;;  %654 = vrot.lane.b32.xlu1 %v4790_v22, %s4610_s0  ;;  %v4808_v43 = vsel %vm144_vm2, %v160_v28, %v161_v21  ;;  %v4856_v10 = vsub.s32 %v213_v1, %v215_v2 }
  0x8f   :  { %v164_v35 = vrot.slane %v125_v31, 7  ;;  %v163_v36 = vrot.slane %v124_v33, 7  ;;  %656 = vrot.lane.b32.xlu0 %v4805_v34, %s4610_s0  ;;  %v245_v14 = vunpack.c.0.s8 %v244_v5  ;;  %v210_v24 = vcombine.high %v4697_v27, %v4746_v58 }
  0x90   :  { %v77_v41 = vpop.permute.xlu1 %76  ;;  %v75_v42 = vpop.permute.xlu0 %74  ;;  %v4863_v12 = vrot.slane %v225_v3, %v4856_v10  ;;  %v4875_v23 = vrot.slane %v209_v9, %v4856_v10  ;;  %v1583_v25 = vrot.slane %v4754_v63, 1  ;;  %v240_v33 = vrot.slane %v226_v15, %v4856_v10 }
  0x91   :  { %v4811_v44 = vsel %vm144_vm2, %v164_v35, 0.0  ;;  %v110_v45 = vsel %vm94_vm0, 0.0, %v77_v41  ;;  %v4817_v47 = vsel %vm144_vm2, 0.0, %v163_v36  ;;  %v109_v49 = vsel %vm94_vm0, 0.0, %v75_v42 }
  0x92   :  { %658 = vrot.lane.b32.xlu1 %v4808_v43, %s4610_s0  ;;  %v127_v48 = vsel %vm111_vm1, %v110_v45, 0.0  ;;  %v126_v51 = vsel %vm111_vm1, %v109_v49, 0.0  ;;  %v4825_v52 = vsel %vm144_vm2, %v163_v36, %v164_v35  ;;  %v345_v11 = vcombine.low %v4779_v18, %v4817_v47 }
  0x93   :  { %v167_v50 = vrot.slane %v127_v48, 7  ;;  %v166_v53 = vrot.slane %v126_v51, 7  ;;  %660 = vrot.lane.b32.xlu0 %v4817_v47, %s4610_s0  ;;  %v346_v29 = vcombine.high %v4779_v18, %v4817_v47  ;;  %v242_v30 = vcombine.high %v4875_v23, %v4863_v12 }
  0x94   :  { %v4883_v28 = vrot.slane %v345_v11, %v4856_v10  ;;  %v4889_v31 = vsub.s32 %v245_v14, %v215_v2  ;;  %v224_v41 = vrot.slane %v210_v24, %v4856_v10  ;;  %v4904_v45 = vsel %vm1564_vm3, %v1581_v13, %v1583_v25 }
  0x95   :  { %v4830_v54 = vsel %vm144_vm2, %v167_v50, 0.0  ;;  %v4835_v55 = vsel %vm144_vm2, 0.0, %v166_v53  ;;  %v4838_v59 = vsel %vm144_vm2, %v166_v53, %v167_v50  ;;  %v360_v42 = vrot.slane %v346_v29, %v4856_v10 }
  0x96   :  { %662 = vrot.lane.b32.xlu1 %v4825_v52, %s4610_s0  ;;  %v361_v8 = vcombine.low %v4805_v34, %v4835_v55  ;;  %v362_v21 = vcombine.high %v4805_v34, %v4835_v55  ;;  %v4907_v48 = vrot.slane %v242_v30, %v4889_v31  ;;  %v257_v49 = vcombine.low %v224_v41, %v240_v33 }
  0x97   :  { %664 = vrot.lane.b32.xlu0 %v4835_v55, %s4610_s0  ;;  %v293_v50 = vcombine.low %v4709_v37, %v4764_v6  ;;  %v429_v61 = vcombine.low %v4808_v43, %v4838_v59  ;;  %v277_v13 = vcombine.low %v4715_v39, %v4749_v60  ;;  %v1593_v1 = vrot.slane %v4794_v26, 1 }
  0x98   :  { %v4868_v19 = vrot.slane %v361_v8, %v4856_v10  ;;  %v376_v36 = vrot.slane %v362_v21, %v4856_v10  ;;  %v7842_v2 = vrot.slane %v4808_v43, 1  ;;  %v413_v3 = vcombine.low %v4790_v22, %v4825_v52 }
  0x99   :  { %v7840_v38 = vrot.slane %v4790_v22, 1  ;;  %v4930_v4 = vrot.slane %v257_v49, %v4889_v31  ;;  %v258_v5 = vcombine.high %v224_v41, %v240_v33  ;;  %v4933_v8 = vrot.slane %v293_v50, %v4856_v10 }
  0x9a   :  { %666 = vrot.lane.b32.xlu1 %v4838_v59, %s4610_s0  ;;  %v378_v35 = vcombine.high %v4883_v28, %v4868_v19  ;;  %v393_v53 = vcombine.low %v360_v42, %v376_v36  ;;  %v294_v9 = vcombine.high %v4709_v37, %v4764_v6  ;;  %v394_v14 = vcombine.high %v360_v42, %v376_v36 }
  0x9b   :  { %1096 = vrot.lane.b32.xlu0 %v4697_v27, %s4612_s16  ;;  %v4941_v15 = vrot.slane %v429_v61, %v4856_v10  ;;  %v430_v21 = vcombine.high %v4808_v43, %v4838_v59  ;;  %v1598_v24 = vrot.slane %v4811_v44, 1  ;;  %v1603_v25 = vrot.slane %v4830_v54, 1 }
  0x9c   :  { %v4912_v51 = vrot.slane %v378_v35, %v4889_v31  ;;  %v4938_v11 = vrot.slane %v393_v53, %v4889_v31  ;;  %v4950_v29 = vrot.slane %v277_v13, %v4856_v10  ;;  %v278_v30 = vcombine.high %v4715_v39, %v4749_v60 }
  0x9d   :  { %v7843_v33 = vrot.slane %v4838_v59, 1  ;;  %v4958_v35 = vrot.slane %v413_v3, %v4856_v10  ;;  %v414_v36 = vcombine.high %v4790_v22, %v4825_v52  ;;  %v4965_v41 = vsel %vm1564_vm3, %v7840_v38, %v1588_v0 }
  0x9e   :  { %1098 = vrot.lane.b32.xlu1 %v4715_v39, %s4612_s16  ;;  %v4968_v42 = vrot.slane %v258_v5, %v4889_v31  ;;  %v310_v49 = vcombine.high %v4950_v29, %v4933_v8  ;;  %v308_v50 = vrot.slane %v294_v9, %v4856_v10  ;;  %v7841_v53 = vrot.slane %v4825_v52, 1 }
  0x9f   :  { %1100 = vrot.lane.b32.xlu0 %v4706_v32, %s4612_s16  ;;  %v4975_v61 = vrot.slane %v394_v14, %v4889_v31  ;;  %v446_v13 = vcombine.high %v4958_v35, %v4941_v15  ;;  %v444_v3 = vrot.slane %v430_v21, %v4856_v10  ;;  %v2960_v0 = vrot.slane %v4709_v37, 2 }
  0xa0   :  { %v292_v5 = vrot.slane %v278_v30, %v4856_v10  ;;  %v4987_v9 = vsel %vm1564_vm3, %v7842_v2, %v1593_v1  ;;  %v4992_v14 = vsel %vm1564_vm3, %v7841_v53, %v1598_v24  ;;  %v5000_v21 = vsel %vm1564_vm3, %v7843_v33, %v1603_v25 }
  0xa1   :  { %v5003_v30 = vrot.slane %v310_v49, %v4889_v31  ;;  %v5006_v38 = vrot.slane %v446_v13, %v4889_v31  ;;  %v5009_v53 = vsel %vm2953_vm4, %v2960_v0, %v2962_v62  ;;  %v2972_v25 = vrot.slane %v4754_v63, 2 }
  0xa2   :  { %1102 = vrot.lane.b32.xlu1 %v4709_v37, %s4612_s16  ;;  %v428_v37 = vrot.slane %v414_v36, %v4856_v10  ;;  %v325_v1 = vcombine.low %v292_v5, %v308_v50  ;;  %7948 = vst [vmem:[#allocation2_spill] sm:$0xff] %v5009_v53  ;;  %v326_v49 = vcombine.high %v292_v5, %v308_v50  ;;  %v2970_v16 = vrot.slane %v4764_v6, 2 }
  0xa3   :  { %1104 = vrot.lane.b32.xlu0 %v4746_v58, %s4612_s16  ;;  %v241_v13 = vcombine.low %v4875_v23, %v4863_v12  ;;  %v377_v33 = vcombine.low %v4883_v28, %v4868_v19  ;;  %v2959_v19 = vrot.slane %v4706_v32, 2  ;;  %v7952_v28 = vmov 0.0  }
  0xa4   :  { %v461_v24 = vcombine.low %v428_v37, %v444_v3  ;;  %v5017_v36 = vrot.slane %v325_v1, %v4889_v31  ;;  %v462_v62 = vcombine.high %v428_v37, %v444_v3  ;;  %v5032_v63 = vrot.slane %v326_v49, %v4889_v31 }
  0xa5   :  { %v5035_v12 = vrot.slane %v241_v13, %v4889_v31  ;;  %v5041_v50 = vrot.slane %v377_v33, %v4889_v31  ;;  %v5056_v33 = vsel %vm2953_vm4, %v2959_v19, %v2960_v0  ;;  %v2969_v32 = vrot.slane %v4767_v7, 2 }
  0xa6   :  { %1106 = vrot.lane.b32.xlu1 %v4749_v60, %s4612_s16  ;;  %v5022_v2 = vrot.slane %v461_v24, %v4889_v31  ;;  %v5038_v23 = vrot.slane %v462_v62, %v4889_v31  ;;  %7953 = vst [vmem:[#allocation6_spill] sm:$0xff] %v5056_v33  ;;  %v274_v37 = vcombine.high %v4907_v48, %v7952_v28  ;;  %v2954_v24 = vrot.slane %v4697_v27, 2 }
  0xa7   :  { %1108 = vrot.lane.b32.xlu0 %v4767_v7, %s4612_s16  ;;  %7949 = vst [vmem:[#allocation3_spill] sm:$0xff] %v5035_v12  ;;  %7950 = vst [vmem:[#allocation4_spill] sm:$0xff] %v5041_v50  ;;  %v273_v3 = vcombine.high %v5035_v12, %v7952_v28  ;;  %v409_v5 = vcombine.high %v5041_v50, %v7952_v28  ;;  %v5064_v1 = vsel %vm2953_vm4, %v2969_v32, %v2970_v16 }
  0xa8   :  { %7954 = vst [vmem:[#allocation7_spill] sm:$0xff] %v5064_v1  ;;  %v2967_v0 = vrot.slane %v4743_v57, 2  ;;  %v2977_v49 = vrot.slane %v4776_v17, 2  ;;  %v410_v13 = vcombine.high %v4912_v51, %v7952_v28  ;;  %v2982_v7 = vrot.slane %v4794_v26, 2 }
  0xa9   :  { %v2987_v62 = vrot.slane %v4811_v44, 2  ;;  %v275_v19 = vcombine.high %v4930_v4, %v7952_v28  ;;  %v309_v17 = vcombine.low %v4950_v29, %v4933_v8  ;;  %v445_v26 = vcombine.low %v4958_v35, %v4941_v15 }
  0xaa   :  { %1110 = vrot.lane.b32.xlu1 %v4764_v6, %s4612_s16  ;;  %v5044_v6 = vsel %vm2953_vm4, %v2970_v16, %v2972_v25  ;;  %v2957_v25 = vrot.slane %v4718_v40, 2  ;;  %v2990_v16 = vrot.slane %v4838_v59, 2  ;;  %v2989_v44 = vrot.slane %v4835_v55, 2 }
  0xab   :  { %491 = vrot.lane.b32.xlu0 %v4907_v48, %s4614_s19  ;;  %7951 = vst [vmem:[#allocation5_spill] sm:$0xff] %v5044_v6  ;;  %v2992_v48 = vrot.slane %v4830_v54, 2  ;;  %v276_v54 = vcombine.high %v4968_v42, %v7952_v28  ;;  %v2979_v32 = vrot.slane %v4805_v34, 2  ;;  %v2964_v8 = vrot.slane %v4746_v58, 2 }
  0xac   :  { %v2984_v15 = vrot.slane %v4817_v47, 2  ;;  %v412_v29 = vcombine.high %v4975_v61, %v7952_v28 }
  0xad   :  { %v5099_v35 = vsel %vm2953_vm4, %v2990_v16, %v2992_v48  ;;  %v3095_v48 = vcombine.high %v5009_v53, %v5044_v6 }
  0xae   :  { %493 = vrot.lane.b32.xlu1 %v4912_v51, %s4614_s19  ;;  %v2980_v51 = vrot.slane %v4808_v43, 2  ;;  %7955 = vst [vmem:[#allocation8_spill] sm:$0xff] %v5099_v35 }
  0xaf   :  { %507 = vrot.lane.b32.xlu0 %v4930_v4, %s4615_s20  ;;  %v411_v4 = vcombine.high %v4938_v11, %v7952_v28 }
  0xb0   :  { %v5117_v12 = vsel %vm2953_vm4, %v2980_v51, %v2982_v7  ;;  %v3027_v7 = vcombine.high %v5056_v33, %v5064_v1 }
  0xb1   :  { %7959 = vst [vmem:[#allocation12_spill] sm:$0xff] %v5117_v12 }
  0xb2   :  { %509 = vrot.lane.b32.xlu1 %v4938_v11, %s4615_s20  ;;  %v5105_v11 = vrot.slane %v309_v17, %v4889_v31 }
  0xb3   :  { %523 = vrot.lane.b32.xlu0 %v4968_v42, %s4616_s21  ;;  %v2955_v42 = vrot.slane %v4715_v39, 2 }
  0xb4   :  { %7956 = vst [vmem:[#allocation9_spill] sm:$0xff] %v5105_v11 }
  0xb6   :  { %525 = vrot.lane.b32.xlu1 %v4975_v61, %s4616_s21  ;;  %v2974_v61 = vrot.slane %v4779_v18, 2 }
  0xb7   :  { %547 = vrot.lane.b32.xlu0 %v5003_v30, %s4614_s19 }
  0xba   :  { %549 = vrot.lane.b32.xlu1 %v5006_v38, %s4614_s19 }
  0xbb   :  { %563 = vrot.lane.b32.xlu0 %v5017_v36, %s4615_s20 }
  0xbe   :  { %565 = vrot.lane.b32.xlu1 %v5022_v2, %s4615_s20 }
  0xbf   :  { %579 = vrot.lane.b32.xlu0 %v5032_v63, %s4616_s21 }
  0xc2   :  { %581 = vrot.lane.b32.xlu1 %v5038_v23, %s4616_s21 }
  0xc3   :  { %483 = vrot.lane.b32.xlu0 %v273_v3, %s4617_s22  ;;  %v2965_v3 = vrot.slane %v4749_v60, 2 }
  0xc5   :  { %v5120_v50 = vsel %vm2953_vm4, %v2965_v3, %v2967_v0  ;;  %v5138_v0 = vsel %vm2953_vm4, %v2955_v42, %v2957_v25  ;;  %v5153_v25 = vsel %vm2953_vm4, %v2954_v24, %v2955_v42  ;;  %v5174_v42 = vrot.slane %v3027_v7, %v4856_v10 }
  0xc6   :  { %485 = vrot.lane.b32.xlu1 %v409_v5, %s4617_s22  ;;  %v2985_v5 = vrot.slane %v4825_v52, 2  ;;  %7960 = vst [vmem:[#allocation13_spill] sm:$0xff] %v5120_v50  ;;  %7965 = vst [vmem:[#allocation18_spill] sm:$0xff] %v5138_v0 }
  0xc7   :  { %499 = vrot.lane.b32.xlu0 %v274_v37, %s4618_s23  ;;  %v2975_v37 = vrot.slane %v4790_v22, 2  ;;  %7967 = vst [vmem:[#allocation20_spill] sm:$0xff] %v5153_v25  ;;  %7971 = vst [vmem:[#allocation24_spill] sm:$0xff] %v5174_v42 }
  0xc8   :  { %v5123_v17 = vsel %vm2953_vm4, %v2985_v5, %v2987_v62 }
  0xc9   :  { %7961 = vst [vmem:[#allocation14_spill] sm:$0xff] %v5123_v17  ;;  %v5143_v62 = vsel %vm2953_vm4, %v2975_v37, %v2977_v49  ;;  %v341_v49 = vcombine.high %v5105_v11, %v7952_v28 }
  0xca   :  { %501 = vrot.lane.b32.xlu1 %v410_v13, %s4618_s23  ;;  %v5108_v13 = vrot.slane %v445_v26, %v4889_v31  ;;  %v3231_v26 = vcombine.high %v5117_v12, %v5099_v35  ;;  %7966 = vst [vmem:[#allocation19_spill] sm:$0xff] %v5143_v62 }
  0xcb   :  { %515 = vrot.lane.b32.xlu0 %v275_v19, %s4619_s24  ;;  %v5111_v19 = vsel %vm2953_vm4, %v2989_v44, %v2990_v16  ;;  %v5128_v16 = vsel %vm2953_vm4, %v2979_v32, %v2980_v51  ;;  %v5131_v44 = vsel %vm2953_vm4, %v2964_v8, %v2965_v3  ;;  %v3079_v3 = vcombine.high %v5138_v0, %v5120_v50 }
  0xcc   :  { %7957 = vst [vmem:[#allocation10_spill] sm:$0xff] %v5108_v13  ;;  %7958 = vst [vmem:[#allocation11_spill] sm:$0xff] %v5111_v19  ;;  %v3163_v51 = vcombine.high %v5128_v16, %v5111_v19  ;;  %v3011_v32 = vcombine.high %v5153_v25, %v5131_v44  ;;  %v5170_v24 = vrot.slane %v3231_v26, %v4856_v10 }
  0xcd   :  { %7962 = vst [vmem:[#allocation15_spill] sm:$0xff] %v5128_v16  ;;  %7963 = vst [vmem:[#allocation16_spill] sm:$0xff] %v5131_v44 }
  0xce   :  { %517 = vrot.lane.b32.xlu1 %v411_v4, %s4619_s24  ;;  %v5134_v4 = vsel %vm2953_vm4, %v2984_v15, %v2985_v5  ;;  %v5156_v5 = vsel %vm2953_vm4, %v2974_v61, %v2975_v37  ;;  %v477_v15 = vcombine.high %v5108_v13, %v7952_v28  ;;  %7970 = vst [vmem:[#allocation23_spill] sm:$0xff] %v5170_v24 }
  0xcf   :  { %7964 = vst [vmem:[#allocation17_spill] sm:$0xff] %v5134_v4  ;;  %531 = vrot.lane.b32.xlu0 %v276_v54, %s4620_s25  ;;  %v3215_v54 = vcombine.high %v5143_v62, %v5123_v17  ;;  %7968 = vst [vmem:[#allocation21_spill] sm:$0xff] %v5156_v5  ;;  %v3147_v8 = vcombine.high %v5156_v5, %v5134_v4  ;;  %v5177_v37 = vrot.slane %v3163_v51, %v4856_v10 }
  0xd0   :  { %v5181_v61 = vrot.slane %v3079_v3, %v4856_v10  ;;  %v5189_v26 = vrot.slane %v3011_v32, %v4856_v10  ;;  %v478_v51 = vcombine.high %v5006_v38, %v7952_v28  ;;  %v343_v32 = vcombine.high %v5017_v36, %v7952_v28 }
  0xd1   :  { %7972 = vst [vmem:[#allocation25_spill] sm:$0xff] %v5177_v37  ;;  %v5184_v11 = vrot.slane %v3215_v54, %v4856_v10  ;;  %v5192_v7 = vrot.slane %v3147_v8, %v4856_v10  ;;  %v479_v38 = vcombine.high %v5022_v2, %v7952_v28  ;;  %v344_v8 = vcombine.high %v5032_v63, %v7952_v28 }
  0xd2   :  { %533 = vrot.lane.b32.xlu1 %v412_v29, %s4620_s25  ;;  %v5167_v29 = vrot.slane %v3095_v48, %v4856_v10  ;;  %7973 = vst [vmem:[#allocation26_spill] sm:$0xff] %v5181_v61  ;;  %v342_v48 = vcombine.high %v5003_v30, %v7952_v28  ;;  %7975 = vst [vmem:[#allocation28_spill] sm:$0xff] %v5189_v26 }
  0xd3   :  { %539 = vrot.lane.b32.xlu0 %v341_v49, %s4617_s22  ;;  %7974 = vst [vmem:[#allocation27_spill] sm:$0xff] %v5184_v11  ;;  %7976 = vst [vmem:[#allocation29_spill] sm:$0xff] %v5192_v7 }
  0xd4   :  { %7969 = vst [vmem:[#allocation22_spill] sm:$0xff] %v5167_v29 }
  0xd6   :  { %541 = vrot.lane.b32.xlu1 %v477_v15, %s4617_s22  ;;  %v480_v15 = vcombine.high %v5038_v23, %v7952_v28 }
  0xd7   :  { %555 = vrot.lane.b32.xlu0 %v342_v48, %s4618_s23 }
  0xda   :  { %557 = vrot.lane.b32.xlu1 %v478_v51, %s4618_s23 }
  0xdb   :  { %571 = vrot.lane.b32.xlu0 %v343_v32, %s4619_s24 }
  0xde   :  { %573 = vrot.lane.b32.xlu1 %v479_v38, %s4619_s24 }
  0xdf   :  { %587 = vrot.lane.b32.xlu0 %v344_v8, %s4620_s25 }
  0xe2   :  { %589 = vrot.lane.b32.xlu1 %v480_v15, %s4620_s25 }
  0xe3   :  { %1112 = vrot.lane.b32.xlu0 %v4779_v18, %s4612_s16 }
  0xe6   :  { %1114 = vrot.lane.b32.xlu1 %v4790_v22, %s4612_s16 }
  0xe7   :  { %1116 = vrot.lane.b32.xlu0 %v4805_v34, %s4612_s16 }
  0xea   :  { %1118 = vrot.lane.b32.xlu1 %v4808_v43, %s4612_s16 }
  0xeb   :  { %1120 = vrot.lane.b32.xlu0 %v4817_v47, %s4612_s16 }
  0xec   :  { %v637_v2 = vpop.permute.xlu0 %636 }
  0xee   :  { %1122 = vrot.lane.b32.xlu1 %v4825_v52, %s4612_s16 }
  0xef   :  { %1124 = vrot.lane.b32.xlu0 %v4835_v55, %s4612_s16 }
  0xf0   :  { %v639_v36 = vpop.permute.xlu1 %638  ;;  %v641_v63 = vpop.permute.xlu0 %640 }
  0xf2   :  { %1126 = vrot.lane.b32.xlu1 %v4838_v59, %s4612_s16 }
  0xf4   :  { %v643_v23 = vpop.permute.xlu1 %642 }
  0xf5   :  { %v645_v48 = vpop.permute.xlu0 %644 }
  0xf6   :  { %v684_v32 = vcombine.low %v637_v2, %v645_v48  ;;  %v685_v8 = vcombine.high %v637_v2, %v645_v48 }
  0xf8   :  { %v647_v51 = vpop.permute.xlu1 %646  ;;  %v5235_v3 = vrot.slane %v684_v32, %v4856_v10  ;;  %v699_v42 = vrot.slane %v685_v8, %v4856_v10 }
  0xf9   :  { %v649_v38 = vpop.permute.xlu0 %648  ;;  %v753_v61 = vcombine.high %v639_v36, %v647_v51 }
  0xfa   :  { %v700_v15 = vcombine.low %v641_v63, %v649_v38  ;;  %v701_v54 = vcombine.high %v641_v63, %v649_v38  ;;  %v752_v38 = vcombine.low %v639_v36, %v647_v51 }
  0xfc   :  { %v651_v30 = vpop.permute.xlu1 %650  ;;  %v5238_v49 = vrot.slane %v700_v15, %v4856_v10  ;;  %v715_v13 = vrot.slane %v701_v54, %v4856_v10 }
  0xfd   :  { %v653_v26 = vpop.permute.xlu0 %652  ;;  %v768_v2 = vcombine.low %v643_v23, %v651_v30  ;;  %v769_v54 = vcombine.high %v643_v23, %v651_v30 }
  0xfe   :  { %v717_v37 = vcombine.high %v5235_v3, %v5238_v49  ;;  %v732_v48 = vcombine.low %v699_v42, %v715_v13  ;;  %v733_v24 = vcombine.high %v699_v42, %v715_v13  ;;  %v767_v13 = vrot.slane %v753_v61, %v4856_v10 }
  0xff   :  { %v5252_v11 = vrot.slane %v768_v2, %v4856_v10  ;;  %v783_v5 = vrot.slane %v769_v54, %v4856_v10 }
 0x100   :  { %v5242_v7 = vpop.permute.xlu1 %654  ;;  %v5247_v63 = vrot.slane %v717_v37, %v4889_v31  ;;  %v5255_v8 = vrot.slane %v732_v48, %v4889_v31  ;;  %v5258_v37 = vrot.slane %v752_v38, %v4856_v10  ;;  %v5264_v30 = vrot.slane %v733_v24, %v4889_v31 }
 0x101   :  { %v657_v32 = vpop.permute.xlu0 %656  ;;  %v800_v25 = vcombine.low %v767_v13, %v783_v5 }
 0x102   :  { %966 = vrot.lane.b32.xlu0 %v5247_v63, %s4614_s19  ;;  %v785_v23 = vcombine.high %v5258_v37, %v5252_v11 }
 0x104   :  { %v659_v15 = vpop.permute.xlu1 %658  ;;  %v5280_v17 = vrot.slane %v785_v23, %v4889_v31 }
 0x105   :  { %v661_v29 = vpop.permute.xlu0 %660 }
 0x106   :  { %982 = vrot.lane.b32.xlu0 %v5255_v8, %s4615_s20  ;;  %v820_v44 = vcombine.low %v653_v26, %v661_v29  ;;  %v821_v51 = vcombine.high %v653_v26, %v661_v29 }
 0x108   :  { %v663_v4 = vpop.permute.xlu1 %662  ;;  %v5273_v24 = vrot.slane %v820_v44, %v4856_v10 }
 0x109   :  { %v888_v42 = vcombine.low %v5242_v7, %v663_v4  ;;  %v665_v36 = vpop.permute.xlu0 %664 }
 0x10a   :  { %v836_v2 = vcombine.low %v657_v32, %v665_v36  ;;  %v837_v48 = vcombine.high %v657_v32, %v665_v36  ;;  %998 = vrot.lane.b32.xlu0 %v5264_v30, %s4616_s21  ;;  %v835_v36 = vrot.slane %v821_v51, %v4856_v10  ;;  %v801_v51 = vcombine.high %v767_v13, %v783_v5 }
 0x10b   :  { %v5283_v29 = vrot.slane %v888_v42, %v4856_v10  ;;  %v889_v5 = vcombine.high %v5242_v7, %v663_v4 }
 0x10c   :  { %v667_v38 = vpop.permute.xlu1 %666  ;;  %v5276_v19 = vrot.slane %v836_v2, %v4856_v10  ;;  %v851_v61 = vrot.slane %v837_v48, %v4856_v10  ;;  %v5300_v48 = vrot.slane %v800_v25, %v4889_v31  ;;  %v5312_v42 = vrot.slane %v801_v51, %v4889_v31 }
 0x10d   :  { %v904_v54 = vcombine.low %v659_v15, %v667_v38  ;;  %v1097_v32 = vpop.permute.xlu0 %1096  ;;  %v905_v1 = vcombine.high %v659_v15, %v667_v38  ;;  %v903_v4 = vrot.slane %v889_v5, %v4856_v10 }
 0x10e   :  { %1022 = vrot.lane.b32.xlu0 %v5280_v17, %s4614_s19  ;;  %v853_v23 = vcombine.high %v5273_v24, %v5276_v19  ;;  %v868_v16 = vcombine.low %v835_v36, %v851_v61 }
 0x10f   :  { %v5286_v26 = vrot.slane %v904_v54, %v4856_v10  ;;  %v919_v15 = vrot.slane %v905_v1, %v4856_v10 }
 0x110   :  { %v5293_v2 = vpop.permute.xlu1 %1098  ;;  %v5303_v54 = vrot.slane %v853_v23, %v4889_v31  ;;  %v5315_v25 = vrot.slane %v868_v16, %v4889_v31  ;;  %v869_v23 = vcombine.high %v835_v36, %v851_v61 }
 0x111   :  { %v1101_v44 = vpop.permute.xlu0 %1100  ;;  %v921_v16 = vcombine.high %v5283_v29, %v5286_v26  ;;  %v936_v35 = vcombine.low %v903_v4, %v919_v15 }
 0x112   :  { %1038 = vrot.lane.b32.xlu0 %v5300_v48, %s4615_s20  ;;  %968 = vrot.lane.b32.xlu1 %v5303_v54, %s4614_s19  ;;  %v5326_v51 = vrot.slane %v869_v23, %v4889_v31 }
 0x113   :  { %v5343_v5 = vrot.slane %v921_v16, %v4889_v31 }
 0x114   :  { %v5309_v62 = vpop.permute.xlu1 %1102 }
 0x115   :  { %v1105_v13 = vpop.permute.xlu0 %1104 }
 0x116   :  { %1054 = vrot.lane.b32.xlu0 %v5312_v42, %s4616_s21  ;;  %984 = vrot.lane.b32.xlu1 %v5315_v25, %s4615_s20  ;;  %v1144_v38 = vcombine.low %v1097_v32, %v1105_v13  ;;  %v1145_v61 = vcombine.high %v1097_v32, %v1105_v13 }
 0x118   :  { %v5322_v50 = vpop.permute.xlu1 %1106  ;;  %v5336_v1 = vrot.slane %v1144_v38, %v4856_v10 }
 0x119   :  { %v1109_v7 = vpop.permute.xlu0 %1108  ;;  %v1212_v6 = vcombine.low %v5293_v2, %v5322_v50 }
 0x11a   :  { %v1160_v36 = vcombine.low %v1101_v44, %v1109_v7  ;;  %v1161_v33 = vcombine.high %v1101_v44, %v1109_v7  ;;  %1000 = vrot.lane.b32.xlu1 %v5326_v51, %s4616_s21  ;;  %v1159_v44 = vrot.slane %v1145_v61, %v4856_v10  ;;  %v937_v7 = vcombine.high %v903_v4, %v919_v15 }
 0x11b   :  { %v5384_v53 = vrot.slane %v1212_v6, %v4856_v10 }
 0x11c   :  { %v5333_v0 = vpop.permute.xlu1 %1110  ;;  %v5339_v23 = vrot.slane %v1160_v36, %v4856_v10  ;;  %v1175_v12 = vrot.slane %v1161_v33, %v4856_v10  ;;  %v5357_v33 = vrot.slane %v936_v35, %v4889_v31  ;;  %v5376_v4 = vrot.slane %v937_v7, %v4889_v31 }
 0x11d   :  { %v5345_v32 = vpop.permute.xlu0 %491  ;;  %v1228_v36 = vcombine.low %v5309_v62, %v5333_v0  ;;  %v716_v7 = vcombine.low %v5235_v3, %v5238_v49 }
 0x11e   :  { %7977 = vst [vmem:[#allocation30_spill] sm:$0xff] %v5345_v32  ;;  %1024 = vrot.lane.b32.xlu1 %v5343_v5, %s4614_s19  ;;  %v1177_v38 = vcombine.high %v5336_v1, %v5339_v23  ;;  %v1192_v32 = vcombine.low %v1159_v44, %v1175_v12 }
 0x11f   :  { %v5373_v35 = vrot.slane %v1228_v36, %v4856_v10 }
 0x120   :  { %v5350_v13 = vpop.permute.xlu1 %493  ;;  %v5360_v16 = vrot.slane %v1177_v38, %v4889_v31  ;;  %v5379_v38 = vrot.slane %v1192_v32, %v4889_v31 }
 0x121   :  { %7978 = vst [vmem:[#allocation31_spill] sm:$0xff] %v5350_v13  ;;  %v5362_v61 = vpop.permute.xlu0 %507 }
 0x122   :  { %7979 = vst [vmem:[#allocation32_spill] sm:$0xff] %v5362_v61  ;;  %1040 = vrot.lane.b32.xlu1 %v5357_v33, %s4615_s20  ;;  %1426 = vrot.lane.b32.xlu0 %v5360_v16, %s4614_s19  ;;  %v1193_v61 = vcombine.high %v1159_v44, %v1175_v12  ;;  %v1245_v12 = vcombine.high %v5384_v53, %v5373_v35 }
 0x124   :  { %v5370_v15 = vpop.permute.xlu1 %509  ;;  %v1207_v32 = vrot.slane %v1193_v61, %v4889_v31 }
 0x125   :  { %7980 = vst [vmem:[#allocation33_spill] sm:$0xff] %v5370_v15  ;;  %v5381_v13 = vpop.permute.xlu0 %523  ;;  %v5406_v15 = vrot.slane %v716_v7, %v4889_v31  ;;  %v749_v7 = vcombine.high %v5247_v63, %v7952_v28  ;;  %v751_v63 = vcombine.high %v5264_v30, %v7952_v28  ;;  %v817_v30 = vcombine.high %v5280_v17, %v7952_v28 }
 0x126   :  { %7981 = vst [vmem:[#allocation34_spill] sm:$0xff] %v5381_v13  ;;  %1056 = vrot.lane.b32.xlu1 %v5376_v4, %s4616_s21  ;;  %1442 = vrot.lane.b32.xlu0 %v5379_v38, %s4615_s20  ;;  %v5403_v13 = vrot.slane %v1245_v12, %v4889_v31  ;;  %v819_v17 = vcombine.high %v5312_v42, %v7952_v28 }
 0x127   :  { %7985 = vst [vmem:[#allocation38_spill] sm:$0xff] %v5406_v15  ;;  %v748_v3 = vcombine.high %v5406_v15, %v7952_v28  ;;  %v1209_v42 = vcombine.high %v5360_v16, %v7952_v28  ;;  %v1211_v16 = vcombine.high %v1207_v32, %v7952_v28 }
 0x128   :  { %v5390_v36 = vpop.permute.xlu1 %525 }
 0x129   :  { %7982 = vst [vmem:[#allocation35_spill] sm:$0xff] %v5390_v36  ;;  %v5397_v44 = vpop.permute.xlu0 %547 }
 0x12a   :  { %7983 = vst [vmem:[#allocation36_spill] sm:$0xff] %v5397_v44  ;;  %1458 = vrot.lane.b32.xlu0 %v1207_v32, %s4616_s21 }
 0x12c   :  { %v5400_v6 = vpop.permute.xlu1 %549 }
 0x12d   :  { %7984 = vst [vmem:[#allocation37_spill] sm:$0xff] %v5400_v6  ;;  %v5408_v36 = vpop.permute.xlu0 %563  ;;  %v750_v6 = vcombine.high %v5255_v8, %v7952_v28 }
 0x12e   :  { %7986 = vst [vmem:[#allocation39_spill] sm:$0xff] %v5408_v36  ;;  %1482 = vrot.lane.b32.xlu0 %v5403_v13, %s4614_s19 }
 0x130   :  { %v5412_v49 = vpop.permute.xlu1 %565 }
 0x131   :  { %7987 = vst [vmem:[#allocation40_spill] sm:$0xff] %v5412_v49  ;;  %v5416_v61 = vpop.permute.xlu0 %579  ;;  %v784_v49 = vcombine.low %v5258_v37, %v5252_v11 }
 0x132   :  { %7988 = vst [vmem:[#allocation41_spill] sm:$0xff] %v5416_v61  ;;  %958 = vrot.lane.b32.xlu0 %v748_v3, %s4617_s22 }
 0x134   :  { %v5419_v44 = vpop.permute.xlu1 %581 }
 0x135   :  { %7989 = vst [vmem:[#allocation42_spill] sm:$0xff] %v5419_v44  ;;  %v5423_v12 = vpop.permute.xlu0 %483  ;;  %v5440_v44 = vrot.slane %v784_v49, %v4889_v31 }
 0x136   :  { %7990 = vst [vmem:[#allocation43_spill] sm:$0xff] %v5423_v12  ;;  %974 = vrot.lane.b32.xlu0 %v749_v7, %s4618_s23 }
 0x137   :  { %7994 = vst [vmem:[#allocation47_spill] sm:$0xff] %v5440_v44  ;;  %v816_v8 = vcombine.high %v5440_v44, %v7952_v28 }
 0x138   :  { %v5426_v36 = vpop.permute.xlu1 %485 }
 0x139   :  { %7991 = vst [vmem:[#allocation44_spill] sm:$0xff] %v5426_v36  ;;  %v5432_v61 = vpop.permute.xlu0 %499 }
 0x13a   :  { %7992 = vst [vmem:[#allocation45_spill] sm:$0xff] %v5432_v61  ;;  %990 = vrot.lane.b32.xlu0 %v750_v6, %s4619_s24 }
 0x13c   :  { %v5435_v3 = vpop.permute.xlu1 %501 }
 0x13d   :  { %7993 = vst [vmem:[#allocation46_spill] sm:$0xff] %v5435_v3  ;;  %v5442_v7 = vpop.permute.xlu0 %515 }
 0x13e   :  { %7995 = vst [vmem:[#allocation48_spill] sm:$0xff] %v5442_v7  ;;  %1006 = vrot.lane.b32.xlu0 %v751_v63, %s4620_s25  ;;  %v818_v63 = vcombine.high %v5300_v48, %v7952_v28 }
 0x140   :  { %v5445_v11 = vpop.permute.xlu1 %517 }
 0x141   :  { %7996 = vst [vmem:[#allocation49_spill] sm:$0xff] %v5445_v11  ;;  %v5449_v37 = vpop.permute.xlu0 %531  ;;  %v1176_v11 = vcombine.low %v5336_v1, %v5339_v23 }
 0x142   :  { %7997 = vst [vmem:[#allocation50_spill] sm:$0xff] %v5449_v37  ;;  %1014 = vrot.lane.b32.xlu0 %v816_v8, %s4617_s22 }
 0x144   :  { %v5452_v6 = vpop.permute.xlu1 %533 }
 0x145   :  { %7998 = vst [vmem:[#allocation51_spill] sm:$0xff] %v5452_v6  ;;  %v5456_v49 = vpop.permute.xlu0 %539  ;;  %v5473_v6 = vrot.slane %v1176_v11, %v4889_v31 }
 0x146   :  { %7999 = vst [vmem:[#allocation52_spill] sm:$0xff] %v5456_v49  ;;  %1030 = vrot.lane.b32.xlu0 %v817_v30, %s4618_s23 }
 0x147   :  { %8003 = vst [vmem:[#allocation56_spill] sm:$0xff] %v5473_v6  ;;  %v1208_v1 = vcombine.high %v5473_v6, %v7952_v28 }
 0x148   :  { %v5459_v7 = vpop.permute.xlu1 %541 }
 0x149   :  { %8000 = vst [vmem:[#allocation53_spill] sm:$0xff] %v5459_v7  ;;  %v5465_v37 = vpop.permute.xlu0 %555 }
 0x14a   :  { %8001 = vst [vmem:[#allocation54_spill] sm:$0xff] %v5465_v37  ;;  %1046 = vrot.lane.b32.xlu0 %v818_v63, %s4619_s24 }
 0x14c   :  { %v5468_v8 = vpop.permute.xlu1 %557 }
 0x14d   :  { %8002 = vst [vmem:[#allocation55_spill] sm:$0xff] %v5468_v8  ;;  %v5475_v30 = vpop.permute.xlu0 %571 }
 0x14e   :  { %8004 = vst [vmem:[#allocation57_spill] sm:$0xff] %v5475_v30  ;;  %1062 = vrot.lane.b32.xlu0 %v819_v17, %s4620_s25  ;;  %v1244_v17 = vcombine.low %v5384_v53, %v5373_v35 }
 0x150   :  { %v5478_v48 = vpop.permute.xlu1 %573 }
 0x151   :  { %8005 = vst [vmem:[#allocation58_spill] sm:$0xff] %v5478_v48  ;;  %v5482_v23 = vpop.permute.xlu0 %587  ;;  %v1210_v48 = vcombine.high %v5379_v38, %v7952_v28 }
 0x152   :  { %8006 = vst [vmem:[#allocation59_spill] sm:$0xff] %v5482_v23  ;;  %1418 = vrot.lane.b32.xlu0 %v1208_v1, %s4617_s22  ;;  %v1229_v23 = vcombine.high %v5309_v62, %v5333_v0 }
 0x154   :  { %v5485_v63 = vpop.permute.xlu1 %589  ;;  %v1243_v35 = vrot.slane %v1229_v23, %v4856_v10  ;;  %v1277_v23 = vcombine.high %v5403_v13, %v7952_v28  ;;  %v1565_v13 = vrot.slane %v4697_v27, 1 }
 0x155   :  { %8007 = vst [vmem:[#allocation60_spill] sm:$0xff] %v5485_v63  ;;  %v1113_v11 = vpop.permute.xlu0 %1112  ;;  %v1213_v63 = vcombine.high %v5293_v2, %v5322_v50  ;;  %v1575_v50 = vrot.slane %v4746_v58, 1  ;;  %v7901_v2 = vrot.slane %v4749_v60, 1 }
 0x156   :  { %1434 = vrot.lane.b32.xlu0 %v1209_v42, %s4618_s23  ;;  %v5503_v42 = vrot.slane %v1244_v17, %v4889_v31 }
 0x157   :  { %v1227_v0 = vrot.slane %v1213_v63, %v4856_v10 }
 0x158   :  { %v5490_v30 = vpop.permute.xlu1 %1114  ;;  %8008 = vst [vmem:[#allocation61_spill] sm:$0xff] %v5503_v42  ;;  %v1276_v37 = vcombine.high %v5503_v42, %v7952_v28 }
 0x159   :  { %v1117_v6 = vpop.permute.xlu0 %1116 }
 0x15a   :  { %1450 = vrot.lane.b32.xlu0 %v1210_v48, %s4619_s24 }
 0x15c   :  { %v5497_v1 = vpop.permute.xlu1 %1118 }
 0x15d   :  { %v1121_v53 = vpop.permute.xlu0 %1120 }
 0x15e   :  { %1466 = vrot.lane.b32.xlu0 %v1211_v16, %s4620_s25  ;;  %v1280_v48 = vcombine.low %v1113_v11, %v1121_v53  ;;  %v1281_v32 = vcombine.high %v1113_v11, %v1121_v53  ;;  %v1260_v16 = vcombine.low %v1227_v0, %v1243_v35  ;;  %v5537_v53 = vsel %vm1564_vm3, %v1575_v50, %v7901_v2 }
 0x160   :  { %v5509_v38 = vpop.permute.xlu1 %1122  ;;  %v5520_v44 = vrot.slane %v1280_v48, %v4856_v10  ;;  %v1295_v58 = vrot.slane %v1281_v32, %v4856_v10 }
 0x161   :  { %v1125_v62 = vpop.permute.xlu0 %1124  ;;  %v1348_v50 = vcombine.low %v5490_v30, %v5509_v38 }
 0x162   :  { %v1296_v17 = vcombine.low %v1117_v6, %v1125_v62  ;;  %v1297_v8 = vcombine.high %v1117_v6, %v1125_v62  ;;  %1474 = vrot.lane.b32.xlu0 %v1276_v37, %s4617_s22  ;;  %v7902_v6 = vrot.slane %v4715_v39, 1  ;;  %v1268_v62 = vrot.slane %v1260_v16, %v4889_v31 }
 0x163   :  { %v5568_v49 = vrot.slane %v1348_v50, %v4856_v10 }
 0x164   :  { %v5523_v42 = vrot.slane %v1296_v17, %v4856_v10  ;;  %v1311_v63 = vrot.slane %v1297_v8, %v4856_v10  ;;  %v5527_v11 = vpop.permute.xlu1 %1126  ;;  %v1637_v8 = vcombine.low %v4740_v56, %v4787_v20  ;;  %v5550_v27 = vsel %vm1564_vm3, %v1565_v13, %v7902_v6 }
 0x165   :  { %v1364_v48 = vcombine.low %v5497_v1, %v5527_v11  ;;  %v1621_v16 = vcombine.low %v5550_v27, %v5537_v53  ;;  %v1278_v13 = vcombine.high %v1268_v62, %v7952_v28 }
 0x166   :  { %1490 = vrot.lane.b32.xlu0 %v1277_v23, %s4618_s23  ;;  %v1313_v37 = vcombine.high %v5520_v44, %v5523_v42  ;;  %v1328_v17 = vcombine.low %v1295_v58, %v1311_v63  ;;  %v1261_v23 = vcombine.high %v1227_v0, %v1243_v35  ;;  %v1329_v15 = vcombine.high %v1295_v58, %v1311_v63 }
 0x167   :  { %v5561_v2 = vrot.slane %v1364_v48, %v4856_v10  ;;  %v1629_v35 = vrot.slane %v1621_v16, %v4856_v10 }
 0x168   :  { %v5545_v32 = vrot.slane %v1313_v37, %v4889_v31  ;;  %v1645_v37 = vrot.slane %v1637_v8, %v4856_v10  ;;  %v5565_v6 = vrot.slane %v1328_v17, %v4889_v31  ;;  %v1275_v0 = vrot.slane %v1261_v23, %v4889_v31 }
 0x169   :  { %v5576_v8 = vrot.slane %v1329_v15, %v4889_v31  ;;  %v1381_v48 = vcombine.high %v5568_v49, %v5561_v2  ;;  %v8011_v15 = vcombine.low %v5273_v24, %v5276_v19  ;;  %v1622_v19 = vcombine.high %v5550_v27, %v5537_v53 }
 0x16a   :  { %1498 = vrot.lane.b32.xlu0 %v1268_v62, %s4615_s20  ;;  %1428 = vrot.lane.b32.xlu1 %v5545_v32, %s4614_s19  ;;  %v1653_v62 = vcombine.low %v1629_v35, %v1645_v37  ;;  %v1279_v58 = vcombine.high %v1275_v0, %v7952_v28  ;;  %v885_v24 = vcombine.high %v5303_v54, %v7952_v28 }
 0x16b   :  { %v5587_v17 = vrot.slane %v1381_v48, %v4889_v31  ;;  %v5596_v16 = vrot.slane %v8011_v15, %v4889_v31  ;;  %v1654_v48 = vcombine.high %v1629_v35, %v1645_v37  ;;  %v1636_v37 = vrot.slane %v1622_v19, %v4856_v10 }
 0x16c   :  { %v5590_v50 = vrot.slane %v1653_v62, %v4889_v31  ;;  %v1638_v62 = vcombine.high %v4740_v56, %v4787_v20  ;;  %v1578_v35 = vrot.slane %v4743_v57, 1  ;;  %v887_v57 = vcombine.high %v5326_v51, %v7952_v28 }
 0x16d   :  { %8012 = vst [vmem:[#allocation64_spill] sm:$0xff] %v5596_v16 }
 0x16e   :  { %1506 = vrot.lane.b32.xlu0 %v1278_v13, %s4619_s24  ;;  %1444 = vrot.lane.b32.xlu1 %v5565_v6, %s4615_s20  ;;  %8010 = vst [vmem:[#allocation63_spill] sm:$0xff] %v5590_v50  ;;  %v1685_v13 = vcombine.high %v5590_v50, %v7952_v28  ;;  %v1652_v15 = vrot.slane %v1638_v62, %v4856_v10  ;;  %v8015_v62 = vrot.slane %v4749_v60, 1  ;;  %v8019_v60 = vrot.slane %v4715_v39, 1 }
 0x170   :  { %v1669_v54 = vcombine.low %v1636_v37, %v1652_v15 }
 0x172   :  { %1514 = vrot.lane.b32.xlu0 %v1275_v0, %s4616_s21  ;;  %1460 = vrot.lane.b32.xlu1 %v5576_v8, %s4616_s21  ;;  %v884_v0 = vcombine.high %v5596_v16, %v7952_v28 }
 0x174   :  { %v5583_v63 = vpop.permute.xlu0 %966 }
 0x175   :  { %8009 = vst [vmem:[#allocation62_spill] sm:$0xff] %v5583_v63 }
 0x176   :  { %1522 = vrot.lane.b32.xlu0 %v1279_v58, %s4620_s25  ;;  %1484 = vrot.lane.b32.xlu1 %v5587_v17, %s4614_s19  ;;  %v1668_v58 = vrot.slane %v1654_v48, %v4889_v31  ;;  %v1568_v48 = vrot.slane %v4718_v40, 1  ;;  %v8017_v40 = vcombine.low %v5283_v29, %v5286_v26  ;;  %v1670_v26 = vcombine.high %v1636_v37, %v1652_v15 }
 0x177   :  { %v954_v15 = vcombine.high %v5357_v33, %v7952_v28  ;;  %v1312_v37 = vcombine.low %v5520_v44, %v5523_v42  ;;  %v955_v33 = vcombine.high %v5376_v4, %v7952_v28 }
 0x178   :  { %v5601_v23 = vpop.permute.xlu0 %982 }
 0x179   :  { %8013 = vst [vmem:[#allocation65_spill] sm:$0xff] %v5601_v23 }
 0x17a   :  { %1895 = vrot.lane.b32.xlu0 %v1685_v13, %s4617_s22  ;;  %960 = vrot.lane.b32.xlu1 %v884_v0, %s4617_s22  ;;  %v886_v13 = vcombine.high %v5315_v25, %v7952_v28  ;;  %v1686_v0 = vcombine.high %v1668_v58, %v7952_v28  ;;  %v1677_v25 = vrot.slane %v1669_v54, %v4889_v31 }
 0x17c   :  { %v5617_v50 = vpop.permute.xlu0 %998 }
 0x17d   :  { %8014 = vst [vmem:[#allocation66_spill] sm:$0xff] %v5617_v50 }
 0x17e   :  { %1903 = vrot.lane.b32.xlu0 %v1668_v58, %s4614_s19  ;;  %976 = vrot.lane.b32.xlu1 %v885_v24, %s4618_s23  ;;  %v5632_v24 = vsel %vm1564_vm3, %v8015_v62, %v1578_v35  ;;  %v5643_v58 = vrot.slane %v8017_v40, %v4889_v31  ;;  %v5650_v35 = vsel %vm1564_vm3, %v8019_v60, %v1568_v48 }
 0x17f   :  { %v1689_v51 = vcombine.low %v5650_v35, %v5632_v24  ;;  %v953_v48 = vcombine.high %v5343_v5, %v7952_v28  ;;  %v1706_v5 = vcombine.high %v4730_v46, %v4904_v45 }
 0x180   :  { %v5636_v19 = vpop.permute.xlu0 %1022  ;;  %8018 = vst [vmem:[#allocation68_spill] sm:$0xff] %v5643_v58  ;;  %v952_v29 = vcombine.high %v5643_v58, %v7952_v28 }
 0x181   :  { %8016 = vst [vmem:[#allocation67_spill] sm:$0xff] %v5636_v19  ;;  %v1697_v39 = vrot.slane %v1689_v51, %v4856_v10 }
 0x182   :  { %1911 = vrot.lane.b32.xlu0 %v1686_v0, %s4618_s23  ;;  %992 = vrot.lane.b32.xlu1 %v886_v13, %s4619_s24  ;;  %v1705_v13 = vcombine.low %v4730_v46, %v4904_v45  ;;  %v1687_v0 = vcombine.high %v1677_v25, %v7952_v28 }
 0x184   :  { %v1713_v54 = vrot.slane %v1705_v13, %v4856_v10  ;;  %v5660_v62 = vpop.permute.xlu0 %1038 }
 0x185   :  { %8020 = vst [vmem:[#allocation69_spill] sm:$0xff] %v5660_v62  ;;  %v8137_v62 = vld [vmem:[#allocation17_spill] sm:$0xff] }
 0x186   :  { %1919 = vrot.lane.b32.xlu0 %v1677_v25, %s4615_s20  ;;  %1008 = vrot.lane.b32.xlu1 %v887_v57, %s4620_s25  ;;  %v1684_v57 = vrot.slane %v1670_v26, %v4889_v31  ;;  %v1721_v25 = vcombine.low %v1697_v39, %v1713_v54  ;;  %v1722_v42 = vcombine.high %v1697_v39, %v1713_v54 }
 0x187   :  { %v1345_v39 = vcombine.high %v5545_v32, %v7952_v28 }
 0x188   :  { %v5674_v40 = vpop.permute.xlu0 %1054  ;;  %v1688_v13 = vcombine.high %v1684_v57, %v7952_v28  ;;  %v5678_v60 = vrot.slane %v1721_v25, %v4889_v31  ;;  %v1736_v4 = vrot.slane %v1722_v42, %v4889_v31  ;;  %v1365_v42 = vcombine.high %v5497_v1, %v5527_v11 }
 0x189   :  { %8021 = vst [vmem:[#allocation70_spill] sm:$0xff] %v5674_v40 }
 0x18a   :  { %1927 = vrot.lane.b32.xlu0 %v1687_v0, %s4619_s24  ;;  %1016 = vrot.lane.b32.xlu1 %v952_v29, %s4617_s22  ;;  %8022 = vst [vmem:[#allocation71_spill] sm:$0xff] %v5678_v60  ;;  %v1753_v44 = vcombine.high %v5678_v60, %v7952_v28  ;;  %v5691_v0 = vrot.slane %v1312_v37, %v4889_v31 }
 0x18b   :  { %v1690_v29 = vcombine.high %v5650_v35, %v5632_v24 }
 0x18c   :  { %8024 = vst [vmem:[#allocation73_spill] sm:$0xff] %v5691_v0 }
 0x18d   :  { %v1704_v54 = vrot.slane %v1690_v29, %v4856_v10  ;;  %v1347_v29 = vcombine.high %v5576_v8, %v7952_v28 }
 0x18e   :  { %1935 = vrot.lane.b32.xlu0 %v1684_v57, %s4616_s21  ;;  %1032 = vrot.lane.b32.xlu1 %v953_v48, %s4618_s23  ;;  %v1344_v48 = vcombine.high %v5691_v0, %v7952_v28  ;;  %v1720_v57 = vrot.slane %v1706_v5, %v4856_v10  ;;  %v1346_v5 = vcombine.high %v5565_v6, %v7952_v28 }
 0x18f   :  { %v1349_v6 = vcombine.high %v5490_v30, %v5509_v38  ;;  %v1590_v30 = vrot.slane %v4805_v34, 1  ;;  %v1595_v38 = vrot.slane %v4817_v47, 1  ;;  %v8033_v34 = vrot.slane %v4808_v43, 1 }
 0x190   :  { %v1737_v37 = vcombine.low %v1704_v54, %v1720_v57  ;;  %v1738_v32 = vcombine.high %v1704_v54, %v1720_v57  ;;  %v1600_v57 = vrot.slane %v4835_v55, 1  ;;  %v8032_v55 = vrot.slane %v4838_v59, 1 }
 0x191   :  { %v1363_v54 = vrot.slane %v1349_v6, %v4856_v10  ;;  %v5764_v47 = vsel %vm1564_vm3, %v1590_v30, %v8033_v34 }
 0x192   :  { %1943 = vrot.lane.b32.xlu0 %v1688_v13, %s4620_s25  ;;  %1048 = vrot.lane.b32.xlu1 %v954_v15, %s4619_s24  ;;  %v1754_v15 = vcombine.high %v1736_v4, %v7952_v28  ;;  %v1380_v13 = vcombine.low %v5568_v49, %v5561_v2  ;;  %v1752_v11 = vrot.slane %v1738_v32, %v4889_v31 }
 0x194   :  { %v5686_v51 = vpop.permute.xlu0 %1426  ;;  %v5730_v2 = vrot.slane %v1380_v13, %v4889_v31  ;;  %v1756_v13 = vcombine.high %v1752_v11, %v7952_v28 }
 0x195   :  { %8023 = vst [vmem:[#allocation72_spill] sm:$0xff] %v5686_v51  ;;  %v8134_v51 = vld [vmem:[#allocation20_spill] sm:$0xff] }
 0x196   :  { %1951 = vrot.lane.b32.xlu0 %v1753_v44, %s4617_s22  ;;  %1064 = vrot.lane.b32.xlu1 %v955_v33, %s4620_s25  ;;  %v1745_v44 = vrot.slane %v1737_v37, %v4889_v31  ;;  %8029 = vst [vmem:[#allocation78_spill] sm:$0xff] %v5730_v2  ;;  %v1412_v8 = vcombine.high %v5730_v2, %v7952_v28 }
 0x198   :  { %v5697_v26 = vpop.permute.xlu0 %1442  ;;  %v1755_v49 = vcombine.high %v1745_v44, %v7952_v28 }
 0x199   :  { %8025 = vst [vmem:[#allocation74_spill] sm:$0xff] %v5697_v26 }
 0x19a   :  { %1959 = vrot.lane.b32.xlu0 %v1736_v4, %s4614_s19  ;;  %1420 = vrot.lane.b32.xlu1 %v1344_v48, %s4617_s22  ;;  %v1379_v48 = vrot.slane %v1365_v42, %v4856_v10 }
 0x19c   :  { %v5708_v25 = vpop.permute.xlu0 %1458 }
 0x19d   :  { %8026 = vst [vmem:[#allocation75_spill] sm:$0xff] %v5708_v25 }
 0x19e   :  { %1967 = vrot.lane.b32.xlu0 %v1754_v15, %s4618_s23  ;;  %1436 = vrot.lane.b32.xlu1 %v1345_v39, %s4618_s23  ;;  %v1396_v39 = vcombine.low %v1363_v54, %v1379_v48  ;;  %v1413_v15 = vcombine.high %v5587_v17, %v7952_v28  ;;  %v8034_v17 = vrot.slane %v4825_v52, 1  ;;  %v1397_v52 = vcombine.high %v1363_v54, %v1379_v48 }
 0x1a0   :  { %v5717_v33 = vpop.permute.xlu0 %1482  ;;  %v5769_v32 = vsel %vm1564_vm3, %v1595_v38, %v8034_v17  ;;  %v1404_v42 = vrot.slane %v1396_v39, %v4889_v31  ;;  %v1411_v30 = vrot.slane %v1397_v52, %v4889_v31  ;;  %v5797_v39 = vpop.permute.xlu1 %968 }
 0x1a1   :  { %8027 = vst [vmem:[#allocation76_spill] sm:$0xff] %v5717_v33  ;;  %8039 = vst [vmem:[#allocation84_spill] sm:$0xff] %v5797_v39 }
 0x1a2   :  { %1975 = vrot.lane.b32.xlu0 %v1745_v44, %s4615_s20  ;;  %1452 = vrot.lane.b32.xlu1 %v1346_v5, %s4619_s24  ;;  %v5756_v5 = vsel %vm1564_vm3, %v1600_v57, %v8032_v55  ;;  %v1585_v44 = vrot.slane %v4779_v18, 1  ;;  %v1415_v54 = vcombine.high %v1411_v30, %v7952_v28 }
 0x1a3   :  { %v1773_v18 = vcombine.low %v5764_v47, %v5756_v5  ;;  %v1774_v17 = vcombine.high %v5764_v47, %v5756_v5 }
 0x1a4   :  { %v5726_v4 = vpop.permute.xlu0 %958 }
 0x1a5   :  { %8028 = vst [vmem:[#allocation77_spill] sm:$0xff] %v5726_v4 }
 0x1a6   :  { %1983 = vrot.lane.b32.xlu0 %v1755_v49, %s4619_s24  ;;  %1468 = vrot.lane.b32.xlu1 %v1347_v29, %s4620_s25  ;;  %v8036_v29 = vrot.slane %v4790_v22, 1 }
 0x1a8   :  { %v5737_v1 = vpop.permute.xlu0 %974  ;;  %v5779_v49 = vsel %vm1564_vm3, %v1585_v44, %v8036_v29 }
 0x1a9   :  { %8030 = vst [vmem:[#allocation79_spill] sm:$0xff] %v5737_v1  ;;  %v1757_v43 = vcombine.low %v5779_v49, %v5769_v32 }
 0x1aa   :  { %1991 = vrot.lane.b32.xlu0 %v1752_v11, %s4616_s21  ;;  %1476 = vrot.lane.b32.xlu1 %v1412_v8, %s4617_s22  ;;  %v1414_v11 = vcombine.high %v1404_v42, %v7952_v28  ;;  %v1781_v8 = vrot.slane %v1773_v18, %v4856_v10 }
 0x1ab   :  { %v1765_v22 = vrot.slane %v1757_v43, %v4856_v10  ;;  %v1788_v43 = vrot.slane %v1774_v17, %v4856_v10  ;;  %v1825_v17 = vcombine.low %v4965_v41, %v4992_v14 }
 0x1ac   :  { %v5750_v37 = vpop.permute.xlu0 %990 }
 0x1ad   :  { %8031 = vst [vmem:[#allocation80_spill] sm:$0xff] %v5750_v37  ;;  %v1789_v38 = vcombine.low %v1765_v22, %v1781_v8  ;;  %v1790_v34 = vcombine.high %v1765_v22, %v1781_v8  ;;  %v8136_v37 = vld [vmem:[#allocation21_spill] sm:$0xff] }
 0x1ae   :  { %1999 = vrot.lane.b32.xlu0 %v1756_v13, %s4620_s25  ;;  %1492 = vrot.lane.b32.xlu1 %v1413_v15, %s4618_s23  ;;  %v5811_v13 = vpop.permute.xlu1 %984 }
 0x1af   :  { %v5806_v15 = vrot.slane %v1789_v38, %v4889_v31  ;;  %8042 = vst [vmem:[#allocation87_spill] sm:$0xff] %v5811_v13  ;;  %v1804_v29 = vrot.slane %v1790_v34, %v4889_v31  ;;  %v1841_v34 = vcombine.low %v4987_v9, %v5000_v21 }
 0x1b0   :  { %v5771_v59 = vpop.permute.xlu0 %1006 }
 0x1b1   :  { %8035 = vst [vmem:[#allocation81_spill] sm:$0xff] %v5771_v59  ;;  %8041 = vst [vmem:[#allocation86_spill] sm:$0xff] %v5806_v15  ;;  %v1821_v44 = vcombine.high %v5806_v15, %v7952_v28  ;;  %v1822_v22 = vcombine.high %v1804_v29, %v7952_v28  ;;  %v1849_v15 = vrot.slane %v1841_v34, %v4856_v10 }
 0x1b2   :  { %2033 = vrot.lane.b32.xlu0 %v5550_v27, %s4610_s0  ;;  %1500 = vrot.lane.b32.xlu1 %v1404_v42, %s4615_s20  ;;  %v1758_v42 = vcombine.high %v5779_v49, %v5769_v32  ;;  %v5828_v52 = vpop.permute.xlu1 %1000 }
 0x1b3   :  { %8045 = vst [vmem:[#allocation90_spill] sm:$0xff] %v5828_v52 }
 0x1b4   :  { %v5786_v6 = vpop.permute.xlu0 %1014 }
 0x1b5   :  { %8037 = vst [vmem:[#allocation82_spill] sm:$0xff] %v5786_v6 }
 0x1b6   :  { %2037 = vrot.lane.b32.xlu0 %v4740_v56, %s4610_s0  ;;  %1508 = vrot.lane.b32.xlu1 %v1414_v11, %s4619_s24  ;;  %v1772_v11 = vrot.slane %v1758_v42, %v4856_v10  ;;  %v5840_v38 = vpop.permute.xlu1 %1024 }
 0x1b7   :  { %8047 = vst [vmem:[#allocation92_spill] sm:$0xff] %v5840_v38 }
 0x1b8   :  { %v5794_v57 = vpop.permute.xlu0 %1030 }
 0x1b9   :  { %8038 = vst [vmem:[#allocation83_spill] sm:$0xff] %v5794_v57 }
 0x1ba   :  { %2041 = vrot.lane.b32.xlu0 %v5537_v53, %s4610_s0  ;;  %1516 = vrot.lane.b32.xlu1 %v1411_v30, %s4616_s21  ;;  %v1805_v30 = vcombine.low %v1772_v11, %v1788_v43  ;;  %v5856_v2 = vpop.permute.xlu1 %1040 }
 0x1bb   :  { %8050 = vst [vmem:[#allocation95_spill] sm:$0xff] %v5856_v2 }
 0x1bc   :  { %v5802_v48 = vpop.permute.xlu0 %1046 }
 0x1bd   :  { %8040 = vst [vmem:[#allocation85_spill] sm:$0xff] %v5802_v48  ;;  %v8135_v48 = vld [vmem:[#allocation16_spill] sm:$0xff] }
 0x1be   :  { %2045 = vrot.lane.b32.xlu0 %v4787_v20, %s4610_s0  ;;  %1524 = vrot.lane.b32.xlu1 %v1415_v54, %s4620_s25 }
 0x1c0   :  { %v5813_v55 = vpop.permute.xlu0 %1062 }
 0x1c1   :  { %8043 = vst [vmem:[#allocation88_spill] sm:$0xff] %v5813_v55 }
 0x1c2   :  { %2049 = vrot.lane.b32.xlu0 %v5779_v49, %s4610_s0  ;;  %1897 = vrot.lane.b32.xlu1 %v1821_v44, %s4617_s22  ;;  %v1813_v44 = vrot.slane %v1805_v30, %v4889_v31  ;;  %v1833_v30 = vrot.slane %v1825_v17, %v4856_v10 }
 0x1c4   :  { %v5824_v18 = vpop.permute.xlu0 %1418  ;;  %v1857_v52 = vcombine.low %v1833_v30, %v1849_v15 }
 0x1c5   :  { %8044 = vst [vmem:[#allocation89_spill] sm:$0xff] %v5824_v18 }
 0x1c6   :  { %2053 = vrot.lane.b32.xlu0 %v5764_v47, %s4610_s0  ;;  %1905 = vrot.lane.b32.xlu1 %v1804_v29, %s4614_s19  ;;  %v1823_v29 = vcombine.high %v1813_v44, %v7952_v28 }
 0x1c8   :  { %v5834_v8 = vpop.permute.xlu0 %1434 }
 0x1c9   :  { %8046 = vst [vmem:[#allocation91_spill] sm:$0xff] %v5834_v8  ;;  %v8132_v8 = vld [vmem:[#allocation14_spill] sm:$0xff] }
 0x1ca   :  { %1913 = vrot.lane.b32.xlu1 %v1822_v22, %s4618_s23  ;;  %2057 = vrot.lane.b32.xlu0 %v5769_v32, %s4610_s0  ;;  %v1806_v22 = vcombine.high %v1772_v11, %v1788_v43  ;;  %v5870_v11 = vrot.slane %v1857_v52, %v4889_v31 }
 0x1cc   :  { %v5842_v54 = vpop.permute.xlu0 %1450  ;;  %v1820_v25 = vrot.slane %v1806_v22, %v4889_v31  ;;  %8054 = vst [vmem:[#allocation99_spill] sm:$0xff] %v5870_v11  ;;  %v1889_v17 = vcombine.high %v5870_v11, %v7952_v28  ;;  %v1842_v22 = vcombine.high %v4987_v9, %v5000_v21 }
 0x1cd   :  { %8048 = vst [vmem:[#allocation93_spill] sm:$0xff] %v5842_v54  ;;  %v5864_v54 = vpop.permute.xlu1 %1056 }
 0x1ce   :  { %1921 = vrot.lane.b32.xlu1 %v1813_v44, %s4615_s20  ;;  %2061 = vrot.lane.b32.xlu0 %v5756_v5, %s4610_s0  ;;  %8052 = vst [vmem:[#allocation97_spill] sm:$0xff] %v5864_v54  ;;  %v1824_v43 = vcombine.high %v1820_v25, %v7952_v28 }
 0x1d0   :  { %v5852_v42 = vpop.permute.xlu0 %1466 }
 0x1d1   :  { %8049 = vst [vmem:[#allocation94_spill] sm:$0xff] %v5852_v42 }
 0x1d2   :  { %1929 = vrot.lane.b32.xlu1 %v1823_v29, %s4619_s24  ;;  %v1858_v29 = vcombine.high %v1833_v30, %v1849_v15 }
 0x1d4   :  { %v5860_v60 = vpop.permute.xlu0 %1474 }
 0x1d5   :  { %8051 = vst [vmem:[#allocation96_spill] sm:$0xff] %v5860_v60  ;;  %v8133_v60 = vld [vmem:[#allocation11_spill] sm:$0xff] }
 0x1d6   :  { %1937 = vrot.lane.b32.xlu1 %v1820_v25, %s4616_s21  ;;  %v1826_v25 = vcombine.high %v4965_v41, %v4992_v14 }
 0x1d8   :  { %v5866_v42 = vpop.permute.xlu0 %1490  ;;  %v1840_v15 = vrot.slane %v1826_v25, %v4856_v10 }
 0x1d9   :  { %8053 = vst [vmem:[#allocation98_spill] sm:$0xff] %v5866_v42 }
 0x1da   :  { %1945 = vrot.lane.b32.xlu1 %v1824_v43, %s4620_s25  ;;  %v1872_v43 = vrot.slane %v1858_v29, %v4889_v31 }
 0x1dc   :  { %v5873_v44 = vpop.permute.xlu1 %1428  ;;  %v5875_v34 = vpop.permute.xlu0 %1498 }
 0x1dd   :  { %8055 = vst [vmem:[#allocation100_spill] sm:$0xff] %v5873_v44  ;;  %8056 = vst [vmem:[#allocation101_spill] sm:$0xff] %v5875_v34  ;;  %v1856_v44 = vrot.slane %v1842_v22, %v4856_v10 }
 0x1de   :  { %1953 = vrot.lane.b32.xlu1 %v1889_v17, %s4617_s22  ;;  %v1890_v17 = vcombine.high %v1872_v43, %v7952_v28 }
 0x1df   :  { %v1873_v2 = vcombine.low %v1840_v15, %v1856_v44 }
 0x1e0   :  { %v5884_v52 = vpop.permute.xlu1 %1444  ;;  %v5886_v54 = vpop.permute.xlu0 %1506 }
 0x1e1   :  { %8057 = vst [vmem:[#allocation102_spill] sm:$0xff] %v5884_v52  ;;  %8058 = vst [vmem:[#allocation103_spill] sm:$0xff] %v5886_v54  ;;  %v1881_v29 = vrot.slane %v1873_v2, %v4889_v31 }
 0x1e2   :  { %1961 = vrot.lane.b32.xlu1 %v1872_v43, %s4614_s19 }
 0x1e4   :  { %v5892_v30 = vpop.permute.xlu1 %1460  ;;  %v5894_v11 = vpop.permute.xlu0 %1514 }
 0x1e5   :  { %8059 = vst [vmem:[#allocation104_spill] sm:$0xff] %v5892_v30  ;;  %8060 = vst [vmem:[#allocation105_spill] sm:$0xff] %v5894_v11  ;;  %v1891_v30 = vcombine.high %v1881_v29, %v7952_v28  ;;  %v1874_v11 = vcombine.high %v1840_v15, %v1856_v44 }
 0x1e6   :  { %1969 = vrot.lane.b32.xlu1 %v1890_v17, %s4618_s23 }
 0x1e8   :  { %v5898_v52 = vpop.permute.xlu1 %1484  ;;  %v5900_v54 = vpop.permute.xlu0 %1522 }
 0x1e9   :  { %8061 = vst [vmem:[#allocation106_spill] sm:$0xff] %v5898_v52  ;;  %8062 = vst [vmem:[#allocation107_spill] sm:$0xff] %v5900_v54  ;;  %v1888_v52 = vrot.slane %v1874_v11, %v4889_v31 }
 0x1ea   :  { %1977 = vrot.lane.b32.xlu1 %v1881_v29, %s4615_s20 }
 0x1eb   :  { %v1892_v34 = vcombine.high %v1888_v52, %v7952_v28 }
 0x1ec   :  { %v5904_v22 = vpop.permute.xlu1 %960  ;;  %v5906_v25 = vpop.permute.xlu0 %1895 }
 0x1ed   :  { %8063 = vst [vmem:[#allocation108_spill] sm:$0xff] %v5904_v22  ;;  %8064 = vst [vmem:[#allocation109_spill] sm:$0xff] %v5906_v25 }
 0x1ee   :  { %1985 = vrot.lane.b32.xlu1 %v1891_v30, %s4619_s24 }
 0x1f0   :  { %v5910_v43 = vpop.permute.xlu1 %976  ;;  %v5912_v17 = vpop.permute.xlu0 %1903 }
 0x1f1   :  { %8065 = vst [vmem:[#allocation110_spill] sm:$0xff] %v5910_v43  ;;  %8066 = vst [vmem:[#allocation111_spill] sm:$0xff] %v5912_v17 }
 0x1f2   :  { %1993 = vrot.lane.b32.xlu1 %v1888_v52, %s4616_s21 }
 0x1f4   :  { %v5916_v2 = vpop.permute.xlu1 %992  ;;  %v5918_v54 = vpop.permute.xlu0 %1911 }
 0x1f5   :  { %8067 = vst [vmem:[#allocation112_spill] sm:$0xff] %v5916_v2  ;;  %8068 = vst [vmem:[#allocation113_spill] sm:$0xff] %v5918_v54 }
 0x1f6   :  { %2001 = vrot.lane.b32.xlu1 %v1892_v34, %s4620_s25 }
 0x1f8   :  { %v5922_v29 = vpop.permute.xlu1 %1008  ;;  %v5924_v44 = vpop.permute.xlu0 %1919 }
 0x1f9   :  { %8069 = vst [vmem:[#allocation114_spill] sm:$0xff] %v5922_v29  ;;  %8070 = vst [vmem:[#allocation115_spill] sm:$0xff] %v5924_v44 }
 0x1fa   :  { %2035 = vrot.lane.b32.xlu1 %v5650_v35, %s4610_s0 }
 0x1fc   :  { %v5928_v15 = vpop.permute.xlu1 %1016  ;;  %v5930_v11 = vpop.permute.xlu0 %1927 }
 0x1fd   :  { %8071 = vst [vmem:[#allocation116_spill] sm:$0xff] %v5928_v15  ;;  %8072 = vst [vmem:[#allocation117_spill] sm:$0xff] %v5930_v11 }
 0x1fe   :  { %2039 = vrot.lane.b32.xlu1 %v4730_v46, %s4610_s0 }
 0x200   :  { %v5934_v30 = vpop.permute.xlu1 %1032  ;;  %v5936_v54 = vpop.permute.xlu0 %1935 }
 0x201   :  { %8073 = vst [vmem:[#allocation118_spill] sm:$0xff] %v5934_v30  ;;  %8074 = vst [vmem:[#allocation119_spill] sm:$0xff] %v5936_v54 }
 0x202   :  { %2043 = vrot.lane.b32.xlu1 %v5632_v24, %s4610_s0 }
 0x204   :  { %v5940_v34 = vpop.permute.xlu1 %1048  ;;  %v5942_v52 = vpop.permute.xlu0 %1943 }
 0x205   :  { %8075 = vst [vmem:[#allocation120_spill] sm:$0xff] %v5940_v34  ;;  %8076 = vst [vmem:[#allocation121_spill] sm:$0xff] %v5942_v52 }
 0x206   :  { %2047 = vrot.lane.b32.xlu1 %v4904_v45, %s4610_s0 }
 0x208   :  { %v5946_v44 = vpop.permute.xlu1 %1064  ;;  %v5948_v11 = vpop.permute.xlu0 %1951 }
 0x209   :  { %8077 = vst [vmem:[#allocation122_spill] sm:$0xff] %v5946_v44  ;;  %8078 = vst [vmem:[#allocation123_spill] sm:$0xff] %v5948_v11 }
 0x20a   :  { %2051 = vrot.lane.b32.xlu1 %v4965_v41, %s4610_s0 }
 0x20c   :  { %v5952_v17 = vpop.permute.xlu1 %1420  ;;  %v5954_v54 = vpop.permute.xlu0 %1959 }
 0x20d   :  { %8079 = vst [vmem:[#allocation124_spill] sm:$0xff] %v5952_v17  ;;  %8080 = vst [vmem:[#allocation125_spill] sm:$0xff] %v5954_v54 }
 0x20e   :  { %2055 = vrot.lane.b32.xlu1 %v4987_v9, %s4610_s0 }
 0x210   :  { %v5958_v34 = vpop.permute.xlu1 %1436  ;;  %v5960_v52 = vpop.permute.xlu0 %1967 }
 0x211   :  { %8081 = vst [vmem:[#allocation126_spill] sm:$0xff] %v5958_v34  ;;  %8082 = vst [vmem:[#allocation127_spill] sm:$0xff] %v5960_v52 }
 0x212   :  { %2059 = vrot.lane.b32.xlu1 %v4992_v14, %s4610_s0 }
 0x214   :  { %v5964_v44 = vpop.permute.xlu1 %1452  ;;  %v5966_v11 = vpop.permute.xlu0 %1975 }
 0x215   :  { %8083 = vst [vmem:[#allocation128_spill] sm:$0xff] %v5964_v44  ;;  %8084 = vst [vmem:[#allocation129_spill] sm:$0xff] %v5966_v11 }
 0x216   :  { %2063 = vrot.lane.b32.xlu1 %v5000_v21, %s4610_s0 }
 0x218   :  { %v5970_v29 = vpop.permute.xlu1 %1468  ;;  %v5972_v54 = vpop.permute.xlu0 %1983 }
 0x219   :  { %8085 = vst [vmem:[#allocation130_spill] sm:$0xff] %v5970_v29  ;;  %8086 = vst [vmem:[#allocation131_spill] sm:$0xff] %v5972_v54 }
 0x21c   :  { %v5974_v25 = vpop.permute.xlu1 %1476  ;;  %v5976_v42 = vpop.permute.xlu0 %1991 }
 0x21d   :  { %8087 = vst [vmem:[#allocation132_spill] sm:$0xff] %v5974_v25  ;;  %8088 = vst [vmem:[#allocation133_spill] sm:$0xff] %v5976_v42 }
 0x220   :  { %v5978_v34 = vpop.permute.xlu1 %1492  ;;  %v5980_v52 = vpop.permute.xlu0 %1999 }
 0x221   :  { %8089 = vst [vmem:[#allocation134_spill] sm:$0xff] %v5978_v34  ;;  %8090 = vst [vmem:[#allocation135_spill] sm:$0xff] %v5980_v52 }
 0x224   :  { %v5982_v26 = vpop.permute.xlu1 %1500  ;;  %v2034_v44 = vpop.permute.xlu0 %2033 }
 0x225   :  { %8091 = vst [vmem:[#allocation136_spill] sm:$0xff] %v5982_v26 }
 0x228   :  { %v5984_v55 = vpop.permute.xlu1 %1508  ;;  %v2038_v11 = vpop.permute.xlu0 %2037 }
 0x229   :  { %8092 = vst [vmem:[#allocation137_spill] sm:$0xff] %v5984_v55 }
 0x22c   :  { %v5986_v59 = vpop.permute.xlu1 %1516  ;;  %v2042_v0 = vpop.permute.xlu0 %2041 }
 0x22d   :  { %8093 = vst [vmem:[#allocation138_spill] sm:$0xff] %v5986_v59  ;;  %v2081_v29 = vcombine.low %v2034_v44, %v2042_v0  ;;  %v2082_v2 = vcombine.high %v2034_v44, %v2042_v0 }
 0x22f   :  { %v2089_v42 = vrot.slane %v2081_v29, %v4856_v10 }
 0x230   :  { %v5988_v17 = vpop.permute.xlu1 %1524  ;;  %v2046_v54 = vpop.permute.xlu0 %2045 }
 0x231   :  { %8094 = vst [vmem:[#allocation139_spill] sm:$0xff] %v5988_v17  ;;  %v2097_v25 = vcombine.low %v2038_v11, %v2046_v54  ;;  %v2098_v50 = vcombine.high %v2038_v11, %v2046_v54 }
 0x233   :  { %v2105_v34 = vrot.slane %v2097_v25, %v4856_v10 }
 0x234   :  { %v5992_v33 = vpop.permute.xlu1 %1897  ;;  %v2050_v52 = vpop.permute.xlu0 %2049 }
 0x235   :  { %8095 = vst [vmem:[#allocation140_spill] sm:$0xff] %v5992_v33  ;;  %v2113_v26 = vcombine.low %v2089_v42, %v2105_v34  ;;  %v2114_v30 = vcombine.high %v2089_v42, %v2105_v34  ;;  %v2112_v33 = vrot.slane %v2098_v50, %v4856_v10 }
 0x237   :  { %v5995_v40 = vrot.slane %v2113_v26, %v4889_v31  ;;  %v2128_v38 = vrot.slane %v2114_v30, %v4889_v31  ;;  %v2096_v26 = vrot.slane %v2082_v2, %v4856_v10 }
 0x238   :  { %v5997_v55 = vpop.permute.xlu1 %1905  ;;  %v2054_v59 = vpop.permute.xlu0 %2053 }
 0x239   :  { %8096 = vst [vmem:[#allocation141_spill] sm:$0xff] %v5995_v40  ;;  %8097 = vst [vmem:[#allocation142_spill] sm:$0xff] %v5997_v55  ;;  %v2145_v17 = vcombine.high %v5995_v40, %v7952_v28  ;;  %v2129_v11 = vcombine.low %v2096_v26, %v2112_v33  ;;  %v2146_v0 = vcombine.high %v2128_v38, %v7952_v28 }
 0x23b   :  { %2355 = vrot.lane.b32.xlu0 %v2145_v17, %s4617_s22  ;;  %v2137_v2 = vrot.slane %v2129_v11, %v4889_v31 }
 0x23c   :  { %v6002_v29 = vpop.permute.xlu1 %1913  ;;  %v2058_v25 = vpop.permute.xlu0 %2057 }
 0x23d   :  { %8098 = vst [vmem:[#allocation143_spill] sm:$0xff] %v6002_v29  ;;  %v2217_v13 = vcombine.low %v2050_v52, %v2058_v25 }
 0x23f   :  { %2363 = vrot.lane.b32.xlu0 %v2128_v38, %s4614_s19  ;;  %v2225_v17 = vrot.slane %v2217_v13, %v4856_v10  ;;  %v2147_v13 = vcombine.high %v2137_v2, %v7952_v28 }
 0x240   :  { %v6008_v54 = vpop.permute.xlu1 %1921  ;;  %v2062_v42 = vpop.permute.xlu0 %2061 }
 0x241   :  { %8099 = vst [vmem:[#allocation144_spill] sm:$0xff] %v6008_v54  ;;  %v2233_v34 = vcombine.low %v2054_v59, %v2062_v42  ;;  %v2130_v54 = vcombine.high %v2096_v26, %v2112_v33  ;;  %v2234_v38 = vcombine.high %v2054_v59, %v2062_v42 }
 0x243   :  { %v2241_v44 = vrot.slane %v2233_v34, %v4856_v10  ;;  %2371 = vrot.lane.b32.xlu0 %v2146_v0, %s4618_s23  ;;  %v2218_v0 = vcombine.high %v2050_v52, %v2058_v25  ;;  %v2144_v33 = vrot.slane %v2130_v54, %v4889_v31 }
 0x244   :  { %v6014_v50 = vpop.permute.xlu1 %1929 }
 0x245   :  { %8100 = vst [vmem:[#allocation145_spill] sm:$0xff] %v6014_v50  ;;  %v2249_v30 = vcombine.low %v2225_v17, %v2241_v44  ;;  %v2250_v55 = vcombine.high %v2225_v17, %v2241_v44  ;;  %v2232_v59 = vrot.slane %v2218_v0, %v4856_v10  ;;  %v2148_v25 = vcombine.high %v2144_v33, %v7952_v28 }
 0x247   :  { %2379 = vrot.lane.b32.xlu0 %v2137_v2, %s4615_s20  ;;  %v6019_v40 = vrot.slane %v2249_v30, %v4889_v31  ;;  %v2248_v30 = vrot.slane %v2234_v38, %v4856_v10  ;;  %v2264_v26 = vrot.slane %v2250_v55, %v4889_v31 }
 0x248   :  { %v6021_v29 = vpop.permute.xlu1 %1937 }
 0x249   :  { %8101 = vst [vmem:[#allocation146_spill] sm:$0xff] %v6019_v40  ;;  %8102 = vst [vmem:[#allocation147_spill] sm:$0xff] %v6021_v29  ;;  %v2281_v34 = vcombine.high %v6019_v40, %v7952_v28  ;;  %v2265_v52 = vcombine.low %v2232_v59, %v2248_v30  ;;  %v2282_v17 = vcombine.high %v2264_v26, %v7952_v28 }
 0x24a   :  { %v2266_v2 = vcombine.high %v2232_v59, %v2248_v30 }
 0x24b   :  { %2387 = vrot.lane.b32.xlu0 %v2147_v13, %s4619_s24  ;;  %2357 = vrot.lane.b32.xlu1 %v2281_v34, %s4617_s22  ;;  %v2273_v55 = vrot.slane %v2265_v52, %v4889_v31 }
 0x24c   :  { %v6028_v11 = vpop.permute.xlu1 %1945  ;;  %v2280_v34 = vrot.slane %v2266_v2, %v4889_v31 }
 0x24d   :  { %8103 = vst [vmem:[#allocation148_spill] sm:$0xff] %v6028_v11  ;;  %v2283_v38 = vcombine.high %v2273_v55, %v7952_v28 }
 0x24f   :  { %2395 = vrot.lane.b32.xlu0 %v2144_v33, %s4616_s21  ;;  %2365 = vrot.lane.b32.xlu1 %v2264_v26, %s4614_s19  ;;  %v2284_v33 = vcombine.high %v2280_v34, %v7952_v28 }
 0x250   :  { %v6036_v42 = vpop.permute.xlu1 %1953 }
 0x251   :  { %8104 = vst [vmem:[#allocation149_spill] sm:$0xff] %v6036_v42  ;;  %v8122_v42 = vld [vmem:[#allocation5_spill] sm:$0xff] }
 0x253   :  { %2403 = vrot.lane.b32.xlu0 %v2148_v25, %s4620_s25  ;;  %2373 = vrot.lane.b32.xlu1 %v2282_v17, %s4618_s23 }
 0x254   :  { %v6042_v54 = vpop.permute.xlu1 %1961 }
 0x255   :  { %8105 = vst [vmem:[#allocation150_spill] sm:$0xff] %v6042_v54 }
 0x257   :  { %2381 = vrot.lane.b32.xlu1 %v2273_v55, %s4615_s20 }
 0x258   :  { %v6046_v44 = vpop.permute.xlu1 %1969 }
 0x259   :  { %8106 = vst [vmem:[#allocation151_spill] sm:$0xff] %v6046_v44 }
 0x25b   :  { %2389 = vrot.lane.b32.xlu1 %v2283_v38, %s4619_s24 }
 0x25c   :  { %v6050_v13 = vpop.permute.xlu1 %1977 }
 0x25d   :  { %8107 = vst [vmem:[#allocation152_spill] sm:$0xff] %v6050_v13 }
 0x25f   :  { %2397 = vrot.lane.b32.xlu1 %v2280_v34, %s4616_s21 }
 0x260   :  { %v6054_v0 = vpop.permute.xlu1 %1985 }
 0x261   :  { %8108 = vst [vmem:[#allocation153_spill] sm:$0xff] %v6054_v0 }
 0x263   :  { %2405 = vrot.lane.b32.xlu1 %v2284_v33, %s4620_s25 }
 0x264   :  { %v6058_v26 = vpop.permute.xlu1 %1993 }
 0x265   :  { %8109 = vst [vmem:[#allocation154_spill] sm:$0xff] %v6058_v26 }
 0x268   :  { %v6060_v52 = vpop.permute.xlu1 %2001 }
 0x269   :  { %8110 = vst [vmem:[#allocation155_spill] sm:$0xff] %v6060_v52 }
 0x26c   :  { %v6062_v30 = vpop.permute.xlu1 %2035 }
 0x26d   :  { %8111 = vst [vmem:[#allocation156_spill] sm:$0xff] %v6062_v30 }
 0x270   :  { %v6064_v59 = vpop.permute.xlu1 %2039 }
 0x271   :  { %8112 = vst [vmem:[#allocation157_spill] sm:$0xff] %v6064_v59 }
 0x274   :  { %v6066_v25 = vpop.permute.xlu1 %2043 }
 0x275   :  { %8113 = vst [vmem:[#allocation158_spill] sm:$0xff] %v6066_v25  ;;  %v2149_v17 = vcombine.low %v6062_v30, %v6066_v25 }
 0x277   :  { %v2157_v38 = vrot.slane %v2149_v17, %v4856_v10 }
 0x278   :  { %v6070_v55 = vpop.permute.xlu1 %2047 }
 0x279   :  { %8114 = vst [vmem:[#allocation159_spill] sm:$0xff] %v6070_v55  ;;  %v2165_v2 = vcombine.low %v6064_v59, %v6070_v55 }
 0x27b   :  { %v2173_v34 = vrot.slane %v2165_v2, %v4856_v10 }
 0x27c   :  { %v6076_v33 = vpop.permute.xlu1 %2051 }
 0x27d   :  { %8115 = vst [vmem:[#allocation160_spill] sm:$0xff] %v6076_v33  ;;  %v2181_v52 = vcombine.low %v2157_v38, %v2173_v34  ;;  %v2182_v11 = vcombine.high %v2157_v38, %v2173_v34 }
 0x27f   :  { %v6079_v40 = vrot.slane %v2181_v52, %v4889_v31  ;;  %v2196_v17 = vrot.slane %v2182_v11, %v4889_v31  ;;  %v8120_v11 = vld [vmem:[#allocation2_spill] sm:$0xff] }
 0x280   :  { %v6081_v26 = vpop.permute.xlu1 %2055 }
 0x281   :  { %8116 = vst [vmem:[#allocation161_spill] sm:$0xff] %v6079_v40  ;;  %8117 = vst [vmem:[#allocation162_spill] sm:$0xff] %v6081_v26  ;;  %v2213_v0 = vcombine.high %v6079_v40, %v7952_v28  ;;  %v2214_v38 = vcombine.high %v2196_v17, %v7952_v28 }
 0x283   :  { %2411 = vrot.lane.b32.xlu0 %v2213_v0, %s4617_s22 }
 0x284   :  { %v6086_v29 = vpop.permute.xlu1 %2059 }
 0x285   :  { %8118 = vst [vmem:[#allocation163_spill] sm:$0xff] %v6086_v29  ;;  %v2285_v2 = vcombine.low %v6076_v33, %v6086_v29 }
 0x287   :  { %2419 = vrot.lane.b32.xlu0 %v2196_v17, %s4614_s19  ;;  %v2293_v34 = vrot.slane %v2285_v2, %v4856_v10  ;;  %v8124_v2 = vld [vmem:[#allocation12_spill] sm:$0xff] }
 0x288   :  { %v6092_v13 = vpop.permute.xlu1 %2063 }
 0x289   :  { %8119 = vst [vmem:[#allocation164_spill] sm:$0xff] %v6092_v13  ;;  %v2301_v52 = vcombine.low %v6081_v26, %v6092_v13 }
 0x28b   :  { %v2309_v0 = vrot.slane %v2301_v52, %v4856_v10  ;;  %2427 = vrot.lane.b32.xlu0 %v2214_v38, %s4618_s23  ;;  %v8126_v52 = vld [vmem:[#allocation18_spill] sm:$0xff] }
 0x28c   :  { %v8127_v38 = vld [vmem:[#allocation6_spill] sm:$0xff] }
 0x28d   :  { %v2317_v40 = vcombine.low %v2293_v34, %v2309_v0  ;;  %v2318_v44 = vcombine.high %v2293_v34, %v2309_v0  ;;  %v8130_v34 = vld [vmem:[#allocation19_spill] sm:$0xff] }
 0x28e   :  { %v8131_v0 = vld [vmem:[#allocation15_spill] sm:$0xff] }
 0x28f   :  { %3428 = vrot.lane.b32.xlu0 %v8120_v11, %s4610_s0  ;;  %v6103_v50 = vrot.slane %v2317_v40, %v4889_v31  ;;  %v6111_v17 = vrot.slane %v2318_v44, %v4889_v31  ;;  %v8125_v40 = vld [vmem:[#allocation8_spill] sm:$0xff]  ;;  %v8129_v44 = vld [vmem:[#allocation7_spill] sm:$0xff] }
 0x291   :  { %8121 = vst [vmem:[#allocation2_spill] sm:$0xff] %v6103_v50  ;;  %v2349_v54 = vcombine.high %v6103_v50, %v7952_v28  ;;  %8123 = vst [vmem:[#allocation5_spill] sm:$0xff] %v6111_v17 }
 0x293   :  { %3436 = vrot.lane.b32.xlu0 %v8122_v42, %s4610_s0  ;;  %2413 = vrot.lane.b32.xlu1 %v2349_v54, %s4617_s22  ;;  %v8128_v54 = vld [vmem:[#allocation13_spill] sm:$0xff] }
 0x294   :  { %v3078_v25 = vcombine.low %v8126_v52, %v8128_v54 }
 0x297   :  { %3444 = vrot.lane.b32.xlu0 %v8124_v2, %s4610_s0  ;;  %2421 = vrot.lane.b32.xlu1 %v6111_v17, %s4614_s19 }
 0x29b   :  { %3452 = vrot.lane.b32.xlu0 %v8125_v40, %s4610_s0  ;;  %3424 = vrot.lane.b32.xlu1 %v8126_v52, %s4610_s0 }
 0x29f   :  { %3426 = vrot.lane.b32.xlu0 %v8127_v38, %s4610_s0  ;;  %3432 = vrot.lane.b32.xlu1 %v8128_v54, %s4610_s0 }
 0x2a3   :  { %3434 = vrot.lane.b32.xlu0 %v8129_v44, %s4610_s0  ;;  %3440 = vrot.lane.b32.xlu1 %v8130_v34, %s4610_s0 }
 0x2a7   :  { %3442 = vrot.lane.b32.xlu0 %v8131_v0, %s4610_s0  ;;  %3448 = vrot.lane.b32.xlu1 %v8132_v8, %s4610_s0 }
 0x2ab   :  { %3450 = vrot.lane.b32.xlu0 %v8133_v60, %s4610_s0  ;;  %3422 = vrot.lane.b32.xlu1 %v8134_v51, %s4610_s0 }
 0x2af   :  { %3888 = vrot.lane.b32.xlu0 %v8120_v11, %s4612_s16  ;;  %3430 = vrot.lane.b32.xlu1 %v8135_v48, %s4610_s0 }
 0x2b3   :  { %3896 = vrot.lane.b32.xlu0 %v8122_v42, %s4612_s16  ;;  %3438 = vrot.lane.b32.xlu1 %v8136_v37, %s4610_s0 }
 0x2b7   :  { %3904 = vrot.lane.b32.xlu0 %v8124_v2, %s4612_s16  ;;  %3446 = vrot.lane.b32.xlu1 %v8137_v62, %s4610_s0 }
 0x2bb   :  { %3912 = vrot.lane.b32.xlu0 %v8125_v40, %s4612_s16  ;;  %3884 = vrot.lane.b32.xlu1 %v8126_v52, %s4612_s16 }
 0x2bf   :  { %2499 = vrot.lane.b32.xlu0 %v4730_v46, %s4612_s16  ;;  %3892 = vrot.lane.b32.xlu1 %v8128_v54, %s4612_s16  ;;  %v6169_v46 = vpop.permute.xlu0 %2355 }
 0x2c0   :  { %8138 = vst [vmem:[#allocation12_spill] sm:$0xff] %v6169_v46 }
 0x2c3   :  { %2507 = vrot.lane.b32.xlu0 %v4904_v45, %s4612_s16  ;;  %3900 = vrot.lane.b32.xlu1 %v8130_v34, %s4612_s16  ;;  %v6175_v45 = vpop.permute.xlu0 %2363 }
 0x2c4   :  { %8139 = vst [vmem:[#allocation8_spill] sm:$0xff] %v6175_v45 }
 0x2c7   :  { %2515 = vrot.lane.b32.xlu0 %v4987_v9, %s4612_s16  ;;  %3908 = vrot.lane.b32.xlu1 %v8132_v8, %s4612_s16  ;;  %v6185_v9 = vpop.permute.xlu0 %2371 }
 0x2c8   :  { %8140 = vst [vmem:[#allocation18_spill] sm:$0xff] %v6185_v9 }
 0x2cb   :  { %2523 = vrot.lane.b32.xlu0 %v5000_v21, %s4612_s16  ;;  %2495 = vrot.lane.b32.xlu1 %v5650_v35, %s4612_s16  ;;  %v6191_v21 = vpop.permute.xlu1 %2357 }
 0x2cc   :  { %8141 = vst [vmem:[#allocation6_spill] sm:$0xff] %v6191_v21 }
 0x2cf   :  { %3886 = vrot.lane.b32.xlu0 %v8127_v38, %s4612_s16  ;;  %2503 = vrot.lane.b32.xlu1 %v5632_v24, %s4612_s16  ;;  %v6193_v24 = vpop.permute.xlu0 %2379 }
 0x2d0   :  { %8142 = vst [vmem:[#allocation13_spill] sm:$0xff] %v6193_v24 }
 0x2d3   :  { %3894 = vrot.lane.b32.xlu0 %v8129_v44, %s4612_s16  ;;  %2511 = vrot.lane.b32.xlu1 %v4965_v41, %s4612_s16  ;;  %v6199_v41 = vpop.permute.xlu1 %2365 }
 0x2d4   :  { %8143 = vst [vmem:[#allocation7_spill] sm:$0xff] %v6199_v41 }
 0x2d7   :  { %3902 = vrot.lane.b32.xlu0 %v8131_v0, %s4612_s16  ;;  %2519 = vrot.lane.b32.xlu1 %v4992_v14, %s4612_s16  ;;  %v6205_v14 = vpop.permute.xlu0 %2387 }
 0x2d8   :  { %8144 = vst [vmem:[#allocation19_spill] sm:$0xff] %v6205_v14 }
 0x2db   :  { %3910 = vrot.lane.b32.xlu0 %v8133_v60, %s4612_s16  ;;  %3882 = vrot.lane.b32.xlu1 %v8134_v51, %s4612_s16  ;;  %v6213_v35 = vpop.permute.xlu0 %2395 }
 0x2dc   :  { %8146 = vst [vmem:[#allocation14_spill] sm:$0xff] %v6213_v35 }
 0x2df   :  { %2497 = vrot.lane.b32.xlu0 %v4740_v56, %s4612_s16  ;;  %3890 = vrot.lane.b32.xlu1 %v8135_v48, %s4612_s16  ;;  %v6211_v56 = vpop.permute.xlu1 %2373  ;;  %v6223_v14 = vpop.permute.xlu0 %2403 }
 0x2e0   :  { %8145 = vst [vmem:[#allocation15_spill] sm:$0xff] %v6211_v56  ;;  %8148 = vst [vmem:[#allocation20_spill] sm:$0xff] %v6223_v14 }
 0x2e3   :  { %2505 = vrot.lane.b32.xlu0 %v4787_v20, %s4612_s16  ;;  %3898 = vrot.lane.b32.xlu1 %v8136_v37, %s4612_s16  ;;  %v6219_v20 = vpop.permute.xlu1 %2381 }
 0x2e4   :  { %8147 = vst [vmem:[#allocation11_spill] sm:$0xff] %v6219_v20 }
 0x2e7   :  { %2513 = vrot.lane.b32.xlu0 %v5764_v47, %s4612_s16  ;;  %3906 = vrot.lane.b32.xlu1 %v8137_v62, %s4612_s16  ;;  %v6227_v47 = vpop.permute.xlu1 %2389 }
 0x2e8   :  { %8149 = vst [vmem:[#allocation16_spill] sm:$0xff] %v6227_v47 }
 0x2eb   :  { %2521 = vrot.lane.b32.xlu0 %v5756_v5, %s4612_s16  ;;  %2493 = vrot.lane.b32.xlu1 %v5550_v27, %s4612_s16  ;;  %v6235_v27 = vpop.permute.xlu1 %2397 }
 0x2ec   :  { %8152 = vst [vmem:[#allocation165_spill] sm:$0xff] %v6235_v27 }
 0x2ef   :  { %2501 = vrot.lane.b32.xlu1 %v5537_v53, %s4612_s16  ;;  %v6239_v9 = vpop.permute.xlu1 %2405 }
 0x2f0   :  { %8154 = vst [vmem:[#allocation167_spill] sm:$0xff] %v6239_v9 }
 0x2f3   :  { %2509 = vrot.lane.b32.xlu1 %v5779_v49, %s4612_s16 }
 0x2f5   :  { %v6229_v24 = vpop.permute.xlu0 %2411 }
 0x2f6   :  { %8150 = vst [vmem:[#allocation21_spill] sm:$0xff] %v6229_v24 }
 0x2f7   :  { %2517 = vrot.lane.b32.xlu1 %v5769_v32, %s4612_s16 }
 0x2f9   :  { %v6233_v5 = vpop.permute.xlu0 %2419 }
 0x2fa   :  { %8151 = vst [vmem:[#allocation17_spill] sm:$0xff] %v6233_v5 }
 0x2fd   :  { %v6237_v35 = vpop.permute.xlu0 %2427 }
 0x2fe   :  { %8153 = vst [vmem:[#allocation166_spill] sm:$0xff] %v6237_v35 }
 0x301   :  { %v3429_v53 = vpop.permute.xlu0 %3428 }
 0x305   :  { %v6241_v14 = vpop.permute.xlu1 %2413  ;;  %v3437_v20 = vpop.permute.xlu0 %3436 }
 0x306   :  { %8155 = vst [vmem:[#allocation168_spill] sm:$0xff] %v6241_v14  ;;  %v3554_v56 = vcombine.low %v3429_v53, %v3437_v20  ;;  %v3555_v46 = vcombine.high %v3429_v53, %v3437_v20 }
 0x308   :  { %v3562_v27 = vrot.slane %v3554_v56, %v4856_v10  ;;  %v6247_v35 = vrot.slane %v3555_v46, %v4856_v10 }
 0x309   :  { %v6243_v49 = vpop.permute.xlu1 %2421  ;;  %v3445_v47 = vpop.permute.xlu0 %3444 }
 0x30a   :  { %8156 = vst [vmem:[#allocation169_spill] sm:$0xff] %v6243_v49 }
 0x30d   :  { %v3425_v45 = vpop.permute.xlu1 %3424  ;;  %v3453_v24 = vpop.permute.xlu0 %3452 }
 0x30e   :  { %v3690_v53 = vcombine.low %v3445_v47, %v3453_v24  ;;  %v3691_v39 = vcombine.high %v3445_v47, %v3453_v24 }
 0x310   :  { %v6264_v57 = vrot.slane %v3691_v39, %v4856_v10 }
 0x311   :  { %v3433_v32 = vpop.permute.xlu1 %3432  ;;  %v3427_v41 = vpop.permute.xlu0 %3426 }
 0x312   :  { %v3538_v5 = vcombine.low %v3425_v45, %v3433_v32  ;;  %v3539_v21 = vcombine.high %v3425_v45, %v3433_v32 }
 0x314   :  { %v3546_v9 = vrot.slane %v3538_v5, %v4856_v10  ;;  %v6251_v23 = vrot.slane %v3539_v21, %v4856_v10  ;;  %v3698_v5 = vrot.slane %v3690_v53, %v4856_v10 }
 0x315   :  { %v3441_v58 = vpop.permute.xlu1 %3440  ;;  %v3435_v15 = vpop.permute.xlu0 %3434 }
 0x316   :  { %v3570_v43 = vcombine.low %v3546_v9, %v3562_v27  ;;  %v3487_v19 = vcombine.high %v3427_v41, %v3435_v15 }
 0x318   :  { %v6256_v45 = vrot.slane %v3570_v43, %v4889_v31  ;;  %v6284_v22 = vrot.slane %v3487_v19, %v4856_v10 }
 0x319   :  { %v3449_v56 = vpop.permute.xlu1 %3448  ;;  %v6258_v32 = vpop.permute.xlu0 %3442 }
 0x31a   :  { %8157 = vst [vmem:[#allocation170_spill] sm:$0xff] %v6256_v45  ;;  %v3674_v46 = vcombine.low %v3441_v58, %v3449_v56  ;;  %v3675_v18 = vcombine.high %v3441_v58, %v3449_v56  ;;  %v3602_v21 = vcombine.high %v6256_v45, %v7952_v28  ;;  %v3486_v56 = vcombine.low %v3427_v41, %v3435_v15 }
 0x31c   :  { %v3682_v20 = vrot.slane %v3674_v46, %v4856_v10  ;;  %v6268_v24 = vrot.slane %v3675_v18, %v4856_v10  ;;  %3800 = vrot.lane.b32.xlu1 %v3602_v21, %s4617_s22  ;;  %v6281_v21 = vrot.slane %v3486_v56, %v4856_v10 }
 0x31d   :  { %v3423_v43 = vpop.permute.xlu1 %3422  ;;  %v6271_v47 = vpop.permute.xlu0 %3450 }
 0x31e   :  { %v3706_v1 = vcombine.low %v3682_v20, %v3698_v5  ;;  %v3622_v19 = vcombine.low %v6258_v32, %v6271_v47 }
 0x320   :  { %v6276_v53 = vrot.slane %v3706_v1, %v4889_v31  ;;  %v6313_v61 = vrot.slane %v3622_v19, %v4856_v10 }
 0x321   :  { %v3431_v39 = vpop.permute.xlu1 %3430  ;;  %v3889_v63 = vpop.permute.xlu0 %3888 }
 0x322   :  { %8158 = vst [vmem:[#allocation171_spill] sm:$0xff] %v6276_v53  ;;  %v3470_v46 = vcombine.low %v3423_v43, %v3431_v39  ;;  %v3471_v16 = vcombine.high %v3423_v43, %v3431_v39  ;;  %v3738_v18 = vcombine.high %v6276_v53, %v7952_v28 }
 0x324   :  { %v6287_v58 = vrot.slane %v3470_v46, %v4856_v10  ;;  %v6290_v15 = vrot.slane %v3471_v16, %v4856_v10  ;;  %3802 = vrot.lane.b32.xlu0 %v3738_v18, %s4617_s22  ;;  %v3571_v18 = vcombine.high %v3546_v9, %v3562_v27 }
 0x325   :  { %v6293_v1 = vpop.permute.xlu1 %3438  ;;  %v3897_v41 = vpop.permute.xlu0 %3896 }
 0x326   :  { %v3502_v43 = vcombine.low %v6287_v58, %v6281_v21  ;;  %v6324_v27 = vrot.slane %v3571_v18, %v4889_v31  ;;  %v4014_v3 = vcombine.low %v3889_v63, %v3897_v41  ;;  %v4015_v12 = vcombine.high %v3889_v63, %v3897_v41 }
 0x328   :  { %v6302_v39 = vrot.slane %v3502_v43, %v4889_v31  ;;  %v6334_v53 = vrot.slane %v4014_v3, %v4856_v10  ;;  %v6337_v18 = vrot.slane %v4015_v12, %v4856_v10 }
 0x329   :  { %v6304_v46 = vpop.permute.xlu1 %3446  ;;  %v6306_v16 = vpop.permute.xlu0 %3904 }
 0x32a   :  { %8159 = vst [vmem:[#allocation172_spill] sm:$0xff] %v6302_v39  ;;  %v3606_v6 = vcombine.low %v6293_v1, %v6304_v46  ;;  %v3534_v4 = vcombine.high %v6302_v39, %v7952_v28  ;;  %v3094_v39 = vcombine.low %v8120_v11, %v8122_v42  ;;  %v6390_v11 = vrot.slane %v3078_v25, %v4856_v10 }
 0x32c   :  { %v6316_v56 = vrot.slane %v3606_v6, %v4856_v10  ;;  %3744 = vrot.lane.b32.xlu1 %v3534_v4, %s4617_s22  ;;  %v3707_v4 = vcombine.high %v3682_v20, %v3698_v5 }
 0x32d   :  { %v3885_v43 = vpop.permute.xlu1 %3884  ;;  %v6319_v7 = vpop.permute.xlu0 %3912 }
 0x32e   :  { %v3638_v9 = vcombine.low %v6316_v56, %v6313_v61  ;;  %v6353_v12 = vrot.slane %v3707_v4, %v4889_v31 }
 0x330   :  { %3808 = vrot.lane.b32.xlu1 %v6324_v27, %s4614_s19  ;;  %v6329_v19 = vrot.slane %v3638_v9, %v4889_v31 }
 0x331   :  { %v3893_v6 = vpop.permute.xlu1 %3892  ;;  %v2500_v36 = vpop.permute.xlu0 %2499 }
 0x332   :  { %8160 = vst [vmem:[#allocation173_spill] sm:$0xff] %v6329_v19  ;;  %v3998_v49 = vcombine.low %v3885_v43, %v3893_v6  ;;  %v3999_v50 = vcombine.high %v3885_v43, %v3893_v6  ;;  %v3670_v14 = vcombine.high %v6329_v19, %v7952_v28 }
 0x334   :  { %v6340_v63 = vrot.slane %v3998_v49, %v4856_v10  ;;  %v6343_v41 = vrot.slane %v3999_v50, %v4856_v10  ;;  %3746 = vrot.lane.b32.xlu0 %v3670_v14, %s4617_s22  ;;  %v4150_v49 = vcombine.low %v6306_v16, %v6319_v7 }
 0x335   :  { %v6346_v20 = vpop.permute.xlu1 %3900  ;;  %v2508_v5 = vpop.permute.xlu0 %2507 }
 0x336   :  { %v4030_v43 = vcombine.low %v6340_v63, %v6334_v53  ;;  %v6369_v4 = vrot.slane %v4150_v49, %v4856_v10  ;;  %v2626_v59 = vcombine.high %v2500_v36, %v2508_v5 }
 0x338   :  { %3810 = vrot.lane.b32.xlu0 %v6353_v12, %s4614_s19  ;;  %v6360_v50 = vrot.slane %v4030_v43, %v4889_v31 }
 0x339   :  { %v6362_v14 = vpop.permute.xlu1 %3908  ;;  %v2516_v9 = vpop.permute.xlu0 %2515 }
 0x33a   :  { %8161 = vst [vmem:[#allocation174_spill] sm:$0xff] %v6360_v50  ;;  %v4134_v6 = vcombine.low %v6346_v20, %v6362_v14  ;;  %v4062_v3 = vcombine.high %v6360_v50, %v7952_v28  ;;  %v2625_v50 = vcombine.low %v2500_v36, %v2508_v5  ;;  %v6396_v36 = vrot.slane %v2626_v59, %v4856_v10 }
 0x33c   :  { %v6372_v19 = vrot.slane %v4134_v6, %v4856_v10  ;;  %4260 = vrot.lane.b32.xlu1 %v4062_v3, %s4617_s22  ;;  %v6385_v3 = vrot.slane %v3094_v39, %v4856_v10  ;;  %v6393_v52 = vrot.slane %v2625_v50, %v4856_v10  ;;  %8163 = vst [vmem:[#allocation176_spill] sm:$0xff] %v6396_v36 }
 0x33d   :  { %v2496_v45 = vpop.permute.xlu1 %2495  ;;  %v2524_v43 = vpop.permute.xlu0 %2523 }
 0x33e   :  { %v4166_v30 = vcombine.low %v6372_v19, %v6369_v4  ;;  %v2761_v50 = vcombine.low %v2516_v9, %v2524_v43 }
 0x340   :  { %v6382_v49 = vrot.slane %v4166_v30, %v4889_v31 }
 0x341   :  { %v2504_v6 = vpop.permute.xlu1 %2503  ;;  %v3887_v55 = vpop.permute.xlu0 %3886 }
 0x342   :  { %8162 = vst [vmem:[#allocation175_spill] sm:$0xff] %v6382_v49  ;;  %v2609_v33 = vcombine.low %v2496_v45, %v2504_v6  ;;  %v2610_v29 = vcombine.high %v2496_v45, %v2504_v6  ;;  %v4198_v42 = vcombine.high %v6382_v49, %v7952_v28  ;;  %v3230_v45 = vcombine.low %v8124_v2, %v8125_v40 }
 0x343   :  { %v2762_v6 = vcombine.high %v2516_v9, %v2524_v43 }
 0x344   :  { %v6399_v30 = vrot.slane %v2609_v33, %v4856_v10  ;;  %v6402_v54 = vrot.slane %v2610_v29, %v4856_v10  ;;  %4262 = vrot.lane.b32.xlu0 %v4198_v42, %s4617_s22  ;;  %v3110_v33 = vcombine.low %v6390_v11, %v6385_v3  ;;  %v3214_v29 = vcombine.low %v8130_v34, %v8132_v8 }
 0x345   :  { %v2512_v39 = vpop.permute.xlu1 %2511  ;;  %v3895_v25 = vpop.permute.xlu0 %3894  ;;  %v6419_v2 = vrot.slane %v3230_v45, %v4856_v10  ;;  %v6432_v34 = vrot.slane %v2761_v50, %v4856_v10  ;;  %v6435_v9 = vrot.slane %v2762_v6, %v4856_v10 }
 0x346   :  { %8164 = vst [vmem:[#allocation177_spill] sm:$0xff] %v6402_v54  ;;  %v2641_v5 = vcombine.low %v6399_v30, %v6393_v52  ;;  %v6426_v17 = vrot.slane %v3110_v33, %v4889_v31  ;;  %v6429_v8 = vrot.slane %v3214_v29, %v4856_v10  ;;  %v3503_v29 = vcombine.high %v6287_v58, %v6281_v21 }
 0x347   :  { %v3946_v6 = vcombine.low %v3887_v55, %v3895_v25 }
 0x348   :  { %v6416_v42 = vrot.slane %v2641_v5, %v4889_v31  ;;  %8167 = vst [vmem:[#allocation180_spill] sm:$0xff] %v6426_v17  ;;  %v3246_v33 = vcombine.low %v6429_v8, %v6419_v2  ;;  %v6464_v36 = vrot.slane %v3503_v29, %v4889_v31  ;;  %v3639_v29 = vcombine.high %v6316_v56, %v6313_v61 }
 0x349   :  { %v2520_v40 = vpop.permute.xlu1 %2519  ;;  %v6421_v49 = vpop.permute.xlu0 %3902 }
 0x34a   :  { %8165 = vst [vmem:[#allocation178_spill] sm:$0xff] %v6416_v42  ;;  %8166 = vst [vmem:[#allocation179_spill] sm:$0xff] %v6421_v49  ;;  %v2745_v26 = vcombine.low %v2512_v39, %v2520_v40  ;;  %v2746_v13 = vcombine.high %v2512_v39, %v2520_v40  ;;  %v2673_v59 = vcombine.high %v6416_v42, %v7952_v28 }
 0x34b   :  { %v6461_v54 = vrot.slane %v3246_v33, %v4889_v31 }
 0x34c   :  { %v6438_v43 = vrot.slane %v2745_v26, %v4856_v10  ;;  %v6441_v45 = vrot.slane %v2746_v13, %v4856_v10  ;;  %2871 = vrot.lane.b32.xlu1 %v2673_v59, %s4617_s22  ;;  %v3142_v13 = vcombine.high %v6426_v17, %v7952_v28  ;;  %v3947_v59 = vcombine.high %v3887_v55, %v3895_v25 }
 0x34d   :  { %v3883_v39 = vpop.permute.xlu1 %3882  ;;  %v6444_v5 = vpop.permute.xlu0 %3910  ;;  %8170 = vst [vmem:[#allocation183_spill] sm:$0xff] %v6461_v54  ;;  %v6469_v17 = vrot.slane %v3946_v6, %v4856_v10 }
 0x34e   :  { %8168 = vst [vmem:[#allocation181_spill] sm:$0xff] %v6444_v5  ;;  %v2777_v50 = vcombine.low %v6438_v43, %v6432_v34  ;;  %v6472_v25 = vrot.slane %v3947_v59, %v4856_v10  ;;  %v3603_v59 = vcombine.high %v6324_v27, %v7952_v28  ;;  %v6509_v27 = vrot.slane %v3639_v29, %v4889_v31 }
 0x34f   :  { %v3739_v29 = vcombine.high %v6353_v12, %v7952_v28  ;;  %v4167_v12 = vcombine.high %v6372_v19, %v6369_v4 }
 0x350   :  { %3340 = vrot.lane.b32.xlu1 %v3142_v13, %s4617_s22  ;;  %v6458_v40 = vrot.slane %v2777_v50, %v4889_v31 }
 0x351   :  { %v3891_v42 = vpop.permute.xlu1 %3890  ;;  %v2498_v55 = vpop.permute.xlu0 %2497 }
 0x352   :  { %8169 = vst [vmem:[#allocation182_spill] sm:$0xff] %v6458_v40  ;;  %v3930_v58 = vcombine.low %v3883_v39, %v3891_v42  ;;  %v3931_v21 = vcombine.high %v3883_v39, %v3891_v42  ;;  %v2809_v26 = vcombine.high %v6458_v40, %v7952_v28  ;;  %v3278_v39 = vcombine.high %v6461_v54, %v7952_v28 }
 0x354   :  { %v6475_v50 = vrot.slane %v3930_v58, %v4856_v10  ;;  %v6478_v33 = vrot.slane %v3931_v21, %v4856_v10  ;;  %3752 = vrot.lane.b32.xlu1 %v6464_v36, %s4614_s19  ;;  %2873 = vrot.lane.b32.xlu0 %v2809_v26, %s4617_s22  ;;  %v4082_v26 = vcombine.low %v6421_v49, %v6444_v5 }
 0x355   :  { %v6483_v42 = vpop.permute.xlu1 %3898  ;;  %v2506_v61 = vpop.permute.xlu0 %2505  ;;  %v4031_v21 = vcombine.high %v6340_v63, %v6334_v53 }
 0x356   :  { %v3962_v13 = vcombine.low %v6475_v50, %v6469_v17  ;;  %v2558_v54 = vcombine.high %v2498_v55, %v2506_v61 }
 0x357   :  { %v6527_v40 = vrot.slane %v4031_v21, %v4889_v31 }
 0x358   :  { %3816 = vrot.lane.b32.xlu1 %v3603_v59, %s4618_s23  ;;  %3342 = vrot.lane.b32.xlu0 %v3278_v39, %s4617_s22  ;;  %v6500_v58 = vrot.slane %v3962_v13, %v4889_v31  ;;  %v6514_v39 = vrot.slane %v4082_v26, %v4856_v10 }
 0x359   :  { %v6502_v56 = vpop.permute.xlu1 %3906  ;;  %v2514_v26 = vpop.permute.xlu0 %2513 }
 0x35a   :  { %8171 = vst [vmem:[#allocation184_spill] sm:$0xff] %v6500_v58  ;;  %v4066_v6 = vcombine.low %v6483_v42, %v6502_v56  ;;  %v3994_v59 = vcombine.high %v6500_v58, %v7952_v28  ;;  %v2557_v58 = vcombine.low %v2498_v55, %v2506_v61  ;;  %v3010_v61 = vcombine.low %v8134_v51, %v8135_v48 }
 0x35c   :  { %v6517_v13 = vrot.slane %v4066_v6, %v4856_v10  ;;  %3754 = vrot.lane.b32.xlu0 %v6509_v27, %s4614_s19  ;;  %4204 = vrot.lane.b32.xlu1 %v3994_v59, %s4617_s22  ;;  %v3026_v59 = vcombine.low %v8127_v38, %v8129_v44 }
 0x35d   :  { %v2494_v53 = vpop.permute.xlu1 %2493  ;;  %v2522_v4 = vpop.permute.xlu0 %2521 }
 0x35e   :  { %v4098_v63 = vcombine.low %v6517_v13, %v6514_v39  ;;  %v6557_v19 = vrot.slane %v3026_v59, %v4856_v10 }
 0x360   :  { %3818 = vrot.lane.b32.xlu0 %v3739_v29, %s4618_s23  ;;  %4268 = vrot.lane.b32.xlu1 %v6527_v40, %s4614_s19  ;;  %v6533_v6 = vrot.slane %v4098_v63, %v4889_v31  ;;  %v6544_v29 = vrot.slane %v2557_v58, %v4856_v10  ;;  %v6547_v63 = vrot.slane %v2558_v54, %v4856_v10 }
 0x361   :  { %v2502_v49 = vpop.permute.xlu1 %2501  ;;  %v6564_v54 = vrot.slane %v4167_v12, %v4889_v31  ;;  %v6567_v58 = vrot.slane %v3010_v61, %v4856_v10  ;;  %v2642_v12 = vcombine.high %v6399_v30, %v6393_v52 }
 0x362   :  { %8172 = vst [vmem:[#allocation185_spill] sm:$0xff] %v6533_v6  ;;  %v2541_v21 = vcombine.low %v2494_v53, %v2502_v49  ;;  %v2542_v5 = vcombine.high %v2494_v53, %v2502_v49  ;;  %v4130_v55 = vcombine.high %v6533_v6, %v7952_v28  ;;  %v2694_v53 = vcombine.high %v2514_v26, %v2522_v4 }
 0x363   :  { %v3042_v48 = vcombine.low %v6567_v58, %v6557_v19 }
 0x364   :  { %v6550_v38 = vrot.slane %v2541_v21, %v4856_v10  ;;  %v6553_v44 = vrot.slane %v2542_v5, %v4856_v10  ;;  %4206 = vrot.lane.b32.xlu0 %v4130_v55, %s4617_s22  ;;  %v2693_v5 = vcombine.low %v2514_v26, %v2522_v4  ;;  %v3162_v21 = vcombine.low %v8131_v0, %v8133_v60 }
 0x365   :  { %v2510_v49 = vpop.permute.xlu1 %2509  ;;  %v3146_v4 = vcombine.low %v8136_v37, %v8137_v62  ;;  %v2656_v62 = vrot.slane %v2642_v12, %v4889_v31  ;;  %v6600_v37 = vrot.slane %v3042_v48, %v4889_v31 }
 0x366   :  { %8173 = vst [vmem:[#allocation186_spill] sm:$0xff] %v6553_v44  ;;  %v2573_v51 = vcombine.low %v6550_v38, %v6544_v29  ;;  %v6586_v44 = vrot.slane %v2694_v53, %v4856_v10  ;;  %v6594_v52 = vrot.slane %v3162_v21, %v4856_v10  ;;  %v3111_v53 = vcombine.high %v6390_v11, %v6385_v3 }
 0x367   :  { %v2778_v21 = vcombine.high %v6438_v43, %v6432_v34  ;;  %v3586_v11 = vcombine.low %v6251_v23, %v6247_v35  ;;  %v3535_v34 = vcombine.high %v6464_v36, %v7952_v28  ;;  %v3722_v36 = vcombine.low %v6268_v24, %v6264_v57 }
 0x368   :  { %4270 = vrot.lane.b32.xlu0 %v6564_v54, %s4614_s19  ;;  %v6572_v59 = vrot.slane %v2573_v51, %v4889_v31  ;;  %v2701_v51 = vrot.slane %v2693_v5, %v4856_v10  ;;  %v3154_v5 = vrot.slane %v3146_v4, %v4856_v10  ;;  %v3247_v4 = vcombine.high %v6429_v8, %v6419_v2 }
 0x369   :  { %v2518_v55 = vpop.permute.xlu1 %2517  ;;  %v3671_v8 = vcombine.high %v6509_v27, %v7952_v28 }
 0x36a   :  { %8174 = vst [vmem:[#allocation187_spill] sm:$0xff] %v6572_v59  ;;  %v2677_v61 = vcombine.low %v2510_v49, %v2518_v55  ;;  %v2678_v6 = vcombine.high %v2510_v49, %v2518_v55  ;;  %v2605_v26 = vcombine.high %v6572_v59, %v7952_v28  ;;  %v3074_v55 = vcombine.high %v6600_v37, %v7952_v28 }
 0x36b   :  { %v3178_v12 = vcombine.low %v3154_v5, %v6594_v52 }
 0x36c   :  { %v2685_v60 = vrot.slane %v2677_v61, %v4856_v10  ;;  %v6590_v0 = vrot.slane %v2678_v6, %v4856_v10  ;;  %2815 = vrot.lane.b32.xlu1 %v2605_v26, %s4617_s22  ;;  %v3125_v61 = vrot.slane %v3111_v53, %v4889_v31  ;;  %v2792_v26 = vrot.slane %v2778_v21, %v4889_v31 }
 0x36d   :  { %v6621_v3 = vrot.slane %v3178_v12, %v4889_v31  ;;  %v3594_v53 = vrot.slane %v3586_v11, %v4889_v31  ;;  %v3261_v21 = vrot.slane %v3247_v4, %v4889_v31 }
 0x36e   :  { %v2709_v30 = vcombine.low %v2685_v60, %v2701_v51 }
 0x36f   :  { %v3210_v43 = vcombine.high %v6621_v3, %v7952_v28 }
 0x370   :  { %2879 = vrot.lane.b32.xlu1 %v2656_v62, %s4614_s19  ;;  %v6605_v6 = vrot.slane %v2709_v30, %v4889_v31  ;;  %v3963_v30 = vcombine.high %v6475_v50, %v6469_v17  ;;  %v4099_v17 = vcombine.high %v6517_v13, %v6514_v39  ;;  %v2574_v50 = vcombine.high %v6550_v38, %v6544_v29 }
 0x371   :  { %v2710_v39 = vcombine.high %v2685_v60, %v2701_v51  ;;  %v2674_v13 = vcombine.high %v2656_v62, %v7952_v28  ;;  %v3043_v29 = vcombine.high %v6567_v58, %v6557_v19  ;;  %v3179_v51 = vcombine.high %v3154_v5, %v6594_v52 }
 0x372   :  { %8175 = vst [vmem:[#allocation188_spill] sm:$0xff] %v6605_v6  ;;  %v2741_v48 = vcombine.high %v6605_v6, %v7952_v28  ;;  %v3977_v2 = vrot.slane %v3963_v30, %v4889_v31  ;;  %v2588_v27 = vrot.slane %v2574_v50, %v4889_v31  ;;  %v4113_v12 = vrot.slane %v4099_v17, %v4889_v31 }
 0x373   :  { %v3057_v38 = vrot.slane %v3043_v29, %v4889_v31  ;;  %v2724_v11 = vrot.slane %v2710_v39, %v4889_v31  ;;  %v3607_v19 = vcombine.high %v6293_v1, %v6304_v46  ;;  %v3143_v58 = vcombine.high %v3125_v61, %v7952_v28  ;;  %v8179_v29 = vld [vmem:[#allocation26_spill] sm:$0xff] }
 0x374   :  { %3284 = vrot.lane.b32.xlu1 %v3074_v55, %s4617_s22  ;;  %2817 = vrot.lane.b32.xlu0 %v2741_v48, %s4617_s22  ;;  %v4063_v55 = vcombine.high %v6527_v40, %v7952_v28  ;;  %v3730_v48 = vrot.slane %v3722_v36, %v4889_v31  ;;  %v4199_v40 = vcombine.high %v6564_v54, %v7952_v28 }
 0x375   :  { %v3518_v54 = vcombine.low %v6290_v15, %v6284_v22  ;;  %v2810_v60 = vcombine.high %v2792_v26, %v7952_v28  ;;  %v3623_v62 = vcombine.high %v6258_v32, %v6271_v47  ;;  %v3193_v5 = vrot.slane %v3179_v51, %v4889_v31 }
 0x376   :  { %v3604_v47 = vcombine.high %v3594_v53, %v7952_v28  ;;  %v3279_v46 = vcombine.high %v3261_v21, %v7952_v28  ;;  %v4151_v30 = vcombine.high %v6306_v16, %v6319_v7  ;;  %v3740_v36 = vcombine.high %v3730_v48, %v7952_v28  ;;  %v8176_v16 = vld [vmem:[#allocation176_spill] sm:$0xff] }
 0x377   :  { %v3526_v52 = vrot.slane %v3518_v54, %v4889_v31  ;;  %v6689_v1 = vrot.slane %v3623_v62, %v4856_v10  ;;  %v4131_v17 = vcombine.high %v4113_v12, %v7952_v28 }
 0x378   :  { %3348 = vrot.lane.b32.xlu1 %v3125_v61, %s4614_s19  ;;  %2881 = vrot.lane.b32.xlu0 %v2792_v26, %s4614_s19  ;;  %v4046_v61 = vcombine.low %v6343_v41, %v6337_v18  ;;  %v4135_v26 = vcombine.high %v6346_v20, %v6362_v14  ;;  %v6715_v20 = vrot.slane %v4151_v30, %v4856_v10  ;;  %v8177_v14 = vld [vmem:[#allocation177_spill] sm:$0xff] }
 0x37c   :  { %3760 = vrot.lane.b32.xlu1 %v3535_v34, %s4618_s23  ;;  %3286 = vrot.lane.b32.xlu0 %v3210_v43, %s4617_s22  ;;  %v6684_v34 = vrot.slane %v3607_v19, %v4856_v10  ;;  %v3995_v43 = vcombine.high %v3977_v2, %v7952_v28 }
 0x37e   :  { %v3654_v32 = vcombine.low %v6684_v34, %v6689_v1 }
 0x380   :  { %3824 = vrot.lane.b32.xlu1 %v3594_v53, %s4615_s20  ;;  %3350 = vrot.lane.b32.xlu0 %v3261_v21, %s4614_s19  ;;  %v3662_v4 = vrot.slane %v3654_v32, %v4889_v31  ;;  %v6710_v53 = vrot.slane %v4135_v26, %v4856_v10  ;;  %v4054_v21 = vrot.slane %v4046_v61, %v4889_v31 }
 0x381   :  { %v3211_v32 = vcombine.high %v3193_v5, %v7952_v28  ;;  %v3978_v26 = vcombine.low %v6478_v33, %v6472_v25 }
 0x382   :  { %v4182_v7 = vcombine.low %v6710_v53, %v6715_v20 }
 0x384   :  { %4212 = vrot.lane.b32.xlu1 %v3977_v2, %s4614_s19  ;;  %3762 = vrot.lane.b32.xlu0 %v3671_v8, %s4618_s23  ;;  %v2657_v2 = vcombine.low %v8177_v14, %v8176_v16  ;;  %v2606_v8 = vcombine.high %v2588_v27, %v7952_v28 }
 0x388   :  { %4276 = vrot.lane.b32.xlu1 %v4063_v55, %s4618_s23  ;;  %3826 = vrot.lane.b32.xlu0 %v3730_v48, %s4615_s20  ;;  %v6730_v55 = vrot.slane %v2657_v2, %v4889_v31  ;;  %v4190_v48 = vrot.slane %v4182_v7, %v4889_v31  ;;  %v8184_v2 = vld [vmem:[#allocation181_spill] sm:$0xff] }
 0x38c   :  { %2823 = vrot.lane.b32.xlu1 %v2588_v27, %s4614_s19  ;;  %4214 = vrot.lane.b32.xlu0 %v4113_v12, %s4614_s19  ;;  %v2793_v27 = vcombine.low %v6441_v45, %v6435_v9  ;;  %v3075_v12 = vcombine.high %v3057_v38, %v7952_v28 }
 0x38e   :  { %v6725_v50 = vpop.permute.xlu1 %3800 }
 0x390   :  { %2887 = vrot.lane.b32.xlu1 %v2674_v13, %s4618_s23  ;;  %4278 = vrot.lane.b32.xlu0 %v4199_v40, %s4618_s23  ;;  %v2742_v13 = vcombine.high %v2724_v11, %v7952_v28  ;;  %v8178_v40 = vld [vmem:[#allocation22_spill] sm:$0xff] }
 0x391   :  { %v3126_v51 = vcombine.low %v8179_v29, %v8178_v40 }
 0x394   :  { %3292 = vrot.lane.b32.xlu1 %v3057_v38, %s4614_s19  ;;  %2825 = vrot.lane.b32.xlu0 %v2724_v11, %s4614_s19  ;;  %v3536_v11 = vcombine.high %v3526_v52, %v7952_v28 }
 0x396   :  { %v6744_v54 = vpop.permute.xlu0 %3802 }
 0x398   :  { %3356 = vrot.lane.b32.xlu1 %v3143_v58, %s4618_s23  ;;  %2889 = vrot.lane.b32.xlu0 %v2810_v60, %s4618_s23  ;;  %v6751_v58 = vrot.slane %v3126_v51, %v4889_v31  ;;  %v2801_v60 = vrot.slane %v2793_v27, %v4889_v31 }
 0x39c   :  { %3768 = vrot.lane.b32.xlu1 %v3526_v52, %s4615_s20  ;;  %3294 = vrot.lane.b32.xlu0 %v3193_v5, %s4614_s19  ;;  %v8183_v52 = vcombine.high %v6251_v23, %v6247_v35  ;;  %v6795_v23 = vrot.slane %v3978_v26, %v4889_v31  ;;  %v3672_v35 = vcombine.high %v3662_v4, %v7952_v28 }
 0x39d   :  { %v2725_v26 = vcombine.low %v6590_v0, %v6586_v44 }
 0x39e   :  { %v6733_v39 = vpop.permute.xlu1 %3744  ;;  %v6779_v5 = vrot.slane %v8183_v52, %v4889_v31  ;;  %v8189_v52 = vld [vmem:[#allocation5_spill] sm:$0xff] }
 0x3a0   :  { %3832 = vrot.lane.b32.xlu1 %v3604_v47, %s4619_s24  ;;  %3358 = vrot.lane.b32.xlu0 %v3279_v46, %s4618_s23  ;;  %v8180_v47 = vld [vmem:[#allocation23_spill] sm:$0xff] }
 0x3a1   :  { %v8181_v46 = vld [vmem:[#allocation27_spill] sm:$0xff] }
 0x3a2   :  { %v6748_v19 = vpop.permute.xlu1 %3808  ;;  %v3262_v61 = vcombine.low %v8181_v46, %v8180_v47 }
 0x3a4   :  { %4220 = vrot.lane.b32.xlu1 %v3995_v43, %s4618_s23  ;;  %3770 = vrot.lane.b32.xlu0 %v3662_v4, %s4615_s20  ;;  %v4067_v43 = vcombine.high %v6483_v42, %v6502_v56  ;;  %v3270_v7 = vrot.slane %v3262_v61, %v4889_v31 }
 0x3a6   :  { %v6754_v62 = vpop.permute.xlu0 %3746  ;;  %v6788_v42 = vrot.slane %v4067_v43, %v4856_v10 }
 0x3a8   :  { %4284 = vrot.lane.b32.xlu1 %v4054_v21, %s4615_s20  ;;  %3834 = vrot.lane.b32.xlu0 %v3740_v36, %s4619_s24 }
 0x3aa   :  { %v6771_v30 = vpop.permute.xlu0 %3810 }
 0x3ac   :  { %2831 = vrot.lane.b32.xlu1 %v2606_v8, %s4618_s23  ;;  %4222 = vrot.lane.b32.xlu0 %v4131_v17, %s4618_s23  ;;  %v8185_v8 = vld [vmem:[#allocation179_spill] sm:$0xff] }
 0x3ad   :  { %v4083_v17 = vcombine.high %v8185_v8, %v8184_v2  ;;  %v2350_v2 = vcombine.high %v8189_v52, %v7952_v28  ;;  %v8191_v52 = vld [vmem:[#allocation25_spill] sm:$0xff] }
 0x3ae   :  { %v6759_v38 = vpop.permute.xlu1 %4260 }
 0x3b0   :  { %2895 = vrot.lane.b32.xlu1 %v6730_v55, %s4615_s20  ;;  %4286 = vrot.lane.b32.xlu0 %v4190_v48, %s4615_s20 }
 0x3b4   :  { %3300 = vrot.lane.b32.xlu1 %v3075_v12, %s4618_s23  ;;  %2833 = vrot.lane.b32.xlu0 %v2742_v13, %s4618_s23  ;;  %v6799_v12 = vrot.slane %v4083_v17, %v4856_v10  ;;  %v6831_v17 = vrot.slane %v2725_v26, %v4889_v31 }
 0x3b6   :  { %v6790_v56 = vpop.permute.xlu0 %4262  ;;  %v4114_v13 = vcombine.low %v6788_v42, %v6799_v12 }
 0x3b7   :  { %8186 = vst [vmem:[#allocation177_spill] sm:$0xff] %v6790_v56  ;;  %v3280_v56 = vcombine.high %v3270_v7, %v7952_v28 }
 0x3b8   :  { %3364 = vrot.lane.b32.xlu1 %v6751_v58, %s4615_s20  ;;  %2897 = vrot.lane.b32.xlu0 %v2801_v60, %s4615_s20 }
 0x3bc   :  { %3776 = vrot.lane.b32.xlu1 %v3536_v11, %s4619_s24  ;;  %3302 = vrot.lane.b32.xlu0 %v3211_v32, %s4618_s23  ;;  %v4064_v11 = vcombine.high %v4054_v21, %v7952_v28  ;;  %v8188_v32 = vcombine.high %v6268_v24, %v6264_v57  ;;  %v4122_v21 = vrot.slane %v4114_v13, %v4889_v31  ;;  %v8190_v57 = vld [vmem:[#allocation186_spill] sm:$0xff] }
 0x3bd   :  { %v2589_v24 = vcombine.low %v8190_v57, %v6547_v63  ;;  %v2811_v13 = vcombine.high %v2801_v60, %v7952_v28  ;;  %v2675_v60 = vcombine.high %v6730_v55, %v7952_v28 }
 0x3be   :  { %v6773_v36 = vpop.permute.xlu1 %2871  ;;  %v3737_v4 = vrot.slane %v8188_v32, %v4889_v31 }
 0x3bf   :  { %8182 = vst [vmem:[#allocation176_spill] sm:$0xff] %v6773_v36  ;;  %v6841_v32 = vrot.slane %v2589_v24, %v4889_v31  ;;  %v8193_v24 = vld [vmem:[#allocation24_spill] sm:$0xff] }
 0x3c0   :  { %3840 = vrot.lane.b32.xlu1 %v6779_v5, %s4616_s21  ;;  %3366 = vrot.lane.b32.xlu0 %v3270_v7, %s4615_s20 }
 0x3c2   :  { %v6792_v27 = vpop.permute.xlu1 %3340 }
 0x3c4   :  { %4228 = vrot.lane.b32.xlu1 %v6795_v23, %s4615_s20  ;;  %3778 = vrot.lane.b32.xlu0 %v3672_v35, %s4619_s24  ;;  %v4200_v35 = vcombine.high %v4190_v48, %v7952_v28 }
 0x3c6   :  { %v6806_v51 = vpop.permute.xlu0 %2873  ;;  %v6813_v61 = vpop.permute.xlu1 %3752 }
 0x3c7   :  { %8187 = vst [vmem:[#allocation22_spill] sm:$0xff] %v6806_v51 }
 0x3c8   :  { %4292 = vrot.lane.b32.xlu1 %v4064_v11, %s4619_s24  ;;  %3842 = vrot.lane.b32.xlu0 %v3737_v4, %s4616_s21 }
 0x3ca   :  { %v6819_v43 = vpop.permute.xlu0 %3342  ;;  %v6828_v8 = vpop.permute.xlu1 %3816 }
 0x3cc   :  { %2429 = vrot.lane.b32.xlu1 %v2350_v2, %s4618_s23  ;;  %4230 = vrot.lane.b32.xlu0 %v4122_v21, %s4615_s20  ;;  %v8192_v2 = vld [vmem:[#allocation29_spill] sm:$0xff] }
 0x3cd   :  { %v3194_v49 = vcombine.low %v8192_v2, %v8191_v52 }
 0x3ce   :  { %v6834_v11 = vpop.permute.xlu0 %3754  ;;  %v6845_v51 = vpop.permute.xlu1 %4204 }
 0x3cf   :  { %v6853_v26 = vrot.slane %v3194_v49, %v4889_v31 }
 0x3d0   :  { %2841 = vrot.lane.b32.xlu1 %v6831_v17, %s4615_s20  ;;  %4294 = vrot.lane.b32.xlu0 %v4200_v35, %s4619_s24  ;;  %v8194_v35 = vld [vmem:[#allocation28_spill] sm:$0xff] }
 0x3d1   :  { %v3058_v6 = vcombine.low %v8194_v35, %v8193_v24  ;;  %v3741_v35 = vcombine.high %v3737_v4, %v7952_v28  ;;  %v4183_v4 = vcombine.high %v6710_v53, %v6715_v20 }
 0x3d2   :  { %v6850_v48 = vpop.permute.xlu0 %3818  ;;  %v6864_v36 = vpop.permute.xlu1 %4268 }
 0x3d3   :  { %v6868_v49 = vrot.slane %v3058_v6, %v4889_v31  ;;  %v8197_v6 = vld [vmem:[#allocation164_spill] sm:$0xff] }
 0x3d4   :  { %2905 = vrot.lane.b32.xlu1 %v2811_v13, %s4619_s24  ;;  %2839 = vrot.lane.b32.xlu0 %v6841_v32, %s4615_s20  ;;  %v3655_v13 = vcombine.high %v6684_v34, %v6689_v1  ;;  %v3144_v34 = vcombine.high %v6751_v58, %v7952_v28  ;;  %v8198_v1 = vld [vmem:[#allocation162_spill] sm:$0xff]  ;;  %v8202_v58 = vld [vmem:[#allocation163_spill] sm:$0xff] }
 0x3d5   :  { %v2302_v7 = vcombine.high %v8198_v1, %v8197_v6  ;;  %v8205_v6 = vld [vmem:[#allocation157_spill] sm:$0xff] }
 0x3d6   :  { %v6870_v59 = vpop.permute.xlu0 %4206 }
 0x3d7   :  { %8195 = vst [vmem:[#allocation26_spill] sm:$0xff] %v6870_v59  ;;  %v8203_v59 = vld [vmem:[#allocation160_spill] sm:$0xff] }
 0x3d8   :  { %3310 = vrot.lane.b32.xlu1 %v6853_v26, %s4615_s20  ;;  %2903 = vrot.lane.b32.xlu0 %v2675_v60, %s4619_s24  ;;  %v6878_v60 = vrot.slane %v3655_v13, %v4889_v31  ;;  %v8201_v13 = vcombine.high %v6290_v15, %v6284_v22  ;;  %v2286_v52 = vcombine.high %v8203_v59, %v8202_v58  ;;  %v8207_v58 = vld [vmem:[#allocation156_spill] sm:$0xff] }
 0x3d9   :  { %v3605_v59 = vcombine.high %v6779_v5, %v7952_v28  ;;  %v4197_v5 = vrot.slane %v4183_v4, %v4889_v31  ;;  %v8208_v4 = vcombine.high %v6343_v41, %v6337_v18 }
 0x3da   :  { %v6918_v2 = vrot.slane %v2286_v52, %v4856_v10 }
 0x3dc   :  { %3374 = vrot.lane.b32.xlu1 %v3280_v56, %s4619_s24  ;;  %3308 = vrot.lane.b32.xlu0 %v6868_v49, %s4615_s20  ;;  %v6887_v56 = vpop.permute.xlu0 %4270 }
 0x3dd   :  { %8199 = vst [vmem:[#allocation27_spill] sm:$0xff] %v6887_v56 }
 0x3de   :  { %v6875_v55 = vpop.permute.xlu1 %2815 }
 0x3df   :  { %8196 = vst [vmem:[#allocation23_spill] sm:$0xff] %v6875_v55  ;;  %v6896_v55 = vrot.slane %v8201_v13, %v4889_v31  ;;  %v4132_v13 = vcombine.high %v4122_v21, %v7952_v28 }
 0x3e0   :  { %3786 = vrot.lane.b32.xlu1 %v6878_v60, %s4616_s21  ;;  %3372 = vrot.lane.b32.xlu0 %v3144_v34, %s4619_s24  ;;  %v8204_v34 = vld [vmem:[#allocation159_spill] sm:$0xff] }
 0x3e1   :  { %v2166_v1 = vcombine.high %v8205_v6, %v8204_v34  ;;  %v3996_v34 = vcombine.high %v6795_v23, %v7952_v28 }
 0x3e2   :  { %v6889_v24 = vpop.permute.xlu1 %2879 }
 0x3e3   :  { %8200 = vst [vmem:[#allocation181_spill] sm:$0xff] %v6889_v24  ;;  %v6906_v24 = vrot.slane %v2302_v7, %v4856_v10  ;;  %v6923_v53 = vrot.slane %v2166_v1, %v4856_v10 }
 0x3e4   :  { %3850 = vrot.lane.b32.xlu1 %v3741_v35, %s4620_s25  ;;  %3784 = vrot.lane.b32.xlu0 %v6896_v55, %s4616_s21  ;;  %v8206_v35 = vld [vmem:[#allocation158_spill] sm:$0xff] }
 0x3e5   :  { %v2150_v56 = vcombine.high %v8207_v58, %v8206_v35  ;;  %v2333_v20 = vcombine.low %v6918_v2, %v6906_v24  ;;  %v4061_v35 = vrot.slane %v8208_v4, %v4889_v31 }
 0x3e6   :  { %v3285_v22 = vpop.permute.xlu1 %3284  ;;  %v6910_v15 = vpop.permute.xlu0 %2817 }
 0x3e7   :  { %v6933_v52 = vrot.slane %v2150_v56, %v4856_v10  ;;  %v2743_v56 = vcombine.high %v6831_v17, %v7952_v28  ;;  %v2607_v17 = vcombine.high %v6841_v32, %v7952_v28 }
 0x3e8   :  { %4238 = vrot.lane.b32.xlu1 %v4132_v13, %s4619_s24  ;;  %3848 = vrot.lane.b32.xlu0 %v3605_v59, %s4620_s25  ;;  %v2341_v59 = vrot.slane %v2333_v20, %v4889_v31  ;;  %v8209_v20 = vcombine.high %v6441_v45, %v6435_v9  ;;  %v8210_v9 = vcombine.high %v8177_v14, %v8176_v16 }
 0x3e9   :  { %v2197_v6 = vcombine.low %v6933_v52, %v6923_v53  ;;  %v3076_v16 = vcombine.high %v6868_v49, %v7952_v28  ;;  %v4115_v14 = vcombine.high %v6788_v42, %v6799_v12  ;;  %v3394_v42 = vsel %vm593_vm5, %v6600_v37, %v3285_v22 }
 0x3ea   :  { %v3349_v21 = vpop.permute.xlu1 %3348  ;;  %v6927_v7 = vpop.permute.xlu0 %2881  ;;  %v6983_v45 = vrot.slane %v8210_v9, %v4889_v31 }
 0x3eb   :  { %v6953_v58 = vrot.slane %v2197_v6, %v4889_v31 }
 0x3ec   :  { %4302 = vrot.lane.b32.xlu1 %v4197_v5, %s4616_s21  ;;  %4236 = vrot.lane.b32.xlu0 %v3996_v34, %s4619_s24  ;;  %v6966_v34 = vrot.slane %v8209_v20, %v4889_v31 }
 0x3ee   :  { %v3761_v1 = vpop.permute.xlu1 %3760  ;;  %v3287_v13 = vpop.permute.xlu0 %3286 }
 0x3f0   :  { %2437 = vrot.lane.b32.xlu1 %v2341_v59, %s4615_s20  ;;  %4300 = vrot.lane.b32.xlu0 %v4061_v35, %s4616_s21 }
 0x3f2   :  { %v6946_v10 = vpop.permute.xlu1 %3824  ;;  %v6948_v23 = vpop.permute.xlu0 %3350 }
 0x3f4   :  { %2849 = vrot.lane.b32.xlu1 %v2743_v56, %s4619_s24  ;;  %2435 = vrot.lane.b32.xlu0 %v6953_v58, %s4615_s20  ;;  %v3212_v56 = vcombine.high %v6853_v26, %v7952_v28 }
 0x3f6   :  { %v6958_v18 = vpop.permute.xlu1 %4212  ;;  %v6960_v41 = vpop.permute.xlu0 %3762 }
 0x3f8   :  { %2913 = vrot.lane.b32.xlu1 %v6966_v34, %s4616_s21  ;;  %2847 = vrot.lane.b32.xlu0 %v2607_v17, %s4619_s24  ;;  %v8211_v17 = vcombine.high %v8181_v46, %v8180_v47  ;;  %v3673_v47 = vcombine.high %v6878_v60, %v7952_v28  ;;  %v8212_v46 = vcombine.high %v8179_v29, %v8178_v40 }
 0x3f9   :  { %v7025_v60 = vrot.slane %v4115_v14, %v4889_v31  ;;  %v3537_v40 = vcombine.high %v6896_v55, %v7952_v28  ;;  %v4201_v55 = vcombine.high %v4197_v5, %v7952_v28 }
 0x3fa   :  { %v6973_v6 = vpop.permute.xlu1 %4276  ;;  %v6975_v4 = vpop.permute.xlu0 %3826  ;;  %v6996_v26 = vrot.slane %v8211_v17, %v4889_v31  ;;  %v7015_v49 = vrot.slane %v8212_v46, %v4889_v31  ;;  %v8214_v46 = vcombine.high %v6478_v33, %v6472_v25  ;;  %v3395_v33 = vsel %vm593_vm5, %v6621_v3, %v3287_v13  ;;  %v8217_v13 = vld [vmem:[#allocation183_spill] sm:$0xff] }
 0x3fc   :  { %3318 = vrot.lane.b32.xlu1 %v3212_v56, %s4619_s24  ;;  %2911 = vrot.lane.b32.xlu0 %v6983_v45, %s4616_s21 }
 0x3fe   :  { %v6988_v32 = vpop.permute.xlu1 %2823  ;;  %v6990_v20 = vpop.permute.xlu0 %4214 }
 0x400   :  { %3382 = vrot.lane.b32.xlu1 %v6996_v26, %s4616_s21  ;;  %3316 = vrot.lane.b32.xlu0 %v3076_v16, %s4619_s24  ;;  %v8213_v16 = vld [vmem:[#allocation180_spill] sm:$0xff] }
 0x401   :  { %v3408_v37 = vsel %vm593_vm5, %v8213_v16, %v6792_v27 }
 0x402   :  { %v7005_v56 = vpop.permute.xlu1 %2887  ;;  %v7007_v9 = vpop.permute.xlu0 %4278  ;;  %v3410_v22 = vsel %vm596_vm6, %v3408_v37, %v3349_v21  ;;  %v2351_v37 = vcombine.high %v2341_v59, %v7952_v28 }
 0x404   :  { %3794 = vrot.lane.b32.xlu1 %v3673_v47, %s4620_s25  ;;  %3380 = vrot.lane.b32.xlu0 %v7015_v49, %s4616_s21 }
 0x406   :  { %v3293_v12 = vpop.permute.xlu1 %3292  ;;  %v7022_v17 = vpop.permute.xlu0 %2825 }
 0x407   :  { %v7030_v29 = vsel %vm596_vm6, %v3394_v42, %v3293_v12  ;;  %v7046_v42 = vrot.slane %v8214_v46, %v4889_v31 }
 0x408   :  { %4246 = vrot.lane.b32.xlu1 %v7025_v60, %s4616_s21  ;;  %3792 = vrot.lane.b32.xlu0 %v3537_v40, %s4620_s25  ;;  %v8215_v40 = vld [vmem:[#allocation172_spill] sm:$0xff] }
 0x409   :  { %v3854_v27 = vsel %vm593_vm5, %v8215_v40, %v6733_v39  ;;  %v4065_v39 = vcombine.high %v4061_v35, %v7952_v28  ;;  %v8218_v40 = vcombine.high %v6590_v0, %v6586_v44  ;;  %v8220_v44 = vld [vmem:[#allocation184_spill] sm:$0xff] }
 0x40a   :  { %v3357_v14 = vpop.permute.xlu1 %3356  ;;  %v7039_v47 = vpop.permute.xlu0 %2889  ;;  %v3856_v21 = vsel %vm596_vm6, %v3854_v27, %v6813_v61  ;;  %v4314_v0 = vsel %vm593_vm5, %v8220_v44, %v6845_v51  ;;  %v8222_v51 = vld [vmem:[#allocation171_spill] sm:$0xff] }
 0x40b   :  { %v7049_v12 = vsel %vm599_vm7, %v3410_v22, %v3357_v14  ;;  %v3858_v25 = vsel %vm599_vm7, %v3856_v21, %v3761_v1  ;;  %v8216_v22 = vld [vmem:[#allocation170_spill] sm:$0xff]  ;;  %v7090_v27 = vrot.slane %v8218_v40, %v4889_v31  ;;  %v8230_v40 = vld [vmem:[#allocation187_spill] sm:$0xff] }
 0x40c   :  { %4310 = vrot.lane.b32.xlu1 %v4201_v55, %s4620_s25  ;;  %4244 = vrot.lane.b32.xlu0 %v7046_v42, %s4616_s21  ;;  %v3868_v14 = vsel %vm593_vm5, %v8216_v22, %v6725_v50  ;;  %v3409_v50 = vsel %vm593_vm5, %v8217_v13, %v6819_v43  ;;  %v8225_v13 = vld [vmem:[#allocation25_spill] sm:$0xff] }
 0x40d   :  { %v3870_v1 = vsel %vm596_vm6, %v3868_v14, %v6748_v19  ;;  %v3411_v35 = vsel %vm596_vm6, %v3409_v50, %v6948_v23 }
 0x40e   :  { %v3769_v5 = vpop.permute.xlu1 %3768  ;;  %v3295_v16 = vpop.permute.xlu0 %3294  ;;  %v3872_v3 = vsel %vm599_vm7, %v3870_v1, %v6828_v8  ;;  %v2215_v8 = vcombine.high %v6953_v58, %v7952_v28 }
 0x40f   :  { %v7068_v55 = vsel %vm602_vm8, %v3858_v25, %v3769_v5  ;;  %v7071_v61 = vsel %vm596_vm6, %v3395_v33, %v3295_v16  ;;  %v3874_v59 = vsel %vm602_vm8, %v3872_v3, %v6946_v10  ;;  %v8219_v10 = vld [vmem:[#allocation173_spill] sm:$0xff]  ;;  %v4316_v25 = vsel %vm596_vm6, %v4314_v0, %v6958_v18 }
 0x410   :  { %2445 = vrot.lane.b32.xlu1 %v2351_v37, %s4619_s24  ;;  %4308 = vrot.lane.b32.xlu0 %v4065_v39, %s4620_s25  ;;  %v3855_v23 = vsel %vm593_vm5, %v8219_v10, %v6754_v62  ;;  %v2812_v16 = vcombine.high %v6966_v34, %v7952_v28  ;;  %v8221_v37 = vcombine.high %v8190_v57, %v6547_v63  ;;  %v8223_v34 = vld [vmem:[#allocation174_spill] sm:$0xff] }
 0x411   :  { %v3857_v58 = vsel %vm596_vm6, %v3855_v23, %v6834_v11  ;;  %v3869_v11 = vsel %vm593_vm5, %v8222_v51, %v6744_v54  ;;  %v4328_v14 = vsel %vm593_vm5, %v8223_v34, %v6759_v38  ;;  %v8224_v38 = vld [vmem:[#allocation29_spill] sm:$0xff]  ;;  %v3281_v0 = vcombine.high %v6996_v26, %v7952_v28  ;;  %v8236_v51 = vld [vmem:[#allocation176_spill] sm:$0xff]  ;;  %v8238_v26 = vld [vmem:[#allocation27_spill] sm:$0xff] }
 0x412   :  { %v3833_v46 = vpop.permute.xlu1 %3832  ;;  %v3359_v19 = vpop.permute.xlu0 %3358  ;;  %v3859_v33 = vsel %vm599_vm7, %v3857_v58, %v6960_v41  ;;  %v7121_v39 = vrot.slane %v8221_v37, %v4889_v31  ;;  %v3871_v22 = vsel %vm596_vm6, %v3869_v11, %v6771_v30  ;;  %v4330_v63 = vsel %vm596_vm6, %v4328_v14, %v6864_v36  ;;  %v8231_v58 = vld [vmem:[#allocation28_spill] sm:$0xff]  ;;  %v8235_v37 = vld [vmem:[#allocation175_spill] sm:$0xff]  ;;  %v8237_v11 = vld [vmem:[#allocation178_spill] sm:$0xff] }
 0x413   :  { %v7095_v21 = vsel %vm605_vm9, %v3874_v59, %v3833_v46  ;;  %v7098_v43 = vsel %vm599_vm7, %v3411_v35, %v3359_v19  ;;  %v3873_v54 = vsel %vm599_vm7, %v3871_v22, %v6850_v48  ;;  %v4332_v57 = vsel %vm599_vm7, %v4330_v63, %v6973_v6  ;;  %v8227_v6 = vld [vmem:[#allocation26_spill] sm:$0xff]  ;;  %v8229_v19 = vld [vmem:[#allocation23_spill] sm:$0xff]  ;;  %v8239_v14 = vld [vmem:[#allocation181_spill] sm:$0xff] }
 0x414   :  { %2857 = vrot.lane.b32.xlu1 %v7090_v27, %s4616_s21  ;;  %2443 = vrot.lane.b32.xlu0 %v2215_v8, %s4619_s24  ;;  %v3875_v30 = vsel %vm602_vm8, %v3873_v54, %v6975_v4  ;;  %v8226_v50 = vcombine.high %v8224_v38, %v8225_v13  ;;  %v2676_v35 = vcombine.high %v6983_v45, %v7952_v28  ;;  %v8228_v4 = vld [vmem:[#allocation185_spill] sm:$0xff] }
 0x415   :  { %v4315_v46 = vsel %vm593_vm5, %v8228_v4, %v8227_v6  ;;  %v2925_v8 = vsel %vm593_vm5, %v8230_v40, %v8229_v19  ;;  %v2939_v22 = vsel %vm593_vm5, %v8237_v11, %v8236_v51  ;;  %v3145_v54 = vcombine.high %v7015_v49, %v7952_v28  ;;  %v8242_v40 = vld [vmem:[#allocation182_spill] sm:$0xff] }
 0x416   :  { %v4221_v5 = vpop.permute.xlu1 %4220  ;;  %v3771_v62 = vpop.permute.xlu0 %3770  ;;  %v3209_v59 = vrot.slane %v8226_v50, %v4889_v31  ;;  %v2927_v45 = vsel %vm596_vm6, %v2925_v8, %v6988_v32  ;;  %v4317_v10 = vsel %vm596_vm6, %v4315_v46, %v6990_v20  ;;  %v8234_v32 = vld [vmem:[#allocation177_spill] sm:$0xff]  ;;  %v2941_v63 = vsel %vm596_vm6, %v2939_v22, %v8239_v14 }
 0x417   :  { %v7127_v18 = vsel %vm599_vm7, %v4316_v25, %v4221_v5  ;;  %v7130_v41 = vsel %vm602_vm8, %v3859_v33, %v3771_v62  ;;  %v8232_v25 = vld [vmem:[#allocation24_spill] sm:$0xff]  ;;  %v4329_v20 = vsel %vm593_vm5, %v8235_v37, %v8234_v32  ;;  %v4133_v13 = vcombine.high %v7025_v60, %v7952_v28 }
 0x418   :  { %2921 = vrot.lane.b32.xlu1 %v2812_v16, %s4620_s25  ;;  %2855 = vrot.lane.b32.xlu0 %v7121_v39, %s4616_s21  ;;  %v8233_v33 = vcombine.high %v8231_v58, %v8232_v25  ;;  %v4331_v34 = vsel %vm596_vm6, %v4329_v20, %v8238_v26  ;;  %v3997_v4 = vcombine.high %v7046_v42, %v7952_v28 }
 0x41a   :  { %v4285_v1 = vpop.permute.xlu1 %4284  ;;  %v3835_v3 = vpop.permute.xlu0 %3834  ;;  %v3073_v5 = vrot.slane %v8233_v33, %v4889_v31 }
 0x41b   :  { %v7155_v36 = vsel %vm602_vm8, %v4332_v57, %v4285_v1  ;;  %v7158_v48 = vsel %vm605_vm9, %v3875_v30, %v3835_v3  ;;  %v2334_v57 = vcombine.high %v6918_v2, %v6906_v24  ;;  %v2943_v30 = vsel %vm599_vm7, %v2941_v63, %v7005_v56  ;;  %v8240_v2 = vld [vmem:[#allocation188_spill] sm:$0xff] }
 0x41c   :  { %3326 = vrot.lane.b32.xlu1 %v3209_v59, %s4616_s21  ;;  %2919 = vrot.lane.b32.xlu0 %v2676_v35, %s4620_s25  ;;  %v4333_v1 = vsel %vm599_vm7, %v4331_v34, %v7007_v9  ;;  %v2926_v24 = vsel %vm593_vm5, %v8240_v2, %v6910_v15  ;;  %v2198_v56 = vcombine.high %v6933_v52, %v6923_v53  ;;  %v8241_v15 = vld [vmem:[#allocation22_spill] sm:$0xff] }
 0x41d   :  { %v2928_v9 = vsel %vm596_vm6, %v2926_v24, %v7022_v17  ;;  %v2348_v6 = vrot.slane %v2334_v57, %v4889_v31  ;;  %v2940_v53 = vsel %vm593_vm5, %v8242_v40, %v8241_v15  ;;  %v8243_v15 = vld [vmem:[#allocation168_spill] sm:$0xff]  ;;  %v8244_v40 = vld [vmem:[#allocation2_spill] sm:$0xff] }
 0x41e   :  { %v2832_v23 = vpop.permute.xlu1 %2831  ;;  %v4223_v44 = vpop.permute.xlu0 %4222  ;;  %v2942_v52 = vsel %vm596_vm6, %v2940_v53, %v6927_v7  ;;  %v2480_v53 = vsel %vm593_vm5, %v8244_v40, %v8243_v15 }
 0x41f   :  { %v7179_v62 = vsel %vm599_vm7, %v2927_v45, %v2832_v23  ;;  %v7182_v16 = vsel %vm599_vm7, %v4317_v10, %v4223_v44  ;;  %v2944_v17 = vsel %vm599_vm7, %v2942_v52, %v7039_v47  ;;  %v2212_v45 = vrot.slane %v2198_v56, %v4889_v31  ;;  %v8245_v52 = vld [vmem:[#allocation169_spill] sm:$0xff] }
 0x420   :  { %3390 = vrot.lane.b32.xlu1 %v3281_v0, %s4620_s25  ;;  %3324 = vrot.lane.b32.xlu0 %v3073_v5, %s4616_s21  ;;  %v3213_v47 = vcombine.high %v3209_v59, %v7952_v28  ;;  %v2608_v0 = vcombine.high %v7121_v39, %v7952_v28  ;;  %v2352_v25 = vcombine.high %v2348_v6, %v7952_v28 }
 0x421   :  { %v3077_v59 = vcombine.high %v3073_v5, %v7952_v28  ;;  %v2216_v37 = vcombine.high %v2212_v45, %v7952_v28 }
 0x422   :  { %v2896_v3 = vpop.permute.xlu1 %2895  ;;  %v4287_v38 = vpop.permute.xlu0 %4286 }
 0x423   :  { %v7207_v50 = vsel %vm602_vm8, %v2943_v30, %v2896_v3  ;;  %v7210_v35 = vsel %vm602_vm8, %v4333_v1, %v4287_v38 }
 0x424   :  { %4254 = vrot.lane.b32.xlu1 %v4133_v13, %s4620_s25  ;;  %3388 = vrot.lane.b32.xlu0 %v3145_v54, %s4620_s25 }
 0x426   :  { %v3301_v49 = vpop.permute.xlu1 %3300  ;;  %v2834_v60 = vpop.permute.xlu0 %2833 }
 0x427   :  { %v7226_v46 = vsel %vm599_vm7, %v7030_v29, %v3301_v49  ;;  %v2930_v19 = vsel %vm599_vm7, %v2928_v9, %v2834_v60  ;;  %v2744_v29 = vcombine.high %v7090_v27, %v7952_v28 }
 0x428   :  { %2453 = vrot.lane.b32.xlu1 %v2348_v6, %s4616_s21  ;;  %4252 = vrot.lane.b32.xlu0 %v3997_v4, %s4620_s25 }
 0x42a   :  { %v3365_v42 = vpop.permute.xlu1 %3364  ;;  %v2898_v8 = vpop.permute.xlu0 %2897 }
 0x42b   :  { %v3414_v10 = vsel %vm602_vm8, %v7049_v12, %v3365_v42  ;;  %v2946_v23 = vsel %vm602_vm8, %v2944_v17, %v2898_v8  ;;  %v2482_v17 = vsel %vm596_vm6, %v2480_v53, %v8245_v52  ;;  %v8258_v52 = vld [vmem:[#allocation77_spill] sm:$0xff] }
 0x42c   :  { %2865 = vrot.lane.b32.xlu1 %v2744_v29, %s4620_s25  ;;  %2451 = vrot.lane.b32.xlu0 %v2212_v45, %s4616_s21 }
 0x42e   :  { %v3777_v7 = vpop.permute.xlu1 %3776  ;;  %v3303_v44 = vpop.permute.xlu0 %3302 }
 0x42f   :  { %v3862_v27 = vsel %vm605_vm9, %v7068_v55, %v3777_v7  ;;  %v3399_v31 = vsel %vm599_vm7, %v7071_v61, %v3303_v44  ;;  %v4621_v61 = vmov 0  }
 0x430   :  { %3334 = vrot.lane.b32.xlu1 %v3213_v47, %s4620_s25  ;;  %2863 = vrot.lane.b32.xlu0 %v2608_v0, %s4620_s25 }
 0x431   :  { %4607 = vset.pattern.permute.xlu0 %v4621_v61  ;;  %v8248_v61 = vld [vmem:[#allocation43_spill] sm:$0xff] }
 0x432   :  { %v3841_v12 = vpop.permute.xlu1 %3840  ;;  %v3367_v58 = vpop.permute.xlu0 %3366 }
 0x433   :  { %v7259_v39 = vsel %vm608_vm10, %v7095_v21, %v3841_v12  ;;  %v3415_v55 = vsel %vm602_vm8, %v7098_v43, %v3367_v58  ;;  %v4408_v43 = vld [vmem:[%s7837_s2] sm:$0xff] }
 0x434   :  { %2461 = vrot.lane.b32.xlu1 %v2352_v25, %s4620_s25  ;;  %3332 = vrot.lane.b32.xlu0 %v3077_v59, %s4620_s25  ;;  %v8246_v25 = vld [vmem:[#allocation44_spill] sm:$0xff] }
 0x435   :  { %v8247_v59 = vld [vmem:[#allocation4_spill] sm:$0xff] }
 0x436   :  { %v4229_v33 = vpop.permute.xlu1 %4228  ;;  %v3779_v32 = vpop.permute.xlu0 %3778 }
 0x437   :  { %v7268_v5 = vsel %vm602_vm8, %v7127_v18, %v4229_v33  ;;  %v3863_v21 = vsel %vm605_vm9, %v7130_v41, %v3779_v32  ;;  %v8249_v33 = vld [vmem:[#allocation3_spill] sm:$0xff] }
 0x438   :  { %2459 = vrot.lane.b32.xlu0 %v2216_v37, %s4620_s25  ;;  %v594_v32 = vsel %vm593_vm5, %v8249_v33, %v8248_v61  ;;  %v8263_v61 = vld [vmem:[#allocation37_spill] sm:$0xff]  ;;  %v8264_v33 = vld [vmem:[#allocation32_spill] sm:$0xff] }
 0x43a   :  { %v4293_v20 = vpop.permute.xlu1 %4292  ;;  %v3843_v51 = vpop.permute.xlu0 %3842 }
 0x43b   :  { %v7278_v11 = vsel %vm605_vm9, %v7155_v36, %v4293_v20  ;;  %v7282_v28 = vsel %vm608_vm10, %v7158_v48, %v3843_v51  ;;  %v8251_v51 = vld [vmem:[#allocation30_spill] sm:$0xff] }
 0x43c   :  { %4411 = vperm.xlu0 %4607, %v4408_v43   ;;  %v8250_v43 = vld [vmem:[#allocation31_spill] sm:$0xff] }
 0x43e   :  { %v2430_v18 = vpop.permute.xlu1 %2429  ;;  %v4231_v22 = vpop.permute.xlu0 %4230 }
 0x43f   :  { %v7286_v41 = vsel %vm602_vm8, %v7182_v16, %v4231_v22  ;;  %v2484_v42 = vsel %vm599_vm7, %v2482_v17, %v2430_v18  ;;  %v597_v18 = vsel %vm596_vm6, %v594_v32, %v8251_v51  ;;  %v8252_v22 = vld [vmem:[#allocation46_spill] sm:$0xff]  ;;  %v8266_v51 = vld [vmem:[#allocation55_spill] sm:$0xff] }
 0x440   :  { %v8259_v17 = vld [vmem:[#allocation38_spill] sm:$0xff] }
 0x442   :  { %v2842_v26 = vpop.permute.xlu1 %2841  ;;  %v4295_v34 = vpop.permute.xlu0 %4294 }
 0x443   :  { %v7289_v14 = vsel %vm602_vm8, %v2930_v19, %v2842_v26 }
 0x446   :  { %v2906_v63 = vpop.permute.xlu1 %2905  ;;  %v2840_v54 = vpop.permute.xlu0 %2839 }
 0x447   :  { %v7292_v36 = vsel %vm605_vm9, %v2946_v23, %v2906_v63  ;;  %v7296_v48 = vsel %vm602_vm8, %v7179_v62, %v2840_v54  ;;  %v8253_v63 = vld [vmem:[#allocation53_spill] sm:$0xff]  ;;  %v8254_v54 = vld [vmem:[#allocation10_spill] sm:$0xff] }
 0x44a   :  { %v3311_v57 = vpop.permute.xlu1 %3310  ;;  %v2904_v30 = vpop.permute.xlu0 %2903 }
 0x44b   :  { %v7299_v1 = vsel %vm602_vm8, %v3399_v31, %v3311_v57  ;;  %v7303_v16 = vsel %vm605_vm9, %v7207_v50, %v2904_v30  ;;  %v615_v57 = vsel %vm593_vm5, %v8254_v54, %v8253_v63  ;;  %v4337_v30 = vsel %vm605_vm9, %v7210_v35, %v4295_v34  ;;  %v8268_v63 = vld [vmem:[#allocation64_spill] sm:$0xff] }
 0x44e   :  { %v3375_v3 = vpop.permute.xlu1 %3374  ;;  %v3309_v38 = vpop.permute.xlu0 %3308 }
 0x44f   :  { %v7306_v13 = vsel %vm605_vm9, %v3415_v55, %v3375_v3  ;;  %v7310_v2 = vsel %vm602_vm8, %v7226_v46, %v3309_v38  ;;  %v595_v55 = vsel %vm593_vm5, %v8247_v59, %v8246_v25  ;;  %v8255_v3 = vld [vmem:[#allocation45_spill] sm:$0xff]  ;;  %v8261_v25 = vld [vmem:[#allocation47_spill] sm:$0xff] }
 0x450   :  { %v598_v20 = vsel %vm596_vm6, %v595_v55, %v8250_v43  ;;  %v600_v38 = vsel %vm599_vm7, %v597_v18, %v8255_v3  ;;  %v8262_v59 = vld [vmem:[#allocation33_spill] sm:$0xff]  ;;  %v8270_v3 = vld [vmem:[#allocation62_spill] sm:$0xff] }
 0x451   :  { %v601_v26 = vsel %vm599_vm7, %v598_v20, %v8252_v22  ;;  %v603_v32 = vsel %vm602_vm8, %v600_v38, %v8264_v33  ;;  %v8265_v43 = vld [vmem:[#allocation49_spill] sm:$0xff]  ;;  %v8267_v22 = vld [vmem:[#allocation108_spill] sm:$0xff] }
 0x452   :  { %v3787_v62 = vpop.permute.xlu1 %3786  ;;  %v3373_v24 = vpop.permute.xlu0 %3372  ;;  %v604_v55 = vsel %vm602_vm8, %v601_v26, %v8262_v59  ;;  %v1069_v54 = vsel %vm593_vm5, %v8268_v63, %v8267_v22  ;;  %v8275_v59 = vld [vmem:[#allocation48_spill] sm:$0xff]  ;;  %v8281_v63 = vld [vmem:[#allocation58_spill] sm:$0xff] }
 0x453   :  { %v7313_v56 = vsel %vm608_vm10, %v3863_v21, %v3787_v62  ;;  %v7316_v9 = vsel %vm605_vm9, %v3414_v10, %v3373_v24  ;;  %v8256_v62 = vld [vmem:[#allocation52_spill] sm:$0xff]  ;;  %v8257_v24 = vld [vmem:[#allocation9_spill] sm:$0xff]  ;;  %v607_v20 = vsel %vm605_vm9, %v604_v55, %v8265_v43 }
 0x454   :  { %v8276_v55 = vld [vmem:[#allocation40_spill] sm:$0xff] }
 0x455   :  { %v8279_v33 = vld [vmem:[#allocation84_spill] sm:$0xff] }
 0x456   :  { %v7318_v49 = vpop.permute.xlu1 %3850  ;;  %v3785_v50 = vpop.permute.xlu0 %3784  ;;  %v1071_v43 = vsel %vm596_vm6, %v1069_v54, %v8279_v33  ;;  %v8286_v54 = vld [vmem:[#allocation39_spill] sm:$0xff] }
 0x457   :  { %v7321_v60 = vsel %vm608_vm10, %v3862_v27, %v3785_v50  ;;  %v614_v50 = vsel %vm593_vm5, %v8257_v24, %v8256_v62  ;;  %v8271_v62 = vld [vmem:[#allocation67_spill] sm:$0xff] }
 0x45a   :  { %v7323_v6 = vpop.permute.xlu1 %4238  ;;  %v7325_v4 = vpop.permute.xlu0 %3848 }
 0x45e   :  { %v4303_v46 = vpop.permute.xlu1 %4302  ;;  %v7327_v19 = vpop.permute.xlu0 %4236 }
 0x45f   :  { %v4339_v15 = vsel %vm608_vm10, %v4337_v30, %v4303_v46  ;;  %v617_v46 = vsel %vm596_vm6, %v615_v57, %v8263_v61  ;;  %v8269_v30 = vld [vmem:[#allocation36_spill] sm:$0xff] }
 0x460   :  { %v619_v18 = vsel %vm599_vm7, %v617_v46, %v8266_v51  ;;  %v616_v26 = vsel %vm596_vm6, %v614_v50, %v8269_v30  ;;  %v8278_v61 = vld [vmem:[#allocation56_spill] sm:$0xff]  ;;  %v8280_v51 = vld [vmem:[#allocation35_spill] sm:$0xff] }
 0x461   :  { %v610_v22 = vsel %vm608_vm10, %v607_v20, %v8280_v51  ;;  %v8294_v51 = vld [vmem:[#allocation42_spill] sm:$0xff] }
 0x462   :  { %v2438_v8 = vpop.permute.xlu1 %2437  ;;  %v4301_v29 = vpop.permute.xlu0 %4300 }
 0x463   :  { %v7336_v45 = vsel %vm602_vm8, %v2484_v42, %v2438_v8  ;;  %v1068_v42 = vsel %vm593_vm5, %v8259_v17, %v8258_v52  ;;  %v8260_v8 = vld [vmem:[#allocation82_spill] sm:$0xff]  ;;  %v4338_v38 = vsel %vm608_vm10, %v7278_v11, %v4301_v29  ;;  %v621_v11 = vsel %vm602_vm8, %v619_v18, %v8276_v55  ;;  %v8277_v29 = vld [vmem:[#allocation89_spill] sm:$0xff]  ;;  %v8284_v18 = vld [vmem:[#allocation68_spill] sm:$0xff] }
 0x464   :  { %v1082_v35 = vsel %vm593_vm5, %v8261_v25, %v8260_v8  ;;  %v1070_v57 = vsel %vm596_vm6, %v1068_v42, %v8270_v3  ;;  %v8272_v52 = vld [vmem:[#allocation54_spill] sm:$0xff]  ;;  %v8273_v8 = vld [vmem:[#allocation79_spill] sm:$0xff]  ;;  %v1528_v46 = vsel %vm593_vm5, %v8278_v61, %v8277_v29  ;;  %v623_v30 = vsel %vm605_vm9, %v621_v11, %v8281_v63  ;;  %v8283_v3 = vld [vmem:[#allocation116_spill] sm:$0xff] }
 0x465   :  { %v1084_v24 = vsel %vm596_vm6, %v1082_v35, %v8271_v62  ;;  %v618_v17 = vsel %vm599_vm7, %v616_v26, %v8272_v52  ;;  %v1072_v25 = vsel %vm599_vm7, %v1070_v57, %v8273_v8  ;;  %v7427_v35 = vsel %vm605_vm9, %v603_v32, %v8275_v59  ;;  %v8282_v32 = vld [vmem:[#allocation110_spill] sm:$0xff]  ;;  %v8285_v62 = vld [vmem:[#allocation51_spill] sm:$0xff]  ;;  %v8288_v52 = vld [vmem:[#allocation69_spill] sm:$0xff] }
 0x466   :  { %v7338_v10 = vpop.permute.xlu1 %2849  ;;  %v7340_v23 = vpop.permute.xlu0 %2435  ;;  %v1073_v26 = vsel %vm599_vm7, %v1071_v43, %v8282_v32  ;;  %v1083_v57 = vsel %vm593_vm5, %v8284_v18, %v8283_v3  ;;  %v8289_v59 = vld [vmem:[#allocation80_spill] sm:$0xff]  ;;  %v8290_v11 = vld [vmem:[#allocation85_spill] sm:$0xff]  ;;  %v8296_v32 = vld [vmem:[#allocation87_spill] sm:$0xff] }
 0x467   :  { %v8291_v61 = vld [vmem:[#allocation72_spill] sm:$0xff]  ;;  %v8293_v43 = vld [vmem:[#allocation61_spill] sm:$0xff]  ;;  %v1075_v3 = vsel %vm602_vm8, %v1073_v26, %v8296_v32 }
 0x468   :  { %v1530_v33 = vsel %vm596_vm6, %v1528_v46, %v8291_v61  ;;  %v8297_v18 = vld [vmem:[#allocation92_spill] sm:$0xff]  ;;  %v8303_v61 = vld [vmem:[#allocation70_spill] sm:$0xff]  ;;  %v8307_v32 = vld [vmem:[#allocation81_spill] sm:$0xff] }
 0x469   :  { %v8299_v46 = vld [vmem:[#allocation60_spill] sm:$0xff] }
 0x46a   :  { %v7342_v7 = vpop.permute.xlu1 %2913  ;;  %v7344_v44 = vpop.permute.xlu0 %2847 }
 0x46e   :  { %v7346_v47 = vpop.permute.xlu1 %3318  ;;  %v7348_v0 = vpop.permute.xlu0 %2911 }
 0x472   :  { %v7350_v27 = vpop.permute.xlu1 %3382  ;;  %v7352_v31 = vpop.permute.xlu0 %3316 }
 0x476   :  { %v7354_v12 = vpop.permute.xlu1 %3794  ;;  %v7356_v58 = vpop.permute.xlu0 %3380 }
 0x47a   :  { %v7364_v37 = vpop.permute.xlu1 %4246  ;;  %v7366_v21 = vpop.permute.xlu0 %3792 }
 0x47e   :  { %v4311_v40 = vpop.permute.xlu1 %4310  ;;  %v7385_v53 = vpop.permute.xlu0 %4244 }
 0x47f   :  { %v4341_v34 = vsel %vm611_vm11, %v4339_v15, %v4311_v40 }
 0x480   :  { %4588 = vmatprep.subr.msk.mxu1 %vm4390_vm12, %v4341_v34  ;;  %v8274_v34 = vld [vmem:[#allocation83_spill] sm:$0xff] }
 0x481   :  { %v1086_v50 = vsel %vm599_vm7, %v1084_v24, %v8274_v34  ;;  %v7448_v24 = vsel %vm611_vm11, %v610_v22, %v8285_v62  ;;  %v8295_v22 = vld [vmem:[#allocation91_spill] sm:$0xff]  ;;  %v1085_v62 = vsel %vm596_vm6, %v1083_v57, %v8297_v18  ;;  %v8308_v18 = vld [vmem:[#allocation88_spill] sm:$0xff] }
 0x482   :  { %v7416_v15 = vpop.permute.xlu1 %2445  ;;  %v4309_v40 = vpop.permute.xlu0 %4308  ;;  %v1088_v8 = vsel %vm602_vm8, %v1086_v50, %v8288_v52  ;;  %v625_v50 = vsel %vm608_vm10, %v623_v30, %v8294_v51  ;;  %v1532_v63 = vsel %vm599_vm7, %v1530_v33, %v8295_v22  ;;  %v8300_v52 = vld [vmem:[#allocation112_spill] sm:$0xff] }
 0x483   :  { %v4340_v42 = vsel %vm611_vm11, %v4338_v38, %v4309_v40  ;;  %v620_v38 = vsel %vm602_vm8, %v618_v17, %v8286_v54  ;;  %v8287_v40 = vld [vmem:[#allocation65_spill] sm:$0xff]  ;;  %v1090_v29 = vsel %vm605_vm9, %v1088_v8, %v8290_v11  ;;  %v8292_v17 = vld [vmem:[#allocation96_spill] sm:$0xff]  ;;  %v1077_v30 = vsel %vm605_vm9, %v1075_v3, %v8300_v52  ;;  %v8301_v8 = vld [vmem:[#allocation118_spill] sm:$0xff] }
 0x484   :  { %4585 = vmatprep.subr.msk.mxu0 %vm4390_vm12, %v4340_v42  ;;  %v1074_v20 = vsel %vm602_vm8, %v1072_v25, %v8287_v40  ;;  %v1542_v25 = vsel %vm593_vm5, %v8293_v43, %v8292_v17  ;;  %v8298_v54 = vld [vmem:[#allocation57_spill] sm:$0xff]  ;;  %v8302_v11 = vld [vmem:[#allocation66_spill] sm:$0xff]  ;;  %v1092_v57 = vsel %vm608_vm10, %v1090_v29, %v8303_v61  ;;  %v8304_v33 = vld [vmem:[#allocation76_spill] sm:$0xff] }
 0x485   :  { %v1076_v55 = vsel %vm605_vm9, %v1074_v20, %v8289_v59  ;;  %v7479_v40 = vsel %vm605_vm9, %v620_v38, %v8298_v54  ;;  %v7483_v20 = vsel %vm611_vm11, %v625_v50, %v8299_v46  ;;  %v1087_v59 = vsel %vm599_vm7, %v1085_v62, %v8301_v8  ;;  %v8305_v17 = vld [vmem:[#allocation124_spill] sm:$0xff]  ;;  %v8306_v43 = vld [vmem:[#allocation73_spill] sm:$0xff]  ;;  %v8310_v29 = vld [vmem:[#allocation74_spill] sm:$0xff] }
 0x486   :  { %v7456_v34 = vpop.permute.xlu1 %2857  ;;  %v7458_v42 = vpop.permute.xlu0 %2443  ;;  %v1078_v26 = vsel %vm608_vm10, %v1076_v55, %v8302_v11  ;;  %v1544_v38 = vsel %vm596_vm6, %v1542_v25, %v8304_v33  ;;  %v1529_v51 = vsel %vm593_vm5, %v8306_v43, %v8305_v17  ;;  %v7508_v55 = vsel %vm611_vm11, %v1092_v57, %v8308_v18  ;;  %v8311_v25 = vld [vmem:[#allocation98_spill] sm:$0xff]  ;;  %v8312_v46 = vld [vmem:[#allocation93_spill] sm:$0xff]  ;;  %v8315_v33 = vld [vmem:[#allocation95_spill] sm:$0xff] }
 0x487   :  { %v7504_v3 = vsel %vm611_vm11, %v1078_v26, %v8307_v32  ;;  %8309 = vst [vmem:[#allocation179_spill] sm:$0xff] %v7508_v55  ;;  %v1534_v62 = vsel %vm602_vm8, %v1532_v63, %v8310_v29  ;;  %v1546_v54 = vsel %vm599_vm7, %v1544_v38, %v8311_v25  ;;  %v8313_v8 = vld [vmem:[#allocation101_spill] sm:$0xff]  ;;  %v8314_v61 = vld [vmem:[#allocation90_spill] sm:$0xff]  ;;  %v1089_v17 = vsel %vm602_vm8, %v1087_v59, %v8315_v33  ;;  %v8317_v43 = vld [vmem:[#allocation63_spill] sm:$0xff] }
 0x488   :  { %v1536_v52 = vsel %vm605_vm9, %v1534_v62, %v8312_v46  ;;  %v1548_v11 = vsel %vm602_vm8, %v1546_v54, %v8313_v8  ;;  %v1079_v26 = vsel %vm608_vm10, %v1077_v30, %v8314_v61  ;;  %v8316_v57 = vld [vmem:[#allocation109_spill] sm:$0xff]  ;;  %v8318_v63 = vld [vmem:[#allocation114_spill] sm:$0xff]  ;;  %v8319_v38 = vld [vmem:[#allocation120_spill] sm:$0xff] }
 0x489   :  { %v2005_v32 = vsel %vm593_vm5, %v8317_v43, %v8316_v57  ;;  %v7527_v18 = vsel %vm611_vm11, %v1079_v26, %v8318_v63  ;;  %v1091_v29 = vsel %vm605_vm9, %v1089_v17, %v8319_v38  ;;  %v8320_v62 = vld [vmem:[#allocation100_spill] sm:$0xff]  ;;  %v8321_v30 = vld [vmem:[#allocation103_spill] sm:$0xff]  ;;  %v8323_v61 = vld [vmem:[#allocation126_spill] sm:$0xff] }
 0x48a   :  { %v7498_v50 = vpop.permute.xlu1 %2921  ;;  %v7500_v22 = vpop.permute.xlu0 %2855  ;;  %v1531_v25 = vsel %vm596_vm6, %v1529_v51, %v8320_v62  ;;  %v1550_v46 = vsel %vm605_vm9, %v1548_v11, %v8321_v30  ;;  %v8322_v59 = vld [vmem:[#allocation111_spill] sm:$0xff]  ;;  %v8325_v51 = vld [vmem:[#allocation105_spill] sm:$0xff]  ;;  %v8334_v62 = vld [vmem:[#allocation102_spill] sm:$0xff] }
 0x48b   :  { %v2007_v8 = vsel %vm596_vm6, %v2005_v32, %v8322_v59  ;;  %v1533_v33 = vsel %vm599_vm7, %v1531_v25, %v8323_v61  ;;  %v8324_v43 = vld [vmem:[#allocation75_spill] sm:$0xff]  ;;  %v7550_v63 = vsel %vm608_vm10, %v1550_v46, %v8325_v51  ;;  %v8326_v38 = vld [vmem:[#allocation113_spill] sm:$0xff]  ;;  %v3881_v32 = vsel %vm611_vm11, %v7282_v28, %v7318_v49 }
 0x48c   :  { %v7546_v17 = vsel %vm608_vm10, %v1536_v52, %v8324_v43  ;;  %v2009_v11 = vsel %vm599_vm7, %v2007_v8, %v8326_v38  ;;  %v8327_v25 = vld [vmem:[#allocation115_spill] sm:$0xff]  ;;  %v8328_v59 = vld [vmem:[#allocation97_spill] sm:$0xff]  ;;  %v8332_v8 = vld [vmem:[#allocation122_spill] sm:$0xff] }
 0x48d   :  { %v2011_v30 = vsel %vm602_vm8, %v2009_v11, %v8327_v25  ;;  %v1093_v52 = vsel %vm608_vm10, %v1091_v29, %v8328_v59  ;;  %v8329_v61 = vld [vmem:[#allocation123_spill] sm:$0xff]  ;;  %v8331_v51 = vld [vmem:[#allocation117_spill] sm:$0xff]  ;;  %v1535_v11 = vsel %vm602_vm8, %v1533_v33, %v8334_v62  ;;  %v8336_v59 = vld [vmem:[#allocation128_spill] sm:$0xff]  ;;  %v3880_v62 = vsel %vm611_vm11, %v7259_v39, %v7325_v4 }
 0x48e   :  { %v7540_v57 = vpop.permute.xlu1 %3326  ;;  %v7542_v26 = vpop.permute.xlu0 %2919  ;;  %v8330_v43 = vld [vmem:[#allocation71_spill] sm:$0xff]  ;;  %v2013_v54 = vsel %vm605_vm9, %v2011_v30, %v8331_v51  ;;  %v7569_v38 = vsel %vm611_vm11, %v1093_v52, %v8332_v8  ;;  %v8333_v28 = vld [vmem:[#allocation125_spill] sm:$0xff]  ;;  %v1537_v55 = vsel %vm605_vm9, %v1535_v11, %v8336_v59  ;;  %v3419_v30 = vsel %vm608_vm10, %v7306_v13, %v7350_v27  ;;  %v8342_v59 = vld [vmem:[#allocation132_spill] sm:$0xff] }
 0x48f   :  { %v2019_v46 = vsel %vm593_vm5, %v8330_v43, %v8329_v61  ;;  %v8335_v25 = vld [vmem:[#allocation127_spill] sm:$0xff]  ;;  %v4385_v61 = vrot.slane %v3881_v32, 4  ;;  %v8338_v8 = vld [vmem:[#allocation129_spill] sm:$0xff]  ;;  %v4349_v13 = vrot.slane %v7569_v38, 4  ;;  %v8390_v38 = vrot.slane %v7527_v18, 4 }
 0x490   :  { %v2021_v49 = vsel %vm596_vm6, %v2019_v46, %v8333_v28  ;;  %v8337_v51 = vld [vmem:[#allocation119_spill] sm:$0xff]  ;;  %v8339_v32 = vld [vmem:[#allocation121_spill] sm:$0xff] }
 0x491   :  { %v2023_v29 = vsel %vm599_vm7, %v2021_v49, %v8335_v25  ;;  %v2015_v46 = vsel %vm608_vm10, %v2013_v54, %v8337_v51  ;;  %v8340_v27 = vld [vmem:[#allocation131_spill] sm:$0xff]  ;;  %v8341_v25 = vld [vmem:[#allocation104_spill] sm:$0xff]  ;;  %v8343_v51 = vld [vmem:[#allocation78_spill] sm:$0xff] }
 0x492   :  { %v3391_v43 = vpop.permute.xlu1 %3390  ;;  %v7582_v52 = vpop.permute.xlu0 %3324  ;;  %v2025_v33 = vsel %vm602_vm8, %v2023_v29, %v8338_v8  ;;  %v7594_v49 = vsel %vm611_vm11, %v2015_v46, %v8339_v32  ;;  %v1539_v29 = vsel %vm608_vm10, %v1537_v55, %v8341_v25  ;;  %v1543_v39 = vsel %vm593_vm5, %v8343_v51, %v8342_v59  ;;  %v8344_v4 = vld [vmem:[#allocation133_spill] sm:$0xff]  ;;  %v8345_v46 = vld [vmem:[#allocation140_spill] sm:$0xff]  ;;  %v8346_v8 = vld [vmem:[#allocation86_spill] sm:$0xff] }
 0x493   :  { %v3421_v28 = vsel %vm611_vm11, %v3419_v30, %v3391_v43  ;;  %v2027_v11 = vsel %vm605_vm9, %v2025_v33, %v8340_v27  ;;  %v4323_v43 = vsel %vm605_vm9, %v7286_v41, %v7323_v6  ;;  %v2006_v33 = vsel %vm593_vm5, %v8346_v8, %v8345_v46  ;;  %v8347_v25 = vld [vmem:[#allocation142_spill] sm:$0xff]  ;;  %v8348_v59 = vld [vmem:[#allocation149_spill] sm:$0xff]  ;;  %v8349_v51 = vld [vmem:[#allocation99_spill] sm:$0xff] }
 0x494   :  { %v4406_v54 = vsel %vm4390_vm12, %v3421_v28, %v4385_v61  ;;  %v2029_v30 = vsel %vm608_vm10, %v2027_v11, %v8344_v4  ;;  %v4383_v32 = vrot.slane %v3880_v62, 4  ;;  %v3418_v55 = vsel %vm608_vm10, %v7316_v9, %v7356_v58  ;;  %v8350_v4 = vld [vmem:[#allocation106_spill] sm:$0xff]  ;;  %v8351_v9 = vld [vmem:[#allocation143_spill] sm:$0xff] }
 0x495   :  { %v4325_v61 = vsel %vm608_vm10, %v4323_v43, %v7364_v37  ;;  %v2008_v11 = vsel %vm596_vm6, %v2006_v33, %v8347_v25  ;;  %v2020_v41 = vsel %vm593_vm5, %v8349_v51, %v8348_v59  ;;  %v1545_v46 = vsel %vm596_vm6, %v1543_v39, %v8350_v4  ;;  %v8352_v37 = vld [vmem:[#allocation150_spill] sm:$0xff]  ;;  %v8354_v59 = vld [vmem:[#allocation144_spill] sm:$0xff]  ;;  %v8357_v51 = vld [vmem:[#allocation145_spill] sm:$0xff] }
 0x496   :  { %v4255_v28 = vpop.permute.xlu1 %4254  ;;  %v3389_v27 = vpop.permute.xlu0 %3388  ;;  %v2010_v58 = vsel %vm599_vm7, %v2008_v11, %v8351_v9  ;;  %v2022_v43 = vsel %vm596_vm6, %v2020_v41, %v8352_v37  ;;  %v8353_v33 = vld [vmem:[#allocation134_spill] sm:$0xff]  ;;  %v4322_v39 = vsel %vm605_vm9, %v7268_v5, %v7327_v19  ;;  %v8358_v41 = vld [vmem:[#allocation152_spill] sm:$0xff]  ;;  %v8360_v5 = vld [vmem:[#allocation147_spill] sm:$0xff] }
 0x497   :  { %v3420_v6 = vsel %vm611_vm11, %v3418_v55, %v3389_v27  ;;  %v4327_v62 = vsel %vm611_vm11, %v4325_v61, %v4255_v28  ;;  %v1547_v25 = vsel %vm599_vm7, %v1545_v46, %v8353_v33  ;;  %v2012_v55 = vsel %vm602_vm8, %v2010_v58, %v8354_v59  ;;  %v8355_v61 = vld [vmem:[#allocation151_spill] sm:$0xff]  ;;  %v8359_v9 = vld [vmem:[#allocation136_spill] sm:$0xff] }
 0x498   :  { %4589 = vmatpush1.msk.msra.mxu1 %vm4390_vm12, %v4327_v62  ;;  %v4404_v8 = vsel %vm4390_vm12, %v3420_v6, %v4383_v32  ;;  %v2024_v28 = vsel %vm599_vm7, %v2022_v43, %v8355_v61  ;;  %v8356_v27 = vld [vmem:[#allocation135_spill] sm:$0xff]  ;;  %v2014_v32 = vsel %vm605_vm9, %v2012_v55, %v8357_v51  ;;  %v4324_v62 = vsel %vm608_vm10, %v4322_v39, %v7385_v53  ;;  %v8362_v43 = vld [vmem:[#allocation137_spill] sm:$0xff]  ;;  %v8363_v59 = vld [vmem:[#allocation148_spill] sm:$0xff] }
 0x499   :  { %4529 = vmatprep.subr.mxu1 %v4406_v54  ;;  %v7644_v11 = vsel %vm611_vm11, %v2029_v30, %v8356_v27  ;;  %v2026_v6 = vsel %vm602_vm8, %v2024_v28, %v8358_v41  ;;  %v1549_v58 = vsel %vm602_vm8, %v1547_v25, %v8359_v9  ;;  %v2016_v19 = vsel %vm608_vm10, %v2014_v32, %v8360_v5  ;;  %v8361_v54 = vld [vmem:[#allocation153_spill] sm:$0xff]  ;;  %v8364_v53 = vld [vmem:[#allocation154_spill] sm:$0xff]  ;;  %v8371_v5 = vld [vmem:[#allocation139_spill] sm:$0xff] }
 0x49a   :  { %v2454_v4 = vpop.permute.xlu1 %2453  ;;  %v4253_v46 = vpop.permute.xlu0 %4252  ;;  %v2028_v30 = vsel %vm605_vm9, %v2026_v6, %v8361_v54  ;;  %v1551_v33 = vsel %vm605_vm9, %v1549_v58, %v8362_v43  ;;  %v7663_v55 = vsel %vm611_vm11, %v2016_v19, %v8363_v59  ;;  %v8365_v28 = vld [vmem:[#allocation6_spill] sm:$0xff]  ;;  %v8369_v6 = vld [vmem:[#allocation155_spill] sm:$0xff]  ;;  %v4359_v58 = vrot.slane %v7644_v11, 4  ;;  %v8372_v54 = vld [vmem:[#allocation12_spill] sm:$0xff] }
 0x49b   :  { %v4326_v37 = vsel %vm611_vm11, %v4324_v62, %v4253_v46  ;;  %v2030_v61 = vsel %vm608_vm10, %v2028_v30, %v8364_v53  ;;  %v8366_v25 = vld [vmem:[#allocation146_spill] sm:$0xff]  ;;  %v8370_v46 = vld [vmem:[#allocation7_spill] sm:$0xff]  ;;  %v4360_v53 = vrot.slane %v7663_v55, 4  ;;  %v4346_v55 = vrot.slane %v7504_v3, 4 }
 0x49c   :  { %v2466_v39 = vsel %vm593_vm5, %v8366_v25, %v8365_v28  ;;  %4586 = vmatpush1.msk.msra.mxu0 %vm4390_vm12, %v4326_v37  ;;  %v8367_v27 = vld [vmem:[#allocation130_spill] sm:$0xff]  ;;  %v7679_v62 = vsel %vm611_vm11, %v2030_v61, %v8369_v6  ;;  %v8374_v37 = vld [vmem:[#allocation15_spill] sm:$0xff]  ;;  %v8375_v61 = vld [vmem:[#allocation8_spill] sm:$0xff] }
 0x49d   :  { %v7673_v51 = vsel %vm611_vm11, %v1539_v29, %v8367_v27  ;;  %v8368_v32 = vld [vmem:[#allocation138_spill] sm:$0xff]  ;;  %v2468_v9 = vsel %vm596_vm6, %v2466_v39, %v8370_v46  ;;  %4448 = vmatprep.subr.mxu0 %v4404_v8  ;;  %v8373_v29 = vld [vmem:[#allocation141_spill] sm:$0xff]  ;;  %v8376_v28 = vld [vmem:[#allocation11_spill] sm:$0xff]  ;;  %v3867_v39 = vsel %vm611_vm11, %v7313_v56, %v7354_v12  ;;  %v4361_v27 = vrot.slane %v7679_v62, 4 }
 0x49e   :  { %v1553_v41 = vsel %vm608_vm10, %v1551_v33, %v8368_v32  ;;  %v2465_v30 = vsel %vm593_vm5, %v8373_v29, %v8372_v54  ;;  %v2470_v43 = vsel %vm599_vm7, %v2468_v9, %v8374_v37  ;;  %v2866_v33 = vpop.permute.xlu1 %2865  ;;  %v2452_v59 = vpop.permute.xlu0 %2451  ;;  %v8377_v32 = vld [vmem:[#allocation18_spill] sm:$0xff]  ;;  %v8378_v6 = vld [vmem:[#allocation16_spill] sm:$0xff]  ;;  %v2934_v9 = vsel %vm605_vm9, %v7289_v14, %v7338_v10  ;;  %v8380_v54 = vld [vmem:[#allocation161_spill] sm:$0xff] }
 0x49f   :  { %v7686_v19 = vsel %vm611_vm11, %v1553_v41, %v8371_v5  ;;  %v2467_v8 = vsel %vm596_vm6, %v2465_v30, %v8375_v61  ;;  %v2472_v25 = vsel %vm602_vm8, %v2470_v43, %v8376_v28  ;;  %v8379_v5 = vld [vmem:[#allocation21_spill] sm:$0xff]  ;;  %v2950_v56 = vsel %vm608_vm10, %v7292_v36, %v7342_v7 }
 0x4a0   :  { %v2469_v41 = vsel %vm599_vm7, %v2467_v8, %v8377_v32  ;;  %v2474_v46 = vsel %vm605_vm9, %v2472_v25, %v8378_v6  ;;  %v2479_v29 = vsel %vm593_vm5, %v8380_v54, %v8379_v5  ;;  %v3403_v12 = vsel %vm605_vm9, %v7299_v1, %v7346_v47  ;;  %v8381_v36 = vld [vmem:[#allocation165_spill] sm:$0xff]  ;;  %v8383_v32 = vld [vmem:[#allocation166_spill] sm:$0xff] }
 0x4a1   :  { %v2936_v62 = vsel %vm608_vm10, %v2934_v9, %v7456_v34  ;;  %v4384_v30 = vrot.slane %v3867_v39, 4  ;;  %v3866_v14 = vsel %vm611_vm11, %v7321_v60, %v7366_v21  ;;  %v3405_v10 = vsel %vm608_vm10, %v3403_v12, %v7540_v57  ;;  %v8382_v8 = vld [vmem:[#allocation17_spill] sm:$0xff] }
 0x4a2   :  { %v2938_v37 = vsel %vm611_vm11, %v2936_v62, %v2866_v33  ;;  %v3335_v43 = vpop.permute.xlu1 %3334  ;;  %v2864_v61 = vpop.permute.xlu0 %2863  ;;  %v2476_v7 = vsel %vm608_vm10, %v2474_v46, %v8381_v36  ;;  %v2481_v1 = vsel %vm596_vm6, %v2479_v29, %v8382_v8  ;;  %v2952_v47 = vsel %vm611_vm11, %v2950_v56, %v7498_v50  ;;  %v8384_v46 = vld [vmem:[#allocation167_spill] sm:$0xff]  ;;  %v8385_v54 = vld [vmem:[#allocation13_spill] sm:$0xff] }
 0x4a3   :  { %v3407_v34 = vsel %vm611_vm11, %v3405_v10, %v3335_v43  ;;  %v2933_v60 = vsel %vm605_vm9, %v7296_v48, %v7344_v44  ;;  %v2949_v21 = vsel %vm608_vm10, %v7303_v16, %v7348_v0  ;;  %v3402_v57 = vsel %vm605_vm9, %v7310_v2, %v7352_v31  ;;  %v8386_v62 = vld [vmem:[#allocation19_spill] sm:$0xff]  ;;  %v8387_v43 = vld [vmem:[#allocation14_spill] sm:$0xff] }
 0x4a4   :  { %v4405_v33 = vsel %vm4390_vm12, %v3407_v34, %v4384_v30  ;;  %v4382_v28 = vrot.slane %v3866_v14, 4  ;;  %v2488_v50 = vsel %vm605_vm9, %v7336_v45, %v7416_v15  ;;  %v2935_v25 = vsel %vm608_vm10, %v2933_v60, %v7500_v22  ;;  %v8393_v34 = vld [vmem:[#allocation34_spill] sm:$0xff]  ;;  %v8394_v60 = vld [vmem:[#allocation59_spill] sm:$0xff] }
 0x4a5   :  { %v4372_v39 = vrot.slane %v2938_v37, 4  ;;  %4530 = vmatpush1.msra.mxu1 %v4405_v33  ;;  %v4373_v48 = vrot.slane %v2952_v47, 4  ;;  %v3404_v16 = vsel %vm608_vm10, %v3402_v57, %v7582_v52  ;;  %v2490_v44 = vsel %vm608_vm10, %v2488_v50, %v2454_v4  ;;  %v8392_v47 = vld [vmem:[#allocation94_spill] sm:$0xff]  ;;  %v8396_v57 = vld [vmem:[#allocation179_spill] sm:$0xff] }
 0x4a6   :  { %v2937_v2 = vsel %vm611_vm11, %v2935_v25, %v2864_v61  ;;  %v2462_v0 = vpop.permute.xlu1 %2461  ;;  %v3333_v31 = vpop.permute.xlu0 %3332  ;;  %v2483_v6 = vsel %vm599_vm7, %v2481_v1, %v8383_v32  ;;  %v2951_v45 = vsel %vm611_vm11, %v2949_v21, %v7542_v26  ;;  %v2478_v9 = vsel %vm611_vm11, %v2476_v7, %v8384_v46  ;;  %v8388_v7 = vld [vmem:[#allocation20_spill] sm:$0xff]  ;;  %v8395_v21 = vld [vmem:[#allocation50_spill] sm:$0xff] }
 0x4a7   :  { %v2492_v15 = vsel %vm611_vm11, %v2490_v44, %v2462_v0  ;;  %v3406_v22 = vsel %vm611_vm11, %v3404_v16, %v3333_v31  ;;  %v2485_v52 = vsel %vm602_vm8, %v2483_v6, %v7340_v23  ;;  %v2471_v29 = vsel %vm602_vm8, %v2469_v41, %v8385_v54 }
 0x4a8   :  { %v4403_v4 = vsel %vm4390_vm12, %v3406_v22, %v4382_v28  ;;  %v4402_v5 = vsel %vm4390_vm12, %v2492_v15, %v4373_v48  ;;  %v2487_v26 = vsel %vm605_vm9, %v2485_v52, %v7458_v42  ;;  %v4370_v56 = vrot.slane %v2937_v2, 4 }
 0x4a9   :  { %4449 = vmatpush1.msra.mxu0 %v4403_v4  ;;  %4531 = vmatprep.subr.mxu1 %v4402_v5  ;;  %v4401_v12 = vsel %vm4390_vm12, %v2478_v9, %v4372_v39  ;;  %v2473_v30 = vsel %vm605_vm9, %v2471_v29, %v8386_v62  ;;  %v4371_v14 = vrot.slane %v2951_v45, 4  ;;  %v2489_v23 = vsel %vm608_vm10, %v2487_v26, %v2452_v59 }
 0x4aa   :  { %4532 = vmatpush1.msra.mxu1 %v4401_v12  ;;  %v2460_v10 = vpop.permute.xlu0 %2459  ;;  %v4398_v37 = vsel %vm4390_vm12, %v7686_v19, %v4361_v27  ;;  %v4358_v41 = vrot.slane %v7594_v49, 4  ;;  %v2475_v42 = vsel %vm608_vm10, %v2473_v30, %v8387_v43  ;;  %v4397_v36 = vsel %vm4390_vm12, %v7673_v51, %v4360_v53  ;;  %v4407_v19 = vld [vmem:[%s7838_s1] sm:$0xff]  ;;  %v8389_v27 = vld [vmem:[#allocation107_spill] sm:$0xff] }
 0x4ab   :  { %v2491_v61 = vsel %vm611_vm11, %v2489_v23, %v2460_v10  ;;  %4533 = vmatprep.subr.mxu1 %v4398_v37  ;;  %v2477_v59 = vsel %vm611_vm11, %v2475_v42, %v8388_v7  ;;  %v4394_v49 = vsel %vm4390_vm12, %v7483_v20, %v4349_v13  ;;  %v1554_v51 = vsel %vm611_vm11, %v7550_v63, %v8389_v27  ;;  %v8391_v13 = vld [vmem:[#allocation41_spill] sm:$0xff] }
 0x4ac   :  { %4534 = vmatpush1.msra.mxu1 %v4397_v36  ;;  %v4400_v8 = vsel %vm4390_vm12, %v2491_v61, %v4371_v14  ;;  %v4399_v53 = vsel %vm4390_vm12, %v2477_v59, %v4370_v56  ;;  %v4393_v20 = vsel %vm4390_vm12, %v7448_v24, %v8390_v38  ;;  %v624_v1 = vsel %vm608_vm10, %v7479_v40, %v8391_v13 }
 0x4ad   :  { %4450 = vmatprep.subr.mxu0 %v4400_v8  ;;  %4535 = vmatprep.subr.mxu1 %v4394_v49  ;;  %v1540_v3 = vsel %vm611_vm11, %v7546_v17, %v8392_v47  ;;  %v4396_v63 = vsel %vm4390_vm12, %v1554_v51, %v4359_v58  ;;  %v609_v18 = vsel %vm608_vm10, %v7427_v35, %v8393_v34  ;;  %v8397_v11 = vrot.slane %v8396_v57, 4 }
 0x4ae   :  { %4451 = vmatpush1.msra.mxu0 %v4399_v53  ;;  %4536 = vmatpush1.msra.mxu1 %v4393_v20  ;;  %v626_v24 = vsel %vm611_vm11, %v624_v1, %v8394_v60  ;;  %v4395_v40 = vsel %vm4390_vm12, %v1540_v3, %v4358_v41  ;;  %v612_v17 = vsel %vm611_vm11, %v609_v18, %v8395_v21 }
 0x4af   :  { %4452 = vmatprep.subr.mxu0 %v4396_v63  ;;  %4590 = vmatmul.mubr.msk.f32.vlgmr.msra.gmra.mxu1 %vm4414_vm13, %v4407_v19  ;;  %v4392_v58 = vsel %vm4390_vm12, %v626_v24, %v8397_v11  ;;  %v4391_v33 = vsel %vm4390_vm12, %v612_v17, %v4346_v55 }
 0x4b0   :  { %4453 = vmatpush1.msra.mxu0 %v4395_v40 }
 0x4b1   :  { %4454 = vmatprep.subr.mxu0 %v4392_v58 }
 0x4b2   :  { %4455 = vmatpush1.msra.mxu0 %v4391_v33 }
 0x4b3   :  { %4587 = vmatmul.mubr.msk.f32.vlgmr.msra.gmra.mxu0 %vm4414_vm13, %v4407_v19 }
 0x4b7   :  { %v4412_v35 = vpop.permute.xlu0 %4411 }
 0x56f   :  { %v4571_v28 = vpop.f32.mrf.mxu1 }
 0x570   :  { %v4572_v50 = vadd.f32 %v4571_v28, %v4412_v35 }
 0x571   :  { %v4573_v25 = vpop.f32.mrf.mxu1 }
 0x572   :  { %v4574_v39 = vadd.f32 %v4573_v25, %v4412_v35  ;;  %v4576_v48 = vmax.f32 %v4572_v50, 0.0 }
 0x573   :  { %v4490_v16 = vpop.f32.mrf.mxu0 }
 0x574   :  { %v4491_v44 = vadd.f32 %v4490_v16, %v4412_v35  ;;  %v4577_v2 = vmax.f32 %v4574_v39, 0.0  ;;  %4591 = vst [vmem:[%s7839_s3 + $0x10] sm:$0xff] %v4576_v48 }
 0x575   :  { %v4492_v0 = vpop.f32.mrf.mxu0 }
 0x576   :  { %v4495_v31 = vmax.f32 %v4491_v44, 0.0  ;;  %4592 = vst [vmem:[%s7839_s3 + $0x18] sm:$0xff] %v4577_v2  ;;  %v4493_v32 = vadd.f32 %v4492_v0, %v4412_v35 }
 0x578   :  { %4497 = vst [vmem:[%s7839_s3] sm:$0xff] %v4495_v31  ;;  %v4496_v6 = vmax.f32 %v4493_v32, 0.0 }
 0x57a   :  { %4498 = vst [vmem:[%s7839_s3 + $0x8] sm:$0xff] %v4496_v6 }

// kernel: conv_block_forward.2
= control target key start
LH: loop header
LB: loop body
LE: loop exit
PB: predicated region body
PF: predicated region fallthrough
CT: control target
= control target key end

     0   :  { %s4617_s13 = smov 1   ;;  %v8057_v16 = vmov 0.0   ;;  %vm91_vm0 = vcmask 7168   ;;  %vm108_vm1 = vcmask 138240   ;;  %vm141_vm2 = vcmask 1040384   ;;  %s4623_s15 = smov 32   ;;  %s8051_s0 = inlined_call_operand.vmem [shape: f32[2,4,16,16], index: 0, kind: input, shape index: {}]   ;;  %s8052_s1 = inlined_call_operand.vmem [shape: f32[8,36], index: 1, kind: input, shape index: {}]   ;;  %s8053_s2 = inlined_call_operand.vmem [shape: f32[8,2], index: 2, kind: output, shape index: {}]  }
   0x1   :  { %v13_v0 = vld [vmem:[%s8051_s0 + $0x10] sm:$0xff]  ;;  %v11_v1 = vld [vmem:[%s8051_s0] sm:$0xff]  ;;  %v14_v2 = vld [vmem:[%s8051_s0 + $0x18] sm:$0xff]  ;;  %4479 = vmatprep.mubr.f32.mxu0 %v8057_v16  ;;  %4566 = vmatprep.mubr.f32.mxu1 %v8057_v16  ;;  %vm1561_vm3 = vcmask 1046528   ;;  %vm2950_vm4 = vcmask 1045504   ;;  %s4624_s16 = smov 64  }
   0x2   :  { %47 = vrot.lane.b32.xlu1 %v13_v0, %s4617_s13  ;;  %43 = vrot.lane.b32.xlu0 %v11_v1, %s4617_s13  ;;  %v12_v3 = vld [vmem:[%s8051_s0 + $0x8] sm:$0xff]  ;;  %v15_v5 = vld [vmem:[%s8051_s0 + $0x20] sm:$0xff]  ;;  %s4625_s17 = smov 96   ;;  %s4626_s18 = smov 16   ;;  %vm590_vm5 = vcmask 130048   ;;  %vm593_vm6 = vcmask 261120  }
   0x3   :  { %v16_v4 = vld [vmem:[%s8051_s0 + $0x28] sm:$0xff]  ;;  %v18_v6 = vld [vmem:[%s8051_s0 + $0x38] sm:$0xff]  ;;  %v17_v7 = vld [vmem:[%s8051_s0 + $0x30] sm:$0xff]  ;;  %s4627_s19 = smov 48   ;;  %s4628_s20 = smov 80   ;;  %vm596_vm7 = vcmask 392192  }
   0x4   :  { %v20_v8 = vld [vmem:[%s8051_s0 + $0x48] sm:$0xff]  ;;  %v19_v9 = vld [vmem:[%s8051_s0 + $0x40] sm:$0xff]  ;;  %v22_v10 = vld [vmem:[%s8051_s0 + $0x58] sm:$0xff]  ;;  %s4629_s21 = smov 112   ;;  %vm599_vm8 = vcmask 523264   ;;  %vm602_vm9 = vcmask 654336  }
   0x5   :  { %v21_v11 = vld [vmem:[%s8051_s0 + $0x50] sm:$0xff]  ;;  %v24_v12 = vld [vmem:[%s8051_s0 + $0x68] sm:$0xff]  ;;  %v23_v13 = vld [vmem:[%s8051_s0 + $0x60] sm:$0xff]  ;;  %vm605_vm10 = vcmask 785408   ;;  %vm608_vm11 = vcmask 916480   ;;  %vm4387_vm12 = vcmask 1043456  }
   0x6   :  { %49 = vrot.lane.b32.xlu1 %v14_v2, %s4617_s13  ;;  %45 = vrot.lane.b32.xlu0 %v12_v3, %s4617_s13  ;;  %v26_v14 = vld [vmem:[%s8051_s0 + $0x78] sm:$0xff]  ;;  %v25_v15 = vld [vmem:[%s8051_s0 + $0x70] sm:$0xff]  ;;  %s4619_s0 = smov 127   ;;  %vm4405_vm13 = vcmask 293888   ;;  %vm4587_vm14 = vcmask 15360  }
   0xa   :  { %53 = vrot.lane.b32.xlu1 %v16_v4, %s4617_s13  ;;  %51 = vrot.lane.b32.xlu0 %v15_v5, %s4617_s13 }
   0xe   :  { %57 = vrot.lane.b32.xlu1 %v18_v6, %s4617_s13  ;;  %55 = vrot.lane.b32.xlu0 %v17_v7, %s4617_s13 }
  0x12   :  { %61 = vrot.lane.b32.xlu1 %v20_v8, %s4617_s13  ;;  %59 = vrot.lane.b32.xlu0 %v19_v9, %s4617_s13 }
  0x16   :  { %65 = vrot.lane.b32.xlu1 %v22_v10, %s4617_s13  ;;  %63 = vrot.lane.b32.xlu0 %v21_v11, %s4617_s13 }
  0x1a   :  { %69 = vrot.lane.b32.xlu1 %v24_v12, %s4617_s13  ;;  %67 = vrot.lane.b32.xlu0 %v23_v13, %s4617_s13 }
  0x1e   :  { %73 = vrot.lane.b32.xlu1 %v26_v14, %s4617_s13  ;;  %71 = vrot.lane.b32.xlu0 %v25_v15, %s4617_s13  ;;  %s4621_s13 = smov 126  }
  0x74   :  { %v48_v17 = vpop.permute.xlu1 %47  ;;  %v44_v18 = vpop.permute.xlu0 %43 }
  0x75   :  { %v94_v19 = vsel %vm91_vm0, 0.0, %v48_v17  ;;  %v92_v20 = vsel %vm91_vm0, 0.0, %v44_v18 }
  0x76   :  { %v111_v21 = vsel %vm108_vm1, %v94_v19, 0.0  ;;  %v109_v22 = vsel %vm108_vm1, %v92_v20, 0.0 }
  0x77   :  { %v145_v23 = vrot.slane %v111_v21, 7  ;;  %v142_v24 = vrot.slane %v109_v22, 7 }
  0x78   :  { %v50_v25 = vpop.permute.xlu1 %49  ;;  %v46_v26 = vpop.permute.xlu0 %45 }
  0x79   :  { %v4700_v27 = vsel %vm141_vm2, 0.0, %v142_v24  ;;  %v95_v28 = vsel %vm91_vm0, 0.0, %v50_v25  ;;  %v93_v29 = vsel %vm91_vm0, 0.0, %v46_v26  ;;  %v4709_v32 = vsel %vm141_vm2, 0.0, %v145_v23 }
  0x7a   :  { %v112_v30 = vsel %vm108_vm1, %v95_v28, 0.0  ;;  %v110_v31 = vsel %vm108_vm1, %v93_v29, 0.0  ;;  %633 = vrot.lane.b32.xlu0 %v4700_v27, %s4619_s0  ;;  %v1562_v40 = vrot.slane %v4700_v27, 1 }
  0x7b   :  { %v146_v33 = vrot.slane %v112_v30, 7  ;;  %v143_v34 = vrot.slane %v110_v31, 7 }
  0x7c   :  { %v54_v35 = vpop.permute.xlu1 %53  ;;  %v52_v36 = vpop.permute.xlu0 %51 }
  0x7d   :  { %v4712_v37 = vsel %vm141_vm2, %v146_v33, 0.0  ;;  %v4715_v38 = vsel %vm141_vm2, %v142_v24, %v143_v34  ;;  %v4718_v39 = vsel %vm141_vm2, %v143_v34, 0.0  ;;  %v97_v43 = vsel %vm91_vm0, 0.0, %v54_v35 }
  0x7e   :  { %v1563_v41 = vrot.slane %v4715_v38, 1  ;;  %637 = vrot.lane.b32.xlu0 %v4709_v32, %s4619_s0  ;;  %635 = vrot.lane.b32.xlu1 %v4715_v38, %s4619_s0  ;;  %v1565_v42 = vrot.slane %v4718_v39, 1  ;;  %v96_v44 = vsel %vm91_vm0, 0.0, %v52_v36  ;;  %v4730_v45 = vsel %vm141_vm2, %v145_v23, %v146_v33 }
  0x7f   :  { %v114_v46 = vsel %vm108_vm1, %v97_v43, 0.0  ;;  %v113_v47 = vsel %vm108_vm1, %v96_v44, 0.0 }
  0x80   :  { %v58_v48 = vpop.permute.xlu1 %57  ;;  %v56_v49 = vpop.permute.xlu0 %55  ;;  %v4735_v50 = vsel %vm1561_vm3, %v1562_v40, %v1563_v41  ;;  %v4738_v51 = vsel %vm1561_vm3, %v1563_v41, %v1565_v42  ;;  %v149_v52 = vrot.slane %v114_v46, 7  ;;  %v148_v53 = vrot.slane %v113_v47, 7 }
  0x81   :  { %v99_v54 = vsel %vm91_vm0, 0.0, %v58_v48  ;;  %v98_v56 = vsel %vm91_vm0, 0.0, %v56_v49 }
  0x82   :  { %v116_v55 = vsel %vm108_vm1, %v99_v54, 0.0  ;;  %639 = vrot.lane.b32.xlu1 %v4730_v45, %s4619_s0  ;;  %v4746_v57 = vsel %vm141_vm2, %v149_v52, 0.0  ;;  %v4749_v58 = vsel %vm141_vm2, %v148_v53, %v149_v52  ;;  %v4752_v59 = vsel %vm141_vm2, 0.0, %v148_v53 }
  0x83   :  { %v152_v60 = vrot.slane %v116_v55, 7  ;;  %v1572_v61 = vrot.slane %v4752_v59, 1  ;;  %v1573_v62 = vrot.slane %v4749_v58, 1  ;;  %641 = vrot.lane.b32.xlu0 %v4752_v59, %s4619_s0  ;;  %v115_v2 = vsel %vm108_vm1, %v98_v56, 0.0 }
  0x84   :  { %v62_v63 = vpop.permute.xlu1 %61  ;;  %v60_v0 = vpop.permute.xlu0 %59  ;;  %v151_v6 = vrot.slane %v115_v2, 7 }
  0x85   :  { %v4759_v1 = vsel %vm141_vm2, %v152_v60, 0.0  ;;  %v101_v3 = vsel %vm91_vm0, 0.0, %v62_v63  ;;  %v100_v4 = vsel %vm91_vm0, 0.0, %v60_v0  ;;  %v4767_v5 = vsel %vm1561_vm3, %v1572_v61, %v1573_v62 }
  0x86   :  { %643 = vrot.lane.b32.xlu1 %v4749_v58, %s4619_s0  ;;  %v118_v7 = vsel %vm108_vm1, %v101_v3, 0.0  ;;  %v117_v8 = vsel %vm108_vm1, %v100_v4, 0.0  ;;  %v4774_v9 = vsel %vm141_vm2, 0.0, %v151_v6  ;;  %v4777_v14 = vsel %vm141_vm2, %v151_v6, %v152_v60 }
  0x87   :  { %v155_v10 = vrot.slane %v118_v7, 7  ;;  %v154_v11 = vrot.slane %v117_v8, 7  ;;  %645 = vrot.lane.b32.xlu0 %v4774_v9, %s4619_s0  ;;  %v4620_v60 = vmov 1983009808   ;;  %v211_v63 = vlaneseq }
  0x88   :  { %v66_v12 = vpop.permute.xlu1 %65  ;;  %v64_v13 = vpop.permute.xlu0 %63  ;;  %v209_v61 = vunpack.c.l.s4 %v4620_v60  ;;  %v4622_v4 = vmov 1934713408   ;;  %v222_v7 = vcombine.low %v4709_v32, %v4774_v9  ;;  %v206_v8 = vcombine.low %v4700_v27, %v4752_v59 }
  0x89   :  { %v103_v15 = vsel %vm91_vm0, 0.0, %v66_v12  ;;  %v102_v17 = vsel %vm91_vm0, 0.0, %v64_v13  ;;  %v4784_v18 = vsel %vm141_vm2, %v155_v10, 0.0  ;;  %v4787_v19 = vsel %vm141_vm2, 0.0, %v154_v11 }
  0x8a   :  { %8162 = vst [vmem:[#allocation2_spill] sm:$0xff] %v4784_v18  ;;  %v120_v20 = vsel %vm108_vm1, %v103_v15, 0.0  ;;  %647 = vrot.lane.b32.xlu1 %v4777_v14, %s4619_s0  ;;  %v119_v22 = vsel %vm108_vm1, %v102_v17, 0.0  ;;  %v4794_v25 = vsel %vm141_vm2, %v154_v11, %v155_v10  ;;  %v210_v2 = vunpack.c.0.s8 %v209_v61 }
  0x8b   :  { %v158_v21 = vrot.slane %v120_v20, 7  ;;  %v157_v26 = vrot.slane %v119_v22, 7  ;;  %649 = vrot.lane.b32.xlu0 %v4787_v19, %s4619_s0  ;;  %v212_v3 = vshrl.u32 %v211_v63, 7  ;;  %v241_v6 = vunpack.c.l.s4 %v4622_v4 }
  0x8c   :  { %v70_v23 = vpop.permute.xlu1 %69  ;;  %v68_v24 = vpop.permute.xlu0 %67  ;;  %v223_v15 = vcombine.high %v4709_v32, %v4774_v9 }
  0x8d   :  { %v105_v28 = vsel %vm91_vm0, 0.0, %v70_v23  ;;  %v104_v29 = vsel %vm91_vm0, 0.0, %v68_v24  ;;  %v4801_v30 = vsel %vm141_vm2, %v158_v21, 0.0  ;;  %v4808_v34 = vsel %vm141_vm2, 0.0, %v157_v26 }
  0x8e   :  { %8163 = vst [vmem:[#allocation3_spill] sm:$0xff] %v4801_v30  ;;  %v122_v31 = vsel %vm108_vm1, %v105_v28, 0.0  ;;  %v121_v33 = vsel %vm108_vm1, %v104_v29, 0.0  ;;  %651 = vrot.lane.b32.xlu1 %v4794_v25, %s4619_s0  ;;  %v4811_v42 = vsel %vm141_vm2, %v157_v26, %v158_v21  ;;  %v4855_v10 = vsub.s32 %v210_v2, %v212_v3 }
  0x8f   :  { %v161_v35 = vrot.slane %v122_v31, 7  ;;  %v160_v36 = vrot.slane %v121_v33, 7  ;;  %653 = vrot.lane.b32.xlu0 %v4808_v34, %s4619_s0  ;;  %v242_v12 = vunpack.c.0.s8 %v241_v6  ;;  %v207_v21 = vcombine.high %v4700_v27, %v4752_v59 }
  0x90   :  { %v74_v40 = vpop.permute.xlu1 %73  ;;  %v72_v41 = vpop.permute.xlu0 %71  ;;  %v4864_v13 = vrot.slane %v222_v7, %v4855_v10  ;;  %v4871_v20 = vrot.slane %v206_v8, %v4855_v10  ;;  %v2954_v24 = vrot.slane %v4718_v39, 2  ;;  %v237_v29 = vrot.slane %v223_v15, %v4855_v10 }
  0x91   :  { %v107_v43 = vsel %vm91_vm0, 0.0, %v74_v40  ;;  %v106_v44 = vsel %vm91_vm0, 0.0, %v72_v41  ;;  %v4818_v46 = vsel %vm141_vm2, %v161_v35, 0.0  ;;  %v4821_v47 = vsel %vm141_vm2, 0.0, %v160_v36 }
  0x92   :  { %8164 = vst [vmem:[#allocation4_spill] sm:$0xff] %v4818_v46  ;;  %655 = vrot.lane.b32.xlu1 %v4811_v42, %s4619_s0  ;;  %v124_v48 = vsel %vm108_vm1, %v107_v43, 0.0  ;;  %v123_v49 = vsel %vm108_vm1, %v106_v44, 0.0  ;;  %v4828_v52 = vsel %vm141_vm2, %v160_v36, %v161_v35  ;;  %v342_v17 = vcombine.low %v4787_v19, %v4821_v47 }
  0x93   :  { %v164_v53 = vrot.slane %v124_v48, 7  ;;  %v163_v54 = vrot.slane %v123_v49, 7  ;;  %657 = vrot.lane.b32.xlu0 %v4821_v47, %s4619_s0  ;;  %v4883_v26 = vsub.s32 %v242_v12, %v212_v3  ;;  %v239_v28 = vcombine.high %v4871_v20, %v4864_v13 }
  0x94   :  { %v4891_v31 = vrot.slane %v342_v17, %v4855_v10  ;;  %v343_v33 = vcombine.high %v4787_v19, %v4821_v47  ;;  %v1575_v39 = vrot.slane %v4746_v57, 1  ;;  %v1580_v35 = vrot.slane %v4759_v1, 1 }
  0x95   :  { %v4835_v55 = vsel %vm141_vm2, %v164_v53, 0.0  ;;  %v4838_v56 = vsel %vm141_vm2, 0.0, %v163_v54  ;;  %v4841_v0 = vsel %vm141_vm2, %v163_v54, %v164_v53  ;;  %v8054_v36 = vrot.slane %v4777_v14, 1 }
  0x96   :  { %659 = vrot.lane.b32.xlu1 %v4828_v52, %s4619_s0  ;;  %v358_v11 = vcombine.low %v4808_v34, %v4838_v56  ;;  %v359_v23 = vcombine.high %v4808_v34, %v4838_v56  ;;  %v2952_v40 = vrot.slane %v4715_v38, 2  ;;  %v221_v41 = vrot.slane %v207_v21, %v4855_v10 }
  0x97   :  { %661 = vrot.lane.b32.xlu0 %v4838_v56, %s4619_s0  ;;  %v4906_v48 = vrot.slane %v239_v28, %v4883_v26  ;;  %v357_v53 = vrot.slane %v343_v33, %v4855_v10  ;;  %v290_v54 = vcombine.low %v4730_v45, %v4777_v14  ;;  %v4916_v60 = vsel %vm1561_vm3, %v1573_v62, %v1575_v39 }
  0x98   :  { %v4876_v22 = vrot.slane %v358_v11, %v4855_v10  ;;  %v373_v44 = vrot.slane %v359_v23, %v4855_v10  ;;  %v254_v49 = vcombine.low %v221_v41, %v237_v29  ;;  %v4921_v61 = vsel %vm1561_vm3, %v8054_v36, %v1580_v35 }
  0x99   :  { %v4924_v63 = vsel %vm2950_vm4, %v2952_v40, %v2954_v24  ;;  %v426_v4 = vcombine.low %v4811_v42, %v4841_v0  ;;  %v274_v62 = vcombine.low %v4715_v38, %v4749_v58  ;;  %v410_v6 = vcombine.low %v4794_v25, %v4828_v52 }
  0x9a   :  { %663 = vrot.lane.b32.xlu1 %v4841_v0, %s4619_s0  ;;  %v375_v43 = vcombine.high %v4891_v31, %v4876_v22  ;;  %v390_v3 = vcombine.low %v357_v53, %v373_v44  ;;  %v4940_v7 = vrot.slane %v254_v49, %v4883_v26  ;;  %v255_v8 = vcombine.high %v221_v41, %v237_v29 }
  0x9b   :  { %1093 = vrot.lane.b32.xlu0 %v4700_v27, %s4621_s13  ;;  %v4943_v11 = vrot.slane %v290_v54, %v4855_v10  ;;  %v291_v12 = vcombine.high %v4730_v45, %v4777_v14  ;;  %v391_v17 = vcombine.high %v357_v53, %v373_v44  ;;  %v4951_v21 = vrot.slane %v426_v4, %v4855_v10 }
  0x9c   :  { %v4927_v2 = vrot.slane %v375_v43, %v4883_v26  ;;  %v4948_v15 = vrot.slane %v390_v3, %v4883_v26  ;;  %v427_v23 = vcombine.high %v4811_v42, %v4841_v0  ;;  %v2964_v24 = vrot.slane %v4746_v57, 2 }
  0x9d   :  { %v4959_v28 = vrot.slane %v274_v62, %v4855_v10  ;;  %v275_v29 = vcombine.high %v4715_v38, %v4749_v58  ;;  %v4966_v33 = vrot.slane %v410_v6, %v4855_v10  ;;  %v411_v39 = vcombine.high %v4794_v25, %v4828_v52 }
  0x9e   :  { %1095 = vrot.lane.b32.xlu1 %v4715_v38, %s4621_s13  ;;  %v4971_v57 = vrot.slane %v255_v8, %v4883_v26  ;;  %v305_v41 = vrot.slane %v291_v12, %v4855_v10  ;;  %v2962_v43 = vrot.slane %v4749_v58, 2  ;;  %v4978_v38 = vrot.slane %v391_v17, %v4883_v26 }
  0x9f   :  { %1097 = vrot.lane.b32.xlu0 %v4709_v32, %s4621_s13  ;;  %v307_v35 = vcombine.high %v4959_v28, %v4943_v11  ;;  %v443_v44 = vcombine.high %v4966_v33, %v4951_v21  ;;  %v441_v49 = vrot.slane %v427_v23, %v4855_v10  ;;  %v289_v53 = vrot.slane %v275_v29, %v4855_v10 }
  0xa0   :  { %v4987_v54 = vsel %vm2950_vm4, %v2962_v43, %v2964_v24  ;;  %v2951_v3 = vrot.slane %v4700_v27, 2  ;;  %v238_v23 = vcombine.low %v4871_v20, %v4864_v13 }
  0xa1   :  { %v4994_v4 = vrot.slane %v307_v35, %v4883_v26  ;;  %v322_v62 = vcombine.low %v289_v53, %v305_v41  ;;  %v5000_v8 = vrot.slane %v443_v44, %v4883_v26  ;;  %v323_v17 = vcombine.high %v289_v53, %v305_v41 }
  0xa2   :  { %1099 = vrot.lane.b32.xlu1 %v4730_v45, %s4621_s13  ;;  %v4997_v6 = vsel %vm2950_vm4, %v2951_v3, %v2952_v40  ;;  %v2961_v40 = vrot.slane %v4752_v59, 2  ;;  %v2969_v41 = vrot.slane %v4759_v1, 2  ;;  %v2989_v44 = vrot.slane %v4835_v55, 2 }
  0xa3   :  { %1101 = vrot.lane.b32.xlu0 %v4752_v59, %s4621_s13  ;;  %8165 = vst [vmem:[#allocation5_spill] sm:$0xff] %v4997_v6  ;;  %v5007_v27 = vrot.slane %v322_v62, %v4883_v26  ;;  %v5025_v13 = vrot.slane %v323_v17, %v4883_v26  ;;  %v5028_v59 = vrot.slane %v238_v23, %v4883_v26  ;;  %v2957_v53 = vrot.slane %v4730_v45, 2 }
  0xa4   :  { %v5022_v35 = vsel %vm2950_vm4, %v2961_v40, %v2962_v43  ;;  %v2979_v43 = vrot.slane %v4801_v30, 2  ;;  %v2967_v3 = vrot.slane %v4777_v14, 2  ;;  %v2987_v17 = vrot.slane %v4841_v0, 2 }
  0xa5   :  { %8166 = vst [vmem:[#allocation6_spill] sm:$0xff] %v5022_v35  ;;  %8167 = vst [vmem:[#allocation7_spill] sm:$0xff] %v5028_v59  ;;  %v271_v23 = vcombine.high %v4906_v48, %v8057_v16 }
  0xa6   :  { %1103 = vrot.lane.b32.xlu1 %v4749_v58, %s4621_s13  ;;  %v425_v58 = vrot.slane %v411_v39, %v4855_v10  ;;  %v374_v39 = vcombine.low %v4891_v31, %v4876_v22  ;;  %v2959_v31 = vrot.slane %v4712_v37, 2  ;;  %v5055_v62 = vsel %vm2950_vm4, %v2967_v3, %v2969_v41 }
  0xa7   :  { %1105 = vrot.lane.b32.xlu0 %v4774_v9, %s4621_s13  ;;  %8170 = vst [vmem:[#allocation10_spill] sm:$0xff] %v5055_v62  ;;  %v2984_v41 = vrot.slane %v4818_v46, 2 }
  0xa8   :  { %v458_v12 = vcombine.low %v425_v58, %v441_v49  ;;  %v459_v29 = vcombine.high %v425_v58, %v441_v49  ;;  %v5034_v22 = vrot.slane %v374_v39, %v4883_v26  ;;  %v270_v49 = vcombine.high %v5028_v59, %v8057_v16 }
  0xa9   :  { %v5052_v58 = vsel %vm2950_vm4, %v2957_v53, %v2959_v31  ;;  %v2956_v39 = vrot.slane %v4709_v32, 2  ;;  %v407_v31 = vcombine.high %v4927_v2, %v8057_v16 }
  0xaa   :  { %1107 = vrot.lane.b32.xlu1 %v4777_v14, %s4621_s13  ;;  %v5013_v24 = vrot.slane %v458_v12, %v4883_v26  ;;  %v5031_v20 = vrot.slane %v459_v29, %v4883_v26  ;;  %8168 = vst [vmem:[#allocation8_spill] sm:$0xff] %v5034_v22  ;;  %v406_v1 = vcombine.high %v5034_v22, %v8057_v16  ;;  %8169 = vst [vmem:[#allocation9_spill] sm:$0xff] %v5052_v58 }
  0xab   :  { %488 = vrot.lane.b32.xlu0 %v4906_v48, %s4623_s15  ;;  %v2977_v12 = vrot.slane %v4811_v42, 2  ;;  %v5066_v29 = vsel %vm2950_vm4, %v2987_v17, %v2989_v44  ;;  %v306_v48 = vcombine.low %v4959_v28, %v4943_v11  ;;  %v5080_v44 = vsel %vm2950_vm4, %v2956_v39, %v2957_v53 }
  0xac   :  { %8172 = vst [vmem:[#allocation12_spill] sm:$0xff] %v5066_v29  ;;  %8173 = vst [vmem:[#allocation13_spill] sm:$0xff] %v5080_v44  ;;  %v2981_v11 = vrot.slane %v4821_v47, 2  ;;  %v2976_v53 = vrot.slane %v4808_v34, 2  ;;  %v2986_v39 = vrot.slane %v4838_v56, 2 }
  0xad   :  { %v5063_v40 = vsel %vm2950_vm4, %v2977_v12, %v2979_v43  ;;  %v2982_v43 = vrot.slane %v4828_v52, 2 }
  0xae   :  { %490 = vrot.lane.b32.xlu1 %v4927_v2, %s4623_s15  ;;  %8171 = vst [vmem:[#allocation11_spill] sm:$0xff] %v5063_v40  ;;  %v2966_v2 = vrot.slane %v4774_v9, 2 }
  0xaf   :  { %504 = vrot.lane.b32.xlu0 %v4940_v7, %s4624_s16 }
  0xb0   :  { %v5092_v28 = vsel %vm2950_vm4, %v2966_v2, %v2967_v3  ;;  %v5107_v3 = vsel %vm2950_vm4, %v2986_v39, %v2987_v17  ;;  %v409_v2 = vcombine.high %v4978_v38, %v8057_v16  ;;  %v5123_v17 = vsel %vm2950_vm4, %v2981_v11, %v2982_v43 }
  0xb1   :  { %8174 = vst [vmem:[#allocation14_spill] sm:$0xff] %v5092_v28  ;;  %8177 = vst [vmem:[#allocation17_spill] sm:$0xff] %v5107_v3  ;;  %v3008_v11 = vcombine.high %v4997_v6, %v5022_v35 }
  0xb2   :  { %506 = vrot.lane.b32.xlu1 %v4948_v15, %s4624_s16  ;;  %8179 = vst [vmem:[#allocation19_spill] sm:$0xff] %v5123_v17 }
  0xb3   :  { %520 = vrot.lane.b32.xlu0 %v4971_v57, %s4625_s17 }
  0xb6   :  { %522 = vrot.lane.b32.xlu1 %v4978_v38, %s4625_s17  ;;  %v3024_v38 = vcombine.high %v5080_v44, %v5092_v28 }
  0xb7   :  { %544 = vrot.lane.b32.xlu0 %v4994_v4, %s4623_s15 }
  0xba   :  { %546 = vrot.lane.b32.xlu1 %v5000_v8, %s4623_s15 }
  0xbb   :  { %560 = vrot.lane.b32.xlu0 %v5007_v27, %s4624_s16 }
  0xbe   :  { %562 = vrot.lane.b32.xlu1 %v5013_v24, %s4624_s16 }
  0xbf   :  { %576 = vrot.lane.b32.xlu0 %v5025_v13, %s4625_s17 }
  0xc2   :  { %578 = vrot.lane.b32.xlu1 %v5031_v20, %s4625_s17 }
  0xc3   :  { %480 = vrot.lane.b32.xlu0 %v270_v49, %s4626_s18  ;;  %v272_v49 = vcombine.high %v4940_v7, %v8057_v16  ;;  %v442_v7 = vcombine.low %v4966_v33, %v4951_v21  ;;  %v5100_v21 = vrot.slane %v306_v48, %v4883_v26  ;;  %v5103_v33 = vsel %vm2950_vm4, %v2982_v43, %v2984_v41 }
  0xc4   :  { %8176 = vst [vmem:[#allocation16_spill] sm:$0xff] %v5103_v33  ;;  %v3228_v48 = vcombine.high %v5063_v40, %v5066_v29 }
  0xc5   :  { %8175 = vst [vmem:[#allocation15_spill] sm:$0xff] %v5100_v21  ;;  %v5112_v36 = vrot.slane %v442_v7, %v4883_v26  ;;  %v3076_v7 = vcombine.high %v4924_v63, %v4987_v54  ;;  %v338_v43 = vcombine.high %v5100_v21, %v8057_v16  ;;  %v5156_v21 = vrot.slane %v3024_v38, %v4855_v10 }
  0xc6   :  { %482 = vrot.lane.b32.xlu1 %v406_v1, %s4626_s18  ;;  %v2974_v1 = vrot.slane %v4784_v18, 2  ;;  %v5152_v22 = vrot.slane %v3228_v48, %v4855_v10 }
  0xc7   :  { %496 = vrot.lane.b32.xlu0 %v271_v23, %s4627_s19  ;;  %v408_v23 = vcombine.high %v4948_v15, %v8057_v16  ;;  %v273_v15 = vcombine.high %v4971_v57, %v8057_v16  ;;  %8178 = vst [vmem:[#allocation18_spill] sm:$0xff] %v5112_v36  ;;  %v3092_v57 = vcombine.high %v5052_v58, %v5055_v62  ;;  %8184 = vst [vmem:[#allocation24_spill] sm:$0xff] %v5156_v21 }
  0xc8   :  { %8183 = vst [vmem:[#allocation23_spill] sm:$0xff] %v5152_v22 }
  0xca   :  { %498 = vrot.lane.b32.xlu1 %v407_v31, %s4627_s19  ;;  %v2972_v31 = vrot.slane %v4794_v25, 2 }
  0xcb   :  { %512 = vrot.lane.b32.xlu0 %v272_v49, %s4628_s20  ;;  %v2971_v49 = vrot.slane %v4787_v19, 2 }
  0xcc   :  { %v5120_v41 = vsel %vm2950_vm4, %v2972_v31, %v2974_v1 }
  0xcd   :  { %v3212_v39 = vcombine.high %v5120_v41, %v5103_v33 }
  0xce   :  { %514 = vrot.lane.b32.xlu1 %v408_v23, %s4628_s20  ;;  %v5128_v23 = vsel %vm2950_vm4, %v2976_v53, %v2977_v12  ;;  %v5142_v12 = vsel %vm2950_vm4, %v2971_v49, %v2972_v31  ;;  %v474_v53 = vcombine.high %v5112_v36, %v8057_v16  ;;  %v5160_v31 = vrot.slane %v3076_v7, %v4855_v10 }
  0xcf   :  { %528 = vrot.lane.b32.xlu0 %v273_v15, %s4629_s21  ;;  %8180 = vst [vmem:[#allocation20_spill] sm:$0xff] %v5128_v23  ;;  %v3160_v1 = vcombine.high %v5128_v23, %v5107_v3  ;;  %8181 = vst [vmem:[#allocation21_spill] sm:$0xff] %v5142_v12  ;;  %v3144_v15 = vcombine.high %v5142_v12, %v5123_v17  ;;  %v5163_v49 = vrot.slane %v3212_v39, %v4855_v10 }
  0xd0   :  { %8185 = vst [vmem:[#allocation25_spill] sm:$0xff] %v5160_v31  ;;  %v5171_v36 = vrot.slane %v3008_v11, %v4855_v10 }
  0xd1   :  { %8186 = vst [vmem:[#allocation26_spill] sm:$0xff] %v5163_v49  ;;  %v5166_v16 = vrot.slane %v3160_v1, %v4855_v10 }
  0xd2   :  { %530 = vrot.lane.b32.xlu1 %v409_v2, %s4629_s21  ;;  %v5149_v2 = vrot.slane %v3092_v57, %v4855_v10  ;;  %v8188_v57 = vmov 0.0   ;;  %8189 = vst [vmem:[#allocation28_spill] sm:$0xff] %v5171_v36 }
  0xd3   :  { %536 = vrot.lane.b32.xlu0 %v338_v43, %s4626_s18  ;;  %8187 = vst [vmem:[#allocation27_spill] sm:$0xff] %v5166_v16  ;;  %v339_v48 = vcombine.high %v4994_v4, %v8188_v57  ;;  %v475_v38 = vcombine.high %v5000_v8, %v8188_v57  ;;  %v5176_v43 = vrot.slane %v3144_v15, %v4855_v10  ;;  %4588 = vst.msk [vmem:[%s8053_s2] sm:$0xff] %vm4587_vm14, %v8188_v57 }
  0xd4   :  { %8182 = vst [vmem:[#allocation22_spill] sm:$0xff] %v5149_v2  ;;  %v340_v8 = vcombine.high %v5007_v27, %v8188_v57  ;;  %v476_v11 = vcombine.high %v5013_v24, %v8188_v57  ;;  %v477_v15 = vcombine.high %v5031_v20, %v8188_v57 }
  0xd5   :  { %8190 = vst [vmem:[#allocation29_spill] sm:$0xff] %v5176_v43 }
  0xd6   :  { %538 = vrot.lane.b32.xlu1 %v474_v53, %s4626_s18  ;;  %v341_v53 = vcombine.high %v5025_v13, %v8188_v57 }
  0xd7   :  { %552 = vrot.lane.b32.xlu0 %v339_v48, %s4627_s19 }
  0xda   :  { %554 = vrot.lane.b32.xlu1 %v475_v38, %s4627_s19 }
  0xdb   :  { %568 = vrot.lane.b32.xlu0 %v340_v8, %s4628_s20 }
  0xde   :  { %570 = vrot.lane.b32.xlu1 %v476_v11, %s4628_s20 }
  0xdf   :  { %584 = vrot.lane.b32.xlu0 %v341_v53, %s4629_s21 }
  0xe2   :  { %586 = vrot.lane.b32.xlu1 %v477_v15, %s4629_s21 }
  0xe3   :  { %1109 = vrot.lane.b32.xlu0 %v4787_v19, %s4621_s13 }
  0xe6   :  { %1111 = vrot.lane.b32.xlu1 %v4794_v25, %s4621_s13 }
  0xe7   :  { %1113 = vrot.lane.b32.xlu0 %v4808_v34, %s4621_s13 }
  0xea   :  { %1115 = vrot.lane.b32.xlu1 %v4811_v42, %s4621_s13 }
  0xeb   :  { %1117 = vrot.lane.b32.xlu0 %v4821_v47, %s4621_s13 }
  0xec   :  { %v634_v27 = vpop.permute.xlu0 %633 }
  0xee   :  { %1119 = vrot.lane.b32.xlu1 %v4828_v52, %s4621_s13 }
  0xef   :  { %1121 = vrot.lane.b32.xlu0 %v4838_v56, %s4621_s13 }
  0xf0   :  { %v636_v24 = vpop.permute.xlu1 %635  ;;  %v638_v13 = vpop.permute.xlu0 %637 }
  0xf2   :  { %1123 = vrot.lane.b32.xlu1 %v4841_v0, %s4621_s13 }
  0xf4   :  { %v640_v20 = vpop.permute.xlu1 %639 }
  0xf5   :  { %v642_v48 = vpop.permute.xlu0 %641 }
  0xf6   :  { %v681_v8 = vcombine.low %v634_v27, %v642_v48  ;;  %v682_v53 = vcombine.high %v634_v27, %v642_v48 }
  0xf8   :  { %v644_v38 = vpop.permute.xlu1 %643  ;;  %v5217_v39 = vrot.slane %v681_v8, %v4855_v10  ;;  %v696_v16 = vrot.slane %v682_v53, %v4855_v10 }
  0xf9   :  { %v646_v11 = vpop.permute.xlu0 %645  ;;  %v750_v31 = vcombine.high %v636_v24, %v644_v38 }
  0xfa   :  { %v697_v15 = vcombine.low %v638_v13, %v646_v11  ;;  %v698_v1 = vcombine.high %v638_v13, %v646_v11  ;;  %v749_v11 = vcombine.low %v636_v24, %v644_v38 }
  0xfc   :  { %v648_v4 = vpop.permute.xlu1 %647  ;;  %v5220_v7 = vrot.slane %v697_v15, %v4855_v10  ;;  %v712_v59 = vrot.slane %v698_v1, %v4855_v10 }
  0xfd   :  { %v650_v43 = vpop.permute.xlu0 %649  ;;  %v765_v27 = vcombine.low %v640_v20, %v648_v4  ;;  %v766_v1 = vcombine.high %v640_v20, %v648_v4 }
  0xfe   :  { %v714_v21 = vcombine.high %v5217_v39, %v5220_v7  ;;  %v729_v48 = vcombine.low %v696_v16, %v712_v59  ;;  %v730_v22 = vcombine.high %v696_v16, %v712_v59  ;;  %v764_v16 = vrot.slane %v750_v31, %v4855_v10 }
  0xff   :  { %v5234_v49 = vrot.slane %v765_v27, %v4855_v10  ;;  %v780_v23 = vrot.slane %v766_v1, %v4855_v10 }
 0x100   :  { %v5224_v36 = vpop.permute.xlu1 %651  ;;  %v5229_v13 = vrot.slane %v714_v21, %v4883_v26  ;;  %v5237_v53 = vrot.slane %v729_v48, %v4883_v26  ;;  %v5240_v21 = vrot.slane %v749_v11, %v4855_v10  ;;  %v5246_v4 = vrot.slane %v730_v22, %v4883_v26 }
 0x101   :  { %v654_v8 = vpop.permute.xlu0 %653  ;;  %v797_v44 = vcombine.low %v764_v16, %v780_v23 }
 0x102   :  { %963 = vrot.lane.b32.xlu0 %v5229_v13, %s4623_s15  ;;  %v782_v20 = vcombine.high %v5240_v21, %v5234_v49 }
 0x104   :  { %v656_v15 = vpop.permute.xlu1 %655  ;;  %v5262_v40 = vrot.slane %v782_v20, %v4883_v26 }
 0x105   :  { %v658_v2 = vpop.permute.xlu0 %657 }
 0x106   :  { %979 = vrot.lane.b32.xlu0 %v5237_v53, %s4624_s16  ;;  %v817_v28 = vcombine.low %v650_v43, %v658_v2  ;;  %v818_v38 = vcombine.high %v650_v43, %v658_v2 }
 0x108   :  { %v660_v3 = vpop.permute.xlu1 %659  ;;  %v5255_v22 = vrot.slane %v817_v28, %v4855_v10 }
 0x109   :  { %v885_v59 = vcombine.low %v5224_v36, %v660_v3  ;;  %v662_v24 = vpop.permute.xlu0 %661 }
 0x10a   :  { %v833_v27 = vcombine.low %v654_v8, %v662_v24  ;;  %v834_v48 = vcombine.high %v654_v8, %v662_v24  ;;  %995 = vrot.lane.b32.xlu0 %v5246_v4, %s4625_s17  ;;  %v832_v24 = vrot.slane %v818_v38, %v4855_v10  ;;  %v798_v38 = vcombine.high %v764_v16, %v780_v23 }
 0x10b   :  { %v5265_v2 = vrot.slane %v885_v59, %v4855_v10  ;;  %v886_v23 = vcombine.high %v5224_v36, %v660_v3 }
 0x10c   :  { %v664_v11 = vpop.permute.xlu1 %663  ;;  %v5258_v29 = vrot.slane %v833_v27, %v4855_v10  ;;  %v848_v31 = vrot.slane %v834_v48, %v4855_v10  ;;  %v5282_v48 = vrot.slane %v797_v44, %v4883_v26  ;;  %v5294_v59 = vrot.slane %v798_v38, %v4883_v26 }
 0x10d   :  { %v901_v1 = vcombine.low %v656_v15, %v664_v11  ;;  %v1094_v8 = vpop.permute.xlu0 %1093  ;;  %v902_v17 = vcombine.high %v656_v15, %v664_v11  ;;  %v900_v36 = vrot.slane %v886_v23, %v4855_v10 }
 0x10e   :  { %1019 = vrot.lane.b32.xlu0 %v5262_v40, %s4623_s15  ;;  %v850_v20 = vcombine.high %v5255_v22, %v5258_v29  ;;  %v865_v62 = vcombine.low %v832_v24, %v848_v31 }
 0x10f   :  { %v5268_v43 = vrot.slane %v901_v1, %v4855_v10  ;;  %v916_v15 = vrot.slane %v902_v17, %v4855_v10 }
 0x110   :  { %v5275_v27 = vpop.permute.xlu1 %1095  ;;  %v5285_v1 = vrot.slane %v850_v20, %v4883_v26  ;;  %v5297_v44 = vrot.slane %v865_v62, %v4883_v26  ;;  %v866_v20 = vcombine.high %v832_v24, %v848_v31 }
 0x111   :  { %v1098_v28 = vpop.permute.xlu0 %1097  ;;  %v918_v62 = vcombine.high %v5265_v2, %v5268_v43  ;;  %v933_v33 = vcombine.low %v900_v36, %v916_v15 }
 0x112   :  { %1035 = vrot.lane.b32.xlu0 %v5282_v48, %s4624_s16  ;;  %965 = vrot.lane.b32.xlu1 %v5285_v1, %s4623_s15  ;;  %v5308_v38 = vrot.slane %v866_v20, %v4883_v26 }
 0x113   :  { %v5325_v23 = vrot.slane %v918_v62, %v4883_v26 }
 0x114   :  { %v5291_v58 = vpop.permute.xlu1 %1099 }
 0x115   :  { %v1102_v16 = vpop.permute.xlu0 %1101 }
 0x116   :  { %1051 = vrot.lane.b32.xlu0 %v5294_v59, %s4625_s17  ;;  %981 = vrot.lane.b32.xlu1 %v5297_v44, %s4624_s16  ;;  %v1141_v11 = vcombine.low %v1094_v8, %v1102_v16  ;;  %v1142_v31 = vcombine.high %v1094_v8, %v1102_v16 }
 0x118   :  { %v5304_v12 = vpop.permute.xlu1 %1103  ;;  %v5318_v17 = vrot.slane %v1141_v11, %v4855_v10 }
 0x119   :  { %v1106_v3 = vpop.permute.xlu0 %1105  ;;  %v1209_v46 = vcombine.low %v5275_v27, %v5304_v12 }
 0x11a   :  { %v1157_v24 = vcombine.low %v1098_v28, %v1106_v3  ;;  %v1158_v35 = vcombine.high %v1098_v28, %v1106_v3  ;;  %997 = vrot.lane.b32.xlu1 %v5308_v38, %s4625_s17  ;;  %v1156_v28 = vrot.slane %v1142_v31, %v4855_v10  ;;  %v934_v3 = vcombine.high %v900_v36, %v916_v15 }
 0x11b   :  { %v5366_v30 = vrot.slane %v1209_v46, %v4855_v10 }
 0x11c   :  { %v5315_v6 = vpop.permute.xlu1 %1107  ;;  %v5321_v20 = vrot.slane %v1157_v24, %v4855_v10  ;;  %v1172_v18 = vrot.slane %v1158_v35, %v4855_v10  ;;  %v5339_v35 = vrot.slane %v933_v33, %v4883_v26  ;;  %v5358_v36 = vrot.slane %v934_v3, %v4883_v26 }
 0x11d   :  { %v5327_v8 = vpop.permute.xlu0 %488  ;;  %v1225_v24 = vcombine.low %v5291_v58, %v5315_v6  ;;  %v713_v3 = vcombine.low %v5217_v39, %v5220_v7 }
 0x11e   :  { %8191 = vst [vmem:[#allocation30_spill] sm:$0xff] %v5327_v8  ;;  %1021 = vrot.lane.b32.xlu1 %v5325_v23, %s4623_s15  ;;  %v1174_v11 = vcombine.high %v5318_v17, %v5321_v20  ;;  %v1189_v8 = vcombine.low %v1156_v28, %v1172_v18 }
 0x11f   :  { %v5355_v33 = vrot.slane %v1225_v24, %v4855_v10 }
 0x120   :  { %v5332_v16 = vpop.permute.xlu1 %490  ;;  %v5342_v62 = vrot.slane %v1174_v11, %v4883_v26  ;;  %v5361_v11 = vrot.slane %v1189_v8, %v4883_v26 }
 0x121   :  { %8192 = vst [vmem:[#allocation31_spill] sm:$0xff] %v5332_v16  ;;  %v5344_v31 = vpop.permute.xlu0 %504 }
 0x122   :  { %8193 = vst [vmem:[#allocation32_spill] sm:$0xff] %v5344_v31  ;;  %1037 = vrot.lane.b32.xlu1 %v5339_v35, %s4624_s16  ;;  %1423 = vrot.lane.b32.xlu0 %v5342_v62, %s4623_s15  ;;  %v1190_v31 = vcombine.high %v1156_v28, %v1172_v18  ;;  %v1242_v18 = vcombine.high %v5366_v30, %v5355_v33 }
 0x124   :  { %v5352_v15 = vpop.permute.xlu1 %506  ;;  %v1204_v8 = vrot.slane %v1190_v31, %v4883_v26 }
 0x125   :  { %8194 = vst [vmem:[#allocation33_spill] sm:$0xff] %v5352_v15  ;;  %v5363_v16 = vpop.permute.xlu0 %520  ;;  %v5388_v15 = vrot.slane %v713_v3, %v4883_v26  ;;  %v746_v3 = vcombine.high %v5229_v13, %v8188_v57  ;;  %v748_v13 = vcombine.high %v5246_v4, %v8188_v57  ;;  %v814_v4 = vcombine.high %v5262_v40, %v8188_v57 }
 0x126   :  { %8195 = vst [vmem:[#allocation34_spill] sm:$0xff] %v5363_v16  ;;  %1053 = vrot.lane.b32.xlu1 %v5358_v36, %s4625_s17  ;;  %1439 = vrot.lane.b32.xlu0 %v5361_v11, %s4624_s16  ;;  %v5385_v16 = vrot.slane %v1242_v18, %v4883_v26  ;;  %v816_v40 = vcombine.high %v5294_v59, %v8188_v57 }
 0x127   :  { %8199 = vst [vmem:[#allocation38_spill] sm:$0xff] %v5388_v15  ;;  %v745_v39 = vcombine.high %v5388_v15, %v8188_v57  ;;  %v1206_v59 = vcombine.high %v5342_v62, %v8188_v57  ;;  %v1208_v62 = vcombine.high %v1204_v8, %v8188_v57 }
 0x128   :  { %v5372_v24 = vpop.permute.xlu1 %522 }
 0x129   :  { %8196 = vst [vmem:[#allocation35_spill] sm:$0xff] %v5372_v24  ;;  %v5379_v28 = vpop.permute.xlu0 %544 }
 0x12a   :  { %8197 = vst [vmem:[#allocation36_spill] sm:$0xff] %v5379_v28  ;;  %1455 = vrot.lane.b32.xlu0 %v1204_v8, %s4625_s17  ;;  %v747_v28 = vcombine.high %v5237_v53, %v8188_v57 }
 0x12c   :  { %v5382_v46 = vpop.permute.xlu1 %546 }
 0x12d   :  { %8198 = vst [vmem:[#allocation37_spill] sm:$0xff] %v5382_v46  ;;  %v5390_v24 = vpop.permute.xlu0 %560 }
 0x12e   :  { %8200 = vst [vmem:[#allocation39_spill] sm:$0xff] %v5390_v24  ;;  %1479 = vrot.lane.b32.xlu0 %v5385_v16, %s4623_s15 }
 0x130   :  { %v5394_v7 = vpop.permute.xlu1 %562 }
 0x131   :  { %8201 = vst [vmem:[#allocation40_spill] sm:$0xff] %v5394_v7  ;;  %v5398_v31 = vpop.permute.xlu0 %576  ;;  %v781_v7 = vcombine.low %v5240_v21, %v5234_v49 }
 0x132   :  { %8202 = vst [vmem:[#allocation41_spill] sm:$0xff] %v5398_v31  ;;  %955 = vrot.lane.b32.xlu0 %v745_v39, %s4626_s18 }
 0x134   :  { %v5401_v46 = vpop.permute.xlu1 %578 }
 0x135   :  { %8203 = vst [vmem:[#allocation42_spill] sm:$0xff] %v5401_v46  ;;  %v5405_v18 = vpop.permute.xlu0 %480  ;;  %v5422_v46 = vrot.slane %v781_v7, %v4883_v26 }
 0x136   :  { %8204 = vst [vmem:[#allocation43_spill] sm:$0xff] %v5405_v18  ;;  %971 = vrot.lane.b32.xlu0 %v746_v3, %s4627_s19 }
 0x137   :  { %8208 = vst [vmem:[#allocation47_spill] sm:$0xff] %v5422_v46  ;;  %v813_v53 = vcombine.high %v5422_v46, %v8188_v57 }
 0x138   :  { %v5408_v24 = vpop.permute.xlu1 %482 }
 0x139   :  { %8205 = vst [vmem:[#allocation44_spill] sm:$0xff] %v5408_v24  ;;  %v5414_v31 = vpop.permute.xlu0 %496 }
 0x13a   :  { %8206 = vst [vmem:[#allocation45_spill] sm:$0xff] %v5414_v31  ;;  %987 = vrot.lane.b32.xlu0 %v747_v28, %s4628_s20 }
 0x13c   :  { %v5417_v39 = vpop.permute.xlu1 %498 }
 0x13d   :  { %8207 = vst [vmem:[#allocation46_spill] sm:$0xff] %v5417_v39  ;;  %v5424_v3 = vpop.permute.xlu0 %512 }
 0x13e   :  { %8209 = vst [vmem:[#allocation48_spill] sm:$0xff] %v5424_v3  ;;  %1003 = vrot.lane.b32.xlu0 %v748_v13, %s4629_s21  ;;  %v815_v13 = vcombine.high %v5282_v48, %v8188_v57 }
 0x140   :  { %v5427_v49 = vpop.permute.xlu1 %514 }
 0x141   :  { %8210 = vst [vmem:[#allocation49_spill] sm:$0xff] %v5427_v49  ;;  %v5431_v21 = vpop.permute.xlu0 %528  ;;  %v1173_v49 = vcombine.low %v5318_v17, %v5321_v20 }
 0x142   :  { %8211 = vst [vmem:[#allocation50_spill] sm:$0xff] %v5431_v21  ;;  %1011 = vrot.lane.b32.xlu0 %v813_v53, %s4626_s18 }
 0x144   :  { %v5434_v28 = vpop.permute.xlu1 %530 }
 0x145   :  { %8212 = vst [vmem:[#allocation51_spill] sm:$0xff] %v5434_v28  ;;  %v5438_v7 = vpop.permute.xlu0 %536  ;;  %v5455_v28 = vrot.slane %v1173_v49, %v4883_v26 }
 0x146   :  { %8213 = vst [vmem:[#allocation52_spill] sm:$0xff] %v5438_v7  ;;  %1027 = vrot.lane.b32.xlu0 %v814_v4, %s4627_s19 }
 0x147   :  { %8217 = vst [vmem:[#allocation56_spill] sm:$0xff] %v5455_v28  ;;  %v1205_v17 = vcombine.high %v5455_v28, %v8188_v57 }
 0x148   :  { %v5441_v3 = vpop.permute.xlu1 %538 }
 0x149   :  { %8214 = vst [vmem:[#allocation53_spill] sm:$0xff] %v5441_v3  ;;  %v5447_v21 = vpop.permute.xlu0 %552 }
 0x14a   :  { %8215 = vst [vmem:[#allocation54_spill] sm:$0xff] %v5447_v21  ;;  %1043 = vrot.lane.b32.xlu0 %v815_v13, %s4628_s20 }
 0x14c   :  { %v5450_v53 = vpop.permute.xlu1 %554 }
 0x14d   :  { %8216 = vst [vmem:[#allocation55_spill] sm:$0xff] %v5450_v53  ;;  %v5457_v4 = vpop.permute.xlu0 %568 }
 0x14e   :  { %8218 = vst [vmem:[#allocation57_spill] sm:$0xff] %v5457_v4  ;;  %1059 = vrot.lane.b32.xlu0 %v816_v40, %s4629_s21  ;;  %v1241_v40 = vcombine.low %v5366_v30, %v5355_v33  ;;  %v1577_v33 = vrot.slane %v4774_v9, 1  ;;  %v8223_v9 = vrot.slane %v4777_v14, 1 }
 0x150   :  { %v5460_v48 = vpop.permute.xlu1 %570 }
 0x151   :  { %8219 = vst [vmem:[#allocation58_spill] sm:$0xff] %v5460_v48  ;;  %v5464_v20 = vpop.permute.xlu0 %584  ;;  %v1207_v48 = vcombine.high %v5361_v11, %v8188_v57 }
 0x152   :  { %8220 = vst [vmem:[#allocation59_spill] sm:$0xff] %v5464_v20  ;;  %1415 = vrot.lane.b32.xlu0 %v1205_v17, %s4626_s18  ;;  %v1210_v20 = vcombine.high %v5275_v27, %v5304_v12  ;;  %v8108_v12 = vrot.slane %v4730_v45, 1 }
 0x154   :  { %v5467_v13 = vpop.permute.xlu1 %586  ;;  %v1224_v8 = vrot.slane %v1210_v20, %v4855_v10 }
 0x155   :  { %8221 = vst [vmem:[#allocation60_spill] sm:$0xff] %v5467_v13  ;;  %v1110_v49 = vpop.permute.xlu0 %1109  ;;  %v1226_v13 = vcombine.high %v5291_v58, %v5315_v6  ;;  %v1567_v58 = vrot.slane %v4709_v32, 1 }
 0x156   :  { %1431 = vrot.lane.b32.xlu0 %v1206_v59, %s4627_s19  ;;  %v5485_v59 = vrot.slane %v1241_v40, %v4883_v26 }
 0x157   :  { %v1240_v11 = vrot.slane %v1226_v13, %v4855_v10  ;;  %v5503_v13 = vsel %vm1561_vm3, %v1577_v33, %v8223_v9 }
 0x158   :  { %v5472_v4 = vpop.permute.xlu1 %1111  ;;  %8222 = vst [vmem:[#allocation61_spill] sm:$0xff] %v5485_v59  ;;  %v1273_v6 = vcombine.high %v5485_v59, %v8188_v57  ;;  %v1274_v59 = vcombine.high %v5385_v16, %v8188_v57  ;;  %v5523_v16 = vsel %vm1561_vm3, %v1567_v58, %v8108_v12  ;;  %v1618_v58 = vcombine.low %v4735_v50, %v4767_v5 }
 0x159   :  { %v1114_v28 = vpop.permute.xlu0 %1113  ;;  %v1257_v39 = vcombine.low %v1224_v8, %v1240_v11 }
 0x15a   :  { %1447 = vrot.lane.b32.xlu0 %v1207_v48, %s4628_s20 }
 0x15b   :  { %v1265_v33 = vrot.slane %v1257_v39, %v4883_v26 }
 0x15c   :  { %v5479_v17 = vpop.permute.xlu1 %1115 }
 0x15d   :  { %v1118_v30 = vpop.permute.xlu0 %1117  ;;  %v1275_v9 = vcombine.high %v1265_v33, %v8188_v57 }
 0x15e   :  { %1463 = vrot.lane.b32.xlu0 %v1208_v62, %s4629_s21  ;;  %v1277_v53 = vcombine.low %v1110_v49, %v1118_v30  ;;  %v1278_v27 = vcombine.high %v1110_v49, %v1118_v30 }
 0x160   :  { %v5492_v48 = vpop.permute.xlu1 %1119  ;;  %v5508_v32 = vrot.slane %v1277_v53, %v4855_v10  ;;  %v1292_v30 = vrot.slane %v1278_v27, %v4855_v10  ;;  %v1258_v27 = vcombine.high %v1224_v8, %v1240_v11  ;;  %v1626_v11 = vrot.slane %v1618_v58, %v4855_v10 }
 0x161   :  { %v1122_v40 = vpop.permute.xlu0 %1121 }
 0x162   :  { %v1293_v21 = vcombine.low %v1114_v28, %v1122_v40  ;;  %v1294_v62 = vcombine.high %v1114_v28, %v1122_v40  ;;  %1471 = vrot.lane.b32.xlu0 %v1273_v6, %s4626_s18  ;;  %v1345_v40 = vcombine.low %v5472_v4, %v5492_v48  ;;  %v1272_v8 = vrot.slane %v1258_v27, %v4883_v26 }
 0x164   :  { %v5511_v20 = vrot.slane %v1293_v21, %v4855_v10  ;;  %v1308_v49 = vrot.slane %v1294_v62, %v4855_v10  ;;  %v5514_v28 = vpop.permute.xlu1 %1123  ;;  %v1634_v21 = vcombine.low %v5523_v16, %v5503_v13  ;;  %v5549_v3 = vrot.slane %v1345_v40, %v4855_v10 }
 0x165   :  { %v1361_v53 = vcombine.low %v5479_v17, %v5514_v28 }
 0x166   :  { %1487 = vrot.lane.b32.xlu0 %v1274_v59, %s4627_s19  ;;  %v1310_v14 = vcombine.high %v5508_v32, %v5511_v20  ;;  %v1325_v59 = vcombine.low %v1292_v30, %v1308_v49  ;;  %v1642_v62 = vrot.slane %v1634_v21, %v4855_v10  ;;  %v1326_v12 = vcombine.high %v1292_v30, %v1308_v49 }
 0x167   :  { %v5542_v39 = vrot.slane %v1361_v53, %v4855_v10  ;;  %v1276_v30 = vcombine.high %v1272_v8, %v8188_v57 }
 0x168   :  { %v5531_v6 = vrot.slane %v1310_v14, %v4883_v26  ;;  %v5546_v14 = vrot.slane %v1325_v59, %v4883_v26  ;;  %v5557_v21 = vrot.slane %v1326_v12, %v4883_v26  ;;  %v8226_v12 = vcombine.low %v5255_v22, %v5258_v29 }
 0x169   :  { %v1378_v53 = vcombine.high %v5549_v3, %v5542_v39  ;;  %v1619_v29 = vcombine.high %v4735_v50, %v4767_v5  ;;  %v882_v22 = vcombine.high %v5285_v1, %v8188_v57 }
 0x16a   :  { %1495 = vrot.lane.b32.xlu0 %v1265_v33, %s4624_s16  ;;  %1425 = vrot.lane.b32.xlu1 %v5531_v6, %s4623_s15  ;;  %v1650_v33 = vcombine.low %v1626_v11, %v1642_v62  ;;  %v5577_v58 = vrot.slane %v8226_v12, %v4883_v26 }
 0x16b   :  { %v5568_v59 = vrot.slane %v1378_v53, %v4883_v26  ;;  %v1651_v53 = vcombine.high %v1626_v11, %v1642_v62  ;;  %v1633_v62 = vrot.slane %v1619_v29, %v4855_v10  ;;  %v1570_v11 = vrot.slane %v4712_v37, 1 }
 0x16c   :  { %v5571_v40 = vrot.slane %v1650_v33, %v4883_v26  ;;  %8227 = vst [vmem:[#allocation64_spill] sm:$0xff] %v5577_v58  ;;  %v1635_v33 = vcombine.high %v5523_v16, %v5503_v13  ;;  %v884_v29 = vcombine.high %v5308_v38, %v8188_v57 }
 0x16e   :  { %1503 = vrot.lane.b32.xlu0 %v1275_v9, %s4628_s20  ;;  %1441 = vrot.lane.b32.xlu1 %v5546_v14, %s4624_s16  ;;  %8225 = vst [vmem:[#allocation63_spill] sm:$0xff] %v5571_v40  ;;  %v1682_v9 = vcombine.high %v5571_v40, %v8188_v57  ;;  %v1649_v12 = vrot.slane %v1635_v33, %v4855_v10 }
 0x170   :  { %v1666_v1 = vcombine.low %v1633_v62, %v1649_v12 }
 0x172   :  { %1511 = vrot.lane.b32.xlu0 %v1272_v8, %s4625_s17  ;;  %1457 = vrot.lane.b32.xlu1 %v5557_v21, %s4625_s17  ;;  %v881_v8 = vcombine.high %v5577_v58, %v8188_v57  ;;  %v1674_v37 = vrot.slane %v1666_v1, %v4883_v26 }
 0x174   :  { %v5564_v49 = vpop.permute.xlu0 %963  ;;  %v1684_v38 = vcombine.high %v1674_v37, %v8188_v57 }
 0x175   :  { %8224 = vst [vmem:[#allocation62_spill] sm:$0xff] %v5564_v49 }
 0x176   :  { %1519 = vrot.lane.b32.xlu0 %v1276_v30, %s4629_s21  ;;  %1481 = vrot.lane.b32.xlu1 %v5568_v59, %s4623_s15  ;;  %v1665_v30 = vrot.slane %v1651_v53, %v4883_v26  ;;  %v8230_v53 = vrot.slane %v4730_v45, 1  ;;  %v1686_v45 = vcombine.low %v4738_v51, %v4916_v60 }
 0x178   :  { %v5582_v27 = vpop.permute.xlu0 %979  ;;  %v5612_v33 = vsel %vm1561_vm3, %v8230_v53, %v1570_v11  ;;  %v1694_v1 = vrot.slane %v1686_v45, %v4855_v10  ;;  %v950_v53 = vcombine.high %v5325_v23, %v8188_v57 }
 0x179   :  { %8228 = vst [vmem:[#allocation65_spill] sm:$0xff] %v5582_v27  ;;  %v1703_v23 = vcombine.high %v5612_v33, %v4921_v61 }
 0x17a   :  { %1892 = vrot.lane.b32.xlu0 %v1682_v9, %s4626_s18  ;;  %957 = vrot.lane.b32.xlu1 %v881_v8, %s4626_s18  ;;  %v883_v9 = vcombine.high %v5297_v44, %v8188_v57  ;;  %v1683_v8 = vcombine.high %v1665_v30, %v8188_v57  ;;  %v8232_v44 = vcombine.low %v5265_v2, %v5268_v43 }
 0x17c   :  { %v5598_v40 = vpop.permute.xlu0 %995 }
 0x17d   :  { %8229 = vst [vmem:[#allocation66_spill] sm:$0xff] %v5598_v40 }
 0x17e   :  { %1900 = vrot.lane.b32.xlu0 %v1665_v30, %s4623_s15  ;;  %973 = vrot.lane.b32.xlu1 %v882_v22, %s4627_s19  ;;  %v5623_v30 = vrot.slane %v8232_v44, %v4883_v26 }
 0x180   :  { %v5616_v22 = vpop.permute.xlu0 %1019  ;;  %8233 = vst [vmem:[#allocation68_spill] sm:$0xff] %v5623_v30  ;;  %v949_v11 = vcombine.high %v5623_v30, %v8188_v57 }
 0x181   :  { %8231 = vst [vmem:[#allocation67_spill] sm:$0xff] %v5616_v22 }
 0x182   :  { %1908 = vrot.lane.b32.xlu0 %v1683_v8, %s4627_s19  ;;  %989 = vrot.lane.b32.xlu1 %v883_v9, %s4628_s20  ;;  %v1702_v9 = vcombine.low %v5612_v33, %v4921_v61  ;;  %v1667_v8 = vcombine.high %v1633_v62, %v1649_v12  ;;  %v951_v12 = vcombine.high %v5339_v35, %v8188_v57 }
 0x183   :  { %v1309_v62 = vcombine.low %v5508_v32, %v5511_v20  ;;  %v952_v35 = vcombine.high %v5358_v36, %v8188_v57 }
 0x184   :  { %v1710_v2 = vrot.slane %v1702_v9, %v4855_v10  ;;  %v5635_v43 = vpop.permute.xlu0 %1035 }
 0x185   :  { %8234 = vst [vmem:[#allocation69_spill] sm:$0xff] %v5635_v43 }
 0x186   :  { %1916 = vrot.lane.b32.xlu0 %v1674_v37, %s4624_s16  ;;  %1005 = vrot.lane.b32.xlu1 %v884_v29, %s4629_s21  ;;  %v1681_v29 = vrot.slane %v1667_v8, %v4883_v26  ;;  %v1718_v37 = vcombine.low %v1694_v1, %v1710_v2  ;;  %v1719_v20 = vcombine.high %v1694_v1, %v1710_v2 }
 0x187   :  { %v1687_v8 = vcombine.high %v4738_v51, %v4916_v60  ;;  %v1342_v1 = vcombine.high %v5531_v6, %v8188_v57 }
 0x188   :  { %v5649_v44 = vpop.permute.xlu0 %1051  ;;  %v1685_v9 = vcombine.high %v1681_v29, %v8188_v57  ;;  %v5653_v45 = vrot.slane %v1718_v37, %v4883_v26  ;;  %v1733_v36 = vrot.slane %v1719_v20, %v4883_v26  ;;  %v1717_v37 = vrot.slane %v1703_v23, %v4855_v10 }
 0x189   :  { %8235 = vst [vmem:[#allocation70_spill] sm:$0xff] %v5649_v44  ;;  %v1701_v2 = vrot.slane %v1687_v8, %v4855_v10  ;;  %v1377_v23 = vcombine.low %v5549_v3, %v5542_v39  ;;  %v1362_v8 = vcombine.high %v5479_v17, %v5514_v28 }
 0x18a   :  { %1924 = vrot.lane.b32.xlu0 %v1684_v38, %s4628_s20  ;;  %1013 = vrot.lane.b32.xlu1 %v949_v11, %s4626_s18  ;;  %8236 = vst [vmem:[#allocation71_spill] sm:$0xff] %v5653_v45  ;;  %v1750_v32 = vcombine.high %v5653_v45, %v8188_v57  ;;  %v5666_v11 = vrot.slane %v1309_v62, %v4883_v26 }
 0x18b   :  { %v1751_v62 = vcombine.high %v1733_v36, %v8188_v57  ;;  %v1735_v6 = vcombine.high %v1701_v2, %v1717_v37  ;;  %v5705_v39 = vrot.slane %v1377_v23, %v4883_v26  ;;  %v8111_v23 = vrot.slane %v4828_v52, 1 }
 0x18c   :  { %8238 = vst [vmem:[#allocation73_spill] sm:$0xff] %v5666_v11 }
 0x18d   :  { %8243 = vst [vmem:[#allocation78_spill] sm:$0xff] %v5705_v39  ;;  %v1749_v28 = vrot.slane %v1735_v6, %v4883_v26 }
 0x18e   :  { %1932 = vrot.lane.b32.xlu0 %v1681_v29, %s4625_s17  ;;  %1029 = vrot.lane.b32.xlu1 %v950_v53, %s4627_s19  ;;  %v1341_v29 = vcombine.high %v5666_v11, %v8188_v57  ;;  %v8257_v11 = vld [vmem:[#allocation4_spill] sm:$0xff] }
 0x18f   :  { %v1753_v6 = vcombine.high %v1749_v28, %v8188_v57  ;;  %v1595_v45 = vrot.slane %v8257_v11, 1 }
 0x192   :  { %1940 = vrot.lane.b32.xlu0 %v1685_v9, %s4629_s21  ;;  %1045 = vrot.lane.b32.xlu1 %v951_v12, %s4628_s20  ;;  %v1734_v9 = vcombine.low %v1701_v2, %v1717_v37  ;;  %v1376_v37 = vrot.slane %v1362_v8, %v4855_v10  ;;  %v1597_v2 = vrot.slane %v4838_v56, 1  ;;  %v1410_v56 = vcombine.high %v5568_v59, %v8188_v57 }
 0x193   :  { %v1582_v8 = vrot.slane %v4787_v19, 1 }
 0x194   :  { %v5661_v38 = vpop.permute.xlu0 %1423  ;;  %v1742_v20 = vrot.slane %v1734_v9, %v4883_v26  ;;  %v1592_v9 = vrot.slane %v4821_v47, 1 }
 0x195   :  { %8237 = vst [vmem:[#allocation72_spill] sm:$0xff] %v5661_v38 }
 0x196   :  { %1948 = vrot.lane.b32.xlu0 %v1750_v32, %s4626_s18  ;;  %1061 = vrot.lane.b32.xlu1 %v952_v35, %s4629_s21  ;;  %v1343_v35 = vcombine.high %v5546_v14, %v8188_v57  ;;  %v1752_v3 = vcombine.high %v1742_v20, %v8188_v57  ;;  %v1346_v14 = vcombine.high %v5472_v4, %v5492_v48  ;;  %v1587_v4 = vrot.slane %v4808_v34, 1 }
 0x197   :  { %v8112_v48 = vrot.slane %v4811_v42, 1  ;;  %v5748_v19 = vsel %vm1561_vm3, %v1592_v9, %v8111_v23  ;;  %v5776_v23 = vpop.permute.xlu1 %965 }
 0x198   :  { %v5672_v53 = vpop.permute.xlu0 %1439  ;;  %8249 = vst [vmem:[#allocation84_spill] sm:$0xff] %v5776_v23 }
 0x199   :  { %8239 = vst [vmem:[#allocation74_spill] sm:$0xff] %v5672_v53  ;;  %v5743_v47 = vsel %vm1561_vm3, %v1587_v4, %v8112_v48 }
 0x19a   :  { %1956 = vrot.lane.b32.xlu0 %v1733_v36, %s4623_s15  ;;  %1417 = vrot.lane.b32.xlu1 %v1341_v29, %s4626_s18  ;;  %v1344_v36 = vcombine.high %v5557_v21, %v8188_v57  ;;  %v1409_v21 = vcombine.high %v5705_v39, %v8188_v57 }
 0x19c   :  { %v5683_v12 = vpop.permute.xlu0 %1455 }
 0x19d   :  { %8240 = vst [vmem:[#allocation75_spill] sm:$0xff] %v5683_v12  ;;  %v8259_v12 = vld [vmem:[#allocation2_spill] sm:$0xff] }
 0x19e   :  { %1964 = vrot.lane.b32.xlu0 %v1751_v62, %s4627_s19  ;;  %1433 = vrot.lane.b32.xlu1 %v1342_v1, %s4627_s19  ;;  %v8113_v1 = vrot.slane %v4841_v0, 1  ;;  %v1360_v62 = vrot.slane %v1346_v14, %v4855_v10 }
 0x1a0   :  { %v5692_v32 = vpop.permute.xlu0 %1479  ;;  %v5736_v34 = vsel %vm1561_vm3, %v1597_v2, %v8113_v1  ;;  %v1394_v2 = vcombine.high %v1360_v62, %v1376_v37 }
 0x1a1   :  { %8241 = vst [vmem:[#allocation76_spill] sm:$0xff] %v5692_v32  ;;  %v1770_v14 = vcombine.low %v5743_v47, %v5736_v34  ;;  %v1771_v48 = vcombine.high %v5743_v47, %v5736_v34 }
 0x1a2   :  { %1972 = vrot.lane.b32.xlu0 %v1742_v20, %s4624_s16  ;;  %1449 = vrot.lane.b32.xlu1 %v1343_v35, %s4628_s20  ;;  %v1393_v35 = vcombine.low %v1360_v62, %v1376_v37 }
 0x1a3   :  { %v1785_v1 = vrot.slane %v1771_v48, %v4855_v10 }
 0x1a4   :  { %v5701_v29 = vpop.permute.xlu0 %955 }
 0x1a5   :  { %8242 = vst [vmem:[#allocation77_spill] sm:$0xff] %v5701_v29 }
 0x1a6   :  { %1980 = vrot.lane.b32.xlu0 %v1752_v3, %s4628_s20  ;;  %1465 = vrot.lane.b32.xlu1 %v1344_v36, %s4629_s21  ;;  %v8110_v36 = vrot.slane %v4794_v25, 1  ;;  %v1401_v3 = vrot.slane %v1393_v35, %v4883_v26  ;;  %v1778_v35 = vrot.slane %v1770_v14, %v4855_v10  ;;  %v5790_v14 = vpop.permute.xlu1 %981 }
 0x1a7   :  { %8252 = vst [vmem:[#allocation87_spill] sm:$0xff] %v5790_v14 }
 0x1a8   :  { %v5712_v17 = vpop.permute.xlu0 %971  ;;  %v1411_v9 = vcombine.high %v1401_v3, %v8188_v57 }
 0x1a9   :  { %8244 = vst [vmem:[#allocation79_spill] sm:$0xff] %v5712_v17 }
 0x1aa   :  { %1988 = vrot.lane.b32.xlu0 %v1749_v28, %s4625_s17  ;;  %1473 = vrot.lane.b32.xlu1 %v1409_v21, %s4626_s18  ;;  %v5758_v28 = vsel %vm1561_vm3, %v1582_v8, %v8110_v36  ;;  %v1408_v8 = vrot.slane %v1394_v2, %v4883_v26 }
 0x1ab   :  { %v1754_v21 = vcombine.low %v5758_v28, %v5748_v19 }
 0x1ac   :  { %v5728_v20 = vpop.permute.xlu0 %987  ;;  %v1412_v62 = vcombine.high %v1408_v8, %v8188_v57 }
 0x1ad   :  { %8245 = vst [vmem:[#allocation80_spill] sm:$0xff] %v5728_v20 }
 0x1ae   :  { %1996 = vrot.lane.b32.xlu0 %v1753_v6, %s4629_s21  ;;  %1489 = vrot.lane.b32.xlu1 %v1410_v56, %s4627_s19  ;;  %v1762_v56 = vrot.slane %v1754_v21, %v4855_v10 }
 0x1b0   :  { %v5750_v59 = vpop.permute.xlu0 %1003  ;;  %v1786_v36 = vcombine.low %v1762_v56, %v1778_v35 }
 0x1b1   :  { %8246 = vst [vmem:[#allocation81_spill] sm:$0xff] %v5750_v59 }
 0x1b2   :  { %2030 = vrot.lane.b32.xlu0 %v4735_v50, %s4619_s0  ;;  %1497 = vrot.lane.b32.xlu1 %v1401_v3, %s4624_s16  ;;  %v5785_v3 = vrot.slane %v1786_v36, %v4883_v26  ;;  %v1755_v36 = vcombine.high %v5758_v28, %v5748_v19 }
 0x1b4   :  { %v5765_v4 = vpop.permute.xlu0 %1011  ;;  %8251 = vst [vmem:[#allocation86_spill] sm:$0xff] %v5785_v3  ;;  %v1818_v2 = vcombine.high %v5785_v3, %v8188_v57  ;;  %v1600_v3 = vrot.slane %v4835_v55, 1  ;;  %v1585_v55 = vrot.slane %v8259_v12, 1 }
 0x1b5   :  { %8247 = vst [vmem:[#allocation82_spill] sm:$0xff] %v5765_v4 }
 0x1b6   :  { %2034 = vrot.lane.b32.xlu0 %v5523_v16, %s4619_s0  ;;  %1505 = vrot.lane.b32.xlu1 %v1411_v9, %s4628_s20  ;;  %v1787_v9 = vcombine.high %v1762_v56, %v1778_v35  ;;  %v5808_v35 = vpop.permute.xlu1 %997  ;;  %v1769_v56 = vrot.slane %v1755_v36, %v4855_v10  ;;  %v8261_v36 = vld [vmem:[#allocation16_spill] sm:$0xff] }
 0x1b7   :  { %8255 = vst [vmem:[#allocation90_spill] sm:$0xff] %v5808_v35  ;;  %v8260_v35 = vrot.slane %v4841_v0, 1 }
 0x1b8   :  { %v5773_v6 = vpop.permute.xlu0 %1027  ;;  %v1802_v48 = vcombine.low %v1769_v56, %v1785_v1 }
 0x1b9   :  { %8248 = vst [vmem:[#allocation83_spill] sm:$0xff] %v5773_v6  ;;  %v5823_v32 = vsel %vm1561_vm3, %v8260_v35, %v1600_v3 }
 0x1ba   :  { %2038 = vrot.lane.b32.xlu0 %v4767_v5, %s4619_s0  ;;  %1513 = vrot.lane.b32.xlu1 %v1408_v8, %s4625_s17  ;;  %v5838_v12 = vpop.permute.xlu1 %1021  ;;  %v1810_v3 = vrot.slane %v1802_v48, %v4883_v26 }
 0x1bb   :  { %8264 = vst [vmem:[#allocation4_spill] sm:$0xff] %v5838_v12 }
 0x1bc   :  { %v5781_v37 = vpop.permute.xlu0 %1043  ;;  %v1820_v48 = vcombine.high %v1810_v3, %v8188_v57 }
 0x1bd   :  { %8250 = vst [vmem:[#allocation85_spill] sm:$0xff] %v5781_v37 }
 0x1be   :  { %3421 = vrot.lane.b32.xlu0 %v4924_v63, %s4619_s0  ;;  %1521 = vrot.lane.b32.xlu1 %v1412_v62, %s4629_s21  ;;  %v1801_v62 = vrot.slane %v1787_v9, %v4883_v26  ;;  %v5859_v12 = vpop.permute.xlu1 %1037 }
 0x1c0   :  { %v5792_v21 = vpop.permute.xlu0 %1059  ;;  %v1819_v9 = vcombine.high %v1801_v62, %v8188_v57 }
 0x1c1   :  { %8253 = vst [vmem:[#allocation88_spill] sm:$0xff] %v5792_v21 }
 0x1c2   :  { %3429 = vrot.lane.b32.xlu0 %v4987_v54, %s4619_s0  ;;  %1894 = vrot.lane.b32.xlu1 %v1818_v2, %s4626_s18  ;;  %v8256_v2 = vld [vmem:[#allocation3_spill] sm:$0xff] }
 0x1c3   :  { %v1590_v39 = vrot.slane %v8256_v2, 1  ;;  %v8262_v2 = vrot.slane %v4811_v42, 1 }
 0x1c4   :  { %v5803_v8 = vpop.permute.xlu0 %1415 }
 0x1c5   :  { %8254 = vst [vmem:[#allocation89_spill] sm:$0xff] %v5803_v8  ;;  %v5831_v11 = vsel %vm1561_vm3, %v8262_v2, %v1590_v39  ;;  %v1803_v2 = vcombine.high %v1769_v56, %v1785_v1  ;;  %v8272_v1 = vld [vmem:[#allocation21_spill] sm:$0xff]  ;;  %v5871_v56 = vpop.permute.xlu1 %1053 }
 0x1c6   :  { %3437 = vrot.lane.b32.xlu0 %v5120_v41, %s4619_s0  ;;  %1902 = vrot.lane.b32.xlu1 %v1801_v62, %s4623_s15  ;;  %v8263_v62 = vrot.slane %v4828_v52, 1  ;;  %v1838_v35 = vcombine.low %v5831_v11, %v5823_v32  ;;  %v8267_v52 = vld [vmem:[#allocation5_spill] sm:$0xff]  ;;  %8273 = vst [vmem:[#allocation21_spill] sm:$0xff] %v5871_v56 }
 0x1c7   :  { %8269 = vst [vmem:[#allocation5_spill] sm:$0xff] %v5859_v12 }
 0x1c8   :  { %v5816_v14 = vpop.permute.xlu0 %1431  ;;  %v5836_v23 = vsel %vm1561_vm3, %v8263_v62, %v1595_v45  ;;  %v1846_v62 = vrot.slane %v1838_v35, %v4855_v10 }
 0x1c9   :  { %8258 = vst [vmem:[#allocation3_spill] sm:$0xff] %v5816_v14 }
 0x1ca   :  { %1910 = vrot.lane.b32.xlu1 %v1819_v9, %s4627_s19  ;;  %3445 = vrot.lane.b32.xlu0 %v8261_v36, %s4619_s0  ;;  %v8266_v9 = vrot.slane %v4794_v25, 1  ;;  %v8270_v25 = vld [vmem:[#allocation6_spill] sm:$0xff] }
 0x1cc   :  { %v5840_v0 = vpop.permute.xlu0 %1447  ;;  %v5848_v42 = vsel %vm1561_vm3, %v8266_v9, %v1585_v55 }
 0x1cd   :  { %8265 = vst [vmem:[#allocation2_spill] sm:$0xff] %v5840_v0  ;;  %v1822_v45 = vcombine.low %v5848_v42, %v5836_v23  ;;  %v1817_v0 = vrot.slane %v1803_v2, %v4883_v26 }
 0x1ce   :  { %1918 = vrot.lane.b32.xlu1 %v1810_v3, %s4624_s16  ;;  %3419 = vrot.lane.b32.xlu0 %v8267_v52, %s4619_s0 }
 0x1cf   :  { %v1830_v55 = vrot.slane %v1822_v45, %v4855_v10  ;;  %v1821_v35 = vcombine.high %v1817_v0, %v8188_v57  ;;  %v8276_v45 = vld [vmem:[#allocation19_spill] sm:$0xff] }
 0x1d0   :  { %v5855_v39 = vpop.permute.xlu0 %1463 }
 0x1d1   :  { %8268 = vst [vmem:[#allocation16_spill] sm:$0xff] %v5855_v39  ;;  %v1854_v53 = vcombine.low %v1830_v55, %v1846_v62  ;;  %v1855_v56 = vcombine.high %v1830_v55, %v1846_v62 }
 0x1d2   :  { %1926 = vrot.lane.b32.xlu1 %v1820_v48, %s4628_s20  ;;  %3427 = vrot.lane.b32.xlu0 %v8270_v25, %s4619_s0 }
 0x1d3   :  { %v5877_v48 = vrot.slane %v1854_v53, %v4883_v26  ;;  %v1823_v53 = vcombine.high %v5848_v42, %v5836_v23 }
 0x1d4   :  { %v5865_v9 = vpop.permute.xlu0 %1471 }
 0x1d5   :  { %8271 = vst [vmem:[#allocation6_spill] sm:$0xff] %v5865_v9  ;;  %8275 = vst [vmem:[#allocation92_spill] sm:$0xff] %v5877_v48  ;;  %v1886_v12 = vcombine.high %v5877_v48, %v8188_v57 }
 0x1d6   :  { %1934 = vrot.lane.b32.xlu1 %v1817_v0, %s4625_s17  ;;  %3435 = vrot.lane.b32.xlu0 %v8272_v1, %s4619_s0 }
 0x1d8   :  { %v5873_v3 = vpop.permute.xlu0 %1487 }
 0x1d9   :  { %8274 = vst [vmem:[#allocation91_spill] sm:$0xff] %v5873_v3  ;;  %v1839_v3 = vcombine.high %v5831_v11, %v5823_v32 }
 0x1da   :  { %1942 = vrot.lane.b32.xlu1 %v1821_v35, %s4629_s21  ;;  %3443 = vrot.lane.b32.xlu0 %v8276_v45, %s4619_s0 }
 0x1db   :  { %v1853_v48 = vrot.slane %v1839_v3, %v4855_v10 }
 0x1dc   :  { %v5882_v2 = vpop.permute.xlu1 %1425  ;;  %v5884_v39 = vpop.permute.xlu0 %1495 }
 0x1dd   :  { %8277 = vst [vmem:[#allocation19_spill] sm:$0xff] %v5882_v2  ;;  %8278 = vst [vmem:[#allocation93_spill] sm:$0xff] %v5884_v39  ;;  %v1869_v2 = vrot.slane %v1855_v56, %v4883_v26 }
 0x1de   :  { %1950 = vrot.lane.b32.xlu1 %v1886_v12, %s4626_s18  ;;  %3881 = vrot.lane.b32.xlu0 %v4924_v63, %s4621_s13  ;;  %v1837_v12 = vrot.slane %v1823_v53, %v4855_v10 }
 0x1df   :  { %v1887_v39 = vcombine.high %v1869_v2, %v8188_v57 }
 0x1e0   :  { %v5895_v0 = vpop.permute.xlu1 %1441  ;;  %v5897_v35 = vpop.permute.xlu0 %1503 }
 0x1e1   :  { %8279 = vst [vmem:[#allocation94_spill] sm:$0xff] %v5895_v0  ;;  %8280 = vst [vmem:[#allocation95_spill] sm:$0xff] %v5897_v35  ;;  %v1870_v0 = vcombine.low %v1837_v12, %v1853_v48 }
 0x1e2   :  { %1958 = vrot.lane.b32.xlu1 %v1869_v2, %s4623_s15  ;;  %3889 = vrot.lane.b32.xlu0 %v4987_v54, %s4621_s13 }
 0x1e3   :  { %v1878_v35 = vrot.slane %v1870_v0, %v4883_v26 }
 0x1e4   :  { %v5905_v62 = vpop.permute.xlu1 %1457  ;;  %v5907_v55 = vpop.permute.xlu0 %1511 }
 0x1e5   :  { %8281 = vst [vmem:[#allocation96_spill] sm:$0xff] %v5905_v62  ;;  %8282 = vst [vmem:[#allocation97_spill] sm:$0xff] %v5907_v55  ;;  %v1871_v62 = vcombine.high %v1837_v12, %v1853_v48 }
 0x1e6   :  { %1966 = vrot.lane.b32.xlu1 %v1887_v39, %s4627_s19  ;;  %3897 = vrot.lane.b32.xlu0 %v5120_v41, %s4621_s13  ;;  %v1888_v39 = vcombine.high %v1878_v35, %v8188_v57 }
 0x1e8   :  { %v5913_v56 = vpop.permute.xlu1 %1481  ;;  %v5915_v3 = vpop.permute.xlu0 %1519 }
 0x1e9   :  { %8283 = vst [vmem:[#allocation98_spill] sm:$0xff] %v5913_v56  ;;  %8284 = vst [vmem:[#allocation99_spill] sm:$0xff] %v5915_v3  ;;  %v1885_v3 = vrot.slane %v1871_v62, %v4883_v26 }
 0x1ea   :  { %1974 = vrot.lane.b32.xlu1 %v1878_v35, %s4624_s16  ;;  %3905 = vrot.lane.b32.xlu0 %v8261_v36, %s4621_s13 }
 0x1eb   :  { %v1889_v48 = vcombine.high %v1885_v3, %v8188_v57 }
 0x1ec   :  { %v5921_v53 = vpop.permute.xlu1 %957  ;;  %v5923_v2 = vpop.permute.xlu0 %1892 }
 0x1ed   :  { %8285 = vst [vmem:[#allocation100_spill] sm:$0xff] %v5921_v53  ;;  %8286 = vst [vmem:[#allocation101_spill] sm:$0xff] %v5923_v2 }
 0x1ee   :  { %1982 = vrot.lane.b32.xlu1 %v1888_v39, %s4628_s20  ;;  %2492 = vrot.lane.b32.xlu0 %v4738_v51, %s4621_s13 }
 0x1f0   :  { %v5929_v56 = vpop.permute.xlu1 %973  ;;  %v5931_v0 = vpop.permute.xlu0 %1900 }
 0x1f1   :  { %8287 = vst [vmem:[#allocation102_spill] sm:$0xff] %v5929_v56  ;;  %8288 = vst [vmem:[#allocation103_spill] sm:$0xff] %v5931_v0 }
 0x1f2   :  { %1990 = vrot.lane.b32.xlu1 %v1885_v3, %s4625_s17  ;;  %2500 = vrot.lane.b32.xlu0 %v4916_v60, %s4621_s13 }
 0x1f4   :  { %v5937_v55 = vpop.permute.xlu1 %989  ;;  %v5939_v35 = vpop.permute.xlu0 %1908 }
 0x1f5   :  { %8289 = vst [vmem:[#allocation104_spill] sm:$0xff] %v5937_v55  ;;  %8290 = vst [vmem:[#allocation105_spill] sm:$0xff] %v5939_v35 }
 0x1f6   :  { %1998 = vrot.lane.b32.xlu1 %v1889_v48, %s4629_s21  ;;  %2508 = vrot.lane.b32.xlu0 %v5848_v42, %s4621_s13 }
 0x1f8   :  { %v5945_v12 = vpop.permute.xlu1 %1005  ;;  %v5947_v39 = vpop.permute.xlu0 %1916 }
 0x1f9   :  { %8291 = vst [vmem:[#allocation106_spill] sm:$0xff] %v5945_v12  ;;  %8292 = vst [vmem:[#allocation107_spill] sm:$0xff] %v5947_v39 }
 0x1fa   :  { %2032 = vrot.lane.b32.xlu1 %v4738_v51, %s4619_s0  ;;  %2516 = vrot.lane.b32.xlu0 %v5836_v23, %s4621_s13 }
 0x1fc   :  { %v5953_v62 = vpop.permute.xlu1 %1013  ;;  %v5955_v55 = vpop.permute.xlu0 %1924 }
 0x1fd   :  { %8293 = vst [vmem:[#allocation108_spill] sm:$0xff] %v5953_v62  ;;  %8294 = vst [vmem:[#allocation109_spill] sm:$0xff] %v5955_v55  ;;  %v8299_v55 = vld [vmem:[#allocation9_spill] sm:$0xff] }
 0x1fe   :  { %2036 = vrot.lane.b32.xlu1 %v5612_v33, %s4619_s0  ;;  %3879 = vrot.lane.b32.xlu0 %v8267_v52, %s4621_s13 }
 0x200   :  { %v5961_v3 = vpop.permute.xlu1 %1029  ;;  %v5963_v48 = vpop.permute.xlu0 %1932 }
 0x201   :  { %8295 = vst [vmem:[#allocation110_spill] sm:$0xff] %v5961_v3  ;;  %8296 = vst [vmem:[#allocation111_spill] sm:$0xff] %v5963_v48  ;;  %v8302_v48 = vld [vmem:[#allocation10_spill] sm:$0xff] }
 0x202   :  { %2040 = vrot.lane.b32.xlu1 %v4916_v60, %s4619_s0  ;;  %3887 = vrot.lane.b32.xlu0 %v8270_v25, %s4621_s13 }
 0x204   :  { %v5969_v51 = vpop.permute.xlu1 %1045  ;;  %v5971_v12 = vpop.permute.xlu0 %1940 }
 0x205   :  { %8297 = vst [vmem:[#allocation112_spill] sm:$0xff] %v5969_v51  ;;  %8298 = vst [vmem:[#allocation113_spill] sm:$0xff] %v5971_v12  ;;  %v8305_v12 = vld [vmem:[#allocation11_spill] sm:$0xff] }
 0x206   :  { %3425 = vrot.lane.b32.xlu1 %v8299_v55, %s4619_s0  ;;  %3895 = vrot.lane.b32.xlu0 %v8272_v1, %s4621_s13 }
 0x208   :  { %v5977_v56 = vpop.permute.xlu1 %1061  ;;  %v5979_v3 = vpop.permute.xlu0 %1948 }
 0x209   :  { %8300 = vst [vmem:[#allocation9_spill] sm:$0xff] %v5977_v56  ;;  %8301 = vst [vmem:[#allocation114_spill] sm:$0xff] %v5979_v3  ;;  %v8308_v3 = vld [vmem:[#allocation12_spill] sm:$0xff] }
 0x20a   :  { %3433 = vrot.lane.b32.xlu1 %v8302_v48, %s4619_s0  ;;  %3903 = vrot.lane.b32.xlu0 %v8276_v45, %s4621_s13 }
 0x20c   :  { %v5985_v60 = vpop.permute.xlu1 %1417  ;;  %v5987_v51 = vpop.permute.xlu0 %1956 }
 0x20d   :  { %8303 = vst [vmem:[#allocation10_spill] sm:$0xff] %v5985_v60  ;;  %8304 = vst [vmem:[#allocation115_spill] sm:$0xff] %v5987_v51  ;;  %v8311_v51 = vld [vmem:[#allocation13_spill] sm:$0xff] }
 0x20e   :  { %3441 = vrot.lane.b32.xlu1 %v8305_v12, %s4619_s0  ;;  %2490 = vrot.lane.b32.xlu0 %v4735_v50, %s4621_s13 }
 0x210   :  { %v5993_v39 = vpop.permute.xlu1 %1433  ;;  %v5995_v56 = vpop.permute.xlu0 %1964 }
 0x211   :  { %8306 = vst [vmem:[#allocation11_spill] sm:$0xff] %v5993_v39  ;;  %8307 = vst [vmem:[#allocation116_spill] sm:$0xff] %v5995_v56  ;;  %v8314_v56 = vld [vmem:[#allocation14_spill] sm:$0xff] }
 0x212   :  { %3449 = vrot.lane.b32.xlu1 %v8308_v3, %s4619_s0  ;;  %2498 = vrot.lane.b32.xlu0 %v4767_v5, %s4621_s13 }
 0x214   :  { %v6001_v35 = vpop.permute.xlu1 %1449  ;;  %v6003_v60 = vpop.permute.xlu0 %1972 }
 0x215   :  { %8309 = vst [vmem:[#allocation12_spill] sm:$0xff] %v6001_v35  ;;  %8310 = vst [vmem:[#allocation117_spill] sm:$0xff] %v6003_v60  ;;  %v8317_v60 = vld [vmem:[#allocation20_spill] sm:$0xff] }
 0x216   :  { %3423 = vrot.lane.b32.xlu1 %v8311_v51, %s4619_s0  ;;  %2506 = vrot.lane.b32.xlu0 %v5758_v28, %s4621_s13 }
 0x218   :  { %v6009_v50 = vpop.permute.xlu1 %1465  ;;  %v6011_v39 = vpop.permute.xlu0 %1980 }
 0x219   :  { %8312 = vst [vmem:[#allocation13_spill] sm:$0xff] %v6009_v50  ;;  %8313 = vst [vmem:[#allocation118_spill] sm:$0xff] %v6011_v39  ;;  %v8320_v39 = vld [vmem:[#allocation17_spill] sm:$0xff] }
 0x21a   :  { %3431 = vrot.lane.b32.xlu1 %v8314_v56, %s4619_s0  ;;  %2514 = vrot.lane.b32.xlu0 %v5748_v19, %s4621_s13 }
 0x21c   :  { %v6017_v5 = vpop.permute.xlu1 %1473  ;;  %v6019_v35 = vpop.permute.xlu0 %1988 }
 0x21d   :  { %8315 = vst [vmem:[#allocation14_spill] sm:$0xff] %v6017_v5  ;;  %8316 = vst [vmem:[#allocation119_spill] sm:$0xff] %v6019_v35 }
 0x21e   :  { %3439 = vrot.lane.b32.xlu1 %v8317_v60, %s4619_s0  ;;  %2044 = vrot.lane.b32.xlu0 %v4921_v61, %s4619_s0 }
 0x220   :  { %v6025_v30 = vpop.permute.xlu1 %1489  ;;  %v6027_v50 = vpop.permute.xlu0 %1996 }
 0x221   :  { %8318 = vst [vmem:[#allocation20_spill] sm:$0xff] %v6025_v30  ;;  %8319 = vst [vmem:[#allocation120_spill] sm:$0xff] %v6027_v50 }
 0x222   :  { %3447 = vrot.lane.b32.xlu1 %v8320_v39, %s4619_s0  ;;  %2052 = vrot.lane.b32.xlu0 %v5831_v11, %s4619_s0 }
 0x224   :  { %v6033_v62 = vpop.permute.xlu1 %1497  ;;  %v6035_v5 = vpop.permute.xlu0 %2030 }
 0x225   :  { %8321 = vst [vmem:[#allocation17_spill] sm:$0xff] %v6033_v62  ;;  %8322 = vst [vmem:[#allocation121_spill] sm:$0xff] %v6035_v5 }
 0x226   :  { %3885 = vrot.lane.b32.xlu1 %v8299_v55, %s4621_s13  ;;  %2060 = vrot.lane.b32.xlu0 %v5823_v32, %s4619_s0 }
 0x228   :  { %v6041_v35 = vpop.permute.xlu1 %1505  ;;  %v6043_v30 = vpop.permute.xlu0 %2034 }
 0x229   :  { %8323 = vst [vmem:[#allocation122_spill] sm:$0xff] %v6041_v35  ;;  %8324 = vst [vmem:[#allocation123_spill] sm:$0xff] %v6043_v30 }
 0x22a   :  { %3893 = vrot.lane.b32.xlu1 %v8302_v48, %s4621_s13  ;;  %2046 = vrot.lane.b32.xlu0 %v5758_v28, %s4619_s0 }
 0x22c   :  { %v6049_v50 = vpop.permute.xlu1 %1513  ;;  %v6051_v62 = vpop.permute.xlu0 %2038 }
 0x22d   :  { %8325 = vst [vmem:[#allocation124_spill] sm:$0xff] %v6049_v50  ;;  %8326 = vst [vmem:[#allocation125_spill] sm:$0xff] %v6051_v62 }
 0x22e   :  { %3901 = vrot.lane.b32.xlu1 %v8305_v12, %s4621_s13  ;;  %2054 = vrot.lane.b32.xlu0 %v5748_v19, %s4619_s0 }
 0x230   :  { %v6057_v0 = vpop.permute.xlu1 %1521  ;;  %v6059_v35 = vpop.permute.xlu0 %3421 }
 0x231   :  { %8327 = vst [vmem:[#allocation126_spill] sm:$0xff] %v6057_v0 }
 0x232   :  { %3909 = vrot.lane.b32.xlu1 %v8308_v3, %s4621_s13 }
 0x234   :  { %v6063_v9 = vpop.permute.xlu1 %1894  ;;  %v3430_v28 = vpop.permute.xlu0 %3429 }
 0x235   :  { %8328 = vst [vmem:[#allocation127_spill] sm:$0xff] %v6063_v9  ;;  %v3535_v37 = vcombine.low %v6059_v35, %v3430_v28 }
 0x236   :  { %2496 = vrot.lane.b32.xlu1 %v5612_v33, %s4621_s13 }
 0x238   :  { %v6067_v50 = vpop.permute.xlu1 %1902  ;;  %v6069_v2 = vpop.permute.xlu0 %3437 }
 0x239   :  { %8329 = vst [vmem:[#allocation128_spill] sm:$0xff] %v6067_v50 }
 0x23a   :  { %2504 = vrot.lane.b32.xlu1 %v4921_v61, %s4621_s13 }
 0x23c   :  { %v6073_v19 = vpop.permute.xlu1 %1910  ;;  %v6075_v0 = vpop.permute.xlu0 %3445 }
 0x23d   :  { %8330 = vst [vmem:[#allocation129_spill] sm:$0xff] %v6073_v19 }
 0x23e   :  { %2512 = vrot.lane.b32.xlu1 %v5831_v11, %s4621_s13 }
 0x240   :  { %v6079_v58 = vpop.permute.xlu1 %1918  ;;  %v6081_v9 = vpop.permute.xlu0 %3419 }
 0x241   :  { %8331 = vst [vmem:[#allocation130_spill] sm:$0xff] %v6079_v58 }
 0x242   :  { %2520 = vrot.lane.b32.xlu1 %v5823_v32, %s4621_s13 }
 0x244   :  { %v6085_v33 = vpop.permute.xlu1 %1926  ;;  %v6087_v50 = vpop.permute.xlu0 %3427 }
 0x245   :  { %8332 = vst [vmem:[#allocation131_spill] sm:$0xff] %v6085_v33 }
 0x246   :  { %3883 = vrot.lane.b32.xlu1 %v8311_v51, %s4621_s13 }
 0x248   :  { %v6091_v61 = vpop.permute.xlu1 %1934  ;;  %v6093_v19 = vpop.permute.xlu0 %3435 }
 0x249   :  { %8333 = vst [vmem:[#allocation132_spill] sm:$0xff] %v6091_v61 }
 0x24a   :  { %3891 = vrot.lane.b32.xlu1 %v8314_v56, %s4621_s13 }
 0x24c   :  { %v6097_v11 = vpop.permute.xlu1 %1942  ;;  %v6099_v58 = vpop.permute.xlu0 %3443 }
 0x24d   :  { %8334 = vst [vmem:[#allocation133_spill] sm:$0xff] %v6097_v11 }
 0x24e   :  { %3899 = vrot.lane.b32.xlu1 %v8317_v60, %s4621_s13 }
 0x250   :  { %v6103_v32 = vpop.permute.xlu1 %1950  ;;  %v6105_v33 = vpop.permute.xlu0 %3881 }
 0x251   :  { %8335 = vst [vmem:[#allocation134_spill] sm:$0xff] %v6103_v32 }
 0x252   :  { %3907 = vrot.lane.b32.xlu1 %v8320_v39, %s4621_s13 }
 0x254   :  { %v6109_v61 = vpop.permute.xlu1 %1958  ;;  %v6111_v53 = vpop.permute.xlu0 %3889 }
 0x255   :  { %8336 = vst [vmem:[#allocation135_spill] sm:$0xff] %v6109_v61 }
 0x256   :  { %2494 = vrot.lane.b32.xlu1 %v5523_v16, %s4621_s13 }
 0x258   :  { %v6115_v11 = vpop.permute.xlu1 %1966  ;;  %v6117_v14 = vpop.permute.xlu0 %3897 }
 0x259   :  { %8337 = vst [vmem:[#allocation136_spill] sm:$0xff] %v6115_v11 }
 0x25a   :  { %2502 = vrot.lane.b32.xlu1 %v5503_v13, %s4621_s13 }
 0x25c   :  { %v6121_v32 = vpop.permute.xlu1 %1974  ;;  %v6123_v21 = vpop.permute.xlu0 %3905 }
 0x25d   :  { %8338 = vst [vmem:[#allocation137_spill] sm:$0xff] %v6121_v32 }
 0x25e   :  { %2510 = vrot.lane.b32.xlu1 %v5743_v47, %s4621_s13 }
 0x260   :  { %v6127_v61 = vpop.permute.xlu1 %1982  ;;  %v6129_v59 = vpop.permute.xlu0 %2492 }
 0x261   :  { %8339 = vst [vmem:[#allocation138_spill] sm:$0xff] %v6127_v61 }
 0x262   :  { %2518 = vrot.lane.b32.xlu1 %v5736_v34, %s4621_s13 }
 0x264   :  { %v6133_v16 = vpop.permute.xlu1 %1990  ;;  %v6135_v11 = vpop.permute.xlu0 %2500 }
 0x265   :  { %8340 = vst [vmem:[#allocation139_spill] sm:$0xff] %v6133_v16 }
 0x266   :  { %2048 = vrot.lane.b32.xlu1 %v5848_v42, %s4619_s0 }
 0x268   :  { %v6139_v32 = vpop.permute.xlu1 %1998  ;;  %v6141_v38 = vpop.permute.xlu0 %2508 }
 0x269   :  { %8341 = vst [vmem:[#allocation140_spill] sm:$0xff] %v6139_v32 }
 0x26a   :  { %2056 = vrot.lane.b32.xlu1 %v5836_v23, %s4619_s0 }
 0x26c   :  { %v6145_v61 = vpop.permute.xlu1 %2032  ;;  %v6147_v44 = vpop.permute.xlu0 %2516 }
 0x26e   :  { %2042 = vrot.lane.b32.xlu1 %v5503_v13, %s4619_s0  ;;  %v3536_v13 = vcombine.high %v6059_v35, %v3430_v28 }
 0x270   :  { %v6151_v16 = vpop.permute.xlu1 %2036  ;;  %v6153_v40 = vpop.permute.xlu0 %3879  ;;  %v6173_v17 = vrot.slane %v3536_v13, %v4855_v10 }
 0x272   :  { %2050 = vrot.lane.b32.xlu1 %v5743_v47, %s4619_s0  ;;  %v6170_v47 = vrot.slane %v3535_v37, %v4855_v10  ;;  %v3672_v37 = vcombine.high %v6069_v2, %v6075_v0 }
 0x274   :  { %v6157_v42 = vpop.permute.xlu1 %2040  ;;  %v6159_v32 = vpop.permute.xlu0 %3887  ;;  %v6199_v28 = vrot.slane %v3672_v37, %v4855_v10  ;;  %v3467_v37 = vcombine.low %v6081_v9, %v6087_v50 }
 0x276   :  { %2058 = vrot.lane.b32.xlu1 %v5736_v34, %s4619_s0  ;;  %8343 = vst [vmem:[#allocation142_spill] sm:$0xff] %v6199_v28 }
 0x278   :  { %v3426_v23 = vpop.permute.xlu1 %3425  ;;  %v6163_v8 = vpop.permute.xlu0 %3895 }
 0x27c   :  { %v3434_v20 = vpop.permute.xlu1 %3433  ;;  %v6167_v43 = vpop.permute.xlu0 %3903 }
 0x27d   :  { %v3551_v27 = vcombine.low %v3426_v23, %v3434_v20  ;;  %v3552_v6 = vcombine.high %v3426_v23, %v3434_v20  ;;  %v3671_v20 = vcombine.low %v6069_v2, %v6075_v0 }
 0x27f   :  { %v3559_v34 = vrot.slane %v3551_v27, %v4855_v10  ;;  %v6177_v22 = vrot.slane %v3552_v6, %v4855_v10  ;;  %v6196_v46 = vrot.slane %v3671_v20, %v4855_v10 }
 0x280   :  { %v3442_v49 = vpop.permute.xlu1 %3441  ;;  %v6179_v7 = vpop.permute.xlu0 %2490 }
 0x281   :  { %v3567_v35 = vcombine.low %v6170_v47, %v3559_v34 }
 0x283   :  { %v6189_v23 = vrot.slane %v3567_v35, %v4883_v26 }
 0x284   :  { %v3450_v27 = vpop.permute.xlu1 %3449  ;;  %v6191_v6 = vpop.permute.xlu0 %2498 }
 0x285   :  { %8342 = vst [vmem:[#allocation141_spill] sm:$0xff] %v6189_v23  ;;  %v3687_v13 = vcombine.low %v3442_v49, %v3450_v27  ;;  %v3688_v31 = vcombine.high %v3442_v49, %v3450_v27  ;;  %v3599_v24 = vcombine.high %v6189_v23, %v8188_v57  ;;  %v3468_v27 = vcombine.high %v6081_v9, %v6087_v50 }
 0x286   :  { %v6226_v23 = vrot.slane %v3467_v37, %v4855_v10  ;;  %v2147_v50 = vcombine.high %v6145_v61, %v6157_v42 }
 0x287   :  { %v6202_v4 = vrot.slane %v3687_v13, %v4855_v10  ;;  %v6205_v2 = vrot.slane %v3688_v31, %v4855_v10  ;;  %3797 = vrot.lane.b32.xlu0 %v3599_v24, %s4626_s18  ;;  %v6229_v20 = vrot.slane %v3468_v27, %v4855_v10  ;;  %v3568_v27 = vcombine.high %v6170_v47, %v3559_v34 }
 0x288   :  { %v3424_v0 = vpop.permute.xlu1 %3423  ;;  %v6208_v35 = vpop.permute.xlu0 %2506 }
 0x289   :  { %v3703_v49 = vcombine.low %v6196_v46, %v6202_v4  ;;  %8345 = vst [vmem:[#allocation144_spill] sm:$0xff] %v6229_v20 }
 0x28b   :  { %v6219_v31 = vrot.slane %v3703_v49, %v4883_v26 }
 0x28c   :  { %v3432_v13 = vpop.permute.xlu1 %3431  ;;  %v6221_v24 = vpop.permute.xlu0 %2514 }
 0x28d   :  { %8344 = vst [vmem:[#allocation143_spill] sm:$0xff] %v6219_v31  ;;  %v3483_v15 = vcombine.low %v3424_v0, %v3432_v13  ;;  %v3484_v29 = vcombine.high %v3424_v0, %v3432_v13  ;;  %v3735_v18 = vcombine.high %v6219_v31, %v8188_v57  ;;  %v3604_v13 = vcombine.high %v6093_v19, %v6099_v58 }
 0x28e   :  { %v6256_v31 = vrot.slane %v2147_v50, %v4855_v10 }
 0x28f   :  { %v6232_v5 = vrot.slane %v3483_v15, %v4855_v10  ;;  %v6235_v9 = vrot.slane %v3484_v29, %v4855_v10  ;;  %3799 = vrot.lane.b32.xlu1 %v3735_v18, %s4626_s18  ;;  %v3603_v29 = vcombine.low %v6093_v19, %v6099_v58  ;;  %v6270_v50 = vrot.slane %v3604_v13, %v4855_v10 }
 0x290   :  { %v3440_v0 = vpop.permute.xlu1 %3439  ;;  %v6240_v49 = vpop.permute.xlu0 %2044  ;;  %8348 = vst [vmem:[#allocation147_spill] sm:$0xff] %v6256_v31  ;;  %v3704_v13 = vcombine.high %v6196_v46, %v6202_v4 }
 0x291   :  { %8346 = vst [vmem:[#allocation145_spill] sm:$0xff] %v6235_v9  ;;  %v3499_v37 = vcombine.low %v6226_v23, %v6232_v5  ;;  %v2163_v15 = vcombine.high %v6151_v16, %v6240_v49  ;;  %v6267_v19 = vrot.slane %v3603_v29, %v4855_v10  ;;  %v3995_v29 = vcombine.low %v6105_v33, %v6111_v53 }
 0x293   :  { %v6253_v18 = vrot.slane %v3499_v37, %v4883_v26  ;;  %v6259_v62 = vrot.slane %v2163_v15, %v4855_v10 }
 0x294   :  { %v3448_v30 = vpop.permute.xlu1 %3447 }
 0x295   :  { %8347 = vst [vmem:[#allocation146_spill] sm:$0xff] %v6253_v18  ;;  %8349 = vst [vmem:[#allocation148_spill] sm:$0xff] %v6259_v62  ;;  %v3619_v20 = vcombine.low %v3440_v0, %v3448_v30  ;;  %v3620_v9 = vcombine.high %v3440_v0, %v3448_v30  ;;  %v3531_v28 = vcombine.high %v6253_v18, %v8188_v57 }
 0x296   :  { %v6284_v0 = vrot.slane %v3568_v27, %v4883_v26  ;;  %v6300_v18 = vrot.slane %v3995_v29, %v4855_v10  ;;  %v6317_v29 = vrot.slane %v3704_v13, %v4883_v26 }
 0x297   :  { %v6273_v37 = vrot.slane %v3619_v20, %v4855_v10  ;;  %v6276_v15 = vrot.slane %v3620_v9, %v4855_v10  ;;  %3741 = vrot.lane.b32.xlu0 %v3531_v28, %s4626_s18  ;;  %v3996_v20 = vcombine.high %v6105_v33, %v6111_v53 }
 0x298   :  { %v3886_v30 = vpop.permute.xlu1 %3885 }
 0x299   :  { %v3635_v47 = vcombine.low %v6267_v19, %v6273_v37  ;;  %v6303_v53 = vrot.slane %v3996_v20, %v4855_v10  ;;  %v4131_v20 = vcombine.low %v6117_v14, %v6123_v21 }
 0x29b   :  { %3805 = vrot.lane.b32.xlu0 %v6284_v0, %s4623_s15  ;;  %v6293_v28 = vrot.slane %v3635_v47, %v4883_v26  ;;  %v6331_v13 = vrot.slane %v4131_v20, %v4855_v10 }
 0x29c   :  { %v3894_v9 = vpop.permute.xlu1 %3893 }
 0x29d   :  { %8350 = vst [vmem:[#allocation149_spill] sm:$0xff] %v6293_v28  ;;  %v4011_v58 = vcombine.low %v3886_v30, %v3894_v9  ;;  %v4012_v34 = vcombine.high %v3886_v30, %v3894_v9  ;;  %v3667_v27 = vcombine.high %v6293_v28, %v8188_v57 }
 0x29f   :  { %v6306_v33 = vrot.slane %v4011_v58, %v4855_v10  ;;  %v6309_v47 = vrot.slane %v4012_v34, %v4855_v10  ;;  %3743 = vrot.lane.b32.xlu1 %v3667_v27, %s4626_s18  ;;  %v4132_v58 = vcombine.high %v6117_v14, %v6123_v21 }
 0x2a0   :  { %v3902_v46 = vpop.permute.xlu1 %3901 }
 0x2a1   :  { %v4027_v4 = vcombine.low %v6300_v18, %v6306_v33  ;;  %v6334_v31 = vrot.slane %v4132_v58, %v4855_v10  ;;  %v3075_v58 = vcombine.low %v4924_v63, %v4987_v54 }
 0x2a3   :  { %3807 = vrot.lane.b32.xlu1 %v6317_v29, %s4623_s15  ;;  %v6326_v34 = vrot.slane %v4027_v4, %v4883_v26  ;;  %v6364_v63 = vrot.slane %v3075_v58, %v4855_v10 }
 0x2a4   :  { %v3910_v9 = vpop.permute.xlu1 %3909 }
 0x2a5   :  { %8351 = vst [vmem:[#allocation150_spill] sm:$0xff] %v6326_v34  ;;  %v4147_v27 = vcombine.low %v3902_v46, %v3910_v9  ;;  %v4148_v28 = vcombine.high %v3902_v46, %v3910_v9  ;;  %v4059_v30 = vcombine.high %v6326_v34, %v8188_v57  ;;  %v3091_v46 = vcombine.low %v8299_v55, %v8302_v48 }
 0x2a7   :  { %v6337_v14 = vrot.slane %v4147_v27, %v4855_v10  ;;  %v6340_v21 = vrot.slane %v4148_v28, %v4855_v10  ;;  %4257 = vrot.lane.b32.xlu0 %v4059_v30, %s4626_s18  ;;  %v2606_v27 = vcombine.low %v6129_v59, %v6135_v11  ;;  %v2607_v28 = vcombine.high %v6129_v59, %v6135_v11 }
 0x2a8   :  { %v2497_v4 = vpop.permute.xlu1 %2496  ;;  %v6359_v55 = vrot.slane %v3091_v46, %v4855_v10 }
 0x2a9   :  { %v4163_v9 = vcombine.low %v6331_v13, %v6337_v14  ;;  %v6367_v54 = vrot.slane %v2606_v27, %v4855_v10  ;;  %v6370_v59 = vrot.slane %v2607_v28, %v4855_v10  ;;  %v3211_v28 = vcombine.low %v5120_v41, %v8261_v36 }
 0x2aa   :  { %v3107_v27 = vcombine.low %v6364_v63, %v6359_v55 }
 0x2ab   :  { %v6356_v30 = vrot.slane %v4163_v9, %v4883_v26  ;;  %8353 = vst [vmem:[#allocation152_spill] sm:$0xff] %v6370_v59  ;;  %v6405_v36 = vrot.slane %v3211_v28, %v4855_v10  ;;  %v3500_v28 = vcombine.high %v6226_v23, %v6232_v5 }
 0x2ac   :  { %v2505_v34 = vpop.permute.xlu1 %2504  ;;  %v6402_v41 = vrot.slane %v3107_v27, %v4883_v26 }
 0x2ad   :  { %8352 = vst [vmem:[#allocation151_spill] sm:$0xff] %v6356_v30  ;;  %v2622_v48 = vcombine.low %v2497_v4, %v2505_v34  ;;  %v2623_v62 = vcombine.high %v2497_v4, %v2505_v34  ;;  %v4195_v20 = vcombine.high %v6356_v30, %v8188_v57  ;;  %v3227_v34 = vcombine.low %v8305_v12, %v8308_v3 }
 0x2ae   :  { %8355 = vst [vmem:[#allocation154_spill] sm:$0xff] %v6402_v41 }
 0x2af   :  { %v6373_v11 = vrot.slane %v2622_v48, %v4855_v10  ;;  %v6376_v46 = vrot.slane %v2623_v62, %v4855_v10  ;;  %4259 = vrot.lane.b32.xlu1 %v4195_v20, %s4626_s18  ;;  %v2742_v62 = vcombine.low %v6141_v38, %v6147_v44  ;;  %v2743_v20 = vcombine.high %v6141_v38, %v6147_v44 }
 0x2b0   :  { %v2513_v4 = vpop.permute.xlu1 %2512  ;;  %v6397_v3 = vrot.slane %v3227_v34, %v4855_v10 }
 0x2b1   :  { %v2638_v9 = vcombine.low %v6367_v54, %v6373_v11  ;;  %v6408_v44 = vrot.slane %v2742_v62, %v4855_v10  ;;  %v6411_v38 = vrot.slane %v2743_v20, %v4855_v10 }
 0x2b2   :  { %v3243_v27 = vcombine.low %v6405_v36, %v6397_v3 }
 0x2b3   :  { %v6394_v12 = vrot.slane %v2638_v9, %v4883_v26  ;;  %8356 = vst [vmem:[#allocation155_spill] sm:$0xff] %v6411_v38  ;;  %v6442_v38 = vrot.slane %v3500_v28, %v4883_v26 }
 0x2b4   :  { %v2521_v48 = vpop.permute.xlu1 %2520  ;;  %v6439_v23 = vrot.slane %v3243_v27, %v4883_v26 }
 0x2b5   :  { %8354 = vst [vmem:[#allocation153_spill] sm:$0xff] %v6394_v12  ;;  %v2758_v58 = vcombine.low %v2513_v4, %v2521_v48  ;;  %v2759_v30 = vcombine.high %v2513_v4, %v2521_v48  ;;  %v2670_v59 = vcombine.high %v6394_v12, %v8188_v57 }
 0x2b6   :  { %8359 = vst [vmem:[#allocation158_spill] sm:$0xff] %v6439_v23 }
 0x2b7   :  { %v6414_v34 = vrot.slane %v2758_v58, %v4855_v10  ;;  %v6417_v4 = vrot.slane %v2759_v30, %v4855_v10  ;;  %2868 = vrot.lane.b32.xlu0 %v2670_v59, %s4626_s18  ;;  %v3139_v58 = vcombine.high %v6402_v41, %v8188_v57  ;;  %v3927_v30 = vcombine.low %v6153_v40, %v6159_v32 }
 0x2b8   :  { %v3884_v9 = vpop.permute.xlu1 %3883  ;;  %v3928_v59 = vcombine.high %v6153_v40, %v6159_v32 }
 0x2b9   :  { %8357 = vst [vmem:[#allocation156_spill] sm:$0xff] %v6417_v4  ;;  %v2774_v62 = vcombine.low %v6408_v44, %v6414_v34  ;;  %v6447_v4 = vrot.slane %v3927_v30, %v4855_v10  ;;  %v4063_v30 = vcombine.low %v6163_v8, %v6167_v43 }
 0x2ba   :  { %v6450_v40 = vrot.slane %v3928_v59, %v4855_v10 }
 0x2bb   :  { %3337 = vrot.lane.b32.xlu0 %v3139_v58, %s4626_s18  ;;  %v6436_v48 = vrot.slane %v2774_v62, %v4883_v26 }
 0x2bc   :  { %v3892_v5 = vpop.permute.xlu1 %3891 }
 0x2bd   :  { %8358 = vst [vmem:[#allocation157_spill] sm:$0xff] %v6436_v48  ;;  %v3943_v12 = vcombine.low %v3884_v9, %v3892_v5  ;;  %v3944_v20 = vcombine.high %v3884_v9, %v3892_v5  ;;  %v2806_v41 = vcombine.high %v6436_v48, %v8188_v57  ;;  %v3636_v9 = vcombine.high %v6267_v19, %v6273_v37 }
 0x2bf   :  { %v6453_v32 = vrot.slane %v3943_v12, %v4855_v10  ;;  %v6456_v27 = vrot.slane %v3944_v20, %v4855_v10  ;;  %3749 = vrot.lane.b32.xlu0 %v6442_v38, %s4623_s15  ;;  %2870 = vrot.lane.b32.xlu1 %v2806_v41, %s4626_s18  ;;  %v3600_v12 = vcombine.high %v6284_v0, %v8188_v57 }
 0x2c0   :  { %v3900_v28 = vpop.permute.xlu1 %3899  ;;  %v3275_v20 = vcombine.high %v6439_v23, %v8188_v57  ;;  %v4064_v41 = vcombine.high %v6163_v8, %v6167_v43  ;;  %v6481_v59 = vrot.slane %v3636_v9, %v4883_v26  ;;  %v4028_v0 = vcombine.high %v6300_v18, %v6306_v33 }
 0x2c1   :  { %v3959_v62 = vcombine.low %v6447_v4, %v6453_v32  ;;  %v6488_v43 = vrot.slane %v4063_v30, %v4855_v10  ;;  %v2539_v30 = vcombine.high %v6179_v7, %v6191_v6 }
 0x2c2   :  { %v6491_v8 = vrot.slane %v4064_v41, %v4855_v10 }
 0x2c3   :  { %3813 = vrot.lane.b32.xlu0 %v3600_v12, %s4627_s19  ;;  %3339 = vrot.lane.b32.xlu1 %v3275_v20, %s4626_s18  ;;  %v6478_v19 = vrot.slane %v3959_v62, %v4883_v26  ;;  %v3736_v12 = vcombine.high %v6317_v29, %v8188_v57  ;;  %v6509_v20 = vrot.slane %v4028_v0, %v4883_v26 }
 0x2c4   :  { %v3908_v37 = vpop.permute.xlu1 %3907  ;;  %v3023_v29 = vcombine.low %v8311_v51, %v8314_v56 }
 0x2c5   :  { %8360 = vst [vmem:[#allocation159_spill] sm:$0xff] %v6478_v19  ;;  %v4079_v5 = vcombine.low %v3900_v28, %v3908_v37  ;;  %v4080_v58 = vcombine.high %v3900_v28, %v3908_v37  ;;  %v3991_v48 = vcombine.high %v6478_v19, %v8188_v57  ;;  %v4164_v37 = vcombine.high %v6331_v13, %v6337_v14 }
 0x2c6   :  { %v6543_v13 = vrot.slane %v3023_v29, %v4855_v10  ;;  %v2675_v29 = vcombine.high %v6208_v35, %v6221_v24 }
 0x2c7   :  { %v6494_v62 = vrot.slane %v4079_v5, %v4855_v10  ;;  %v6497_v9 = vrot.slane %v4080_v58, %v4855_v10  ;;  %3751 = vrot.lane.b32.xlu1 %v6481_v59, %s4623_s15  ;;  %4201 = vrot.lane.b32.xlu0 %v3991_v48, %s4626_s18  ;;  %v2538_v58 = vcombine.low %v6179_v7, %v6191_v6 }
 0x2c8   :  { %v2495_v18 = vpop.permute.xlu1 %2494  ;;  %v3007_v6 = vcombine.low %v8267_v52, %v8270_v25 }
 0x2c9   :  { %v4095_v33 = vcombine.low %v6488_v43, %v6494_v62 }
 0x2cb   :  { %3815 = vrot.lane.b32.xlu1 %v3736_v12, %s4627_s19  ;;  %4265 = vrot.lane.b32.xlu0 %v6509_v20, %s4623_s15  ;;  %v6519_v48 = vrot.slane %v4095_v33, %v4883_v26  ;;  %v6530_v12 = vrot.slane %v2538_v58, %v4855_v10  ;;  %v6533_v33 = vrot.slane %v2539_v30, %v4855_v10  ;;  %v6555_v30 = vpop.permute.xlu0 %2052 }
 0x2cc   :  { %v2503_v41 = vpop.permute.xlu1 %2502  ;;  %v6553_v58 = vrot.slane %v3007_v6, %v4855_v10  ;;  %v2639_v6 = vcombine.high %v6367_v54, %v6373_v11 }
 0x2cd   :  { %8361 = vst [vmem:[#allocation160_spill] sm:$0xff] %v6519_v48  ;;  %v2554_v0 = vcombine.low %v2495_v18, %v2503_v41  ;;  %v2555_v5 = vcombine.high %v2495_v18, %v2503_v41  ;;  %v4127_v7 = vcombine.high %v6519_v48, %v8188_v57  ;;  %v6550_v18 = vrot.slane %v4164_v37, %v4883_v26 }
 0x2ce   :  { %v2674_v41 = vcombine.low %v6208_v35, %v6221_v24  ;;  %v3159_v37 = vcombine.low %v8317_v60, %v8320_v39  ;;  %v3143_v24 = vcombine.low %v8272_v1, %v8276_v45  ;;  %v6580_v39 = vrot.slane %v2675_v29, %v4855_v10 }
 0x2cf   :  { %v6536_v56 = vrot.slane %v2554_v0, %v4855_v10  ;;  %v6539_v51 = vrot.slane %v2555_v5, %v4855_v10  ;;  %4203 = vrot.lane.b32.xlu1 %v4127_v7, %s4626_s18  ;;  %v3039_v7 = vcombine.low %v6553_v58, %v6543_v13  ;;  %v2061_v11 = vpop.permute.xlu0 %2060 }
 0x2d0   :  { %v2511_v14 = vpop.permute.xlu1 %2510  ;;  %v6590_v54 = vrot.slane %v3159_v37, %v4855_v10  ;;  %v2299_v29 = vcombine.high %v6555_v30, %v2061_v11 }
 0x2d1   :  { %v2570_v52 = vcombine.low %v6530_v12, %v6536_v56 }
 0x2d3   :  { %4267 = vrot.lane.b32.xlu1 %v6550_v18, %s4623_s15  ;;  %v6564_v0 = vrot.slane %v2570_v52, %v4883_v26  ;;  %v6577_v52 = vrot.slane %v2674_v41, %v4855_v10  ;;  %v6597_v41 = vrot.slane %v2639_v6, %v4883_v26 }
 0x2d4   :  { %v2519_v5 = vpop.permute.xlu1 %2518 }
 0x2d5   :  { %8362 = vst [vmem:[#allocation161_spill] sm:$0xff] %v6564_v0  ;;  %v2690_v25 = vcombine.low %v2511_v14, %v2519_v5  ;;  %v2691_v28 = vcombine.high %v2511_v14, %v2519_v5  ;;  %v2602_v35 = vcombine.high %v6564_v0, %v8188_v57 }
 0x2d7   :  { %v6583_v60 = vrot.slane %v2690_v25, %v4855_v10  ;;  %v6586_v48 = vrot.slane %v2691_v28, %v4855_v10  ;;  %2812 = vrot.lane.b32.xlu0 %v2602_v35, %s4626_s18  ;;  %v6600_v25 = vrot.slane %v3039_v7, %v4883_v26  ;;  %v6603_v28 = vrot.slane %v3143_v24, %v4855_v10 }
 0x2d8   :  { %v2049_v14 = vpop.permute.xlu1 %2048  ;;  %v3108_v35 = vcombine.high %v6364_v63, %v6359_v55  ;;  %v2775_v7 = vcombine.high %v6408_v44, %v6414_v34 }
 0x2d9   :  { %v2706_v1 = vcombine.low %v6577_v52, %v6583_v60  ;;  %8363 = vst [vmem:[#allocation162_spill] sm:$0xff] %v6600_v25  ;;  %v3175_v6 = vcombine.low %v6603_v28, %v6590_v54  ;;  %v3071_v45 = vcombine.high %v6600_v25, %v8188_v57 }
 0x2da   :  { %v3122_v63 = vrot.slane %v3108_v35, %v4883_v26  ;;  %v2789_v44 = vrot.slane %v2775_v7, %v4883_v26  ;;  %v3532_v35 = vcombine.high %v6442_v38, %v8188_v57  ;;  %v2146_v7 = vcombine.low %v6145_v61, %v6157_v42  ;;  %v8366_v61 = vld [vmem:[#allocation142_spill] sm:$0xff] }
 0x2db   :  { %2876 = vrot.lane.b32.xlu0 %v6597_v41, %s4623_s15  ;;  %v6609_v37 = vrot.slane %v2706_v1, %v4883_v26  ;;  %v6622_v1 = vrot.slane %v2299_v29, %v4855_v10  ;;  %v6634_v34 = vrot.slane %v3175_v6, %v4883_v26  ;;  %v3244_v29 = vcombine.high %v6405_v36, %v6397_v3 }
 0x2dc   :  { %v2057_v5 = vpop.permute.xlu1 %2056  ;;  %v3960_v36 = vcombine.high %v6447_v4, %v6453_v32  ;;  %v6660_v38 = vrot.slane %v2146_v7, %v4855_v10  ;;  %v3719_v42 = vcombine.low %v8366_v61, %v6205_v2  ;;  %v3668_v32 = vcombine.high %v6481_v59, %v8188_v57 }
 0x2dd   :  { %8364 = vst [vmem:[#allocation163_spill] sm:$0xff] %v6609_v37  ;;  %v2283_v24 = vcombine.high %v2049_v14, %v2057_v5  ;;  %v2738_v0 = vcombine.high %v6609_v37, %v8188_v57  ;;  %8365 = vst [vmem:[#allocation164_spill] sm:$0xff] %v6634_v34  ;;  %v3207_v6 = vcombine.high %v6634_v34, %v8188_v57 }
 0x2de   :  { %v3974_v4 = vrot.slane %v3960_v36, %v4883_v26  ;;  %v2671_v36 = vcombine.high %v6597_v41, %v8188_v57  ;;  %v3140_v41 = vcombine.high %v3122_v63, %v8188_v57 }
 0x2df   :  { %v6625_v19 = vrot.slane %v2283_v24, %v4855_v10  ;;  %3281 = vrot.lane.b32.xlu0 %v3071_v45, %s4626_s18  ;;  %2814 = vrot.lane.b32.xlu1 %v2738_v0, %s4626_s18  ;;  %v3583_v0 = vcombine.low %v6173_v17, %v6177_v22  ;;  %v2162_v45 = vcombine.low %v6151_v16, %v6240_v49 }
 0x2e0   :  { %v3258_v49 = vrot.slane %v3244_v29, %v4883_v26  ;;  %v2298_v29 = vcombine.low %v6555_v30, %v2061_v11 }
 0x2e1   :  { %v6653_v3 = vrot.slane %v2162_v45, %v4855_v10  ;;  %v3591_v16 = vrot.slane %v3583_v0, %v4883_v26  ;;  %v2282_v45 = vcombine.low %v2049_v14, %v2057_v5  ;;  %v6675_v0 = vrot.slane %v3719_v42, %v4883_v26 }
 0x2e2   :  { %v4060_v14 = vcombine.high %v6509_v20, %v8188_v57  ;;  %v6688_v30 = vrot.slane %v2298_v29, %v4855_v10  ;;  %v4196_v5 = vcombine.high %v6550_v18, %v8188_v57  ;;  %v3040_v42 = vcombine.high %v6553_v58, %v6543_v13  ;;  %v8370_v13 = vld [vmem:[#allocation144_spill] sm:$0xff] }
 0x2e3   :  { %3345 = vrot.lane.b32.xlu0 %v3122_v63, %s4623_s15  ;;  %2878 = vrot.lane.b32.xlu1 %v2789_v44, %s4623_s15  ;;  %v2178_v24 = vcombine.low %v6660_v38, %v6653_v3  ;;  %v3176_v29 = vcombine.high %v6603_v28, %v6590_v54  ;;  %v6756_v63 = vpop.permute.xlu0 %2046  ;;  %v3651_v28 = vcombine.low %v6270_v50, %v6276_v15 }
 0x2e5   :  { %v6685_v59 = vrot.slane %v2178_v24, %v4883_v26  ;;  %v6727_v24 = vrot.slane %v3040_v42, %v4883_v26 }
 0x2e7   :  { %3757 = vrot.lane.b32.xlu0 %v3532_v35, %s4627_s19  ;;  %3283 = vrot.lane.b32.xlu1 %v3207_v6, %s4626_s18  ;;  %v4096_v35 = vcombine.high %v6488_v43, %v6494_v62  ;;  %v6680_v6 = vrot.slane %v2282_v45, %v4855_v10  ;;  %8367 = vst [vmem:[#allocation142_spill] sm:$0xff] %v6685_v59 }
 0x2e8   :  { %v2571_v43 = vcombine.high %v6530_v12, %v6536_v56  ;;  %v2210_v20 = vcombine.high %v6685_v59, %v8188_v57  ;;  %v2707_v56 = vcombine.high %v6577_v52, %v6583_v60  ;;  %v6732_v52 = vpop.permute.xlu1 %2042  ;;  %v8369_v60 = vld [vmem:[#allocation145_spill] sm:$0xff]  ;;  %v8385_v59 = vld [vmem:[#allocation22_spill] sm:$0xff] }
 0x2e9   :  { %v2314_v62 = vcombine.low %v6680_v6, %v6688_v30  ;;  %v6698_v11 = vrot.slane %v4096_v35, %v4883_v26  ;;  %v3515_v58 = vcombine.low %v8370_v13, %v8369_v60 }
 0x2ea   :  { %v6708_v7 = vrot.slane %v2571_v43, %v4883_v26  ;;  %v6730_v45 = vrot.slane %v2707_v56, %v4883_v26 }
 0x2eb   :  { %3821 = vrot.lane.b32.xlu0 %v3591_v16, %s4624_s16  ;;  %3347 = vrot.lane.b32.xlu1 %v3258_v49, %s4623_s15  ;;  %v6711_v12 = vrot.slane %v2314_v62, %v4883_v26  ;;  %v6751_v62 = vrot.slane %v3515_v58, %v4883_v26 }
 0x2ec   :  { %v6746_v35 = vpop.permute.xlu1 %2050 }
 0x2ed   :  { %8368 = vst [vmem:[#allocation165_spill] sm:$0xff] %v6711_v12  ;;  %v2346_v18 = vcombine.high %v6711_v12, %v8188_v57 }
 0x2ef   :  { %4209 = vrot.lane.b32.xlu0 %v3974_v4, %s4623_s15  ;;  %3759 = vrot.lane.b32.xlu1 %v3668_v32, %s4627_s19  ;;  %v2807_v32 = vcombine.high %v2789_v44, %v8188_v57  ;;  %v8372_v44 = vld [vmem:[#allocation125_spill] sm:$0xff] }
 0x2f0   :  { %v6771_v42 = vpop.permute.xlu1 %2058 }
 0x2f3   :  { %4273 = vrot.lane.b32.xlu0 %v4060_v14, %s4627_s19  ;;  %3823 = vrot.lane.b32.xlu1 %v6675_v0, %s4624_s16  ;;  %v8371_v14 = vld [vmem:[#allocation123_spill] sm:$0xff] }
 0x2f4   :  { %v2094_v43 = vcombine.low %v8371_v14, %v6732_v52 }
 0x2f6   :  { %v6767_v56 = vrot.slane %v2094_v43, %v4855_v10  ;;  %v3992_v43 = vcombine.high %v3974_v4, %v8188_v57 }
 0x2f7   :  { %4211 = vrot.lane.b32.xlu1 %v6698_v11, %s4623_s15  ;;  %2408 = vrot.lane.b32.xlu0 %v2210_v20, %s4626_s18  ;;  %v6754_v20 = vrot.slane %v3176_v29, %v4883_v26  ;;  %v4043_v29 = vcombine.low %v6303_v53, %v6309_v47 }
 0x2fb   :  { %4275 = vrot.lane.b32.xlu1 %v4196_v5, %s4627_s19  ;;  %2820 = vrot.lane.b32.xlu0 %v6708_v7, %s4623_s15  ;;  %v8373_v5 = vld [vmem:[#allocation121_spill] sm:$0xff] }
 0x2fc   :  { %v2078_v54 = vcombine.low %v8373_v5, %v8372_v44 }
 0x2fe   :  { %v6774_v58 = vrot.slane %v2078_v54, %v4855_v10 }
 0x2ff   :  { %2884 = vrot.lane.b32.xlu0 %v2671_v36, %s4627_s19  ;;  %2410 = vrot.lane.b32.xlu1 %v2346_v18, %s4626_s18  ;;  %v3601_v36 = vcombine.high %v3591_v16, %v8188_v57  ;;  %v3276_v18 = vcombine.high %v3258_v49, %v8188_v57  ;;  %v2230_v49 = vcombine.low %v6746_v35, %v6771_v42 }
 0x300   :  { %v2110_v16 = vcombine.low %v6774_v58, %v6767_v56 }
 0x301   :  { %v6837_v25 = vpop.permute.xlu1 %3799 }
 0x302   :  { %v6804_v55 = vrot.slane %v2110_v16, %v4883_v26  ;;  %8377 = vst [vmem:[#allocation125_spill] sm:$0xff] %v6837_v25 }
 0x303   :  { %3289 = vrot.lane.b32.xlu0 %v6727_v24, %s4623_s15  ;;  %2822 = vrot.lane.b32.xlu1 %v6730_v45, %s4623_s15 }
 0x304   :  { %8374 = vst [vmem:[#allocation145_spill] sm:$0xff] %v6804_v55  ;;  %v2142_v16 = vcombine.high %v6804_v55, %v8188_v57  ;;  %v8386_v55 = vld [vmem:[#allocation25_spill] sm:$0xff] }
 0x307   :  { %3353 = vrot.lane.b32.xlu0 %v3140_v41, %s4627_s19  ;;  %2886 = vrot.lane.b32.xlu1 %v2807_v32, %s4627_s19  ;;  %v6778_v41 = vpop.permute.xlu0 %2054  ;;  %v6781_v32 = vrot.slane %v3651_v28, %v4883_v26  ;;  %v6796_v28 = vrot.slane %v2230_v49, %v4855_v10  ;;  %v4179_v49 = vcombine.low %v6334_v31, %v6340_v21 }
 0x308   :  { %v2214_v54 = vcombine.low %v6756_v63, %v6778_v41 }
 0x30a   :  { %v6807_v4 = vrot.slane %v2214_v54, %v4855_v10 }
 0x30b   :  { %3765 = vrot.lane.b32.xlu0 %v6751_v62, %s4624_s16  ;;  %3291 = vrot.lane.b32.xlu1 %v6754_v20, %s4623_s15  ;;  %v6809_v34 = vpop.permute.xlu0 %3797 }
 0x30f   :  { %3829 = vrot.lane.b32.xlu0 %v3601_v36, %s4628_s20  ;;  %3355 = vrot.lane.b32.xlu1 %v3276_v18, %s4627_s19  ;;  %v6799_v36 = vrot.slane %v4043_v29, %v4883_v26  ;;  %v3737_v18 = vcombine.high %v6675_v0, %v8188_v57  ;;  %v2179_v29 = vcombine.high %v6660_v38, %v6653_v3  ;;  %v6824_v54 = vpop.permute.xlu0 %3741 }
 0x310   :  { %v2246_v0 = vcombine.low %v6807_v4, %v6796_v28  ;;  %8375 = vst [vmem:[#allocation144_spill] sm:$0xff] %v6824_v54  ;;  %v6832_v38 = vrot.slane %v4179_v49, %v4883_v26  ;;  %v2603_v49 = vcombine.high %v6708_v7, %v8188_v57  ;;  %v8382_v7 = vld [vmem:[#allocation155_spill] sm:$0xff] }
 0x311   :  { %v6829_v3 = vrot.slane %v2179_v29, %v4883_v26  ;;  %v2315_v29 = vcombine.high %v6680_v6, %v6688_v30  ;;  %v6853_v54 = vpop.permute.xlu1 %3743  ;;  %v8381_v30 = vld [vmem:[#allocation156_spill] sm:$0xff] }
 0x312   :  { %8379 = vst [vmem:[#allocation121_spill] sm:$0xff] %v6853_v54 }
 0x313   :  { %4217 = vrot.lane.b32.xlu0 %v3992_v43, %s4627_s19  ;;  %3767 = vrot.lane.b32.xlu1 %v6781_v32, %s4624_s16  ;;  %v4128_v43 = vcombine.high %v6698_v11, %v8188_v57  ;;  %v8378_v11 = vld [vmem:[#allocation152_spill] sm:$0xff]  ;;  %v6863_v6 = vrot.slane %v2315_v29, %v4883_v26  ;;  %v2739_v29 = vcombine.high %v6730_v45, %v8188_v57 }
 0x314   :  { %v3533_v45 = vcombine.high %v6751_v62, %v8188_v57  ;;  %v8393_v62 = vcombine.high %v6173_v17, %v6177_v22  ;;  %v4111_v17 = vcombine.low %v6491_v8, %v6497_v9 }
 0x317   :  { %4281 = vrot.lane.b32.xlu0 %v6799_v36, %s4624_s16  ;;  %3831 = vrot.lane.b32.xlu1 %v3737_v18, %s4628_s20  ;;  %v6835_v18 = vrot.slane %v2246_v0, %v4883_v26 }
 0x319   :  { %8376 = vst [vmem:[#allocation123_spill] sm:$0xff] %v6835_v18  ;;  %v2278_v0 = vcombine.high %v6835_v18, %v8188_v57  ;;  %v2790_v18 = vcombine.low %v8382_v7, %v8381_v30 }
 0x31b   :  { %2352 = vrot.lane.b32.xlu0 %v2142_v16, %s4626_s18  ;;  %4219 = vrot.lane.b32.xlu1 %v4128_v43, %s4627_s19  ;;  %v2654_v16 = vcombine.low %v8378_v11, %v6376_v46  ;;  %v6847_v43 = vpop.permute.xlu0 %3805 }
 0x31d   :  { %v6860_v12 = vrot.slane %v2654_v16, %v4883_v26  ;;  %v3072_v16 = vcombine.high %v6727_v24, %v8188_v57 }
 0x31f   :  { %2416 = vrot.lane.b32.xlu0 %v6829_v3, %s4623_s15  ;;  %4283 = vrot.lane.b32.xlu1 %v6832_v38, %s4624_s16  ;;  %v6857_v37 = vpop.permute.xlu0 %4257 }
 0x320   :  { %8380 = vst [vmem:[#allocation152_spill] sm:$0xff] %v6857_v37  ;;  %v3123_v37 = vcombine.low %v8386_v55, %v8385_v59 }
 0x323   :  { %2828 = vrot.lane.b32.xlu0 %v2603_v49, %s4627_s19  ;;  %2354 = vrot.lane.b32.xlu1 %v2278_v0, %s4626_s18  ;;  %v6871_v49 = vpop.permute.xlu1 %3807 }
 0x324   :  { %8383 = vst [vmem:[#allocation156_spill] sm:$0xff] %v6871_v49  ;;  %v6888_v49 = vrot.slane %v3123_v37, %v4883_v26  ;;  %v8391_v37 = vld [vmem:[#allocation26_spill] sm:$0xff] }
 0x327   :  { %2892 = vrot.lane.b32.xlu0 %v6860_v12, %s4624_s16  ;;  %2418 = vrot.lane.b32.xlu1 %v6863_v6, %s4623_s15  ;;  %v6883_v25 = vpop.permute.xlu1 %4259 }
 0x328   :  { %8387 = vst [vmem:[#allocation22_spill] sm:$0xff] %v6883_v25 }
 0x329   :  { %v6873_v0 = vpop.permute.xlu0 %2868 }
 0x32a   :  { %8384 = vst [vmem:[#allocation155_spill] sm:$0xff] %v6873_v0  ;;  %v6891_v0 = vrot.slane %v2790_v18, %v4883_v26  ;;  %v3975_v18 = vcombine.low %v6450_v40, %v6456_v27 }
 0x32b   :  { %3297 = vrot.lane.b32.xlu0 %v3072_v16, %s4627_s19  ;;  %2830 = vrot.lane.b32.xlu1 %v2739_v29, %s4627_s19  ;;  %v3208_v16 = vcombine.high %v6754_v20, %v8188_v57  ;;  %v8390_v29 = vld [vmem:[#allocation23_spill] sm:$0xff] }
 0x32d   :  { %v6885_v54 = vpop.permute.xlu0 %3337 }
 0x32e   :  { %8388 = vst [vmem:[#allocation25_spill] sm:$0xff] %v6885_v54  ;;  %v3259_v54 = vcombine.low %v8391_v37, %v8390_v29 }
 0x32f   :  { %3361 = vrot.lane.b32.xlu0 %v6888_v49, %s4624_s16  ;;  %2894 = vrot.lane.b32.xlu1 %v6891_v0, %s4624_s16 }
 0x330   :  { %v6920_v20 = vrot.slane %v3259_v54, %v4883_v26  ;;  %v2111_v54 = vcombine.high %v6774_v58, %v6767_v56  ;;  %v6961_v58 = vrot.slane %v4111_v17, %v4883_v26  ;;  %v4197_v17 = vcombine.high %v6832_v38, %v8188_v57 }
 0x331   :  { %v6897_v24 = vpop.permute.xlu1 %2870  ;;  %v6905_v25 = vpop.permute.xlu0 %3749 }
 0x332   :  { %8389 = vst [vmem:[#allocation166_spill] sm:$0xff] %v6897_v24  ;;  %8392 = vst [vmem:[#allocation23_spill] sm:$0xff] %v6905_v25  ;;  %v6917_v24 = vrot.slane %v8393_v62, %v4883_v26  ;;  %v3669_v25 = vcombine.high %v6781_v32, %v8188_v57  ;;  %v8395_v32 = vcombine.high %v8366_v61, %v6205_v2 }
 0x333   :  { %3773 = vrot.lane.b32.xlu0 %v3533_v45, %s4628_s20  ;;  %3299 = vrot.lane.b32.xlu1 %v3208_v16, %s4627_s19  ;;  %v6929_v16 = vrot.slane %v3975_v18, %v4883_v26  ;;  %v4061_v18 = vcombine.high %v6799_v36, %v8188_v57  ;;  %v6958_v56 = vrot.slane %v2111_v54, %v4883_v26 }
 0x334   :  { %v6948_v62 = vrot.slane %v8395_v32, %v4883_v26  ;;  %v2586_v2 = vcombine.low %v6533_v33, %v6539_v51  ;;  %v2247_v61 = vcombine.high %v6807_v4, %v6796_v28  ;;  %v2211_v54 = vcombine.high %v6829_v3, %v8188_v57 }
 0x335   :  { %v6911_v23 = vpop.permute.xlu1 %3339  ;;  %v6926_v45 = vpop.permute.xlu0 %3813  ;;  %v2722_v4 = vcombine.low %v6580_v39, %v6586_v48 }
 0x336   :  { %v6987_v28 = vrot.slane %v2247_v61, %v4883_v26  ;;  %v2347_v61 = vcombine.high %v6863_v6, %v8188_v57 }
 0x337   :  { %3837 = vrot.lane.b32.xlu0 %v6917_v24, %s4625_s17  ;;  %3363 = vrot.lane.b32.xlu1 %v6920_v20, %s4624_s16 }
 0x339   :  { %v6933_v22 = vpop.permute.xlu1 %3751 }
 0x33a   :  { %8394 = vst [vmem:[#allocation26_spill] sm:$0xff] %v6933_v22  ;;  %v6950_v22 = vpop.permute.xlu0 %4201 }
 0x33b   :  { %4225 = vrot.lane.b32.xlu0 %v6929_v16, %s4624_s16  ;;  %3775 = vrot.lane.b32.xlu1 %v3669_v25, %s4628_s20  ;;  %8396 = vst [vmem:[#allocation167_spill] sm:$0xff] %v6950_v22 }
 0x33d   :  { %v6955_v25 = vpop.permute.xlu1 %3815 }
 0x33e   :  { %8397 = vst [vmem:[#allocation168_spill] sm:$0xff] %v6955_v25  ;;  %v6971_v36 = vpop.permute.xlu0 %4265  ;;  %v6984_v25 = vrot.slane %v2586_v2, %v4883_v26  ;;  %v2672_v2 = vcombine.high %v6860_v12, %v8188_v57 }
 0x33f   :  { %4289 = vrot.lane.b32.xlu0 %v4061_v18, %s4628_s20  ;;  %3839 = vrot.lane.b32.xlu1 %v6948_v62, %s4625_s17  ;;  %8398 = vst [vmem:[#allocation169_spill] sm:$0xff] %v6971_v36 }
 0x341   :  { %v6977_v18 = vpop.permute.xlu1 %4203 }
 0x342   :  { %8399 = vst [vmem:[#allocation170_spill] sm:$0xff] %v6977_v18 }
 0x343   :  { %2360 = vrot.lane.b32.xlu0 %v6958_v56, %s4623_s15  ;;  %4227 = vrot.lane.b32.xlu1 %v6961_v58, %s4624_s16 }
 0x345   :  { %v6995_v3 = vpop.permute.xlu1 %4267 }
 0x346   :  { %8401 = vst [vmem:[#allocation172_spill] sm:$0xff] %v6995_v3 }
 0x347   :  { %2424 = vrot.lane.b32.xlu0 %v2211_v54, %s4627_s19  ;;  %4291 = vrot.lane.b32.xlu1 %v4197_v17, %s4628_s20  ;;  %v8403_v54 = vld [vmem:[#allocation24_spill] sm:$0xff] }
 0x348   :  { %v8404_v17 = vld [vmem:[#allocation28_spill] sm:$0xff] }
 0x349   :  { %v6981_v32 = vpop.permute.xlu0 %2812 }
 0x34a   :  { %8400 = vst [vmem:[#allocation171_spill] sm:$0xff] %v6981_v32  ;;  %v3055_v32 = vcombine.low %v8404_v17, %v8403_v54 }
 0x34b   :  { %2836 = vrot.lane.b32.xlu0 %v6984_v25, %s4624_s16  ;;  %2362 = vrot.lane.b32.xlu1 %v6987_v28, %s4623_s15 }
 0x34c   :  { %v7012_v3 = vrot.slane %v3055_v32, %v4883_v26  ;;  %v8410_v32 = vld [vmem:[#allocation29_spill] sm:$0xff] }
 0x34d   :  { %v6997_v38 = vpop.permute.xlu0 %2876 }
 0x34e   :  { %8402 = vst [vmem:[#allocation173_spill] sm:$0xff] %v6997_v38  ;;  %v2730_v38 = vrot.slane %v2722_v4, %v4883_v26 }
 0x34f   :  { %2900 = vrot.lane.b32.xlu0 %v2672_v2, %s4628_s20  ;;  %2426 = vrot.lane.b32.xlu1 %v2347_v61, %s4627_s19  ;;  %v3141_v2 = vcombine.high %v6888_v49, %v8188_v57  ;;  %v2808_v61 = vcombine.high %v6891_v0, %v8188_v57 }
 0x351   :  { %v7007_v18 = vpop.permute.xlu1 %2814  ;;  %v7009_v36 = vpop.permute.xlu0 %3281 }
 0x352   :  { %8405 = vst [vmem:[#allocation24_spill] sm:$0xff] %v7007_v18  ;;  %8406 = vst [vmem:[#allocation28_spill] sm:$0xff] %v7009_v36  ;;  %v8409_v36 = vld [vmem:[#allocation27_spill] sm:$0xff] }
 0x353   :  { %3305 = vrot.lane.b32.xlu0 %v7012_v3, %s4624_s16  ;;  %2838 = vrot.lane.b32.xlu1 %v2730_v38, %s4624_s16  ;;  %v3191_v18 = vcombine.low %v8410_v32, %v8409_v36 }
 0x355   :  { %v7018_v12 = vpop.permute.xlu1 %2878  ;;  %v7020_v6 = vpop.permute.xlu0 %3345  ;;  %v3199_v49 = vrot.slane %v3191_v18, %v4883_v26  ;;  %v3993_v18 = vcombine.high %v6929_v16, %v8188_v57 }
 0x356   :  { %8407 = vst [vmem:[#allocation174_spill] sm:$0xff] %v7018_v12  ;;  %8408 = vst [vmem:[#allocation175_spill] sm:$0xff] %v7020_v6  ;;  %v8413_v6 = vcombine.high %v8370_v13, %v8369_v60 }
 0x357   :  { %3369 = vrot.lane.b32.xlu0 %v3141_v2, %s4628_s20  ;;  %2902 = vrot.lane.b32.xlu1 %v2808_v61, %s4628_s20  ;;  %v3602_v61 = vcombine.high %v6917_v24, %v8188_v57 }
 0x358   :  { %v7038_v12 = vrot.slane %v8413_v6, %v4883_v26  ;;  %v8414_v6 = vcombine.high %v6270_v50, %v6276_v15  ;;  %v3738_v50 = vcombine.high %v6948_v62, %v8188_v57  ;;  %v8417_v15 = vld [vmem:[#allocation148_spill] sm:$0xff] }
 0x359   :  { %v7030_v4 = vpop.permute.xlu1 %3283  ;;  %v7032_v22 = vpop.permute.xlu0 %3757 }
 0x35a   :  { %8411 = vst [vmem:[#allocation27_spill] sm:$0xff] %v7030_v4  ;;  %8412 = vst [vmem:[#allocation29_spill] sm:$0xff] %v7032_v22  ;;  %v3277_v22 = vcombine.high %v6920_v20, %v8188_v57  ;;  %v7064_v4 = vrot.slane %v8414_v6, %v4883_v26 }
 0x35b   :  { %3781 = vrot.lane.b32.xlu0 %v7038_v12, %s4625_s17  ;;  %3307 = vrot.lane.b32.xlu1 %v3199_v49, %s4624_s16 }
 0x35d   :  { %v7044_v0 = vpop.permute.xlu1 %3347  ;;  %v7046_v2 = vpop.permute.xlu0 %3821 }
 0x35f   :  { %3845 = vrot.lane.b32.xlu0 %v3602_v61, %s4629_s21  ;;  %3371 = vrot.lane.b32.xlu1 %v3277_v22, %s4628_s20  ;;  %v8416_v22 = vcombine.high %v6303_v53, %v6309_v47  ;;  %v8418_v61 = vld [vmem:[#allocation147_spill] sm:$0xff]  ;;  %v2143_v53 = vcombine.high %v6958_v56, %v8188_v57  ;;  %v4129_v47 = vcombine.high %v6961_v58, %v8188_v57 }
 0x360   :  { %v2330_v56 = vcombine.low %v6625_v19, %v6622_v1 }
 0x361   :  { %v7054_v60 = vpop.permute.xlu1 %3759  ;;  %v7056_v13 = vpop.permute.xlu0 %4209  ;;  %v7077_v16 = vrot.slane %v8416_v22, %v4883_v26 }
 0x363   :  { %4233 = vrot.lane.b32.xlu0 %v3993_v18, %s4628_s20  ;;  %3783 = vrot.lane.b32.xlu1 %v7064_v4, %s4625_s17  ;;  %v2194_v18 = vcombine.low %v8418_v61, %v8417_v15 }
 0x365   :  { %v7069_v24 = vpop.permute.xlu1 %3823  ;;  %v7071_v20 = vpop.permute.xlu0 %4273 }
 0x366   :  { %8415 = vst [vmem:[#allocation176_spill] sm:$0xff] %v7071_v20 }
 0x367   :  { %4297 = vrot.lane.b32.xlu0 %v7077_v16, %s4625_s17  ;;  %3847 = vrot.lane.b32.xlu1 %v3738_v50, %s4629_s21  ;;  %v8421_v50 = vcombine.high %v6334_v31, %v6340_v21  ;;  %v2279_v31 = vcombine.high %v6987_v28, %v8188_v57  ;;  %v2604_v21 = vcombine.high %v6984_v25, %v8188_v57 }
 0x369   :  { %v7086_v6 = vpop.permute.xlu1 %4211  ;;  %v7088_v20 = vpop.permute.xlu0 %2408 }
 0x36a   :  { %8419 = vst [vmem:[#allocation148_spill] sm:$0xff] %v7086_v6  ;;  %8420 = vst [vmem:[#allocation147_spill] sm:$0xff] %v7088_v20  ;;  %v7104_v6 = vrot.slane %v8421_v50, %v4883_v26  ;;  %v7107_v20 = vrot.slane %v2194_v18, %v4883_v26  ;;  %v7130_v50 = vrot.slane %v2330_v56, %v4883_v26 }
 0x36b   :  { %2368 = vrot.lane.b32.xlu0 %v2143_v53, %s4627_s19  ;;  %4235 = vrot.lane.b32.xlu1 %v4129_v47, %s4628_s20  ;;  %v3073_v56 = vcombine.high %v7012_v3, %v8188_v57  ;;  %v2095_v3 = vcombine.high %v8371_v14, %v6732_v52 }
 0x36d   :  { %v7096_v62 = vpop.permute.xlu1 %4275  ;;  %v7098_v22 = vpop.permute.xlu0 %2820 }
 0x36f   :  { %4299 = vrot.lane.b32.xlu1 %v7104_v6, %s4625_s17  ;;  %2432 = vrot.lane.b32.xlu0 %v7107_v20, %s4624_s16 }
 0x371   :  { %v7115_v58 = vpop.permute.xlu1 %2410  ;;  %v7117_v53 = vpop.permute.xlu0 %2884 }
 0x372   :  { %8422 = vst [vmem:[#allocation177_spill] sm:$0xff] %v7115_v58  ;;  %8423 = vst [vmem:[#allocation178_spill] sm:$0xff] %v7117_v53  ;;  %v8424_v53 = vcombine.high %v8378_v11, %v6376_v46 }
 0x373   :  { %2370 = vrot.lane.b32.xlu1 %v2279_v31, %s4627_s19  ;;  %2844 = vrot.lane.b32.xlu0 %v2604_v21, %s4628_s20  ;;  %v2740_v31 = vcombine.high %v2730_v38, %v8188_v57  ;;  %v8427_v38 = vcombine.high %v8386_v55, %v8385_v59  ;;  %v3534_v55 = vcombine.high %v7038_v12, %v8188_v57 }
 0x374   :  { %v7136_v58 = vrot.slane %v8424_v53, %v4883_v26  ;;  %v8426_v53 = vcombine.high %v8382_v7, %v8381_v30  ;;  %v3209_v7 = vcombine.high %v3199_v49, %v8188_v57  ;;  %v2079_v59 = vcombine.high %v8373_v5, %v8372_v44 }
 0x375   :  { %v7125_v18 = vpop.permute.xlu1 %2822  ;;  %v7127_v47 = vpop.permute.xlu0 %3289  ;;  %v8428_v49 = vcombine.high %v8391_v37, %v8390_v29  ;;  %v8429_v44 = vcombine.high %v6450_v40, %v6456_v27  ;;  %v2231_v29 = vcombine.high %v6746_v35, %v6771_v42  ;;  %v3670_v40 = vcombine.high %v7064_v4, %v8188_v57 }
 0x376   :  { %v7159_v21 = vrot.slane %v8426_v53, %v4883_v26  ;;  %v7202_v12 = vrot.slane %v2079_v59, %v4855_v10  ;;  %v4062_v27 = vcombine.high %v7077_v16, %v8188_v57  ;;  %v8430_v4 = vcombine.high %v6491_v8, %v6497_v9 }
 0x377   :  { %2434 = vrot.lane.b32.xlu1 %v7130_v50, %s4624_s16  ;;  %2908 = vrot.lane.b32.xlu0 %v7136_v58, %s4625_s17  ;;  %v7195_v53 = vrot.slane %v8428_v49, %v4883_v26  ;;  %v3990_v5 = vrot.slane %v8429_v44, %v4883_v26  ;;  %v4198_v8 = vcombine.high %v7104_v6, %v8188_v57 }
 0x378   :  { %v7234_v59 = vrot.slane %v8430_v4, %v4883_v26  ;;  %v2212_v9 = vcombine.high %v7107_v20, %v8188_v57  ;;  %v2673_v4 = vcombine.high %v7136_v58, %v8188_v57 }
 0x379   :  { %v7142_v25 = vpop.permute.xlu1 %2886  ;;  %v7144_v28 = vpop.permute.xlu0 %3353 }
 0x37a   :  { %8425 = vst [vmem:[#allocation179_spill] sm:$0xff] %v7144_v28  ;;  %v7165_v28 = vrot.slane %v8427_v38, %v4883_v26 }
 0x37b   :  { %2846 = vrot.lane.b32.xlu1 %v2740_v31, %s4628_s20  ;;  %3313 = vrot.lane.b32.xlu0 %v3073_v56, %s4628_s20  ;;  %v7185_v56 = vrot.slane %v2095_v3, %v4855_v10 }
 0x37d   :  { %v7151_v46 = vpop.permute.xlu1 %3291  ;;  %v7153_v11 = vpop.permute.xlu0 %3765  ;;  %v2126_v38 = vcombine.low %v7202_v12, %v7185_v56 }
 0x37f   :  { %2910 = vrot.lane.b32.xlu1 %v7159_v21, %s4625_s17  ;;  %3377 = vrot.lane.b32.xlu0 %v7165_v28, %s4625_s17  ;;  %v2134_v16 = vrot.slane %v2126_v38, %v4883_v26 }
 0x381   :  { %v7173_v31 = vpop.permute.xlu1 %3355  ;;  %v7175_v30 = vpop.permute.xlu0 %3829 }
 0x383   :  { %3315 = vrot.lane.b32.xlu1 %v3209_v7, %s4628_s20  ;;  %3789 = vrot.lane.b32.xlu0 %v3534_v55, %s4629_s21  ;;  %v2215_v7 = vcombine.high %v6756_v63, %v6778_v41  ;;  %v7224_v55 = vrot.slane %v2231_v29, %v4855_v10 }
 0x385   :  { %v7187_v52 = vpop.permute.xlu1 %3767  ;;  %v7189_v14 = vpop.permute.xlu0 %4217  ;;  %v7238_v63 = vrot.slane %v2215_v7, %v4855_v10  ;;  %v2348_v7 = vcombine.high %v7130_v50, %v8188_v57  ;;  %v8433_v50 = vcombine.high %v8404_v17, %v8403_v54  ;;  %v8434_v54 = vld [vmem:[#allocation141_spill] sm:$0xff] }
 0x386   :  { %v3865_v17 = vsel %vm590_vm5, %v8434_v54, %v6809_v34  ;;  %v3278_v54 = vcombine.high %v7195_v53, %v8188_v57 }
 0x387   :  { %3379 = vrot.lane.b32.xlu1 %v7195_v53, %s4625_s17  ;;  %4241 = vrot.lane.b32.xlu0 %v3990_v5, %s4625_s17  ;;  %v2262_v41 = vcombine.low %v7238_v63, %v7224_v55 }
 0x389   :  { %v7211_v37 = vpop.permute.xlu1 %3831  ;;  %v7213_v3 = vpop.permute.xlu0 %4281  ;;  %v7260_v29 = vrot.slane %v2262_v41, %v4883_v26  ;;  %v8432_v41 = vcombine.high %v6580_v39, %v6586_v48  ;;  %v2809_v48 = vcombine.high %v7159_v21, %v8188_v57  ;;  %v3142_v39 = vcombine.high %v7165_v28, %v8188_v57 }
 0x38a   :  { %v8435_v21 = vcombine.high %v8410_v32, %v8409_v36  ;;  %v3994_v28 = vcombine.high %v3990_v5, %v8188_v57 }
 0x38b   :  { %3791 = vrot.lane.b32.xlu1 %v3670_v40, %s4629_s21  ;;  %4305 = vrot.lane.b32.xlu0 %v4062_v27, %s4629_s21  ;;  %v8431_v40 = vcombine.high %v6533_v33, %v6539_v51 }
 0x38d   :  { %v7226_v35 = vpop.permute.xlu1 %4219  ;;  %v7228_v42 = vpop.permute.xlu0 %2352  ;;  %v7266_v27 = vrot.slane %v8431_v40, %v4883_v26 }
 0x38f   :  { %4243 = vrot.lane.b32.xlu1 %v7234_v59, %s4625_s17  ;;  %2376 = vrot.lane.b32.xlu0 %v2134_v16, %s4624_s16 }
 0x391   :  { %v7245_v49 = vpop.permute.xlu1 %4283  ;;  %v7247_v44 = vpop.permute.xlu0 %2416 }
 0x393   :  { %4307 = vrot.lane.b32.xlu1 %v4198_v8, %s4629_s21  ;;  %2440 = vrot.lane.b32.xlu0 %v2212_v9, %s4628_s20  ;;  %v7290_v8 = vrot.slane %v8432_v41, %v4883_v26  ;;  %v7296_v9 = vrot.slane %v8433_v50, %v4883_v26  ;;  %v7323_v41 = vrot.slane %v8435_v21, %v4883_v26  ;;  %v8437_v21 = vld [vmem:[#allocation121_spill] sm:$0xff] }
 0x394   :  { %v3867_v50 = vsel %vm593_vm6, %v3865_v17, %v6847_v43  ;;  %v2144_v17 = vcombine.high %v2134_v16, %v8188_v57 }
 0x395   :  { %v7255_v10 = vpop.permute.xlu1 %2354  ;;  %v7257_v38 = vpop.permute.xlu0 %2828 }
 0x397   :  { %2378 = vrot.lane.b32.xlu1 %v7260_v29, %s4624_s16  ;;  %2852 = vrot.lane.b32.xlu0 %v7266_v27, %s4625_s17 }
 0x399   :  { %v7272_v20 = vpop.permute.xlu1 %2418  ;;  %v7274_v6 = vpop.permute.xlu0 %2892 }
 0x39b   :  { %2442 = vrot.lane.b32.xlu1 %v2348_v7, %s4628_s20  ;;  %2916 = vrot.lane.b32.xlu0 %v2673_v4, %s4629_s21 }
 0x39d   :  { %v7282_v33 = vpop.permute.xlu1 %2830  ;;  %v7284_v51 = vpop.permute.xlu0 %3297 }
 0x39f   :  { %2854 = vrot.lane.b32.xlu1 %v7290_v8, %s4625_s17  ;;  %3321 = vrot.lane.b32.xlu0 %v7296_v9, %s4625_s17 }
 0x3a1   :  { %v7302_v58 = vpop.permute.xlu1 %2894  ;;  %v7304_v40 = vpop.permute.xlu0 %3361 }
 0x3a3   :  { %2918 = vrot.lane.b32.xlu1 %v2809_v48, %s4629_s21  ;;  %3385 = vrot.lane.b32.xlu0 %v3142_v39, %s4629_s21  ;;  %v8436_v48 = vld [vmem:[#allocation158_spill] sm:$0xff]  ;;  %v3869_v39 = vsel %vm596_vm7, %v3867_v50, %v6926_v45 }
 0x3a4   :  { %v3406_v34 = vsel %vm590_vm5, %v8436_v48, %v6911_v23  ;;  %v3871_v43 = vsel %vm599_vm8, %v3869_v39, %v7046_v2  ;;  %v8440_v48 = vld [vmem:[#allocation167_spill] sm:$0xff] }
 0x3a5   :  { %v7315_v7 = vpop.permute.xlu1 %3299  ;;  %v7317_v4 = vpop.permute.xlu0 %3773  ;;  %v3408_v36 = vsel %vm593_vm6, %v3406_v34, %v7044_v0  ;;  %v3873_v23 = vsel %vm602_vm9, %v3871_v43, %v7175_v30  ;;  %v8441_v34 = vld [vmem:[#allocation159_spill] sm:$0xff] }
 0x3a6   :  { %v3410_v32 = vsel %vm596_vm7, %v3408_v36, %v7173_v31  ;;  %v8439_v31 = vld [vmem:[#allocation26_spill] sm:$0xff]  ;;  %v4311_v39 = vsel %vm590_vm5, %v8441_v34, %v8440_v48  ;;  %v8442_v36 = vcombine.high %v8418_v61, %v8417_v15  ;;  %v8446_v15 = vld [vmem:[#allocation152_spill] sm:$0xff]  ;;  %v8449_v48 = vld [vmem:[#allocation169_spill] sm:$0xff] }
 0x3a7   :  { %3323 = vrot.lane.b32.xlu1 %v7323_v41, %s4625_s17  ;;  %4249 = vrot.lane.b32.xlu0 %v3994_v28, %s4629_s21  ;;  %v8438_v28 = vld [vmem:[#allocation149_spill] sm:$0xff]  ;;  %v4313_v16 = vsel %vm593_vm6, %v4311_v39, %v7056_v13  ;;  %v4130_v13 = vcombine.high %v7234_v59, %v8188_v57  ;;  %v8447_v61 = vld [vmem:[#allocation150_spill] sm:$0xff]  ;;  %v8450_v39 = vld [vmem:[#allocation176_spill] sm:$0xff] }
 0x3a8   :  { %v3852_v0 = vsel %vm590_vm5, %v8438_v28, %v8437_v21  ;;  %v2209_v43 = vrot.slane %v8442_v36, %v4883_v26  ;;  %v8445_v21 = vld [vmem:[#allocation156_spill] sm:$0xff] }
 0x3a9   :  { %v3364_v45 = vpop.permute.xlu1 %3363  ;;  %v3838_v5 = vpop.permute.xlu0 %3837  ;;  %v3854_v30 = vsel %vm593_vm6, %v3852_v0, %v8439_v31  ;;  %v4325_v0 = vsel %vm590_vm5, %v8447_v61, %v8446_v15 }
 0x3aa   :  { %v7351_v50 = vsel %vm599_vm8, %v3410_v32, %v3364_v45  ;;  %v7354_v2 = vsel %vm605_vm10, %v3873_v23, %v3838_v5  ;;  %v3856_v53 = vsel %vm596_vm7, %v3854_v30, %v7054_v60  ;;  %v8443_v32 = vld [vmem:[#allocation125_spill] sm:$0xff]  ;;  %v8444_v23 = vld [vmem:[#allocation143_spill] sm:$0xff]  ;;  %v8448_v30 = vld [vmem:[#allocation168_spill] sm:$0xff]  ;;  %v4327_v34 = vsel %vm593_vm6, %v4325_v0, %v8449_v48 }
 0x3ab   :  { %3387 = vrot.lane.b32.xlu1 %v3278_v54, %s4629_s21  ;;  %2384 = vrot.lane.b32.xlu0 %v2144_v17, %s4628_s20  ;;  %v3866_v45 = vsel %vm590_vm5, %v8444_v23, %v8443_v32  ;;  %v3858_v5 = vsel %vm599_vm8, %v3856_v53, %v7187_v52  ;;  %v4315_v54 = vsel %vm596_vm7, %v4313_v16, %v7189_v14  ;;  %v8456_v48 = vld [vmem:[#allocation22_spill] sm:$0xff] }
 0x3ac   :  { %v3868_v28 = vsel %vm593_vm6, %v3866_v45, %v8445_v21  ;;  %v4329_v53 = vsel %vm596_vm7, %v4327_v34, %v8450_v39  ;;  %v2280_v45 = vcombine.high %v7260_v29, %v8188_v57  ;;  %v8457_v34 = vld [vmem:[#allocation151_spill] sm:$0xff] }
 0x3ad   :  { %v3776_v17 = vpop.permute.xlu1 %3775  ;;  %v4226_v60 = vpop.permute.xlu0 %4225  ;;  %v3870_v14 = vsel %vm596_vm7, %v3868_v28, %v8448_v30  ;;  %v4331_v36 = vsel %vm599_vm8, %v4329_v53, %v7213_v3  ;;  %v8453_v3 = vld [vmem:[#allocation148_spill] sm:$0xff]  ;;  %v8454_v28 = vld [vmem:[#allocation145_spill] sm:$0xff]  ;;  %v8455_v30 = vcombine.high %v6625_v19, %v6622_v1  ;;  %v8460_v19 = vld [vmem:[#allocation142_spill] sm:$0xff] }
 0x3ae   :  { %v7386_v31 = vsel %vm602_vm9, %v3858_v5, %v3776_v17  ;;  %v7389_v52 = vsel %vm599_vm8, %v4315_v54, %v4226_v60  ;;  %v3872_v59 = vsel %vm599_vm8, %v3870_v14, %v7069_v24  ;;  %v2605_v5 = vcombine.high %v7266_v27, %v8188_v57  ;;  %v8451_v17 = vld [vmem:[#allocation170_spill] sm:$0xff]  ;;  %v8452_v60 = vld [vmem:[#allocation160_spill] sm:$0xff] }
 0x3af   :  { %4251 = vrot.lane.b32.xlu1 %v4130_v13, %s4629_s21  ;;  %2448 = vrot.lane.b32.xlu0 %v2209_v43, %s4625_s17  ;;  %v3874_v16 = vsel %vm602_vm9, %v3872_v59, %v7211_v37  ;;  %v4312_v37 = vsel %vm590_vm5, %v8452_v60, %v8451_v17  ;;  %v3074_v27 = vcombine.high %v7296_v9, %v8188_v57  ;;  %v8459_v59 = vld [vmem:[#allocation147_spill] sm:$0xff]  ;;  %v8462_v60 = vld [vmem:[#allocation161_spill] sm:$0xff] }
 0x3b0   :  { %v4314_v29 = vsel %vm593_vm6, %v4312_v37, %v8453_v3  ;;  %v2127_v13 = vcombine.high %v7202_v12, %v7185_v56  ;;  %v2462_v15 = vsel %vm590_vm5, %v8454_v28, %v7228_v42  ;;  %v2345_v14 = vrot.slane %v8455_v30, %v4883_v26  ;;  %v8463_v3 = vld [vmem:[#allocation123_spill] sm:$0xff]  ;;  %v8469_v30 = vld [vmem:[#allocation178_spill] sm:$0xff] }
 0x3b1   :  { %v3840_v32 = vpop.permute.xlu1 %3839  ;;  %v4290_v23 = vpop.permute.xlu0 %4289  ;;  %v4316_v21 = vsel %vm596_vm7, %v4314_v29, %v7226_v35  ;;  %v4326_v9 = vsel %vm590_vm5, %v8457_v34, %v8456_v48  ;;  %v8458_v35 = vld [vmem:[#allocation172_spill] sm:$0xff]  ;;  %v2476_v1 = vsel %vm590_vm5, %v8460_v19, %v8459_v59  ;;  %v2263_v37 = vcombine.high %v7238_v63, %v7224_v55  ;;  %v8466_v63 = vld [vmem:[#allocation173_spill] sm:$0xff] }
 0x3b2   :  { %v7410_v54 = vsel %vm605_vm10, %v3874_v16, %v3840_v32  ;;  %v7413_v24 = vsel %vm602_vm9, %v4331_v36, %v4290_v23  ;;  %v4328_v42 = vsel %vm593_vm6, %v4326_v9, %v8458_v35  ;;  %v2478_v16 = vsel %vm593_vm6, %v2476_v1, %v7247_v44 }
 0x3b3   :  { %2386 = vrot.lane.b32.xlu1 %v2280_v45, %s4628_s20  ;;  %2860 = vrot.lane.b32.xlu0 %v2605_v5, %s4629_s21  ;;  %v4330_v39 = vsel %vm596_vm7, %v4328_v42, %v7096_v62  ;;  %v2741_v23 = vcombine.high %v7290_v8, %v8188_v57  ;;  %v2141_v45 = vrot.slane %v2127_v13, %v4883_v26  ;;  %v8461_v62 = vld [vmem:[#allocation171_spill] sm:$0xff] }
 0x3b4   :  { %v4332_v53 = vsel %vm599_vm8, %v4330_v39, %v7245_v49  ;;  %v2922_v49 = vsel %vm590_vm5, %v8462_v60, %v8461_v62  ;;  %v3210_v8 = vcombine.high %v7323_v41, %v8188_v57  ;;  %v2463_v29 = vsel %vm590_vm5, %v8463_v3, %v7255_v10 }
 0x3b5   :  { %v4228_v61 = vpop.permute.xlu1 %4227  ;;  %v2361_v0 = vpop.permute.xlu0 %2360  ;;  %v2924_v44 = vsel %vm593_vm6, %v2922_v49, %v7098_v22  ;;  %v2213_v28 = vcombine.high %v2209_v43, %v8188_v57  ;;  %v2277_v59 = vrot.slane %v2263_v37, %v4883_v26  ;;  %v2145_v19 = vcombine.high %v2141_v45, %v8188_v57  ;;  %v8475_v37 = vld [vmem:[#allocation154_spill] sm:$0xff] }
 0x3b6   :  { %v7439_v56 = vsel %vm599_vm8, %v4316_v21, %v4228_v61  ;;  %v7442_v12 = vsel %vm593_vm6, %v2462_v15, %v2361_v0  ;;  %v8464_v15 = vld [vmem:[#allocation155_spill] sm:$0xff]  ;;  %v8465_v61 = vld [vmem:[#allocation153_spill] sm:$0xff] }
 0x3b7   :  { %2450 = vrot.lane.b32.xlu1 %v2345_v14, %s4625_s17  ;;  %3329 = vrot.lane.b32.xlu0 %v3074_v27, %s4629_s21  ;;  %v2926_v27 = vsel %vm596_vm7, %v2924_v44, %v7257_v38  ;;  %v2936_v22 = vsel %vm590_vm5, %v8465_v61, %v8464_v15  ;;  %v8467_v38 = vld [vmem:[#allocation177_spill] sm:$0xff]  ;;  %v2349_v44 = vcombine.high %v2345_v14, %v8188_v57  ;;  %v8480_v15 = vld [vmem:[#allocation179_spill] sm:$0xff] }
 0x3b8   :  { %v2938_v10 = vsel %vm593_vm6, %v2936_v22, %v8466_v63  ;;  %v8468_v0 = vld [vmem:[#allocation165_spill] sm:$0xff]  ;;  %v8481_v22 = vld [vmem:[#allocation144_spill] sm:$0xff]  ;;  %v8482_v63 = vld [vmem:[#allocation146_spill] sm:$0xff] }
 0x3b9   :  { %v4292_v36 = vpop.permute.xlu1 %4291  ;;  %v2425_v32 = vpop.permute.xlu0 %2424  ;;  %v2477_v43 = vsel %vm590_vm5, %v8468_v0, %v8467_v38  ;;  %v2940_v48 = vsel %vm596_vm7, %v2938_v10, %v8469_v30  ;;  %v3851_v10 = vsel %vm590_vm5, %v8482_v63, %v8481_v22 }
 0x3ba   :  { %v7461_v5 = vsel %vm602_vm9, %v4332_v53, %v4292_v36  ;;  %v7464_v17 = vsel %vm596_vm7, %v2478_v16, %v2425_v32  ;;  %v2479_v34 = vsel %vm593_vm6, %v2477_v43, %v7272_v20  ;;  %v2942_v9 = vsel %vm599_vm8, %v2940_v48, %v7274_v6  ;;  %v8470_v53 = vld [vmem:[#allocation24_spill] sm:$0xff]  ;;  %v8471_v16 = vld [vmem:[#allocation163_spill] sm:$0xff]  ;;  %v8473_v32 = vld [vmem:[#allocation162_spill] sm:$0xff] }
 0x3bb   :  { %2862 = vrot.lane.b32.xlu1 %v2741_v23, %s4629_s21  ;;  %2392 = vrot.lane.b32.xlu0 %v2141_v45, %s4625_s17  ;;  %v2923_v36 = vsel %vm590_vm5, %v8471_v16, %v8470_v53  ;;  %v8472_v20 = vld [vmem:[#allocation28_spill] sm:$0xff]  ;;  %v2281_v48 = vcombine.high %v2277_v59, %v8188_v57 }
 0x3bc   :  { %v3391_v6 = vsel %vm590_vm5, %v8473_v32, %v8472_v20  ;;  %v2925_v26 = vsel %vm593_vm6, %v2923_v36, %v7125_v18 }
 0x3bd   :  { %v2363_v13 = vpop.permute.xlu1 %2362  ;;  %v2837_v21 = vpop.permute.xlu0 %2836  ;;  %v3393_v23 = vsel %vm593_vm6, %v3391_v6, %v7127_v47  ;;  %v2927_v45 = vsel %vm596_vm7, %v2925_v26, %v7282_v33  ;;  %v8478_v33 = vld [vmem:[#allocation174_spill] sm:$0xff] }
 0x3be   :  { %v7487_v41 = vsel %vm593_vm6, %v2463_v29, %v2363_v13  ;;  %v7490_v55 = vsel %vm599_vm8, %v2926_v27, %v2837_v21  ;;  %v3395_v62 = vsel %vm596_vm7, %v3393_v23, %v7284_v51  ;;  %v8476_v29 = vld [vmem:[#allocation166_spill] sm:$0xff]  ;;  %v8477_v27 = vld [vmem:[#allocation157_spill] sm:$0xff]  ;;  %v8479_v21 = vld [vmem:[#allocation175_spill] sm:$0xff] }
 0x3bf   :  { %3331 = vrot.lane.b32.xlu1 %v3210_v8, %s4629_s21  ;;  %2456 = vrot.lane.b32.xlu0 %v2213_v28, %s4629_s21  ;;  %v8474_v8 = vld [vmem:[#allocation25_spill] sm:$0xff]  ;;  %v2937_v18 = vsel %vm590_vm5, %v8477_v27, %v8476_v29 }
 0x3c0   :  { %v3405_v3 = vsel %vm590_vm5, %v8475_v37, %v8474_v8  ;;  %v2939_v51 = vsel %vm593_vm6, %v2937_v18, %v8478_v33 }
 0x3c1   :  { %v2427_v35 = vpop.permute.xlu1 %2426  ;;  %v2901_v42 = vpop.permute.xlu0 %2900  ;;  %v3407_v28 = vsel %vm593_vm6, %v3405_v3, %v8479_v21  ;;  %v2941_v14 = vsel %vm596_vm7, %v2939_v51, %v7142_v25 }
 0x3c2   :  { %v7508_v1 = vsel %vm596_vm7, %v2479_v34, %v2427_v35  ;;  %v7511_v39 = vsel %vm602_vm9, %v2942_v9, %v2901_v42  ;;  %v3409_v61 = vsel %vm596_vm7, %v3407_v28, %v8480_v15  ;;  %v2943_v38 = vsel %vm599_vm8, %v2941_v14, %v7302_v58  ;;  %v8483_v34 = vld [vmem:[#allocation23_spill] sm:$0xff]  ;;  %v8486_v58 = vld [vmem:[#allocation29_spill] sm:$0xff] }
 0x3c3   :  { %2394 = vrot.lane.b32.xlu1 %v2277_v59, %s4625_s17  ;;  %2400 = vrot.lane.b32.xlu0 %v2145_v19, %s4629_s21  ;;  %v3411_v0 = vsel %vm599_vm8, %v3409_v61, %v7304_v40  ;;  %v3853_v25 = vsel %vm593_vm6, %v3851_v10, %v8483_v34  ;;  %v8484_v42 = vld [vmem:[#allocation27_spill] sm:$0xff]  ;;  %v8485_v19 = vld [vmem:[#allocation164_spill] sm:$0xff] }
 0x3c4   :  { %v3392_v53 = vsel %vm590_vm5, %v8485_v19, %v8484_v42  ;;  %v3855_v16 = vsel %vm596_vm7, %v3853_v25, %v8486_v58 }
 0x3c5   :  { %v2839_v60 = vpop.permute.xlu1 %2838  ;;  %v3306_v49 = vpop.permute.xlu0 %3305  ;;  %v3394_v40 = vsel %vm593_vm6, %v3392_v53, %v7151_v46  ;;  %v3857_v59 = vsel %vm599_vm8, %v3855_v16, %v7153_v11 }
 0x3c6   :  { %v2929_v47 = vsel %vm599_vm8, %v2927_v45, %v2839_v60  ;;  %v7538_v13 = vsel %vm599_vm8, %v3395_v62, %v3306_v49  ;;  %v3396_v36 = vsel %vm596_vm7, %v3394_v40, %v7315_v7  ;;  %v3859_v20 = vsel %vm602_vm9, %v3857_v59, %v7317_v4  ;;  %v8488_v40 = vld [vmem:[#allocation7_spill] sm:$0xff] }
 0x3c7   :  { %2458 = vrot.lane.b32.xlu1 %v2349_v44, %s4629_s21 }
 0x3c9   :  { %v2903_v43 = vpop.permute.xlu1 %2902  ;;  %v3370_v30 = vpop.permute.xlu0 %3369 }
 0x3ca   :  { %v2945_v9 = vsel %vm602_vm9, %v2943_v38, %v2903_v43  ;;  %v7561_v35 = vsel %vm602_vm9, %v3411_v0, %v3370_v30 }
 0x3cb   :  { %2402 = vrot.lane.b32.xlu1 %v2281_v48, %s4629_s21 }
 0x3cd   :  { %v3308_v32 = vpop.permute.xlu1 %3307  ;;  %v3782_v6 = vpop.permute.xlu0 %3781 }
 0x3ce   :  { %v7578_v26 = vsel %vm599_vm8, %v3396_v36, %v3308_v32  ;;  %v7581_v23 = vsel %vm605_vm10, %v3859_v20, %v3782_v6  ;;  %v8489_v36 = vld [vmem:[#allocation77_spill] sm:$0xff]  ;;  %v8490_v20 = vld [vmem:[#allocation38_spill] sm:$0xff] }
 0x3cf   :  { %v1065_v32 = vsel %vm590_vm5, %v8490_v20, %v8489_v36  ;;  %v8491_v6 = vld [vmem:[#allocation82_spill] sm:$0xff]  ;;  %v8505_v20 = vld [vmem:[#allocation83_spill] sm:$0xff] }
 0x3d1   :  { %v3372_v45 = vpop.permute.xlu1 %3371  ;;  %v3846_v46 = vpop.permute.xlu0 %3845 }
 0x3d2   :  { %v7585_v11 = vsel %vm602_vm9, %v7351_v50, %v3372_v45  ;;  %v7589_v7 = vsel %vm608_vm11, %v7354_v2, %v3846_v46  ;;  %v8492_v45 = vld [vmem:[#allocation47_spill] sm:$0xff] }
 0x3d3   :  { %v1079_v46 = vsel %vm590_vm5, %v8492_v45, %v8491_v6  ;;  %v8506_v45 = vld [vmem:[#allocation46_spill] sm:$0xff] }
 0x3d5   :  { %v3784_v4 = vpop.permute.xlu1 %3783  ;;  %v4234_v62 = vpop.permute.xlu0 %4233 }
 0x3d6   :  { %v7593_v60 = vsel %vm605_vm10, %v7386_v31, %v3784_v4  ;;  %v7597_v49 = vsel %vm602_vm9, %v7389_v52, %v4234_v62  ;;  %v8493_v4 = vld [vmem:[#allocation44_spill] sm:$0xff] }
 0x3d7   :  { %v8494_v62 = vld [vmem:[#allocation8_spill] sm:$0xff] }
 0x3d9   :  { %v3848_v44 = vpop.permute.xlu1 %3847  ;;  %v4298_v8 = vpop.permute.xlu0 %4297 }
 0x3da   :  { %v7601_v50 = vsel %vm608_vm11, %v7410_v54, %v3848_v44  ;;  %v592_v44 = vsel %vm590_vm5, %v8494_v62, %v8493_v4  ;;  %v8507_v62 = vld [vmem:[#allocation32_spill] sm:$0xff] }
 0x3dd   :  { %v4236_v37 = vpop.permute.xlu1 %4235  ;;  %v2369_v3 = vpop.permute.xlu0 %2368 }
 0x3de   :  { %v7605_v2 = vsel %vm602_vm9, %v7439_v56, %v4236_v37  ;;  %v7609_v31 = vsel %vm596_vm7, %v7442_v12, %v2369_v3  ;;  %v4380_v3 = vrot.slane %v7589_v7, 4  ;;  %v8501_v7 = vld [vmem:[#allocation62_spill] sm:$0xff] }
 0x3e1   :  { %v4300_v29 = vpop.permute.xlu1 %4299  ;;  %v2433_v27 = vpop.permute.xlu0 %2432 }
 0x3e2   :  { %v7613_v52 = vsel %vm599_vm8, %v7464_v17, %v2433_v27  ;;  %v4336_v48 = vsel %vm605_vm10, %v7461_v5, %v4300_v29  ;;  %v8487_v5 = vld [vmem:[#allocation43_spill] sm:$0xff] }
 0x3e3   :  { %v591_v59 = vsel %vm590_vm5, %v8488_v40, %v8487_v5  ;;  %v8503_v5 = vld [vmem:[#allocation31_spill] sm:$0xff] }
 0x3e4   :  { %v595_v40 = vsel %vm593_vm6, %v592_v44, %v8503_v5  ;;  %v8517_v5 = vld [vmem:[#allocation85_spill] sm:$0xff] }
 0x3e5   :  { %v2371_v18 = vpop.permute.xlu1 %2370  ;;  %v2845_v33 = vpop.permute.xlu0 %2844  ;;  %v598_v4 = vsel %vm596_vm7, %v595_v40, %v8506_v45 }
 0x3e6   :  { %v7617_v54 = vsel %vm596_vm7, %v7487_v41, %v2371_v18  ;;  %v7621_v56 = vsel %vm602_vm9, %v7490_v55, %v2845_v33  ;;  %v8496_v33 = vld [vmem:[#allocation45_spill] sm:$0xff] }
 0x3e9   :  { %v2435_v51 = vpop.permute.xlu1 %2434  ;;  %v2909_v21 = vpop.permute.xlu0 %2908 }
 0x3ea   :  { %v7625_v12 = vsel %vm599_vm8, %v7508_v1, %v2435_v51  ;;  %v7629_v17 = vsel %vm605_vm10, %v7511_v39, %v2909_v21  ;;  %v4335_v39 = vsel %vm605_vm10, %v7413_v24, %v4298_v8  ;;  %v8495_v8 = vld [vmem:[#allocation30_spill] sm:$0xff]  ;;  %v8497_v21 = vld [vmem:[#allocation52_spill] sm:$0xff] }
 0x3eb   :  { %v594_v37 = vsel %vm593_vm6, %v591_v59, %v8495_v8  ;;  %v8504_v59 = vld [vmem:[#allocation79_spill] sm:$0xff]  ;;  %v8508_v8 = vld [vmem:[#allocation36_spill] sm:$0xff] }
 0x3ec   :  { %v597_v51 = vsel %vm596_vm7, %v594_v37, %v8496_v33  ;;  %v8510_v33 = vld [vmem:[#allocation54_spill] sm:$0xff] }
 0x3ed   :  { %v2847_v28 = vpop.permute.xlu1 %2846  ;;  %v7631_v14 = vpop.permute.xlu0 %3313 }
 0x3ee   :  { %v7634_v41 = vsel %vm602_vm9, %v2929_v47, %v2847_v28  ;;  %v8498_v28 = vld [vmem:[#allocation15_spill] sm:$0xff] }
 0x3f1   :  { %v2911_v15 = vpop.permute.xlu1 %2910  ;;  %v3378_v61 = vpop.permute.xlu0 %3377 }
 0x3f2   :  { %v7637_v55 = vsel %vm605_vm10, %v2945_v9, %v2911_v15  ;;  %v3415_v29 = vsel %vm605_vm10, %v7561_v35, %v3378_v61  ;;  %v611_v15 = vsel %vm590_vm5, %v8498_v28, %v8497_v21  ;;  %v8502_v35 = vld [vmem:[#allocation67_spill] sm:$0xff]  ;;  %v8511_v28 = vld [vmem:[#allocation37_spill] sm:$0xff] }
 0x3f3   :  { %v1081_v61 = vsel %vm593_vm6, %v1079_v46, %v8502_v35  ;;  %v613_v46 = vsel %vm593_vm6, %v611_v15, %v8508_v8 }
 0x3f4   :  { %v1083_v6 = vsel %vm596_vm7, %v1081_v61, %v8505_v20  ;;  %v615_v21 = vsel %vm596_vm7, %v613_v46, %v8510_v33  ;;  %v8516_v61 = vld [vmem:[#allocation80_spill] sm:$0xff]  ;;  %v8523_v33 = vld [vmem:[#allocation57_spill] sm:$0xff] }
 0x3f5   :  { %v7639_v22 = vpop.permute.xlu1 %3315  ;;  %v7641_v63 = vpop.permute.xlu0 %3789  ;;  %v8519_v20 = vld [vmem:[#allocation56_spill] sm:$0xff] }
 0x3f9   :  { %v7643_v1 = vpop.permute.xlu1 %3379  ;;  %v4242_v10 = vpop.permute.xlu0 %4241 }
 0x3fa   :  { %v4321_v37 = vsel %vm605_vm10, %v7597_v49, %v4242_v10  ;;  %v8514_v10 = vld [vmem:[#allocation69_spill] sm:$0xff]  ;;  %v3416_v8 = vsel %vm605_vm10, %v7585_v11, %v7643_v1  ;;  %v8527_v1 = vld [vmem:[#allocation72_spill] sm:$0xff] }
 0x3fd   :  { %v7647_v38 = vpop.permute.xlu1 %3791  ;;  %v4306_v0 = vpop.permute.xlu0 %4305 }
 0x3fe   :  { %v4337_v47 = vsel %vm608_vm11, %v4335_v39, %v4306_v0  ;;  %v8499_v0 = vld [vmem:[#allocation53_spill] sm:$0xff] }
 0x3ff   :  { %4598 = vmatprep.subr.msk.mxu0 %vm4387_vm12, %v4337_v47  ;;  %v8500_v47 = vld [vmem:[#allocation18_spill] sm:$0xff] }
 0x401   :  { %v7651_v43 = vpop.permute.xlu1 %4243  ;;  %v7653_v30 = vpop.permute.xlu0 %2376 }
 0x405   :  { %v4308_v34 = vpop.permute.xlu1 %4307  ;;  %v7657_v25 = vpop.permute.xlu0 %2440 }
 0x406   :  { %v4338_v24 = vsel %vm608_vm11, %v4336_v48, %v4308_v34  ;;  %v612_v48 = vsel %vm590_vm5, %v8500_v47, %v8499_v0  ;;  %v1067_v34 = vsel %vm593_vm6, %v1065_v32, %v8501_v7  ;;  %v600_v32 = vsel %vm599_vm8, %v597_v51, %v8507_v62  ;;  %v8512_v0 = vld [vmem:[#allocation55_spill] sm:$0xff]  ;;  %v8513_v47 = vld [vmem:[#allocation65_spill] sm:$0xff] }
 0x407   :  { %4601 = vmatprep.subr.msk.mxu1 %vm4387_vm12, %v4338_v24  ;;  %v1069_v36 = vsel %vm596_vm7, %v1067_v34, %v8504_v59  ;;  %v1085_v7 = vsel %vm599_vm8, %v1083_v6, %v8514_v10  ;;  %v8515_v34 = vld [vmem:[#allocation33_spill] sm:$0xff]  ;;  %v8521_v62 = vld [vmem:[#allocation39_spill] sm:$0xff] }
 0x408   :  { %v1071_v49 = vsel %vm599_vm8, %v1069_v36, %v8513_v47  ;;  %v7738_v35 = vsel %vm599_vm8, %v598_v4, %v8515_v34  ;;  %v1087_v40 = vsel %vm602_vm9, %v1085_v7, %v8517_v5  ;;  %v8518_v59 = vld [vmem:[#allocation89_spill] sm:$0xff]  ;;  %v8520_v36 = vld [vmem:[#allocation34_spill] sm:$0xff]  ;;  %v4382_v4 = vrot.slane %v7601_v50, 4  ;;  %v8530_v34 = vld [vmem:[#allocation88_spill] sm:$0xff] }
 0x409   :  { %v7661_v9 = vpop.permute.xlu1 %2378  ;;  %v7663_v42 = vpop.permute.xlu0 %2852  ;;  %v1525_v45 = vsel %vm590_vm5, %v8519_v20, %v8518_v59  ;;  %v8529_v7 = vld [vmem:[#allocation81_spill] sm:$0xff]  ;;  %v8531_v5 = vld [vmem:[#allocation3_spill] sm:$0xff]  ;;  %v8533_v20 = vld [vmem:[#allocation100_spill] sm:$0xff] }
 0x40a   :  { %v8532_v59 = vld [vmem:[#allocation41_spill] sm:$0xff] }
 0x40d   :  { %v7665_v19 = vpop.permute.xlu1 %2442  ;;  %v7667_v53 = vpop.permute.xlu0 %2916 }
 0x411   :  { %v7669_v58 = vpop.permute.xlu1 %2854  ;;  %v7671_v16 = vpop.permute.xlu0 %3321 }
 0x415   :  { %v7690_v27 = vpop.permute.xlu1 %2918  ;;  %v3386_v18 = vpop.permute.xlu0 %3385 }
 0x416   :  { %v3417_v39 = vsel %vm608_vm11, %v3415_v29, %v3386_v18  ;;  %v8509_v29 = vld [vmem:[#allocation48_spill] sm:$0xff] }
 0x417   :  { %v4401_v24 = vsel %vm4387_vm12, %v3417_v39, %v4380_v3  ;;  %v603_v18 = vsel %vm602_vm9, %v600_v32, %v8509_v29  ;;  %v614_v39 = vsel %vm593_vm6, %v612_v48, %v8511_v28  ;;  %v1073_v48 = vsel %vm602_vm9, %v1071_v49, %v8516_v61  ;;  %v8524_v28 = vld [vmem:[#allocation40_spill] sm:$0xff]  ;;  %v8528_v49 = vld [vmem:[#allocation58_spill] sm:$0xff] }
 0x418   :  { %v616_v15 = vsel %vm596_vm7, %v614_v39, %v8512_v0  ;;  %v606_v6 = vsel %vm605_vm10, %v603_v18, %v8520_v36  ;;  %v617_v32 = vsel %vm599_vm8, %v615_v21, %v8521_v62  ;;  %v8525_v39 = vld [vmem:[#allocation66_spill] sm:$0xff]  ;;  %v1527_v0 = vsel %vm593_vm6, %v1525_v45, %v8527_v1  ;;  %v8534_v45 = vld [vmem:[#allocation64_spill] sm:$0xff]  ;;  %v8536_v62 = vld [vmem:[#allocation63_spill] sm:$0xff] }
 0x419   :  { %v7720_v3 = vpop.permute.xlu1 %3323  ;;  %v4250_v44 = vpop.permute.xlu0 %4249  ;;  %v618_v18 = vsel %vm599_vm8, %v616_v15, %v8524_v28  ;;  %v1075_v50 = vsel %vm605_vm10, %v1073_v48, %v8525_v39  ;;  %v1529_v48 = vsel %vm596_vm7, %v1527_v0, %v8531_v5  ;;  %v1066_v36 = vsel %vm590_vm5, %v8534_v45, %v8533_v20  ;;  %v8541_v39 = vld [vmem:[#allocation68_spill] sm:$0xff]  ;;  %v8542_v0 = vld [vmem:[#allocation74_spill] sm:$0xff] }
 0x41a   :  { %v4323_v51 = vsel %vm608_vm11, %v4321_v37, %v4250_v44  ;;  %v8522_v44 = vld [vmem:[#allocation50_spill] sm:$0xff]  ;;  %v7773_v10 = vsel %vm602_vm9, %v618_v18, %v8528_v49  ;;  %v1077_v15 = vsel %vm608_vm11, %v1075_v50, %v8529_v7  ;;  %v8544_v7 = vld [vmem:[#allocation59_spill] sm:$0xff]  ;;  %v8546_v20 = vld [vmem:[#allocation84_spill] sm:$0xff] }
 0x41b   :  { %4599 = vmatpush1.msk.msra.mxu0 %vm4387_vm12, %v4323_v51  ;;  %v609_v29 = vsel %vm608_vm11, %v606_v6, %v8522_v44  ;;  %v8526_v51 = vld [vmem:[#allocation70_spill] sm:$0xff]  ;;  %v8535_v6 = vld [vmem:[#allocation101_spill] sm:$0xff]  ;;  %v1068_v45 = vsel %vm593_vm6, %v1066_v36, %v8546_v20  ;;  %v8552_v36 = vld [vmem:[#allocation91_spill] sm:$0xff] }
 0x41c   :  { %4439 = vmatprep.subr.mxu0 %v4401_v24  ;;  %v619_v24 = vsel %vm602_vm9, %v617_v32, %v8523_v33  ;;  %v1089_v11 = vsel %vm605_vm10, %v1087_v40, %v8526_v51  ;;  %v2002_v32 = vsel %vm590_vm5, %v8536_v62, %v8535_v6  ;;  %v8537_v44 = vld [vmem:[#allocation6_spill] sm:$0xff]  ;;  %v8538_v33 = vld [vmem:[#allocation61_spill] sm:$0xff]  ;;  %v8547_v6 = vld [vmem:[#allocation107_spill] sm:$0xff] }
 0x41d   :  { %v3388_v46 = vpop.permute.xlu1 %3387  ;;  %v7755_v37 = vpop.permute.xlu0 %2384  ;;  %v1091_v61 = vsel %vm608_vm11, %v1089_v11, %v8530_v34  ;;  %v621_v40 = vsel %vm605_vm10, %v619_v24, %v8532_v59  ;;  %v1539_v28 = vsel %vm590_vm5, %v8538_v33, %v8537_v44  ;;  %v8539_v24 = vld [vmem:[#allocation103_spill] sm:$0xff]  ;;  %v4343_v11 = vrot.slane %v1077_v15, 4  ;;  %v8545_v5 = vld [vmem:[#allocation2_spill] sm:$0xff] }
 0x41e   :  { %v3418_v21 = vsel %vm608_vm11, %v3416_v8, %v3388_v46  ;;  %v2004_v18 = vsel %vm593_vm6, %v2002_v32, %v8539_v24  ;;  %v4344_v1 = vrot.slane %v1091_v61, 4  ;;  %v623_v34 = vsel %vm608_vm11, %v621_v40, %v8544_v7  ;;  %v8548_v61 = vld [vmem:[#allocation76_spill] sm:$0xff]  ;;  %v8549_v62 = vld [vmem:[#allocation102_spill] sm:$0xff] }
 0x41f   :  { %v4403_v47 = vsel %vm4387_vm12, %v3418_v21, %v4382_v4  ;;  %v4322_v4 = vsel %vm605_vm10, %v7605_v2, %v7651_v43  ;;  %v8540_v21 = vld [vmem:[#allocation108_spill] sm:$0xff]  ;;  %v1531_v2 = vsel %vm599_vm8, %v1529_v48, %v8542_v0  ;;  %v8543_v43 = vld [vmem:[#allocation105_spill] sm:$0xff]  ;;  %v1541_v48 = vsel %vm593_vm6, %v1539_v28, %v8548_v61 }
 0x420   :  { %v1080_v50 = vsel %vm590_vm5, %v8541_v39, %v8540_v21  ;;  %v2006_v49 = vsel %vm596_vm7, %v2004_v18, %v8543_v43  ;;  %v1533_v59 = vsel %vm602_vm9, %v1531_v2, %v8545_v5  ;;  %v1070_v32 = vsel %vm596_vm7, %v1068_v45, %v8549_v62  ;;  %v8551_v40 = vld [vmem:[#allocation4_spill] sm:$0xff]  ;;  %v8553_v21 = vld [vmem:[#allocation110_spill] sm:$0xff]  ;;  %v8554_v39 = vld [vmem:[#allocation111_spill] sm:$0xff] }
 0x421   :  { %v4252_v8 = vpop.permute.xlu1 %4251  ;;  %v7792_v46 = vpop.permute.xlu0 %2448  ;;  %v2008_v15 = vsel %vm599_vm8, %v2006_v49, %v8547_v6  ;;  %v1082_v44 = vsel %vm593_vm6, %v1080_v50, %v8551_v40  ;;  %v1543_v18 = vsel %vm596_vm7, %v1541_v48, %v8552_v36  ;;  %v8555_v0 = vld [vmem:[#allocation93_spill] sm:$0xff]  ;;  %v7840_v49 = vsel %vm4387_vm12, %v623_v34, %v4344_v1  ;;  %v8557_v5 = vld [vmem:[#allocation75_spill] sm:$0xff]  ;;  %v8560_v61 = vld [vmem:[#allocation104_spill] sm:$0xff] }
 0x422   :  { %v4324_v51 = vsel %vm608_vm11, %v4322_v4, %v4252_v8  ;;  %v8550_v4 = vld [vmem:[#allocation109_spill] sm:$0xff]  ;;  %v1545_v2 = vsel %vm599_vm8, %v1543_v18, %v8555_v0  ;;  %v7843_v7 = vsel %vm4387_vm12, %v609_v29, %v4343_v11  ;;  %v1535_v20 = vsel %vm605_vm10, %v1533_v59, %v8557_v5  ;;  %v8558_v45 = vld [vmem:[#allocation95_spill] sm:$0xff]  ;;  %v8563_v40 = vld [vmem:[#allocation114_spill] sm:$0xff] }
 0x423   :  { %4602 = vmatpush1.msk.msra.mxu1 %vm4387_vm12, %v4324_v51  ;;  %v2010_v8 = vsel %vm602_vm9, %v2008_v15, %v8550_v4  ;;  %v3863_v51 = vsel %vm608_vm11, %v7581_v23, %v7641_v63  ;;  %v8556_v50 = vld [vmem:[#allocation113_spill] sm:$0xff]  ;;  %v1547_v6 = vsel %vm602_vm9, %v1545_v2, %v8558_v45  ;;  %v8559_v15 = vld [vmem:[#allocation87_spill] sm:$0xff]  ;;  %v3399_v63 = vsel %vm602_vm9, %v7538_v13, %v7631_v14  ;;  %v8562_v4 = vld [vmem:[#allocation112_spill] sm:$0xff] }
 0x424   :  { %4526 = vmatprep.subr.mxu1 %v4403_v47  ;;  %v1084_v47 = vsel %vm596_vm7, %v1082_v44, %v8553_v21  ;;  %v2012_v28 = vsel %vm605_vm10, %v2010_v8, %v8554_v39  ;;  %v1072_v23 = vsel %vm599_vm8, %v1070_v32, %v8559_v15  ;;  %v8561_v34 = vld [vmem:[#allocation5_spill] sm:$0xff]  ;;  %v4379_v11 = vrot.slane %v3863_v51, 4  ;;  %v8564_v44 = vld [vmem:[#allocation71_spill] sm:$0xff]  ;;  %v8566_v21 = vld [vmem:[#allocation10_spill] sm:$0xff] }
 0x425   :  { %v7824_v33 = vpop.permute.xlu1 %2386  ;;  %v2861_v24 = vpop.permute.xlu0 %2860  ;;  %v2014_v43 = vsel %vm608_vm11, %v2012_v28, %v8556_v50  ;;  %v1074_v1 = vsel %vm602_vm9, %v1072_v23, %v8560_v61  ;;  %v1086_v29 = vsel %vm599_vm8, %v1084_v47, %v8561_v34  ;;  %v3401_v59 = vsel %vm605_vm10, %v3399_v63, %v7671_v16  ;;  %v8565_v36 = vld [vmem:[#allocation97_spill] sm:$0xff]  ;;  %v8568_v39 = vld [vmem:[#allocation115_spill] sm:$0xff]  ;;  %v8569_v0 = vld [vmem:[#allocation16_spill] sm:$0xff] }
 0x426   :  { %v1088_v32 = vsel %vm602_vm9, %v1086_v29, %v8562_v4  ;;  %v4355_v8 = vrot.slane %v2014_v43, 4  ;;  %v2016_v13 = vsel %vm590_vm5, %v8564_v44, %v8563_v40  ;;  %v1549_v18 = vsel %vm605_vm10, %v1547_v6, %v8565_v36  ;;  %v8567_v47 = vld [vmem:[#allocation73_spill] sm:$0xff]  ;;  %v8570_v50 = vld [vmem:[#allocation99_spill] sm:$0xff]  ;;  %v8571_v5 = vld [vmem:[#allocation90_spill] sm:$0xff] }
 0x427   :  { %v1526_v16 = vsel %vm590_vm5, %v8567_v47, %v8566_v21  ;;  %v2018_v28 = vsel %vm593_vm6, %v2016_v13, %v8568_v39  ;;  %v1537_v2 = vsel %vm608_vm11, %v1535_v20, %v8569_v0  ;;  %v1551_v43 = vsel %vm608_vm11, %v1549_v18, %v8570_v50  ;;  %v8572_v15 = vld [vmem:[#allocation116_spill] sm:$0xff]  ;;  %v8573_v23 = vld [vmem:[#allocation106_spill] sm:$0xff]  ;;  %v8574_v61 = vld [vmem:[#allocation21_spill] sm:$0xff] }
 0x428   :  { %v1076_v45 = vsel %vm605_vm10, %v1074_v1, %v8571_v5  ;;  %v2020_v6 = vsel %vm596_vm7, %v2018_v28, %v8572_v15  ;;  %v1090_v34 = vsel %vm605_vm10, %v1088_v32, %v8574_v61  ;;  %v8575_v29 = vld [vmem:[#allocation117_spill] sm:$0xff]  ;;  %v8577_v40 = vld [vmem:[#allocation118_spill] sm:$0xff]  ;;  %v2948_v13 = vsel %vm608_vm11, %v7629_v17, %v7667_v53  ;;  %v8579_v18 = vld [vmem:[#allocation11_spill] sm:$0xff] }
 0x429   :  { %v7860_v48 = vpop.permute.xlu1 %2450  ;;  %v3330_v62 = vpop.permute.xlu0 %3329  ;;  %v7886_v63 = vsel %vm608_vm11, %v1076_v45, %v8573_v23  ;;  %v2022_v20 = vsel %vm599_vm8, %v2020_v6, %v8575_v29  ;;  %v4392_v32 = vsel %vm4387_vm12, %v1537_v2, %v4355_v8  ;;  %v8581_v21 = vld [vmem:[#allocation78_spill] sm:$0xff]  ;;  %v8583_v28 = vld [vmem:[#allocation120_spill] sm:$0xff]  ;;  %v3400_v17 = vsel %vm602_vm9, %v7578_v26, %v7639_v22  ;;  %v8584_v6 = vld [vmem:[#allocation127_spill] sm:$0xff] }
 0x42a   :  { %v3403_v14 = vsel %vm608_vm11, %v3401_v59, %v3330_v62  ;;  %v8576_v62 = vld [vmem:[#allocation19_spill] sm:$0xff]  ;;  %v2024_v44 = vsel %vm602_vm9, %v2022_v20, %v8577_v40  ;;  %v2484_v8 = vsel %vm602_vm9, %v7613_v52, %v7657_v25  ;;  %v2932_v0 = vsel %vm605_vm10, %v7621_v56, %v7663_v42  ;;  %v8585_v26 = vld [vmem:[#allocation86_spill] sm:$0xff]  ;;  %v8587_v42 = vld [vmem:[#allocation92_spill] sm:$0xff] }
 0x42b   :  { %v4400_v51 = vsel %vm4387_vm12, %v3403_v14, %v4379_v11  ;;  %v3864_v11 = vsel %vm608_vm11, %v7593_v60, %v7647_v38  ;;  %v1528_v4 = vsel %vm593_vm6, %v1526_v16, %v8576_v62  ;;  %v8578_v14 = vld [vmem:[#allocation9_spill] sm:$0xff]  ;;  %v8580_v38 = vld [vmem:[#allocation14_spill] sm:$0xff]  ;;  %v8582_v16 = vld [vmem:[#allocation119_spill] sm:$0xff]  ;;  %v4368_v2 = vrot.slane %v2948_v13, 4 }
 0x42c   :  { %4440 = vmatpush1.msra.mxu0 %v4400_v51  ;;  %v7905_v36 = vsel %vm608_vm11, %v1090_v34, %v8578_v14  ;;  %v1530_v60 = vsel %vm596_vm7, %v1528_v4, %v8579_v18  ;;  %v1540_v47 = vsel %vm590_vm5, %v8581_v21, %v8580_v38  ;;  %v2026_v39 = vsel %vm605_vm10, %v2024_v44, %v8582_v16  ;;  %v8586_v56 = vld [vmem:[#allocation134_spill] sm:$0xff]  ;;  %v8588_v20 = vld [vmem:[#allocation128_spill] sm:$0xff]  ;;  %v8590_v40 = vld [vmem:[#allocation129_spill] sm:$0xff] }
 0x42d   :  { %v2863_v59 = vpop.permute.xlu1 %2862  ;;  %v2393_v1 = vpop.permute.xlu0 %2392  ;;  %v2028_v51 = vsel %vm608_vm11, %v2026_v39, %v8583_v28  ;;  %v4381_v53 = vrot.slane %v3864_v11, 4  ;;  %v3402_v50 = vsel %vm605_vm10, %v3400_v17, %v7720_v3  ;;  %v2486_v5 = vsel %vm605_vm10, %v2484_v8, %v7792_v46  ;;  %v8589_v11 = vld [vmem:[#allocation135_spill] sm:$0xff]  ;;  %v8592_v21 = vld [vmem:[#allocation130_spill] sm:$0xff]  ;;  %v8593_v39 = vld [vmem:[#allocation137_spill] sm:$0xff] }
 0x42e   :  { %v2003_v22 = vsel %vm590_vm5, %v8585_v26, %v8584_v6  ;;  %v2934_v23 = vsel %vm608_vm11, %v2932_v0, %v2861_v24  ;;  %v2017_v61 = vsel %vm590_vm5, %v8587_v42, %v8586_v56  ;;  %v2468_v3 = vsel %vm599_vm8, %v7609_v31, %v7653_v30  ;;  %v8591_v31 = vld [vmem:[#allocation136_spill] sm:$0xff]  ;;  %v8594_v17 = vld [vmem:[#allocation98_spill] sm:$0xff]  ;;  %v8595_v8 = vld [vmem:[#allocation131_spill] sm:$0xff] }
 0x42f   :  { %v4356_v29 = vrot.slane %v2028_v51, 4  ;;  %v2005_v24 = vsel %vm593_vm6, %v2003_v22, %v8588_v20  ;;  %v2019_v62 = vsel %vm593_vm6, %v2017_v61, %v8589_v11  ;;  %v2470_v4 = vsel %vm602_vm9, %v2468_v3, %v7755_v37  ;;  %v8596_v0 = vld [vmem:[#allocation138_spill] sm:$0xff]  ;;  %v8600_v56 = vld [vmem:[#allocation133_spill] sm:$0xff]  ;;  %v8602_v61 = vld [vmem:[#allocation20_spill] sm:$0xff] }
 0x430   :  { %v2007_v44 = vsel %vm596_vm7, %v2005_v24, %v8590_v40  ;;  %v2021_v30 = vsel %vm596_vm7, %v2019_v62, %v8591_v31  ;;  %v4367_v13 = vrot.slane %v2934_v23, 4  ;;  %v2472_v14 = vsel %vm605_vm10, %v2470_v4, %v2393_v1  ;;  %v8605_v24 = vld [vmem:[#allocation122_spill] sm:$0xff]  ;;  %v8606_v4 = vld [vmem:[#allocation49_spill] sm:$0xff] }
 0x431   :  { %v3332_v45 = vpop.permute.xlu1 %3331  ;;  %v2457_v15 = vpop.permute.xlu0 %2456  ;;  %v2009_v16 = vsel %vm599_vm8, %v2007_v44, %v8592_v21  ;;  %v2023_v28 = vsel %vm599_vm8, %v2021_v30, %v8593_v39  ;;  %v2949_v37 = vsel %vm608_vm11, %v7637_v55, %v7690_v27  ;;  %v2485_v55 = vsel %vm602_vm9, %v7625_v12, %v7665_v19 }
 0x432   :  { %v3404_v52 = vsel %vm608_vm11, %v3402_v50, %v3332_v45  ;;  %v2488_v25 = vsel %vm608_vm11, %v2486_v5, %v2457_v15  ;;  %v2011_v1 = vsel %vm602_vm9, %v2009_v16, %v8595_v8  ;;  %v8597_v5 = vld [vmem:[#allocation132_spill] sm:$0xff]  ;;  %v8598_v15 = vld [vmem:[#allocation139_spill] sm:$0xff]  ;;  %v4393_v27 = vsel %vm4387_vm12, %v1551_v43, %v4356_v29  ;;  %v4404_v43 = vld [vmem:[%s8052_s1] sm:$0xff] }
 0x433   :  { %v4397_v46 = vsel %vm4387_vm12, %v2488_v25, %v4368_v2  ;;  %v4402_v34 = vsel %vm4387_vm12, %v3404_v52, %v4381_v53  ;;  %v1542_v53 = vsel %vm593_vm6, %v1540_v47, %v8594_v17  ;;  %v2025_v2 = vsel %vm602_vm9, %v2023_v28, %v8596_v0  ;;  %v8599_v47 = vld [vmem:[#allocation140_spill] sm:$0xff]  ;;  %v8610_v16 = vld [vmem:[#allocation42_spill] sm:$0xff]  ;;  %v8614_v8 = vld [vmem:[#allocation51_spill] sm:$0xff] }
 0x434   :  { %4441 = vmatprep.subr.mxu0 %v4397_v46  ;;  %4527 = vmatpush1.msra.mxu1 %v4402_v34  ;;  %v2013_v45 = vsel %vm605_vm10, %v2011_v1, %v8597_v5  ;;  %v2027_v6 = vsel %vm605_vm10, %v2025_v2, %v8598_v15  ;;  %v2933_v22 = vsel %vm605_vm10, %v7634_v41, %v7669_v58  ;;  %v4370_v23 = vrot.slane %v2949_v37, 4  ;;  %v8601_v41 = vld [vmem:[#allocation94_spill] sm:$0xff]  ;;  %v8604_v34 = vld [vmem:[#allocation17_spill] sm:$0xff]  ;;  %v8612_v37 = vld [vmem:[#allocation35_spill] sm:$0xff] }
 0x435   :  { %v2395_v18 = vpop.permute.xlu1 %2394  ;;  %v2401_v38 = vpop.permute.xlu0 %2400  ;;  %v2029_v26 = vsel %vm608_vm11, %v2027_v6, %v8599_v47  ;;  %v2487_v52 = vsel %vm605_vm10, %v2485_v55, %v7860_v48  ;;  %v2015_v42 = vsel %vm608_vm11, %v2013_v45, %v8600_v56  ;;  %v2935_v12 = vsel %vm608_vm11, %v2933_v22, %v2863_v59 }
 0x436   :  { %v2474_v51 = vsel %vm608_vm11, %v2472_v14, %v2401_v38  ;;  %v1532_v58 = vsel %vm599_vm8, %v1530_v60, %v8601_v41  ;;  %v1544_v48 = vsel %vm596_vm7, %v1542_v53, %v8602_v61  ;;  %v2469_v3 = vsel %vm599_vm8, %v7617_v54, %v7661_v9 }
 0x437   :  { %v4396_v50 = vsel %vm4387_vm12, %v2474_v51, %v4367_v13  ;;  %v1546_v29 = vsel %vm599_vm8, %v1544_v48, %v8604_v34  ;;  %v4358_v20 = vrot.slane %v2029_v26, 4  ;;  %v2471_v60 = vsel %vm602_vm9, %v2469_v3, %v7824_v33  ;;  %v8607_v33 = vld [vmem:[#allocation124_spill] sm:$0xff] }
 0x438   :  { %4442 = vmatpush1.msra.mxu0 %v4396_v50  ;;  %v1548_v54 = vsel %vm602_vm9, %v1546_v29, %v8605_v24  ;;  %v4357_v9 = vrot.slane %v2015_v42, 4  ;;  %v2473_v11 = vsel %vm605_vm10, %v2471_v60, %v2395_v18  ;;  %v604_v40 = vsel %vm602_vm9, %v7738_v35, %v8606_v4  ;;  %v8608_v13 = vld [vmem:[#allocation96_spill] sm:$0xff]  ;;  %v8609_v18 = vld [vmem:[#allocation126_spill] sm:$0xff] }
 0x439   :  { %v2459_v25 = vpop.permute.xlu1 %2458  ;;  %4443 = vmatprep.subr.mxu0 %v4393_v27  ;;  %v4346_v44 = vrot.slane %v7905_v36, 4  ;;  %v4345_v30 = vrot.slane %v7886_v63, 4  ;;  %v622_v35 = vsel %vm605_vm10, %v7773_v10, %v8610_v16  ;;  %v8611_v36 = vld [vmem:[#allocation13_spill] sm:$0xff]  ;;  %v607_v63 = vsel %vm605_vm10, %v604_v40, %v8612_v37  ;;  %v8613_v51 = vld [vmem:[#allocation60_spill] sm:$0xff] }
 0x43a   :  { %v2489_v19 = vsel %vm608_vm11, %v2487_v52, %v2459_v25  ;;  %4444 = vmatpush1.msra.mxu0 %v4392_v32  ;;  %v8603_v32 = vld [vmem:[#allocation12_spill] sm:$0xff]  ;;  %v624_v17 = vsel %vm608_vm11, %v622_v35, %v8613_v51  ;;  %v610_v1 = vsel %vm608_vm11, %v607_v63, %v8614_v8 }
 0x43b   :  { %4445 = vmatprep.subr.mxu0 %v7840_v49  ;;  %v4399_v59 = vsel %vm4387_vm12, %v2489_v19, %v4370_v23  ;;  %v1534_v46 = vsel %vm602_vm9, %v1532_v58, %v8603_v32  ;;  %v4369_v49 = vrot.slane %v2935_v12, 4  ;;  %v4391_v10 = vsel %vm4387_vm12, %v624_v17, %v4346_v44  ;;  %v4589_v19 = vld [vmem:[%s8053_s2] sm:$0xff] }
 0x43c   :  { %4446 = vmatpush1.msra.mxu0 %v7843_v7  ;;  %4528 = vmatprep.subr.mxu1 %v4399_v59  ;;  %v1550_v7 = vsel %vm605_vm10, %v1548_v54, %v8607_v33  ;;  %v1536_v14 = vsel %vm605_vm10, %v1534_v46, %v8608_v13  ;;  %v4390_v0 = vsel %vm4387_vm12, %v610_v1, %v4345_v30 }
 0x43d   :  { %v2403_v62 = vpop.permute.xlu1 %2402  ;;  %4600 = vmatmul.mubr.msk.f32.vlgmr.msra.gmra.mxu0 %vm4405_vm13, %v4404_v43  ;;  %v1552_v38 = vsel %vm608_vm11, %v1550_v7, %v8609_v18  ;;  %v1538_v39 = vsel %vm608_vm11, %v1536_v14, %v8611_v36 }
 0x43e   :  { %v2475_v31 = vsel %vm608_vm11, %v2473_v11, %v2403_v62  ;;  %v4395_v28 = vsel %vm4387_vm12, %v1552_v38, %v4358_v20  ;;  %v4394_v53 = vsel %vm4387_vm12, %v1538_v39, %v4357_v9 }
 0x43f   :  { %v4398_v21 = vsel %vm4387_vm12, %v2475_v31, %v4369_v49 }
 0x440   :  { %4529 = vmatpush1.msra.mxu1 %v4398_v21 }
 0x441   :  { %4530 = vmatprep.subr.mxu1 %v4395_v28 }
 0x442   :  { %4531 = vmatpush1.msra.mxu1 %v4394_v53 }
 0x443   :  { %4532 = vmatprep.subr.mxu1 %v4391_v10 }
 0x444   :  { %4533 = vmatpush1.msra.mxu1 %v4390_v0 }
 0x445   :  { %4603 = vmatmul.mubr.msk.f32.vlgmr.msra.gmra.mxu1 %vm4405_vm13, %v4404_v43 }
 0x4fd   :  { %v4481_v2 = vpop.f32.mrf.mxu0 }
 0x4fe   :  { %v4490_v50 = vmul.f32 %v4481_v2, %v4481_v2 }
 0x4ff   :  { %v4483_v5 = vpop.f32.mrf.mxu0 }
 0x500   :  { %v4486_v45 = vadd.f32 %v4483_v5, %v4481_v2  ;;  %v4491_v15 = vmul.f32 %v4483_v5, %v4483_v5 }
 0x502   :  { %v4492_v6 = vadd.f32 %v4491_v15, %v4490_v50  ;;  %4487 = vadd.xlane.f32.xlu0 %v4486_v45 }
 0x504   :  { %4493 = vadd.xlane.f32.xlu1 %v4492_v6 }
 0x505   :  { %v4568_v55 = vpop.f32.mrf.mxu1 }
 0x506   :  { %v4577_v22 = vmul.f32 %v4568_v55, %v4568_v55 }
 0x507   :  { %v4570_v27 = vpop.f32.mrf.mxu1 }
 0x508   :  { %v4573_v47 = vadd.f32 %v4570_v27, %v4568_v55  ;;  %v4578_v26 = vmul.f32 %v4570_v27, %v4570_v27 }
 0x50a   :  { %4574 = vadd.xlane.f32.xlu0 %v4573_v47  ;;  %v4579_v23 = vadd.f32 %v4578_v26, %v4577_v22 }
 0x50e   :  { %4580 = vadd.xlane.f32.xlu0 %v4579_v23 }
 0x58b   :  { %v4488_v52 = vpop.xlane.xlu0 %4487 }
 0x58d   :  { %v4494_v56 = vpop.xlane.xlu1 %4493 }
 0x593   :  { %v4575_v25 = vpop.xlane.xlu0 %4574 }
 0x594   :  { %v4576_v12 = vadd.f32 %v4575_v25, %v4488_v52 }
 0x597   :  { %v4581_v42 = vpop.xlane.xlu0 %4580 }
 0x598   :  { %v4582_v43 = vadd.f32 %v4581_v42, %v4494_v56 }
 0x59a   :  { %v4590_v41 = vsel %vm91_vm0, %v4576_v12, %v4582_v43 }
 0x59b   :  { %v4591_v58 = vadd.f32 %v4590_v41, %v4589_v19 }
 0x59d   :  { %4593 = vst.msk [vmem:[%s8053_s2] sm:$0xff] %vm4587_vm14, %v4591_v58 }

</bundles_post_ra>
